<compile_context>
chip_gen: v7x
topology: tpu7x:2x2x1
jax: 0.10.0
libtpu: 0.0.40
codegen_flags: <defaults>
</compile_context>

<pallas_src>
import functools
import math

import jax
import jax.numpy as jnp
from jax.experimental import pallas as pl
from jax.experimental.pallas import tpu as pltpu


ENC_LAYER_KEYS = ("wv", "bv", "wo", "bo", "w1", "b1", "w2", "b2",
                  "g1", "be1", "g2", "be2")
PRED_LAYER_KEYS = ("wqkv", "bqkv", "wo", "bo", "w1", "b1", "w2", "b2",
                   "g1", "be1", "g2", "be2")


# ----------------------------- kernel helpers ------------------------------


def _layernorm(x, g, b, eps=1e-5):
    mu = jnp.mean(x, axis=-1, keepdims=True)
    xc = x - mu
    var = jnp.mean(xc * xc, axis=-1, keepdims=True)
    return xc * jax.lax.rsqrt(var + eps) * g + b


def _softmax_last(s):
    s = s - jnp.max(s, axis=-1, keepdims=True)
    p = jnp.exp(s)
    # EUP approx reciprocal: frees VPU divide slots; denom >= 1 so it's stable.
    return p * pl.reciprocal(jnp.sum(p, axis=-1, keepdims=True), approx=True)


# ------------------------------ Pallas kernels ------------------------------


def _embed_kernel(inp_ref, ew_ref, eb_ref, pe_ref, o_ref):
    """board_embed (bf16 weights, f32 accumulate) + bias + pos_embed."""
    h = jnp.dot(inp_ref[...].astype(jnp.bfloat16), ew_ref[...],
                preferred_element_type=jnp.float32)
    o_ref[...] = (h + eb_ref[...] + pe_ref[...]).astype(o_ref.dtype)


def _encoder_stack_kernel(x_ref, wv_ref, bv_ref, wo_ref, bo_ref,
                          w1_ref, b1_ref, w2_ref, b2_ref,
                          g1_ref, be1_ref, g2_ref, be2_ref,
                          o_ref, *, layers_per_step):
    """All ViTEncoder transformer layers.  grid = (row_tiles, layer_steps).

    seq_len == 1 (board_size == 1): softmax over one key is exactly 1, so MHA
    reduces exactly to the V projection -> only wv/bv/wo/bo are used.
    Activations stay resident in o_ref (f32) across the whole layer chain.
    """
    @pl.when(pl.program_id(1) == 0)
    def _init():
        o_ref[...] = x_ref[...]

    x = o_ref[...].astype(jnp.float32)
    for j in range(layers_per_step):
        v = jnp.dot(x.astype(jnp.bfloat16), wv_ref[j],
                    preferred_element_type=jnp.float32) + bv_ref[j]
        attn = jnp.dot(v.astype(jnp.bfloat16), wo_ref[j],
                       preferred_element_type=jnp.float32) + bo_ref[j]
        # TODO(synk): dropout (p=0.1, train mode in the reference) has no
        # deterministic equivalent; eval-mode (identity) semantics are used.
        h = _layernorm(x + attn, g1_ref[j], be1_ref[j])
        ff = jnp.dot(h.astype(jnp.bfloat16), w1_ref[j],
                     preferred_element_type=jnp.float32) + b1_ref[j]
        ff = jnp.maximum(ff, 0.0)                       # ReLU (PyTorch default)
        ff = jnp.dot(ff.astype(jnp.bfloat16), w2_ref[j],
                     preferred_element_type=jnp.float32) + b2_ref[j]
        x = _layernorm(h + ff, g2_ref[j], be2_ref[j])
    o_ref[...] = x.astype(o_ref.dtype)


def _predictor_stack_kernel(ctx_ref, pos_ref,
                            wqkv_ref, bqkv_ref, wo_ref, bo_ref,
                            w1_ref, b1_ref, w2_ref, b2_ref,
                            g1_ref, be1_ref, g2_ref, be2_ref,
                            o_ref, *, layers_per_step, seq_len, cols_per_tile,
                            num_ctx_cols, num_heads):
    """All ViTPredictor transformer layers.  grid = (col_tiles, layer_steps).

    Each row tile is `cols_per_tile` whole torch-batch columns (attention over
    seq_len is fully contained in the tile).  The input assembly (ctx tokens /
    broadcast pos_embed) is fused into layer-step 0.
    """
    M, D = o_ref.shape
    is_first = pl.program_id(1) == 0
    is_ctx_tile = pl.program_id(0) * cols_per_tile < num_ctx_cols

    @pl.when(jnp.logical_and(is_first, is_ctx_tile))
    def _init_ctx():
        o_ref[...] = ctx_ref[...].reshape(M, D).astype(o_ref.dtype)

    @pl.when(jnp.logical_and(is_first, jnp.logical_not(is_ctx_tile)))
    def _init_pos():
        o_ref[...] = jnp.broadcast_to(pos_ref[...], (M, D)).astype(o_ref.dtype)

    x = o_ref[...].astype(jnp.float32)
    B, L, H = cols_per_tile, seq_len, num_heads
    hd = D // H
    scale = 1.0 / (hd ** 0.5)

    def _heads(t):  # (M, D) -> (B*H, L, hd)
        return jnp.transpose(t.reshape(B, L, H, hd), (0, 2, 1, 3)).reshape(B * H, L, hd)

    for j in range(layers_per_step):
        qkv = jnp.dot(x.astype(jnp.bfloat16), wqkv_ref[j],
                      preferred_element_type=jnp.float32) + bqkv_ref[j]
        q = _heads(qkv[:, 0:D]) * scale
        k = _heads(qkv[:, D:2 * D])
        v = _heads(qkv[:, 2 * D:3 * D])
        s = jnp.einsum('zqd,zkd->zqk', q.astype(jnp.bfloat16),
                       k.astype(jnp.bfloat16),
                       preferred_element_type=jnp.float32)
        p = _softmax_last(s)
        c = jnp.einsum('zqk,zkd->zqd', p.astype(jnp.bfloat16),
                       v.astype(jnp.bfloat16),
                       preferred_element_type=jnp.float32)
        attn = jnp.transpose(c.reshape(B, H, L, hd), (0, 2, 1, 3)).reshape(M, D)
        attn = jnp.dot(attn.astype(jnp.bfloat16), wo_ref[j],
                       preferred_element_type=jnp.float32) + bo_ref[j]
        # TODO(synk): dropout (train mode in the reference) replaced by identity.
        h = _layernorm(x + attn, g1_ref[j], be1_ref[j])
        ff = jnp.dot(h.astype(jnp.bfloat16), w1_ref[j],
                     preferred_element_type=jnp.float32) + b1_ref[j]
        ff = jnp.maximum(ff, 0.0)
        ff = jnp.dot(ff.astype(jnp.bfloat16), w2_ref[j],
                     preferred_element_type=jnp.float32) + b2_ref[j]
        x = _layernorm(h + ff, g2_ref[j], be2_ref[j])
    o_ref[...] = x.astype(o_ref.dtype)


def _mse_kernel(a_ref, b_ref, o_ref, acc_ref, *, inv_count):
    """Tiled MSE: row-tile grid, SMEM sum-of-squares accumulator."""
    @pl.when(pl.program_id(0) == 0)
    def _init():
        acc_ref[0] = jnp.float32(0.0)

    d = a_ref[...].astype(jnp.float32) - b_ref[...].astype(jnp.float32)
    acc_ref[0] += jnp.sum(d * d)

    @pl.when(pl.program_id(0) == pl.num_programs(0) - 1)
    def _fin():
        o_ref[0, 0] = acc_ref[0] * inv_count


# ------------------------------ call wrappers -------------------------------


def _pick_row_tile(n, max_tile=256):
    """Largest legal row tile: full array, or a multiple-of-8 divisor of n."""
    if n <= max_tile:
        return n
    for t in range(max_tile, 7, -1):
        if t % 8 == 0 and n % t == 0:
            return t
    return n


def _per_layer_bytes(stacked):
    nl = next(iter(stacked.values())).shape[0]
    return sum(int(v.nbytes) for v in stacked.values()) // nl


def _pick_layers_per_step(num_layers, per_layer_bytes,
                          budget_bytes=8 << 20, max_unroll=4):
    """Amortize per-grid-step overhead: process k layers per step, bounded by a
    (double-buffered) weight VMEM budget and a small unroll cap."""
    k = 1
    for cand in range(1, num_layers + 1):
        if num_layers % cand:
            continue
        if cand > max_unroll or 2 * cand * per_layer_bytes > budget_bytes:
            break
        k = cand
    return k


def _vmem_limit_bytes(step_weight_bytes, act_block_bytes):
    # double-buffered per-step weights + a few activation blocks + slack,
    # capped at 64 MiB so the same budget is valid on v7x (64 MiB physical).
    need = 2 * step_weight_bytes + 8 * act_block_bytes + (4 << 20)
    return int(min(max(need, 16 << 20), 64 << 20))


def _stacked_specs(stacked, keys, layers_per_step):
    specs = []
    for name in keys:
        tail = stacked[name].shape[1:]
        specs.append(pl.BlockSpec((layers_per_step,) + tail,
                                  lambda m, l: (l, 0, 0)))
    return specs


def vit_encoder_forward(params, inp):
    """ViTEncoder.forward on inp: (M, F) -> (M, D)."""
    M, F = inp.shape
    D = params["embed_w"].shape[1]
    tm = _pick_row_tile(M)

    # (a) board_embed + pos_embed in its own tiny call so embed_w is not kept
    #     resident in VMEM for the whole layer stack (v7x VMEM budget).
    x0 = pl.pallas_call(
        _embed_kernel,
        out_shape=jax.ShapeDtypeStruct((M, D), jnp.float32),
        grid=(M // tm,),
        in_specs=[pl.BlockSpec((tm, F), lambda m: (m, 0)),
                  pl.BlockSpec((F, D), lambda m: (0, 0)),
                  pl.BlockSpec((1, D), lambda m: (0, 0)),
                  pl.BlockSpec((1, D), lambda m: (0, 0))],
        out_specs=pl.BlockSpec((tm, D), lambda m: (m, 0)),
        compiler_params=pltpu.CompilerParams(dimension_semantics=("parallel",)),
    )(inp, params["embed_w"], params["embed_b"], params["pos_embed"])

    # (b) all transformer layers in one call; activations resident in VMEM.
    stacked = params["stacked"]
    nl = stacked["wv"].shape[0]
    plb = _per_layer_bytes(stacked)
    k = _pick_layers_per_step(nl, plb)
    return pl.pallas_call(
        functools.partial(_encoder_stack_kernel, layers_per_step=k),
        out_shape=jax.ShapeDtypeStruct((M, D), jnp.float32),
        grid=(M // tm, nl // k),
        in_specs=[pl.BlockSpec((tm, D), lambda m, l: (m, 0))]
                 + _stacked_specs(stacked, ENC_LAYER_KEYS, k),
        out_specs=pl.BlockSpec((tm, D), lambda m, l: (m, 0)),
        compiler_params=pltpu.CompilerParams(
            dimension_semantics=("parallel", "arbitrary"),
            vmem_limit_bytes=_vmem_limit_bytes(k * plb, tm * D * 4)),
    )(x0, *[stacked[key] for key in ENC_LAYER_KEYS])


def vit_predictor_forward(params, ctx_tokens, num_targets, num_heads):
    """ViTPredictor.forward.  ctx_tokens: (N, P, D); returns (N, T, D)."""
    N, P, D = ctx_tokens.shape
    T = num_targets
    Bc = P + T               # torch-batch size of the batch_first=False transformer
    stacked = params["stacked"]
    nl = stacked["wqkv"].shape[0]

    # Batch-major context columns (P, N, D).  With P == 1 (the only config the
    # reference forward runs) this transpose is a free reshape.
    ctx_bm = jnp.transpose(ctx_tokens, (1, 0, 2))
    pos = params["pos_embed"].reshape(1, D)

    # Column tile: divides both P and Bc, so a tile is never part-ctx/part-pos.
    # (Assumes N = batch*seq_length keeps tc*N a multiple of 8; true here.)
    tc = math.gcd(P, T)
    n_ctx_blocks = P // tc
    plb = _per_layer_bytes(stacked)
    k = _pick_layers_per_step(nl, plb)

    out = pl.pallas_call(
        functools.partial(_predictor_stack_kernel, layers_per_step=k,
                          seq_len=N, cols_per_tile=tc, num_ctx_cols=P,
                          num_heads=num_heads),
        out_shape=jax.ShapeDtypeStruct((Bc * N, D), jnp.float32),
        grid=(Bc // tc, nl // k),
        in_specs=[pl.BlockSpec((tc, N, D),
                               lambda m, l: (jnp.minimum(m, n_ctx_blocks - 1), 0, 0)),
                  pl.BlockSpec((1, D), lambda m, l: (0, 0))]
                 + _stacked_specs(stacked, PRED_LAYER_KEYS, k),
        out_specs=pl.BlockSpec((tc * N, D), lambda m, l: (m, 0)),
        compiler_params=pltpu.CompilerParams(
            dimension_semantics=("parallel", "arbitrary"),
            vmem_limit_bytes=_vmem_limit_bytes(k * plb, tc * N * D * 4)),
    )(ctx_bm, pos, *[stacked[key] for key in PRED_LAYER_KEYS])

    out_bm = out.reshape(Bc, N, D)
    # torch: out[:, -T:, :]  ==  last T batch columns, returned as (N, T, D).
    return jnp.transpose(out_bm[P:], (1, 0, 2))


def mse(a, b):
    a2 = a.reshape(-1, a.shape[-1]).astype(jnp.float32)
    b2 = b.reshape(-1, b.shape[-1]).astype(jnp.float32)
    R, D = a2.shape
    tr = _pick_row_tile(R, max_tile=1024)
    out = pl.pallas_call(
        functools.partial(_mse_kernel, inv_count=1.0 / float(R * D)),
        out_shape=jax.ShapeDtypeStruct((1, 1), jnp.float32),
        grid=(R // tr,),
        in_specs=[pl.BlockSpec((tr, D), lambda r: (r, 0)),
                  pl.BlockSpec((tr, D), lambda r: (r, 0))],
        out_specs=pl.BlockSpec((1, 1), lambda r: (0, 0),
                               memory_space=pltpu.MemorySpace.SMEM),
        scratch_shapes=[pltpu.SMEM((1,), jnp.float32)],
        compiler_params=pltpu.CompilerParams(dimension_semantics=("arbitrary",)),
    )(a2, b2)
    return out[0, 0]


# ------------------------------- Model glue ---------------------------------


def vjepa_forward(params, x, context_mask, target_masks, *,
                  board_size, seq_length, num_heads):
    P = board_size ** 2
    F = P * 12
    S = seq_length
    T = target_masks.shape[1]

    x = x.reshape(-1, S, F)
    context_boards = x * context_mask.reshape(-1, S, P)               # as in reference
    target_boards = x[:, :, None, :] * target_masks.reshape(-1, S, 1, F)

    ctx = vit_encoder_forward(params["context_encoder"],
                              context_boards.reshape(-1, F))
    D = ctx.shape[-1]
    context_reps = ctx.reshape(-1, S, P, D)

    # target encoder: torch.no_grad() + eval() in the reference.
    tgt = vit_encoder_forward(params["target_encoder"],
                              target_boards.reshape(-1, F))
    tgt = jax.lax.stop_gradient(tgt)
    target_reps = tgt.reshape(-1, S, T, P, D)

    # torch.nonzero(target_masks.flatten(1))[:, 1] is only consumed through its
    # shape (pos.shape[1] == T, static), so the scan/gather is dropped entirely.
    pred = vit_predictor_forward(params["predictor"],
                                 context_reps.reshape(-1, P, D), T, num_heads)
    pred_reps = pred.reshape(-1, S, T, P, D)

    # mean_i[ mean((pred[i]-target[i])**2) ] == global MSE (equal counts per i).
    return mse(pred_reps, target_reps)


# --------------------------- Parameter initialization ------------------------


def _nrm(key, shape, scale=0.02, dtype=jnp.bfloat16):
    # Matmul weights are stored bf16 (MXU-native, half the HBM->VMEM stream).
    return (scale * jax.random.normal(key, shape, jnp.float32)).astype(dtype)


def _zeros_f32(n):
    return jnp.zeros((1, n), jnp.float32)


def init_encoder_layer_params(key, D):
    ks = jax.random.split(key, 4)
    return {
        # seq_len == 1 for the encoders (board_size == 1): softmax over one key
        # is exactly 1, so MHA == V projection -> only V + out-proj are stored.
        "wv": _nrm(ks[0], (D, D)), "bv": _zeros_f32(D),
        "wo": _nrm(ks[1], (D, D)), "bo": _zeros_f32(D),
        "w1": _nrm(ks[2], (D, 4 * D)), "b1": _zeros_f32(4 * D),
        "w2": _nrm(ks[3], (4 * D, D)), "b2": _zeros_f32(D),
        "g1": jnp.ones((1, D), jnp.float32), "be1": _zeros_f32(D),
        "g2": jnp.ones((1, D), jnp.float32), "be2": _zeros_f32(D),
    }


def init_predictor_layer_params(key, D):
    ks = jax.random.split(key, 6)
    return {
        # q|k|v projection weights fused into one (D, 3D) matmul operand.
        "wqkv": jnp.concatenate([_nrm(ks[0], (D, D)), _nrm(ks[1], (D, D)),
                                 _nrm(ks[2], (D, D))], axis=1),
        "bqkv": _zeros_f32(3 * D),
        "wo": _nrm(ks[3], (D, D)), "bo": _zeros_f32(D),
        "w1": _nrm(ks[4], (D, 4 * D)), "b1": _zeros_f32(4 * D),
        "w2": _nrm(ks[5], (4 * D, D)), "b2": _zeros_f32(D),
        "g1": jnp.ones((1, D), jnp.float32), "be1": _zeros_f32(D),
        "g2": jnp.ones((1, D), jnp.float32), "be2": _zeros_f32(D),
    }


def _stack_layers(layers, keys):
    # Stack per-layer weights along a leading num_layers axis so the fused
    # stack kernels index one block of layers per grid step (auto prefetch).
    return {k: jnp.stack([lp[k] for lp in layers], axis=0) for k in keys}


def init_encoder_params(key, board_size, D, num_layers):
    P = board_size ** 2
    F = P * 12
    k1, k2 = jax.random.split(key)
    layers = [init_encoder_layer_params(k, D) for k in jax.random.split(k2, num_layers)]
    return {
        "embed_w": _nrm(k1, (F, D)),
        "embed_b": jnp.zeros((1, D), jnp.float32),
        # torch pos_embed is zeros(1, P, D); stored squeezed to (1, D) because
        # the reference forward only type-checks with P == 1.
        "pos_embed": jnp.zeros((1, D), jnp.float32),
        "stacked": _stack_layers(layers, ENC_LAYER_KEYS),
    }


def init_predictor_params(key, D, num_layers):
    layers = [init_predictor_layer_params(k, D)
              for k in jax.random.split(key, num_layers)]
    return {"pos_embed": jnp.zeros((1, D), jnp.float32),
            "stacked": _stack_layers(layers, PRED_LAYER_KEYS)}


# ----------------------------------- Main ------------------------------------


if __name__ == "__main__":
    board_size = 1          # only configuration for which the reference forward runs
    seq_length = 4
    batch = 2
    embed_dim = 128         # multiple of 128 -> lane-dense activations / MXU-friendly
    num_heads = 4
    enc_layers = 2
    pred_layers = 2
    num_targets = 1

    P = board_size ** 2
    F = P * 12

    key = jax.random.PRNGKey(0)
    kx, kc, kt, kp = jax.random.split(key, 4)

    x = jax.random.normal(kx, (batch, seq_length, F), jnp.float32)
    context_mask = (jax.random.uniform(kc, (batch, seq_length, P)) > 0.5
                    ).astype(jnp.float32)
    target_masks = (jax.random.uniform(kt, (batch, num_targets, seq_length, F)) > 0.5
                    ).astype(jnp.float32)

    pk = jax.random.split(kp, 3)
    params = {
        "context_encoder": init_encoder_params(pk[0], board_size, embed_dim, enc_layers),
        "target_encoder": init_encoder_params(pk[1], board_size, embed_dim, enc_layers),
        "predictor": init_predictor_params(pk[2], embed_dim, pred_layers),
    }

    fwd = jax.jit(functools.partial(vjepa_forward, board_size=board_size,
                                    seq_length=seq_length, num_heads=num_heads))
    loss = fwd(params, x, context_mask, target_masks)
    loss = jax.block_until_ready(loss)
    assert loss.shape == () and bool(jnp.isfinite(loss))
    print("KERNEL_OK")
</pallas_src>

<mosaic_0001>
module attributes {stable_mosaic.version = 11 : i64} {
  func.func @_embed_kernel(%arg0: i32, %arg1: memref<8x12xf32, #tpu.memory_space<vmem>>, %arg2: memref<12x128xbf16, #tpu.memory_space<vmem>>, %arg3: memref<1x128xf32, #tpu.memory_space<vmem>>, %arg4: memref<1x128xf32, #tpu.memory_space<vmem>>, %arg5: memref<8x128xf32, #tpu.memory_space<vmem>>) attributes {dimension_semantics = [#tpu.dimension_semantics<parallel>], iteration_bounds = array<i64: 1>, scalar_prefetch = 0 : i64, scratch_operands = 0 : i64, tpu.core_type = #tpu.core_type<tc>, window_params = [{transform_indices = @transform_0, window_bounds = array<i64: 8, 12>}, {pipeline_mode = #tpu.pipeline_mode<synchronous>, transform_indices = @transform_1, window_bounds = array<i64: 12, 128>}, {pipeline_mode = #tpu.pipeline_mode<synchronous>, transform_indices = @transform_2, window_bounds = array<i64: 1, 128>}, {pipeline_mode = #tpu.pipeline_mode<synchronous>, transform_indices = @transform_3, window_bounds = array<i64: 1, 128>}, {transform_indices = @transform_4, window_bounds = array<i64: 8, 128>}]} {
    %c0 = arith.constant 0 : index
    %c0_0 = arith.constant 0 : index
    %0 = vector.load %arg1[%c0, %c0_0] : memref<8x12xf32, #tpu.memory_space<vmem>>, vector<8x12xf32>
    %1 = arith.truncf %0 : vector<8x12xf32> to vector<8x12xbf16>
    %c0_1 = arith.constant 0 : index
    %c0_2 = arith.constant 0 : index
    %2 = vector.load %arg2[%c0_1, %c0_2] : memref<12x128xbf16, #tpu.memory_space<vmem>>, vector<12x128xbf16>
    %cst = arith.constant dense<0.000000e+00> : vector<8x128xf32>
    %3 = tpu.matmul %1, %2, %cst {dimension_numbers = #tpu.dot_dimension_numbers<[1], [0], [0], [1], [0, 0, 1, 1], [], []>} : vector<8x12xbf16>, vector<12x128xbf16>, vector<8x128xf32> -> vector<8x128xf32>
    %c0_3 = arith.constant 0 : index
    %c0_4 = arith.constant 0 : index
    %4 = vector.load %arg3[%c0_3, %c0_4] : memref<1x128xf32, #tpu.memory_space<vmem>>, vector<1x128xf32>
    %5 = vector.broadcast %4 : vector<1x128xf32> to vector<8x128xf32>
    %6 = arith.addf %3, %5 : vector<8x128xf32>
    %c0_5 = arith.constant 0 : index
    %c0_6 = arith.constant 0 : index
    %7 = vector.load %arg4[%c0_5, %c0_6] : memref<1x128xf32, #tpu.memory_space<vmem>>, vector<1x128xf32>
    %8 = vector.broadcast %7 : vector<1x128xf32> to vector<8x128xf32>
    %9 = arith.addf %6, %8 : vector<8x128xf32>
    %c0_7 = arith.constant 0 : index
    %c0_8 = arith.constant 0 : index
    %10 = vector.load %arg5[%c0_7, %c0_8] : memref<8x128xf32, #tpu.memory_space<vmem>>, vector<8x128xf32>
    tpu.vector_store %arg5[%c0_7, %c0_8], %9 {strides = array<i32>} : memref<8x128xf32, #tpu.memory_space<vmem>>, vector<8x128xf32>,
    return
  }
  func.func @transform_0(%arg0: i32) -> (i32, i32) {
    %c0_i32 = arith.constant 0 : i32
    %c0_i32_0 = arith.constant 0 : i32
    return %arg0, %c0_i32 : i32, i32
  }
  func.func @transform_1(%arg0: i32) -> (i32, i32) {
    %c0_i32 = arith.constant 0 : i32
    %c0_i32_0 = arith.constant 0 : i32
    %c0_i32_1 = arith.constant 0 : i32
    return %c0_i32, %c0_i32_0 : i32, i32
  }
  func.func @transform_2(%arg0: i32) -> (i32, i32) {
    %c0_i32 = arith.constant 0 : i32
    %c0_i32_0 = arith.constant 0 : i32
    %c0_i32_1 = arith.constant 0 : i32
    return %c0_i32, %c0_i32_0 : i32, i32
  }
  func.func @transform_3(%arg0: i32) -> (i32, i32) {
    %c0_i32 = arith.constant 0 : i32
    %c0_i32_0 = arith.constant 0 : i32
    %c0_i32_1 = arith.constant 0 : i32
    return %c0_i32, %c0_i32_0 : i32, i32
  }
  func.func @transform_4(%arg0: i32) -> (i32, i32) {
    %c0_i32 = arith.constant 0 : i32
    %c0_i32_0 = arith.constant 0 : i32
    return %arg0, %c0_i32 : i32, i32
  }
}

module attributes {stable_mosaic.version = 11 : i64} {
  func.func @_encoder_stack_kernel(%arg0: i32, %arg1: i32, %arg2: memref<8x128xf32, #tpu.memory_space<vmem>>, %arg3: memref<2x128x128xbf16, #tpu.memory_space<vmem>>, %arg4: memref<2x1x128xf32, #tpu.memory_space<vmem>>, %arg5: memref<2x128x128xbf16, #tpu.memory_space<vmem>>, %arg6: memref<2x1x128xf32, #tpu.memory_space<vmem>>, %arg7: memref<2x128x512xbf16, #tpu.memory_space<vmem>>, %arg8: memref<2x1x512xf32, #tpu.memory_space<vmem>>, %arg9: memref<2x512x128xbf16, #tpu.memory_space<vmem>>, %arg10: memref<2x1x128xf32, #tpu.memory_space<vmem>>, %arg11: memref<2x1x128xf32, #tpu.memory_space<vmem>>, %arg12: memref<2x1x128xf32, #tpu.memory_space<vmem>>, %arg13: memref<2x1x128xf32, #tpu.memory_space<vmem>>, %arg14: memref<2x1x128xf32, #tpu.memory_space<vmem>>, %arg15: memref<8x128xf32, #tpu.memory_space<vmem>>) attributes {dimension_semantics = [#tpu.dimension_semantics<parallel>, #tpu.dimension_semantics<arbitrary>], iteration_bounds = array<i64: 1, 1>, scalar_prefetch = 0 : i64, scratch_operands = 0 : i64, tpu.core_type = #tpu.core_type<tc>, window_params = [{transform_indices = @transform_0, window_bounds = array<i64: 8, 128>}, {transform_indices = @transform_1, window_bounds = array<i64: 2, 128, 128>}, {transform_indices = @transform_2, window_bounds = array<i64: 2, 1, 128>}, {transform_indices = @transform_3, window_bounds = array<i64: 2, 128, 128>}, {transform_indices = @transform_4, window_bounds = array<i64: 2, 1, 128>}, {transform_indices = @transform_5, window_bounds = array<i64: 2, 128, 512>}, {transform_indices = @transform_6, window_bounds = array<i64: 2, 1, 512>}, {transform_indices = @transform_7, window_bounds = array<i64: 2, 512, 128>}, {transform_indices = @transform_8, window_bounds = array<i64: 2, 1, 128>}, {transform_indices = @transform_9, window_bounds = array<i64: 2, 1, 128>}, {transform_indices = @transform_10, window_bounds = array<i64: 2, 1, 128>}, {transform_indices = @transform_11, window_bounds = array<i64: 2, 1, 128>}, {transform_indices = @transform_12, window_bounds = array<i64: 2, 1, 128>}, {transform_indices = @transform_13, window_bounds = array<i64: 8, 128>}]} {
    %c0_i32 = arith.constant 0 : i32
    %0 = arith.cmpi eq, %arg1, %c0_i32 : i32
    %1 = arith.extui %0 : i1 to i32
    %c0_i32_0 = arith.constant 0 : i32
    %2 = arith.cmpi ne, %1, %c0_i32_0 : i32
    scf.if %2 {
      %c0_104 = arith.constant 0 : index
      %c0_105 = arith.constant 0 : index
      %173 = vector.load %arg2[%c0_104, %c0_105] : memref<8x128xf32, #tpu.memory_space<vmem>>, vector<8x128xf32>
      %c0_106 = arith.constant 0 : index
      %c0_107 = arith.constant 0 : index
      %174 = vector.load %arg15[%c0_106, %c0_107] : memref<8x128xf32, #tpu.memory_space<vmem>>, vector<8x128xf32>
      tpu.vector_store %arg15[%c0_106, %c0_107], %173 {strides = array<i32>} : memref<8x128xf32, #tpu.memory_space<vmem>>, vector<8x128xf32>,
    } else {
    }
    %c0 = arith.constant 0 : index
    %c0_1 = arith.constant 0 : index
    %3 = vector.load %arg15[%c0, %c0_1] : memref<8x128xf32, #tpu.memory_space<vmem>>, vector<8x128xf32>
    %4 = arith.truncf %3 : vector<8x128xf32> to vector<8x128xbf16>
    %c0_2 = arith.constant 0 : index
    %c0_3 = arith.constant 0 : index
    %c0_4 = arith.constant 0 : index
    %5 = vector.load %arg3[%c0_2, %c0_3, %c0_4] : memref<2x128x128xbf16, #tpu.memory_space<vmem>>, vector<1x128x128xbf16>
    %6 = vector.shape_cast %5 : vector<1x128x128xbf16> to vector<128x128xbf16>
    %cst = arith.constant dense<0.000000e+00> : vector<8x128xf32>
    %7 = tpu.matmul %4, %6, %cst {dimension_numbers = #tpu.dot_dimension_numbers<[1], [0], [0], [1], [0, 0, 1, 1], [], []>} : vector<8x128xbf16>, vector<128x128xbf16>, vector<8x128xf32> -> vector<8x128xf32>
    %c0_5 = arith.constant 0 : index
    %c0_6 = arith.constant 0 : index
    %c0_7 = arith.constant 0 : index
    %8 = vector.load %arg4[%c0_5, %c0_6, %c0_7] : memref<2x1x128xf32, #tpu.memory_space<vmem>>, vector<1x1x128xf32>
    %9 = vector.shape_cast %8 : vector<1x1x128xf32> to vector<1x128xf32>
    %10 = vector.broadcast %9 : vector<1x128xf32> to vector<8x128xf32>
    %11 = arith.addf %7, %10 : vector<8x128xf32>
    %12 = arith.truncf %11 : vector<8x128xf32> to vector<8x128xbf16>
    %c0_8 = arith.constant 0 : index
    %c0_9 = arith.constant 0 : index
    %c0_10 = arith.constant 0 : index
    %13 = vector.load %arg5[%c0_8, %c0_9, %c0_10] : memref<2x128x128xbf16, #tpu.memory_space<vmem>>, vector<1x128x128xbf16>
    %14 = vector.shape_cast %13 : vector<1x128x128xbf16> to vector<128x128xbf16>
    %cst_11 = arith.constant dense<0.000000e+00> : vector<8x128xf32>
    %15 = tpu.matmul %12, %14, %cst_11 {dimension_numbers = #tpu.dot_dimension_numbers<[1], [0], [0], [1], [0, 0, 1, 1], [], []>} : vector<8x128xbf16>, vector<128x128xbf16>, vector<8x128xf32> -> vector<8x128xf32>
    %c0_12 = arith.constant 0 : index
    %c0_13 = arith.constant 0 : index
    %c0_14 = arith.constant 0 : index
    %16 = vector.load %arg6[%c0_12, %c0_13, %c0_14] : memref<2x1x128xf32, #tpu.memory_space<vmem>>, vector<1x1x128xf32>
    %17 = vector.shape_cast %16 : vector<1x1x128xf32> to vector<1x128xf32>
    %18 = vector.broadcast %17 : vector<1x128xf32> to vector<8x128xf32>
    %19 = arith.addf %15, %18 : vector<8x128xf32>
    %20 = arith.addf %3, %19 : vector<8x128xf32>
    %c0_15 = arith.constant 0 : index
    %c0_16 = arith.constant 0 : index
    %c0_17 = arith.constant 0 : index
    %21 = vector.load %arg11[%c0_15, %c0_16, %c0_17] : memref<2x1x128xf32, #tpu.memory_space<vmem>>, vector<1x1x128xf32>
    %22 = vector.shape_cast %21 : vector<1x1x128xf32> to vector<1x128xf32>
    %c0_18 = arith.constant 0 : index
    %c0_19 = arith.constant 0 : index
    %c0_20 = arith.constant 0 : index
    %23 = vector.load %arg12[%c0_18, %c0_19, %c0_20] : memref<2x1x128xf32, #tpu.memory_space<vmem>>, vector<1x1x128xf32>
    %24 = vector.shape_cast %23 : vector<1x1x128xf32> to vector<1x128xf32>
    %cst_21 = arith.constant dense<0.000000e+00> : vector<8xf32>
    %25 = vector.multi_reduction <add>, %20, %cst_21 [1] : vector<8x128xf32> to vector<8xf32>
    %26 = vector.shape_cast %25 : vector<8xf32> to vector<8x1xf32>
    %cst_22 = arith.constant 1.280000e+02 : f32
    %27 = vector.broadcast %cst_22 : f32 to vector<8x1xf32>
    %28 = arith.divf %26, %27 : vector<8x1xf32>
    %29 = vector.broadcast %28 : vector<8x1xf32> to vector<8x128xf32>
    %30 = arith.subf %20, %29 : vector<8x128xf32>
    %31 = arith.mulf %30, %30 : vector<8x128xf32>
    %cst_23 = arith.constant dense<0.000000e+00> : vector<8xf32>
    %32 = vector.multi_reduction <add>, %31, %cst_23 [1] : vector<8x128xf32> to vector<8xf32>
    %33 = vector.shape_cast %32 : vector<8xf32> to vector<8x1xf32>
    %cst_24 = arith.constant 1.280000e+02 : f32
    %34 = vector.broadcast %cst_24 : f32 to vector<8x1xf32>
    %35 = arith.divf %33, %34 : vector<8x1xf32>
    %cst_25 = arith.constant 9.99999974E-6 : f32
    %36 = vector.broadcast %cst_25 : f32 to vector<8x1xf32>
    %37 = arith.addf %35, %36 : vector<8x1xf32>
    %38 = math.rsqrt %37 : vector<8x1xf32>
    %39 = vector.broadcast %38 : vector<8x1xf32> to vector<8x128xf32>
    %40 = arith.mulf %30, %39 : vector<8x128xf32>
    %41 = vector.broadcast %22 : vector<1x128xf32> to vector<8x128xf32>
    %42 = arith.mulf %40, %41 : vector<8x128xf32>
    %43 = vector.broadcast %24 : vector<1x128xf32> to vector<8x128xf32>
    %44 = arith.addf %42, %43 : vector<8x128xf32>
    %45 = arith.truncf %44 : vector<8x128xf32> to vector<8x128xbf16>
    %c0_26 = arith.constant 0 : index
    %c0_27 = arith.constant 0 : index
    %c0_28 = arith.constant 0 : index
    %46 = vector.load %arg7[%c0_26, %c0_27, %c0_28] : memref<2x128x512xbf16, #tpu.memory_space<vmem>>, vector<1x128x512xbf16>
    %47 = vector.shape_cast %46 : vector<1x128x512xbf16> to vector<128x512xbf16>
    %cst_29 = arith.constant dense<0.000000e+00> : vector<8x512xf32>
    %48 = tpu.matmul %45, %47, %cst_29 {dimension_numbers = #tpu.dot_dimension_numbers<[1], [0], [0], [1], [0, 0, 1, 1], [], []>} : vector<8x128xbf16>, vector<128x512xbf16>, vector<8x512xf32> -> vector<8x512xf32>
    %c0_30 = arith.constant 0 : index
    %c0_31 = arith.constant 0 : index
    %c0_32 = arith.constant 0 : index
    %49 = vector.load %arg8[%c0_30, %c0_31, %c0_32] : memref<2x1x512xf32, #tpu.memory_space<vmem>>, vector<1x1x512xf32>
    %50 = vector.shape_cast %49 : vector<1x1x512xf32> to vector<1x512xf32>
    %51 = vector.broadcast %50 : vector<1x512xf32> to vector<8x512xf32>
    %52 = arith.addf %48, %51 : vector<8x512xf32>
    %cst_33 = arith.constant 0.000000e+00 : f32
    %53 = vector.broadcast %cst_33 : f32 to vector<8x512xf32>
    %54 = arith.maximumf %52, %53 : vector<8x512xf32>
    %55 = arith.truncf %54 : vector<8x512xf32> to vector<8x512xbf16>
    %c0_34 = arith.constant 0 : index
    %c0_35 = arith.constant 0 : index
    %c0_36 = arith.constant 0 : index
    %56 = vector.load %arg9[%c0_34, %c0_35, %c0_36] : memref<2x512x128xbf16, #tpu.memory_space<vmem>>, vector<1x512x128xbf16>
    %57 = vector.shape_cast %56 : vector<1x512x128xbf16> to vector<512x128xbf16>
    %cst_37 = arith.constant dense<0.000000e+00> : vector<8x128xf32>
    %58 = tpu.matmul %55, %57, %cst_37 {dimension_numbers = #tpu.dot_dimension_numbers<[1], [0], [0], [1], [0, 0, 1, 1], [], []>} : vector<8x512xbf16>, vector<512x128xbf16>, vector<8x128xf32> -> vector<8x128xf32>
    %c0_38 = arith.constant 0 : index
    %c0_39 = arith.constant 0 : index
    %c0_40 = arith.constant 0 : index
    %59 = vector.load %arg10[%c0_38, %c0_39, %c0_40] : memref<2x1x128xf32, #tpu.memory_space<vmem>>, vector<1x1x128xf32>
    %60 = vector.shape_cast %59 : vector<1x1x128xf32> to vector<1x128xf32>
    %61 = vector.broadcast %60 : vector<1x128xf32> to vector<8x128xf32>
    %62 = arith.addf %58, %61 : vector<8x128xf32>
    %63 = arith.addf %44, %62 : vector<8x128xf32>
    %c0_41 = arith.constant 0 : index
    %c0_42 = arith.constant 0 : index
    %c0_43 = arith.constant 0 : index
    %64 = vector.load %arg13[%c0_41, %c0_42, %c0_43] : memref<2x1x128xf32, #tpu.memory_space<vmem>>, vector<1x1x128xf32>
    %65 = vector.shape_cast %64 : vector<1x1x128xf32> to vector<1x128xf32>
    %c0_44 = arith.constant 0 : index
    %c0_45 = arith.constant 0 : index
    %c0_46 = arith.constant 0 : index
    %66 = vector.load %arg14[%c0_44, %c0_45, %c0_46] : memref<2x1x128xf32, #tpu.memory_space<vmem>>, vector<1x1x128xf32>
    %67 = vector.shape_cast %66 : vector<1x1x128xf32> to vector<1x128xf32>
    %cst_47 = arith.constant dense<0.000000e+00> : vector<8xf32>
    %68 = vector.multi_reduction <add>, %63, %cst_47 [1] : vector<8x128xf32> to vector<8xf32>
    %69 = vector.shape_cast %68 : vector<8xf32> to vector<8x1xf32>
    %cst_48 = arith.constant 1.280000e+02 : f32
    %70 = vector.broadcast %cst_48 : f32 to vector<8x1xf32>
    %71 = arith.divf %69, %70 : vector<8x1xf32>
    %72 = vector.broadcast %71 : vector<8x1xf32> to vector<8x128xf32>
    %73 = arith.subf %63, %72 : vector<8x128xf32>
    %74 = arith.mulf %73, %73 : vector<8x128xf32>
    %cst_49 = arith.constant dense<0.000000e+00> : vector<8xf32>
    %75 = vector.multi_reduction <add>, %74, %cst_49 [1] : vector<8x128xf32> to vector<8xf32>
    %76 = vector.shape_cast %75 : vector<8xf32> to vector<8x1xf32>
    %cst_50 = arith.constant 1.280000e+02 : f32
    %77 = vector.broadcast %cst_50 : f32 to vector<8x1xf32>
    %78 = arith.divf %76, %77 : vector<8x1xf32>
    %cst_51 = arith.constant 9.99999974E-6 : f32
    %79 = vector.broadcast %cst_51 : f32 to vector<8x1xf32>
    %80 = arith.addf %78, %79 : vector<8x1xf32>
    %81 = math.rsqrt %80 : vector<8x1xf32>
    %82 = vector.broadcast %81 : vector<8x1xf32> to vector<8x128xf32>
    %83 = arith.mulf %73, %82 : vector<8x128xf32>
    %84 = vector.broadcast %65 : vector<1x128xf32> to vector<8x128xf32>
    %85 = arith.mulf %83, %84 : vector<8x128xf32>
    %86 = vector.broadcast %67 : vector<1x128xf32> to vector<8x128xf32>
    %87 = arith.addf %85, %86 : vector<8x128xf32>
    %88 = arith.truncf %87 : vector<8x128xf32> to vector<8x128xbf16>
    %c1 = arith.constant 1 : index
    %c0_52 = arith.constant 0 : index
    %c0_53 = arith.constant 0 : index
    %89 = vector.load %arg3[%c1, %c0_52, %c0_53] : memref<2x128x128xbf16, #tpu.memory_space<vmem>>, vector<1x128x128xbf16>
    %90 = vector.shape_cast %89 : vector<1x128x128xbf16> to vector<128x128xbf16>
    %cst_54 = arith.constant dense<0.000000e+00> : vector<8x128xf32>
    %91 = tpu.matmul %88, %90, %cst_54 {dimension_numbers = #tpu.dot_dimension_numbers<[1], [0], [0], [1], [0, 0, 1, 1], [], []>} : vector<8x128xbf16>, vector<128x128xbf16>, vector<8x128xf32> -> vector<8x128xf32>
    %c1_55 = arith.constant 1 : index
    %c0_56 = arith.constant 0 : index
    %c0_57 = arith.constant 0 : index
    %92 = vector.load %arg4[%c1_55, %c0_56, %c0_57] : memref<2x1x128xf32, #tpu.memory_space<vmem>>, vector<1x1x128xf32>
    %93 = vector.shape_cast %92 : vector<1x1x128xf32> to vector<1x128xf32>
    %94 = vector.broadcast %93 : vector<1x128xf32> to vector<8x128xf32>
    %95 = arith.addf %91, %94 : vector<8x128xf32>
    %96 = arith.truncf %95 : vector<8x128xf32> to vector<8x128xbf16>
    %c1_58 = arith.constant 1 : index
    %c0_59 = arith.constant 0 : index
    %c0_60 = arith.constant 0 : index
    %97 = vector.load %arg5[%c1_58, %c0_59, %c0_60] : memref<2x128x128xbf16, #tpu.memory_space<vmem>>, vector<1x128x128xbf16>
    %98 = vector.shape_cast %97 : vector<1x128x128xbf16> to vector<128x128xbf16>
    %cst_61 = arith.constant dense<0.000000e+00> : vector<8x128xf32>
    %99 = tpu.matmul %96, %98, %cst_61 {dimension_numbers = #tpu.dot_dimension_numbers<[1], [0], [0], [1], [0, 0, 1, 1], [], []>} : vector<8x128xbf16>, vector<128x128xbf16>, vector<8x128xf32> -> vector<8x128xf32>
    %c1_62 = arith.constant 1 : index
    %c0_63 = arith.constant 0 : index
    %c0_64 = arith.constant 0 : index
    %100 = vector.load %arg6[%c1_62, %c0_63, %c0_64] : memref<2x1x128xf32, #tpu.memory_space<vmem>>, vector<1x1x128xf32>
    %101 = vector.shape_cast %100 : vector<1x1x128xf32> to vector<1x128xf32>
    %102 = vector.broadcast %101 : vector<1x128xf32> to vector<8x128xf32>
    %103 = arith.addf %99, %102 : vector<8x128xf32>
    %104 = arith.addf %87, %103 : vector<8x128xf32>
    %c1_65 = arith.constant 1 : index
    %c0_66 = arith.constant 0 : index
    %c0_67 = arith.constant 0 : index
    %105 = vector.load %arg11[%c1_65, %c0_66, %c0_67] : memref<2x1x128xf32, #tpu.memory_space<vmem>>, vector<1x1x128xf32>
    %106 = vector.shape_cast %105 : vector<1x1x128xf32> to vector<1x128xf32>
    %c1_68 = arith.constant 1 : index
    %c0_69 = arith.constant 0 : index
    %c0_70 = arith.constant 0 : index
    %107 = vector.load %arg12[%c1_68, %c0_69, %c0_70] : memref<2x1x128xf32, #tpu.memory_space<vmem>>, vector<1x1x128xf32>
    %108 = vector.shape_cast %107 : vector<1x1x128xf32> to vector<1x128xf32>
    %cst_71 = arith.constant dense<0.000000e+00> : vector<8xf32>
    %109 = vector.multi_reduction <add>, %104, %cst_71 [1] : vector<8x128xf32> to vector<8xf32>
    %110 = vector.shape_cast %109 : vector<8xf32> to vector<8x1xf32>
    %cst_72 = arith.constant 1.280000e+02 : f32
    %111 = vector.broadcast %cst_72 : f32 to vector<8x1xf32>
    %112 = arith.divf %110, %111 : vector<8x1xf32>
    %113 = vector.broadcast %112 : vector<8x1xf32> to vector<8x128xf32>
    %114 = arith.subf %104, %113 : vector<8x128xf32>
    %115 = arith.mulf %114, %114 : vector<8x128xf32>
    %cst_73 = arith.constant dense<0.000000e+00> : vector<8xf32>
    %116 = vector.multi_reduction <add>, %115, %cst_73 [1] : vector<8x128xf32> to vector<8xf32>
    %117 = vector.shape_cast %116 : vector<8xf32> to vector<8x1xf32>
    %cst_74 = arith.constant 1.280000e+02 : f32
    %118 = vector.broadcast %cst_74 : f32 to vector<8x1xf32>
    %119 = arith.divf %117, %118 : vector<8x1xf32>
    %cst_75 = arith.constant 9.99999974E-6 : f32
    %120 = vector.broadcast %cst_75 : f32 to vector<8x1xf32>
    %121 = arith.addf %119, %120 : vector<8x1xf32>
    %122 = math.rsqrt %121 : vector<8x1xf32>
    %123 = vector.broadcast %122 : vector<8x1xf32> to vector<8x128xf32>
    %124 = arith.mulf %114, %123 : vector<8x128xf32>
    %125 = vector.broadcast %106 : vector<1x128xf32> to vector<8x128xf32>
    %126 = arith.mulf %124, %125 : vector<8x128xf32>
    %127 = vector.broadcast %108 : vector<1x128xf32> to vector<8x128xf32>
    %128 = arith.addf %126, %127 : vector<8x128xf32>
    %129 = arith.truncf %128 : vector<8x128xf32> to vector<8x128xbf16>
    %c1_76 = arith.constant 1 : index
    %c0_77 = arith.constant 0 : index
    %c0_78 = arith.constant 0 : index
    %130 = vector.load %arg7[%c1_76, %c0_77, %c0_78] : memref<2x128x512xbf16, #tpu.memory_space<vmem>>, vector<1x128x512xbf16>
    %131 = vector.shape_cast %130 : vector<1x128x512xbf16> to vector<128x512xbf16>
    %cst_79 = arith.constant dense<0.000000e+00> : vector<8x512xf32>
    %132 = tpu.matmul %129, %131, %cst_79 {dimension_numbers = #tpu.dot_dimension_numbers<[1], [0], [0], [1], [0, 0, 1, 1], [], []>} : vector<8x128xbf16>, vector<128x512xbf16>, vector<8x512xf32> -> vector<8x512xf32>
    %c1_80 = arith.constant 1 : index
    %c0_81 = arith.constant 0 : index
    %c0_82 = arith.constant 0 : index
    %133 = vector.load %arg8[%c1_80, %c0_81, %c0_82] : memref<2x1x512xf32, #tpu.memory_space<vmem>>, vector<1x1x512xf32>
    %134 = vector.shape_cast %133 : vector<1x1x512xf32> to vector<1x512xf32>
    %135 = vector.broadcast %134 : vector<1x512xf32> to vector<8x512xf32>
    %136 = arith.addf %132, %135 : vector<8x512xf32>
    %cst_83 = arith.constant 0.000000e+00 : f32
    %137 = vector.broadcast %cst_83 : f32 to vector<8x512xf32>
    %138 = arith.maximumf %136, %137 : vector<8x512xf32>
    %139 = arith.truncf %138 : vector<8x512xf32> to vector<8x512xbf16>
    %c1_84 = arith.constant 1 : index
    %c0_85 = arith.constant 0 : index
    %c0_86 = arith.constant 0 : index
    %140 = vector.load %arg9[%c1_84, %c0_85, %c0_86] : memref<2x512x128xbf16, #tpu.memory_space<vmem>>, vector<1x512x128xbf16>
    %141 = vector.shape_cast %140 : vector<1x512x128xbf16> to vector<512x128xbf16>
    %cst_87 = arith.constant dense<0.000000e+00> : vector<8x128xf32>
    %142 = tpu.matmul %139, %141, %cst_87 {dimension_numbers = #tpu.dot_dimension_numbers<[1], [0], [0], [1], [0, 0, 1, 1], [], []>} : vector<8x512xbf16>, vector<512x128xbf16>, vector<8x128xf32> -> vector<8x128xf32>
    %c1_88 = arith.constant 1 : index
    %c0_89 = arith.constant 0 : index
    %c0_90 = arith.constant 0 : index
    %143 = vector.load %arg10[%c1_88, %c0_89, %c0_90] : memref<2x1x128xf32, #tpu.memory_space<vmem>>, vector<1x1x128xf32>
    %144 = vector.shape_cast %143 : vector<1x1x128xf32> to vector<1x128xf32>
    %145 = vector.broadcast %144 : vector<1x128xf32> to vector<8x128xf32>
    %146 = arith.addf %142, %145 : vector<8x128xf32>
    %147 = arith.addf %128, %146 : vector<8x128xf32>
    %c1_91 = arith.constant 1 : index
    %c0_92 = arith.constant 0 : index
    %c0_93 = arith.constant 0 : index
    %148 = vector.load %arg13[%c1_91, %c0_92, %c0_93] : memref<2x1x128xf32, #tpu.memory_space<vmem>>, vector<1x1x128xf32>
    %149 = vector.shape_cast %148 : vector<1x1x128xf32> to vector<1x128xf32>
    %c1_94 = arith.constant 1 : index
    %c0_95 = arith.constant 0 : index
    %c0_96 = arith.constant 0 : index
    %150 = vector.load %arg14[%c1_94, %c0_95, %c0_96] : memref<2x1x128xf32, #tpu.memory_space<vmem>>, vector<1x1x128xf32>
    %151 = vector.shape_cast %150 : vector<1x1x128xf32> to vector<1x128xf32>
    %cst_97 = arith.constant dense<0.000000e+00> : vector<8xf32>
    %152 = vector.multi_reduction <add>, %147, %cst_97 [1] : vector<8x128xf32> to vector<8xf32>
    %153 = vector.shape_cast %152 : vector<8xf32> to vector<8x1xf32>
    %cst_98 = arith.constant 1.280000e+02 : f32
    %154 = vector.broadcast %cst_98 : f32 to vector<8x1xf32>
    %155 = arith.divf %153, %154 : vector<8x1xf32>
    %156 = vector.broadcast %155 : vector<8x1xf32> to vector<8x128xf32>
    %157 = arith.subf %147, %156 : vector<8x128xf32>
    %158 = arith.mulf %157, %157 : vector<8x128xf32>
    %cst_99 = arith.constant dense<0.000000e+00> : vector<8xf32>
    %159 = vector.multi_reduction <add>, %158, %cst_99 [1] : vector<8x128xf32> to vector<8xf32>
    %160 = vector.shape_cast %159 : vector<8xf32> to vector<8x1xf32>
    %cst_100 = arith.constant 1.280000e+02 : f32
    %161 = vector.broadcast %cst_100 : f32 to vector<8x1xf32>
    %162 = arith.divf %160, %161 : vector<8x1xf32>
    %cst_101 = arith.constant 9.99999974E-6 : f32
    %163 = vector.broadcast %cst_101 : f32 to vector<8x1xf32>
    %164 = arith.addf %162, %163 : vector<8x1xf32>
    %165 = math.rsqrt %164 : vector<8x1xf32>
    %166 = vector.broadcast %165 : vector<8x1xf32> to vector<8x128xf32>
    %167 = arith.mulf %157, %166 : vector<8x128xf32>
    %168 = vector.broadcast %149 : vector<1x128xf32> to vector<8x128xf32>
    %169 = arith.mulf %167, %168 : vector<8x128xf32>
    %170 = vector.broadcast %151 : vector<1x128xf32> to vector<8x128xf32>
    %171 = arith.addf %169, %170 : vector<8x128xf32>
    %c0_102 = arith.constant 0 : index
    %c0_103 = arith.constant 0 : index
    %172 = vector.load %arg15[%c0_102, %c0_103] : memref<8x128xf32, #tpu.memory_space<vmem>>, vector<8x128xf32>
    tpu.vector_store %arg15[%c0_102, %c0_103], %171 {strides = array<i32>} : memref<8x128xf32, #tpu.memory_space<vmem>>, vector<8x128xf32>,
    return
  }
  func.func @transform_0(%arg0: i32, %arg1: i32) -> (i32, i32) {
    %c0_i32 = arith.constant 0 : i32
    %c0_i32_0 = arith.constant 0 : i32
    return %arg0, %c0_i32 : i32, i32
  }
  func.func @transform_1(%arg0: i32, %arg1: i32) -> (i32, i32, i32) {
    %c0_i32 = arith.constant 0 : i32
    %c0_i32_0 = arith.constant 0 : i32
    %c0_i32_1 = arith.constant 0 : i32
    return %arg1, %c0_i32, %c0_i32_0 : i32, i32, i32
  }
  func.func @transform_2(%arg0: i32, %arg1: i32) -> (i32, i32, i32) {
    %c0_i32 = arith.constant 0 : i32
    %c0_i32_0 = arith.constant 0 : i32
    %c0_i32_1 = arith.constant 0 : i32
    return %arg1, %c0_i32, %c0_i32_0 : i32, i32, i32
  }
  func.func @transform_3(%arg0: i32, %arg1: i32) -> (i32, i32, i32) {
    %c0_i32 = arith.constant 0 : i32
    %c0_i32_0 = arith.constant 0 : i32
    %c0_i32_1 = arith.constant 0 : i32
    return %arg1, %c0_i32, %c0_i32_0 : i32, i32, i32
  }
  func.func @transform_4(%arg0: i32, %arg1: i32) -> (i32, i32, i32) {
    %c0_i32 = arith.constant 0 : i32
    %c0_i32_0 = arith.constant 0 : i32
    %c0_i32_1 = arith.constant 0 : i32
    return %arg1, %c0_i32, %c0_i32_0 : i32, i32, i32
  }
  func.func @transform_5(%arg0: i32, %arg1: i32) -> (i32, i32, i32) {
    %c0_i32 = arith.constant 0 : i32
    %c0_i32_0 = arith.constant 0 : i32
    %c0_i32_1 = arith.constant 0 : i32
    return %arg1, %c0_i32, %c0_i32_0 : i32, i32, i32
  }
  func.func @transform_6(%arg0: i32, %arg1: i32) -> (i32, i32, i32) {
    %c0_i32 = arith.constant 0 : i32
    %c0_i32_0 = arith.constant 0 : i32
    %c0_i32_1 = arith.constant 0 : i32
    return %arg1, %c0_i32, %c0_i32_0 : i32, i32, i32
  }
  func.func @transform_7(%arg0: i32, %arg1: i32) -> (i32, i32, i32) {
    %c0_i32 = arith.constant 0 : i32
    %c0_i32_0 = arith.constant 0 : i32
    %c0_i32_1 = arith.constant 0 : i32
    return %arg1, %c0_i32, %c0_i32_0 : i32, i32, i32
  }
  func.func @transform_8(%arg0: i32, %arg1: i32) -> (i32, i32, i32) {
    %c0_i32 = arith.constant 0 : i32
    %c0_i32_0 = arith.constant 0 : i32
    %c0_i32_1 = arith.constant 0 : i32
    return %arg1, %c0_i32, %c0_i32_0 : i32, i32, i32
  }
  func.func @transform_9(%arg0: i32, %arg1: i32) -> (i32, i32, i32) {
    %c0_i32 = arith.constant 0 : i32
    %c0_i32_0 = arith.constant 0 : i32
    %c0_i32_1 = arith.constant 0 : i32
    return %arg1, %c0_i32, %c0_i32_0 : i32, i32, i32
  }
  func.func @transform_10(%arg0: i32, %arg1: i32) -> (i32, i32, i32) {
    %c0_i32 = arith.constant 0 : i32
    %c0_i32_0 = arith.constant 0 : i32
    %c0_i32_1 = arith.constant 0 : i32
    return %arg1, %c0_i32, %c0_i32_0 : i32, i32, i32
  }
  func.func @transform_11(%arg0: i32, %arg1: i32) -> (i32, i32, i32) {
    %c0_i32 = arith.constant 0 : i32
    %c0_i32_0 = arith.constant 0 : i32
    %c0_i32_1 = arith.constant 0 : i32
    return %arg1, %c0_i32, %c0_i32_0 : i32, i32, i32
  }
  func.func @transform_12(%arg0: i32, %arg1: i32) -> (i32, i32, i32) {
    %c0_i32 = arith.constant 0 : i32
    %c0_i32_0 = arith.constant 0 : i32
    %c0_i32_1 = arith.constant 0 : i32
    return %arg1, %c0_i32, %c0_i32_0 : i32, i32, i32
  }
  func.func @transform_13(%arg0: i32, %arg1: i32) -> (i32, i32) {
    %c0_i32 = arith.constant 0 : i32
    %c0_i32_0 = arith.constant 0 : i32
    return %arg0, %c0_i32 : i32, i32
  }
}

module attributes {stable_mosaic.version = 11 : i64} {
  func.func @_embed_kernel(%arg0: i32, %arg1: memref<8x12xf32, #tpu.memory_space<vmem>>, %arg2: memref<12x128xbf16, #tpu.memory_space<vmem>>, %arg3: memref<1x128xf32, #tpu.memory_space<vmem>>, %arg4: memref<1x128xf32, #tpu.memory_space<vmem>>, %arg5: memref<8x128xf32, #tpu.memory_space<vmem>>) attributes {dimension_semantics = [#tpu.dimension_semantics<parallel>], iteration_bounds = array<i64: 1>, scalar_prefetch = 0 : i64, scratch_operands = 0 : i64, tpu.core_type = #tpu.core_type<tc>, window_params = [{transform_indices = @transform_0, window_bounds = array<i64: 8, 12>}, {pipeline_mode = #tpu.pipeline_mode<synchronous>, transform_indices = @transform_1, window_bounds = array<i64: 12, 128>}, {pipeline_mode = #tpu.pipeline_mode<synchronous>, transform_indices = @transform_2, window_bounds = array<i64: 1, 128>}, {pipeline_mode = #tpu.pipeline_mode<synchronous>, transform_indices = @transform_3, window_bounds = array<i64: 1, 128>}, {transform_indices = @transform_4, window_bounds = array<i64: 8, 128>}]} {
    %c0 = arith.constant 0 : index
    %c0_0 = arith.constant 0 : index
    %0 = vector.load %arg1[%c0, %c0_0] : memref<8x12xf32, #tpu.memory_space<vmem>>, vector<8x12xf32>
    %1 = arith.truncf %0 : vector<8x12xf32> to vector<8x12xbf16>
    %c0_1 = arith.constant 0 : index
    %c0_2 = arith.constant 0 : index
    %2 = vector.load %arg2[%c0_1, %c0_2] : memref<12x128xbf16, #tpu.memory_space<vmem>>, vector<12x128xbf16>
    %cst = arith.constant dense<0.000000e+00> : vector<8x128xf32>
    %3 = tpu.matmul %1, %2, %cst {dimension_numbers = #tpu.dot_dimension_numbers<[1], [0], [0], [1], [0, 0, 1, 1], [], []>} : vector<8x12xbf16>, vector<12x128xbf16>, vector<8x128xf32> -> vector<8x128xf32>
    %c0_3 = arith.constant 0 : index
    %c0_4 = arith.constant 0 : index
    %4 = vector.load %arg3[%c0_3, %c0_4] : memref<1x128xf32, #tpu.memory_space<vmem>>, vector<1x128xf32>
    %5 = vector.broadcast %4 : vector<1x128xf32> to vector<8x128xf32>
    %6 = arith.addf %3, %5 : vector<8x128xf32>
    %c0_5 = arith.constant 0 : index
    %c0_6 = arith.constant 0 : index
    %7 = vector.load %arg4[%c0_5, %c0_6] : memref<1x128xf32, #tpu.memory_space<vmem>>, vector<1x128xf32>
    %8 = vector.broadcast %7 : vector<1x128xf32> to vector<8x128xf32>
    %9 = arith.addf %6, %8 : vector<8x128xf32>
    %c0_7 = arith.constant 0 : index
    %c0_8 = arith.constant 0 : index
    %10 = vector.load %arg5[%c0_7, %c0_8] : memref<8x128xf32, #tpu.memory_space<vmem>>, vector<8x128xf32>
    tpu.vector_store %arg5[%c0_7, %c0_8], %9 {strides = array<i32>} : memref<8x128xf32, #tpu.memory_space<vmem>>, vector<8x128xf32>,
    return
  }
  func.func @transform_0(%arg0: i32) -> (i32, i32) {
    %c0_i32 = arith.constant 0 : i32
    %c0_i32_0 = arith.constant 0 : i32
    return %arg0, %c0_i32 : i32, i32
  }
  func.func @transform_1(%arg0: i32) -> (i32, i32) {
    %c0_i32 = arith.constant 0 : i32
    %c0_i32_0 = arith.constant 0 : i32
    %c0_i32_1 = arith.constant 0 : i32
    return %c0_i32, %c0_i32_0 : i32, i32
  }
  func.func @transform_2(%arg0: i32) -> (i32, i32) {
    %c0_i32 = arith.constant 0 : i32
    %c0_i32_0 = arith.constant 0 : i32
    %c0_i32_1 = arith.constant 0 : i32
    return %c0_i32, %c0_i32_0 : i32, i32
  }
  func.func @transform_3(%arg0: i32) -> (i32, i32) {
    %c0_i32 = arith.constant 0 : i32
    %c0_i32_0 = arith.constant 0 : i32
    %c0_i32_1 = arith.constant 0 : i32
    return %c0_i32, %c0_i32_0 : i32, i32
  }
  func.func @transform_4(%arg0: i32) -> (i32, i32) {
    %c0_i32 = arith.constant 0 : i32
    %c0_i32_0 = arith.constant 0 : i32
    return %arg0, %c0_i32 : i32, i32
  }
}

module attributes {stable_mosaic.version = 11 : i64} {
  func.func @_encoder_stack_kernel(%arg0: i32, %arg1: i32, %arg2: memref<8x128xf32, #tpu.memory_space<vmem>>, %arg3: memref<2x128x128xbf16, #tpu.memory_space<vmem>>, %arg4: memref<2x1x128xf32, #tpu.memory_space<vmem>>, %arg5: memref<2x128x128xbf16, #tpu.memory_space<vmem>>, %arg6: memref<2x1x128xf32, #tpu.memory_space<vmem>>, %arg7: memref<2x128x512xbf16, #tpu.memory_space<vmem>>, %arg8: memref<2x1x512xf32, #tpu.memory_space<vmem>>, %arg9: memref<2x512x128xbf16, #tpu.memory_space<vmem>>, %arg10: memref<2x1x128xf32, #tpu.memory_space<vmem>>, %arg11: memref<2x1x128xf32, #tpu.memory_space<vmem>>, %arg12: memref<2x1x128xf32, #tpu.memory_space<vmem>>, %arg13: memref<2x1x128xf32, #tpu.memory_space<vmem>>, %arg14: memref<2x1x128xf32, #tpu.memory_space<vmem>>, %arg15: memref<8x128xf32, #tpu.memory_space<vmem>>) attributes {dimension_semantics = [#tpu.dimension_semantics<parallel>, #tpu.dimension_semantics<arbitrary>], iteration_bounds = array<i64: 1, 1>, scalar_prefetch = 0 : i64, scratch_operands = 0 : i64, tpu.core_type = #tpu.core_type<tc>, window_params = [{transform_indices = @transform_0, window_bounds = array<i64: 8, 128>}, {transform_indices = @transform_1, window_bounds = array<i64: 2, 128, 128>}, {transform_indices = @transform_2, window_bounds = array<i64: 2, 1, 128>}, {transform_indices = @transform_3, window_bounds = array<i64: 2, 128, 128>}, {transform_indices = @transform_4, window_bounds = array<i64: 2, 1, 128>}, {transform_indices = @transform_5, window_bounds = array<i64: 2, 128, 512>}, {transform_indices = @transform_6, window_bounds = array<i64: 2, 1, 512>}, {transform_indices = @transform_7, window_bounds = array<i64: 2, 512, 128>}, {transform_indices = @transform_8, window_bounds = array<i64: 2, 1, 128>}, {transform_indices = @transform_9, window_bounds = array<i64: 2, 1, 128>}, {transform_indices = @transform_10, window_bounds = array<i64: 2, 1, 128>}, {transform_indices = @transform_11, window_bounds = array<i64: 2, 1, 128>}, {transform_indices = @transform_12, window_bounds = array<i64: 2, 1, 128>}, {transform_indices = @transform_13, window_bounds = array<i64: 8, 128>}]} {
    %c0_i32 = arith.constant 0 : i32
    %0 = arith.cmpi eq, %arg1, %c0_i32 : i32
    %1 = arith.extui %0 : i1 to i32
    %c0_i32_0 = arith.constant 0 : i32
    %2 = arith.cmpi ne, %1, %c0_i32_0 : i32
    scf.if %2 {
      %c0_104 = arith.constant 0 : index
      %c0_105 = arith.constant 0 : index
      %173 = vector.load %arg2[%c0_104, %c0_105] : memref<8x128xf32, #tpu.memory_space<vmem>>, vector<8x128xf32>
      %c0_106 = arith.constant 0 : index
      %c0_107 = arith.constant 0 : index
      %174 = vector.load %arg15[%c0_106, %c0_107] : memref<8x128xf32, #tpu.memory_space<vmem>>, vector<8x128xf32>
      tpu.vector_store %arg15[%c0_106, %c0_107], %173 {strides = array<i32>} : memref<8x128xf32, #tpu.memory_space<vmem>>, vector<8x128xf32>,
    } else {
    }
    %c0 = arith.constant 0 : index
    %c0_1 = arith.constant 0 : index
    %3 = vector.load %arg15[%c0, %c0_1] : memref<8x128xf32, #tpu.memory_space<vmem>>, vector<8x128xf32>
    %4 = arith.truncf %3 : vector<8x128xf32> to vector<8x128xbf16>
    %c0_2 = arith.constant 0 : index
    %c0_3 = arith.constant 0 : index
    %c0_4 = arith.constant 0 : index
    %5 = vector.load %arg3[%c0_2, %c0_3, %c0_4] : memref<2x128x128xbf16, #tpu.memory_space<vmem>>, vector<1x128x128xbf16>
    %6 = vector.shape_cast %5 : vector<1x128x128xbf16> to vector<128x128xbf16>
    %cst = arith.constant dense<0.000000e+00> : vector<8x128xf32>
    %7 = tpu.matmul %4, %6, %cst {dimension_numbers = #tpu.dot_dimension_numbers<[1], [0], [0], [1], [0, 0, 1, 1], [], []>} : vector<8x128xbf16>, vector<128x128xbf16>, vector<8x128xf32> -> vector<8x128xf32>
    %c0_5 = arith.constant 0 : index
    %c0_6 = arith.constant 0 : index
    %c0_7 = arith.constant 0 : index
    %8 = vector.load %arg4[%c0_5, %c0_6, %c0_7] : memref<2x1x128xf32, #tpu.memory_space<vmem>>, vector<1x1x128xf32>
    %9 = vector.shape_cast %8 : vector<1x1x128xf32> to vector<1x128xf32>
    %10 = vector.broadcast %9 : vector<1x128xf32> to vector<8x128xf32>
    %11 = arith.addf %7, %10 : vector<8x128xf32>
    %12 = arith.truncf %11 : vector<8x128xf32> to vector<8x128xbf16>
    %c0_8 = arith.constant 0 : index
    %c0_9 = arith.constant 0 : index
    %c0_10 = arith.constant 0 : index
    %13 = vector.load %arg5[%c0_8, %c0_9, %c0_10] : memref<2x128x128xbf16, #tpu.memory_space<vmem>>, vector<1x128x128xbf16>
    %14 = vector.shape_cast %13 : vector<1x128x128xbf16> to vector<128x128xbf16>
    %cst_11 = arith.constant dense<0.000000e+00> : vector<8x128xf32>
    %15 = tpu.matmul %12, %14, %cst_11 {dimension_numbers = #tpu.dot_dimension_numbers<[1], [0], [0], [1], [0, 0, 1, 1], [], []>} : vector<8x128xbf16>, vector<128x128xbf16>, vector<8x128xf32> -> vector<8x128xf32>
    %c0_12 = arith.constant 0 : index
    %c0_13 = arith.constant 0 : index
    %c0_14 = arith.constant 0 : index
    %16 = vector.load %arg6[%c0_12, %c0_13, %c0_14] : memref<2x1x128xf32, #tpu.memory_space<vmem>>, vector<1x1x128xf32>
    %17 = vector.shape_cast %16 : vector<1x1x128xf32> to vector<1x128xf32>
    %18 = vector.broadcast %17 : vector<1x128xf32> to vector<8x128xf32>
    %19 = arith.addf %15, %18 : vector<8x128xf32>
    %20 = arith.addf %3, %19 : vector<8x128xf32>
    %c0_15 = arith.constant 0 : index
    %c0_16 = arith.constant 0 : index
    %c0_17 = arith.constant 0 : index
    %21 = vector.load %arg11[%c0_15, %c0_16, %c0_17] : memref<2x1x128xf32, #tpu.memory_space<vmem>>, vector<1x1x128xf32>
    %22 = vector.shape_cast %21 : vector<1x1x128xf32> to vector<1x128xf32>
    %c0_18 = arith.constant 0 : index
    %c0_19 = arith.constant 0 : index
    %c0_20 = arith.constant 0 : index
    %23 = vector.load %arg12[%c0_18, %c0_19, %c0_20] : memref<2x1x128xf32, #tpu.memory_space<vmem>>, vector<1x1x128xf32>
    %24 = vector.shape_cast %23 : vector<1x1x128xf32> to vector<1x128xf32>
    %cst_21 = arith.constant dense<0.000000e+00> : vector<8xf32>
    %25 = vector.multi_reduction <add>, %20, %cst_21 [1] : vector<8x128xf32> to vector<8xf32>
    %26 = vector.shape_cast %25 : vector<8xf32> to vector<8x1xf32>
    %cst_22 = arith.constant 1.280000e+02 : f32
    %27 = vector.broadcast %cst_22 : f32 to vector<8x1xf32>
    %28 = arith.divf %26, %27 : vector<8x1xf32>
    %29 = vector.broadcast %28 : vector<8x1xf32> to vector<8x128xf32>
    %30 = arith.subf %20, %29 : vector<8x128xf32>
    %31 = arith.mulf %30, %30 : vector<8x128xf32>
    %cst_23 = arith.constant dense<0.000000e+00> : vector<8xf32>
    %32 = vector.multi_reduction <add>, %31, %cst_23 [1] : vector<8x128xf32> to vector<8xf32>
    %33 = vector.shape_cast %32 : vector<8xf32> to vector<8x1xf32>
    %cst_24 = arith.constant 1.280000e+02 : f32
    %34 = vector.broadcast %cst_24 : f32 to vector<8x1xf32>
    %35 = arith.divf %33, %34 : vector<8x1xf32>
    %cst_25 = arith.constant 9.99999974E-6 : f32
    %36 = vector.broadcast %cst_25 : f32 to vector<8x1xf32>
    %37 = arith.addf %35, %36 : vector<8x1xf32>
    %38 = math.rsqrt %37 : vector<8x1xf32>
    %39 = vector.broadcast %38 : vector<8x1xf32> to vector<8x128xf32>
    %40 = arith.mulf %30, %39 : vector<8x128xf32>
    %41 = vector.broadcast %22 : vector<1x128xf32> to vector<8x128xf32>
    %42 = arith.mulf %40, %41 : vector<8x128xf32>
    %43 = vector.broadcast %24 : vector<1x128xf32> to vector<8x128xf32>
    %44 = arith.addf %42, %43 : vector<8x128xf32>
    %45 = arith.truncf %44 : vector<8x128xf32> to vector<8x128xbf16>
    %c0_26 = arith.constant 0 : index
    %c0_27 = arith.constant 0 : index
    %c0_28 = arith.constant 0 : index
    %46 = vector.load %arg7[%c0_26, %c0_27, %c0_28] : memref<2x128x512xbf16, #tpu.memory_space<vmem>>, vector<1x128x512xbf16>
    %47 = vector.shape_cast %46 : vector<1x128x512xbf16> to vector<128x512xbf16>
    %cst_29 = arith.constant dense<0.000000e+00> : vector<8x512xf32>
    %48 = tpu.matmul %45, %47, %cst_29 {dimension_numbers = #tpu.dot_dimension_numbers<[1], [0], [0], [1], [0, 0, 1, 1], [], []>} : vector<8x128xbf16>, vector<128x512xbf16>, vector<8x512xf32> -> vector<8x512xf32>
    %c0_30 = arith.constant 0 : index
    %c0_31 = arith.constant 0 : index
    %c0_32 = arith.constant 0 : index
    %49 = vector.load %arg8[%c0_30, %c0_31, %c0_32] : memref<2x1x512xf32, #tpu.memory_space<vmem>>, vector<1x1x512xf32>
    %50 = vector.shape_cast %49 : vector<1x1x512xf32> to vector<1x512xf32>
    %51 = vector.broadcast %50 : vector<1x512xf32> to vector<8x512xf32>
    %52 = arith.addf %48, %51 : vector<8x512xf32>
    %cst_33 = arith.constant 0.000000e+00 : f32
    %53 = vector.broadcast %cst_33 : f32 to vector<8x512xf32>
    %54 = arith.maximumf %52, %53 : vector<8x512xf32>
    %55 = arith.truncf %54 : vector<8x512xf32> to vector<8x512xbf16>
    %c0_34 = arith.constant 0 : index
    %c0_35 = arith.constant 0 : index
    %c0_36 = arith.constant 0 : index
    %56 = vector.load %arg9[%c0_34, %c0_35, %c0_36] : memref<2x512x128xbf16, #tpu.memory_space<vmem>>, vector<1x512x128xbf16>
    %57 = vector.shape_cast %56 : vector<1x512x128xbf16> to vector<512x128xbf16>
    %cst_37 = arith.constant dense<0.000000e+00> : vector<8x128xf32>
    %58 = tpu.matmul %55, %57, %cst_37 {dimension_numbers = #tpu.dot_dimension_numbers<[1], [0], [0], [1], [0, 0, 1, 1], [], []>} : vector<8x512xbf16>, vector<512x128xbf16>, vector<8x128xf32> -> vector<8x128xf32>
    %c0_38 = arith.constant 0 : index
    %c0_39 = arith.constant 0 : index
    %c0_40 = arith.constant 0 : index
    %59 = vector.load %arg10[%c0_38, %c0_39, %c0_40] : memref<2x1x128xf32, #tpu.memory_space<vmem>>, vector<1x1x128xf32>
    %60 = vector.shape_cast %59 : vector<1x1x128xf32> to vector<1x128xf32>
    %61 = vector.broadcast %60 : vector<1x128xf32> to vector<8x128xf32>
    %62 = arith.addf %58, %61 : vector<8x128xf32>
    %63 = arith.addf %44, %62 : vector<8x128xf32>
    %c0_41 = arith.constant 0 : index
    %c0_42 = arith.constant 0 : index
    %c0_43 = arith.constant 0 : index
    %64 = vector.load %arg13[%c0_41, %c0_42, %c0_43] : memref<2x1x128xf32, #tpu.memory_space<vmem>>, vector<1x1x128xf32>
    %65 = vector.shape_cast %64 : vector<1x1x128xf32> to vector<1x128xf32>
    %c0_44 = arith.constant 0 : index
    %c0_45 = arith.constant 0 : index
    %c0_46 = arith.constant 0 : index
    %66 = vector.load %arg14[%c0_44, %c0_45, %c0_46] : memref<2x1x128xf32, #tpu.memory_space<vmem>>, vector<1x1x128xf32>
    %67 = vector.shape_cast %66 : vector<1x1x128xf32> to vector<1x128xf32>
    %cst_47 = arith.constant dense<0.000000e+00> : vector<8xf32>
    %68 = vector.multi_reduction <add>, %63, %cst_47 [1] : vector<8x128xf32> to vector<8xf32>
    %69 = vector.shape_cast %68 : vector<8xf32> to vector<8x1xf32>
    %cst_48 = arith.constant 1.280000e+02 : f32
    %70 = vector.broadcast %cst_48 : f32 to vector<8x1xf32>
    %71 = arith.divf %69, %70 : vector<8x1xf32>
    %72 = vector.broadcast %71 : vector<8x1xf32> to vector<8x128xf32>
    %73 = arith.subf %63, %72 : vector<8x128xf32>
    %74 = arith.mulf %73, %73 : vector<8x128xf32>
    %cst_49 = arith.constant dense<0.000000e+00> : vector<8xf32>
    %75 = vector.multi_reduction <add>, %74, %cst_49 [1] : vector<8x128xf32> to vector<8xf32>
    %76 = vector.shape_cast %75 : vector<8xf32> to vector<8x1xf32>
    %cst_50 = arith.constant 1.280000e+02 : f32
    %77 = vector.broadcast %cst_50 : f32 to vector<8x1xf32>
    %78 = arith.divf %76, %77 : vector<8x1xf32>
    %cst_51 = arith.constant 9.99999974E-6 : f32
    %79 = vector.broadcast %cst_51 : f32 to vector<8x1xf32>
    %80 = arith.addf %78, %79 : vector<8x1xf32>
    %81 = math.rsqrt %80 : vector<8x1xf32>
    %82 = vector.broadcast %81 : vector<8x1xf32> to vector<8x128xf32>
    %83 = arith.mulf %73, %82 : vector<8x128xf32>
    %84 = vector.broadcast %65 : vector<1x128xf32> to vector<8x128xf32>
    %85 = arith.mulf %83, %84 : vector<8x128xf32>
    %86 = vector.broadcast %67 : vector<1x128xf32> to vector<8x128xf32>
    %87 = arith.addf %85, %86 : vector<8x128xf32>
    %88 = arith.truncf %87 : vector<8x128xf32> to vector<8x128xbf16>
    %c1 = arith.constant 1 : index
    %c0_52 = arith.constant 0 : index
    %c0_53 = arith.constant 0 : index
    %89 = vector.load %arg3[%c1, %c0_52, %c0_53] : memref<2x128x128xbf16, #tpu.memory_space<vmem>>, vector<1x128x128xbf16>
    %90 = vector.shape_cast %89 : vector<1x128x128xbf16> to vector<128x128xbf16>
    %cst_54 = arith.constant dense<0.000000e+00> : vector<8x128xf32>
    %91 = tpu.matmul %88, %90, %cst_54 {dimension_numbers = #tpu.dot_dimension_numbers<[1], [0], [0], [1], [0, 0, 1, 1], [], []>} : vector<8x128xbf16>, vector<128x128xbf16>, vector<8x128xf32> -> vector<8x128xf32>
    %c1_55 = arith.constant 1 : index
    %c0_56 = arith.constant 0 : index
    %c0_57 = arith.constant 0 : index
    %92 = vector.load %arg4[%c1_55, %c0_56, %c0_57] : memref<2x1x128xf32, #tpu.memory_space<vmem>>, vector<1x1x128xf32>
    %93 = vector.shape_cast %92 : vector<1x1x128xf32> to vector<1x128xf32>
    %94 = vector.broadcast %93 : vector<1x128xf32> to vector<8x128xf32>
    %95 = arith.addf %91, %94 : vector<8x128xf32>
    %96 = arith.truncf %95 : vector<8x128xf32> to vector<8x128xbf16>
    %c1_58 = arith.constant 1 : index
    %c0_59 = arith.constant 0 : index
    %c0_60 = arith.constant 0 : index
    %97 = vector.load %arg5[%c1_58, %c0_59, %c0_60] : memref<2x128x128xbf16, #tpu.memory_space<vmem>>, vector<1x128x128xbf16>
    %98 = vector.shape_cast %97 : vector<1x128x128xbf16> to vector<128x128xbf16>
    %cst_61 = arith.constant dense<0.000000e+00> : vector<8x128xf32>
    %99 = tpu.matmul %96, %98, %cst_61 {dimension_numbers = #tpu.dot_dimension_numbers<[1], [0], [0], [1], [0, 0, 1, 1], [], []>} : vector<8x128xbf16>, vector<128x128xbf16>, vector<8x128xf32> -> vector<8x128xf32>
    %c1_62 = arith.constant 1 : index
    %c0_63 = arith.constant 0 : index
    %c0_64 = arith.constant 0 : index
    %100 = vector.load %arg6[%c1_62, %c0_63, %c0_64] : memref<2x1x128xf32, #tpu.memory_space<vmem>>, vector<1x1x128xf32>
    %101 = vector.shape_cast %100 : vector<1x1x128xf32> to vector<1x128xf32>
    %102 = vector.broadcast %101 : vector<1x128xf32> to vector<8x128xf32>
    %103 = arith.addf %99, %102 : vector<8x128xf32>
    %104 = arith.addf %87, %103 : vector<8x128xf32>
    %c1_65 = arith.constant 1 : index
    %c0_66 = arith.constant 0 : index
    %c0_67 = arith.constant 0 : index
    %105 = vector.load %arg11[%c1_65, %c0_66, %c0_67] : memref<2x1x128xf32, #tpu.memory_space<vmem>>, vector<1x1x128xf32>
    %106 = vector.shape_cast %105 : vector<1x1x128xf32> to vector<1x128xf32>
    %c1_68 = arith.constant 1 : index
    %c0_69 = arith.constant 0 : index
    %c0_70 = arith.constant 0 : index
    %107 = vector.load %arg12[%c1_68, %c0_69, %c0_70] : memref<2x1x128xf32, #tpu.memory_space<vmem>>, vector<1x1x128xf32>
    %108 = vector.shape_cast %107 : vector<1x1x128xf32> to vector<1x128xf32>
    %cst_71 = arith.constant dense<0.000000e+00> : vector<8xf32>
    %109 = vector.multi_reduction <add>, %104, %cst_71 [1] : vector<8x128xf32> to vector<8xf32>
    %110 = vector.shape_cast %109 : vector<8xf32> to vector<8x1xf32>
    %cst_72 = arith.constant 1.280000e+02 : f32
    %111 = vector.broadcast %cst_72 : f32 to vector<8x1xf32>
    %112 = arith.divf %110, %111 : vector<8x1xf32>
    %113 = vector.broadcast %112 : vector<8x1xf32> to vector<8x128xf32>
    %114 = arith.subf %104, %113 : vector<8x128xf32>
    %115 = arith.mulf %114, %114 : vector<8x128xf32>
    %cst_73 = arith.constant dense<0.000000e+00> : vector<8xf32>
    %116 = vector.multi_reduction <add>, %115, %cst_73 [1] : vector<8x128xf32> to vector<8xf32>
    %117 = vector.shape_cast %116 : vector<8xf32> to vector<8x1xf32>
    %cst_74 = arith.constant 1.280000e+02 : f32
    %118 = vector.broadcast %cst_74 : f32 to vector<8x1xf32>
    %119 = arith.divf %117, %118 : vector<8x1xf32>
    %cst_75 = arith.constant 9.99999974E-6 : f32
    %120 = vector.broadcast %cst_75 : f32 to vector<8x1xf32>
    %121 = arith.addf %119, %120 : vector<8x1xf32>
    %122 = math.rsqrt %121 : vector<8x1xf32>
    %123 = vector.broadcast %122 : vector<8x1xf32> to vector<8x128xf32>
    %124 = arith.mulf %114, %123 : vector<8x128xf32>
    %125 = vector.broadcast %106 : vector<1x128xf32> to vector<8x128xf32>
    %126 = arith.mulf %124, %125 : vector<8x128xf32>
    %127 = vector.broadcast %108 : vector<1x128xf32> to vector<8x128xf32>
    %128 = arith.addf %126, %127 : vector<8x128xf32>
    %129 = arith.truncf %128 : vector<8x128xf32> to vector<8x128xbf16>
    %c1_76 = arith.constant 1 : index
    %c0_77 = arith.constant 0 : index
    %c0_78 = arith.constant 0 : index
    %130 = vector.load %arg7[%c1_76, %c0_77, %c0_78] : memref<2x128x512xbf16, #tpu.memory_space<vmem>>, vector<1x128x512xbf16>
    %131 = vector.shape_cast %130 : vector<1x128x512xbf16> to vector<128x512xbf16>
    %cst_79 = arith.constant dense<0.000000e+00> : vector<8x512xf32>
    %132 = tpu.matmul %129, %131, %cst_79 {dimension_numbers = #tpu.dot_dimension_numbers<[1], [0], [0], [1], [0, 0, 1, 1], [], []>} : vector<8x128xbf16>, vector<128x512xbf16>, vector<8x512xf32> -> vector<8x512xf32>
    %c1_80 = arith.constant 1 : index
    %c0_81 = arith.constant 0 : index
    %c0_82 = arith.constant 0 : index
    %133 = vector.load %arg8[%c1_80, %c0_81, %c0_82] : memref<2x1x512xf32, #tpu.memory_space<vmem>>, vector<1x1x512xf32>
    %134 = vector.shape_cast %133 : vector<1x1x512xf32> to vector<1x512xf32>
    %135 = vector.broadcast %134 : vector<1x512xf32> to vector<8x512xf32>
    %136 = arith.addf %132, %135 : vector<8x512xf32>
    %cst_83 = arith.constant 0.000000e+00 : f32
    %137 = vector.broadcast %cst_83 : f32 to vector<8x512xf32>
    %138 = arith.maximumf %136, %137 : vector<8x512xf32>
    %139 = arith.truncf %138 : vector<8x512xf32> to vector<8x512xbf16>
    %c1_84 = arith.constant 1 : index
    %c0_85 = arith.constant 0 : index
    %c0_86 = arith.constant 0 : index
    %140 = vector.load %arg9[%c1_84, %c0_85, %c0_86] : memref<2x512x128xbf16, #tpu.memory_space<vmem>>, vector<1x512x128xbf16>
    %141 = vector.shape_cast %140 : vector<1x512x128xbf16> to vector<512x128xbf16>
    %cst_87 = arith.constant dense<0.000000e+00> : vector<8x128xf32>
    %142 = tpu.matmul %139, %141, %cst_87 {dimension_numbers = #tpu.dot_dimension_numbers<[1], [0], [0], [1], [0, 0, 1, 1], [], []>} : vector<8x512xbf16>, vector<512x128xbf16>, vector<8x128xf32> -> vector<8x128xf32>
    %c1_88 = arith.constant 1 : index
    %c0_89 = arith.constant 0 : index
    %c0_90 = arith.constant 0 : index
    %143 = vector.load %arg10[%c1_88, %c0_89, %c0_90] : memref<2x1x128xf32, #tpu.memory_space<vmem>>, vector<1x1x128xf32>
    %144 = vector.shape_cast %143 : vector<1x1x128xf32> to vector<1x128xf32>
    %145 = vector.broadcast %144 : vector<1x128xf32> to vector<8x128xf32>
    %146 = arith.addf %142, %145 : vector<8x128xf32>
    %147 = arith.addf %128, %146 : vector<8x128xf32>
    %c1_91 = arith.constant 1 : index
    %c0_92 = arith.constant 0 : index
    %c0_93 = arith.constant 0 : index
    %148 = vector.load %arg13[%c1_91, %c0_92, %c0_93] : memref<2x1x128xf32, #tpu.memory_space<vmem>>, vector<1x1x128xf32>
    %149 = vector.shape_cast %148 : vector<1x1x128xf32> to vector<1x128xf32>
    %c1_94 = arith.constant 1 : index
    %c0_95 = arith.constant 0 : index
    %c0_96 = arith.constant 0 : index
    %150 = vector.load %arg14[%c1_94, %c0_95, %c0_96] : memref<2x1x128xf32, #tpu.memory_space<vmem>>, vector<1x1x128xf32>
    %151 = vector.shape_cast %150 : vector<1x1x128xf32> to vector<1x128xf32>
    %cst_97 = arith.constant dense<0.000000e+00> : vector<8xf32>
    %152 = vector.multi_reduction <add>, %147, %cst_97 [1] : vector<8x128xf32> to vector<8xf32>
    %153 = vector.shape_cast %152 : vector<8xf32> to vector<8x1xf32>
    %cst_98 = arith.constant 1.280000e+02 : f32
    %154 = vector.broadcast %cst_98 : f32 to vector<8x1xf32>
    %155 = arith.divf %153, %154 : vector<8x1xf32>
    %156 = vector.broadcast %155 : vector<8x1xf32> to vector<8x128xf32>
    %157 = arith.subf %147, %156 : vector<8x128xf32>
    %158 = arith.mulf %157, %157 : vector<8x128xf32>
    %cst_99 = arith.constant dense<0.000000e+00> : vector<8xf32>
    %159 = vector.multi_reduction <add>, %158, %cst_99 [1] : vector<8x128xf32> to vector<8xf32>
    %160 = vector.shape_cast %159 : vector<8xf32> to vector<8x1xf32>
    %cst_100 = arith.constant 1.280000e+02 : f32
    %161 = vector.broadcast %cst_100 : f32 to vector<8x1xf32>
    %162 = arith.divf %160, %161 : vector<8x1xf32>
    %cst_101 = arith.constant 9.99999974E-6 : f32
    %163 = vector.broadcast %cst_101 : f32 to vector<8x1xf32>
    %164 = arith.addf %162, %163 : vector<8x1xf32>
    %165 = math.rsqrt %164 : vector<8x1xf32>
    %166 = vector.broadcast %165 : vector<8x1xf32> to vector<8x128xf32>
    %167 = arith.mulf %157, %166 : vector<8x128xf32>
    %168 = vector.broadcast %149 : vector<1x128xf32> to vector<8x128xf32>
    %169 = arith.mulf %167, %168 : vector<8x128xf32>
    %170 = vector.broadcast %151 : vector<1x128xf32> to vector<8x128xf32>
    %171 = arith.addf %169, %170 : vector<8x128xf32>
    %c0_102 = arith.constant 0 : index
    %c0_103 = arith.constant 0 : index
    %172 = vector.load %arg15[%c0_102, %c0_103] : memref<8x128xf32, #tpu.memory_space<vmem>>, vector<8x128xf32>
    tpu.vector_store %arg15[%c0_102, %c0_103], %171 {strides = array<i32>} : memref<8x128xf32, #tpu.memory_space<vmem>>, vector<8x128xf32>,
    return
  }
  func.func @transform_0(%arg0: i32, %arg1: i32) -> (i32, i32) {
    %c0_i32 = arith.constant 0 : i32
    %c0_i32_0 = arith.constant 0 : i32
    return %arg0, %c0_i32 : i32, i32
  }
  func.func @transform_1(%arg0: i32, %arg1: i32) -> (i32, i32, i32) {
    %c0_i32 = arith.constant 0 : i32
    %c0_i32_0 = arith.constant 0 : i32
    %c0_i32_1 = arith.constant 0 : i32
    return %arg1, %c0_i32, %c0_i32_0 : i32, i32, i32
  }
  func.func @transform_2(%arg0: i32, %arg1: i32) -> (i32, i32, i32) {
    %c0_i32 = arith.constant 0 : i32
    %c0_i32_0 = arith.constant 0 : i32
    %c0_i32_1 = arith.constant 0 : i32
    return %arg1, %c0_i32, %c0_i32_0 : i32, i32, i32
  }
  func.func @transform_3(%arg0: i32, %arg1: i32) -> (i32, i32, i32) {
    %c0_i32 = arith.constant 0 : i32
    %c0_i32_0 = arith.constant 0 : i32
    %c0_i32_1 = arith.constant 0 : i32
    return %arg1, %c0_i32, %c0_i32_0 : i32, i32, i32
  }
  func.func @transform_4(%arg0: i32, %arg1: i32) -> (i32, i32, i32) {
    %c0_i32 = arith.constant 0 : i32
    %c0_i32_0 = arith.constant 0 : i32
    %c0_i32_1 = arith.constant 0 : i32
    return %arg1, %c0_i32, %c0_i32_0 : i32, i32, i32
  }
  func.func @transform_5(%arg0: i32, %arg1: i32) -> (i32, i32, i32) {
    %c0_i32 = arith.constant 0 : i32
    %c0_i32_0 = arith.constant 0 : i32
    %c0_i32_1 = arith.constant 0 : i32
    return %arg1, %c0_i32, %c0_i32_0 : i32, i32, i32
  }
  func.func @transform_6(%arg0: i32, %arg1: i32) -> (i32, i32, i32) {
    %c0_i32 = arith.constant 0 : i32
    %c0_i32_0 = arith.constant 0 : i32
    %c0_i32_1 = arith.constant 0 : i32
    return %arg1, %c0_i32, %c0_i32_0 : i32, i32, i32
  }
  func.func @transform_7(%arg0: i32, %arg1: i32) -> (i32, i32, i32) {
    %c0_i32 = arith.constant 0 : i32
    %c0_i32_0 = arith.constant 0 : i32
    %c0_i32_1 = arith.constant 0 : i32
    return %arg1, %c0_i32, %c0_i32_0 : i32, i32, i32
  }
  func.func @transform_8(%arg0: i32, %arg1: i32) -> (i32, i32, i32) {
    %c0_i32 = arith.constant 0 : i32
    %c0_i32_0 = arith.constant 0 : i32
    %c0_i32_1 = arith.constant 0 : i32
    return %arg1, %c0_i32, %c0_i32_0 : i32, i32, i32
  }
  func.func @transform_9(%arg0: i32, %arg1: i32) -> (i32, i32, i32) {
    %c0_i32 = arith.constant 0 : i32
    %c0_i32_0 = arith.constant 0 : i32
    %c0_i32_1 = arith.constant 0 : i32
    return %arg1, %c0_i32, %c0_i32_0 : i32, i32, i32
  }
  func.func @transform_10(%arg0: i32, %arg1: i32) -> (i32, i32, i32) {
    %c0_i32 = arith.constant 0 : i32
    %c0_i32_0 = arith.constant 0 : i32
    %c0_i32_1 = arith.constant 0 : i32
    return %arg1, %c0_i32, %c0_i32_0 : i32, i32, i32
  }
  func.func @transform_11(%arg0: i32, %arg1: i32) -> (i32, i32, i32) {
    %c0_i32 = arith.constant 0 : i32
    %c0_i32_0 = arith.constant 0 : i32
    %c0_i32_1 = arith.constant 0 : i32
    return %arg1, %c0_i32, %c0_i32_0 : i32, i32, i32
  }
  func.func @transform_12(%arg0: i32, %arg1: i32) -> (i32, i32, i32) {
    %c0_i32 = arith.constant 0 : i32
    %c0_i32_0 = arith.constant 0 : i32
    %c0_i32_1 = arith.constant 0 : i32
    return %arg1, %c0_i32, %c0_i32_0 : i32, i32, i32
  }
  func.func @transform_13(%arg0: i32, %arg1: i32) -> (i32, i32) {
    %c0_i32 = arith.constant 0 : i32
    %c0_i32_0 = arith.constant 0 : i32
    return %arg0, %c0_i32 : i32, i32
  }
}

module attributes {stable_mosaic.version = 11 : i64} {
  func.func @_mse_kernel(%arg0: i32, %arg1: memref<8x128xf32, #tpu.memory_space<vmem>>, %arg2: memref<8x128xf32, #tpu.memory_space<vmem>>, %arg3: memref<1x1xf32, #tpu.memory_space<smem>>, %arg4: memref<1xf32, #tpu.memory_space<smem>>) attributes {dimension_semantics = [#tpu.dimension_semantics<arbitrary>], iteration_bounds = array<i64: 1>, scalar_prefetch = 0 : i64, scratch_operands = 1 : i64, tpu.core_type = #tpu.core_type<tc>, window_params = [{transform_indices = @transform_0, window_bounds = array<i64: 8, 128>}, {transform_indices = @transform_1, window_bounds = array<i64: 8, 128>}, {transform_indices = @transform_2, window_bounds = array<i64: 1, 1>}]} {
    %c0_i32 = arith.constant 0 : i32
    %0 = arith.cmpi eq, %arg0, %c0_i32 : i32
    %1 = arith.extui %0 : i1 to i32
    %c0_i32_0 = arith.constant 0 : i32
    %2 = arith.cmpi ne, %1, %c0_i32_0 : i32
    scf.if %2 {
      %cst_8 = arith.constant 0.000000e+00 : f32
      %c0_9 = arith.constant 0 : index
      %17 = memref.load %arg4[%c0_9] : memref<1xf32, #tpu.memory_space<smem>>
      memref.store %cst_8, %arg4[%c0_9] : memref<1xf32, #tpu.memory_space<smem>>
    } else {
    }
    %c0 = arith.constant 0 : index
    %c0_1 = arith.constant 0 : index
    %3 = vector.load %arg1[%c0, %c0_1] : memref<8x128xf32, #tpu.memory_space<vmem>>, vector<8x128xf32>
    %c0_2 = arith.constant 0 : index
    %c0_3 = arith.constant 0 : index
    %4 = vector.load %arg2[%c0_2, %c0_3] : memref<8x128xf32, #tpu.memory_space<vmem>>, vector<8x128xf32>
    %5 = arith.subf %3, %4 : vector<8x128xf32>
    %c0_4 = arith.constant 0 : index
    %6 = memref.load %arg4[%c0_4] : memref<1xf32, #tpu.memory_space<smem>>
    %7 = arith.mulf %5, %5 : vector<8x128xf32>
    %8 = vector.shape_cast %7 : vector<8x128xf32> to vector<1x8x128xf32>
    %cst = arith.constant dense<0.000000e+00> : vector<1xf32>
    %9 = vector.multi_reduction <add>, %8, %cst [1, 2] : vector<1x8x128xf32> to vector<1xf32>
    %10 = vector.shape_cast %9 : vector<1xf32> to vector<1x1x1xf32>
    %11 = vector.extract %10[0, 0, 0] : f32 from vector<1x1x1xf32>
    %12 = arith.addf %6, %11 : f32
    %c0_5 = arith.constant 0 : index
    %13 = memref.load %arg4[%c0_5] : memref<1xf32, #tpu.memory_space<smem>>
    memref.store %12, %arg4[%c0_5] : memref<1xf32, #tpu.memory_space<smem>>
    %c0_i32_6 = arith.constant 0 : i32
    %14 = arith.cmpi eq, %arg0, %c0_i32_6 : i32
    %15 = arith.extui %14 : i1 to i32
    %c0_i32_7 = arith.constant 0 : i32
    %16 = arith.cmpi ne, %15, %c0_i32_7 : i32
    scf.if %16 {
      %c0_8 = arith.constant 0 : index
      %17 = memref.load %arg4[%c0_8] : memref<1xf32, #tpu.memory_space<smem>>
      %cst_9 = arith.constant 9.765625E-4 : f32
      %18 = arith.mulf %17, %cst_9 : f32
      %c0_10 = arith.constant 0 : index
      %c0_11 = arith.constant 0 : index
      %19 = memref.load %arg3[%c0_10, %c0_11] : memref<1x1xf32, #tpu.memory_space<smem>>
      memref.store %18, %arg3[%c0_10, %c0_11] : memref<1x1xf32, #tpu.memory_space<smem>>
    } else {
    }
    return
  }
  func.func @transform_0(%arg0: i32) -> (i32, i32) {
    %c0_i32 = arith.constant 0 : i32
    %c0_i32_0 = arith.constant 0 : i32
    return %arg0, %c0_i32 : i32, i32
  }
  func.func @transform_1(%arg0: i32) -> (i32, i32) {
    %c0_i32 = arith.constant 0 : i32
    %c0_i32_0 = arith.constant 0 : i32
    return %arg0, %c0_i32 : i32, i32
  }
  func.func @transform_2(%arg0: i32) -> (i32, i32) {
    %c0_i32 = arith.constant 0 : i32
    %c0_i32_0 = arith.constant 0 : i32
    %c0_i32_1 = arith.constant 0 : i32
    return %c0_i32, %c0_i32_0 : i32, i32
  }
}

module attributes {stable_mosaic.version = 11 : i64} {
  func.func @_predictor_stack_kernel(%arg0: i32, %arg1: i32, %arg2: memref<1x8x128xf32, #tpu.memory_space<vmem>>, %arg3: memref<1x128xf32, #tpu.memory_space<vmem>>, %arg4: memref<2x128x384xbf16, #tpu.memory_space<vmem>>, %arg5: memref<2x1x384xf32, #tpu.memory_space<vmem>>, %arg6: memref<2x128x128xbf16, #tpu.memory_space<vmem>>, %arg7: memref<2x1x128xf32, #tpu.memory_space<vmem>>, %arg8: memref<2x128x512xbf16, #tpu.memory_space<vmem>>, %arg9: memref<2x1x512xf32, #tpu.memory_space<vmem>>, %arg10: memref<2x512x128xbf16, #tpu.memory_space<vmem>>, %arg11: memref<2x1x128xf32, #tpu.memory_space<vmem>>, %arg12: memref<2x1x128xf32, #tpu.memory_space<vmem>>, %arg13: memref<2x1x128xf32, #tpu.memory_space<vmem>>, %arg14: memref<2x1x128xf32, #tpu.memory_space<vmem>>, %arg15: memref<2x1x128xf32, #tpu.memory_space<vmem>>, %arg16: memref<8x128xf32, #tpu.memory_space<vmem>>) attributes {dimension_semantics = [#tpu.dimension_semantics<parallel>, #tpu.dimension_semantics<arbitrary>], iteration_bounds = array<i64: 2, 1>, scalar_prefetch = 0 : i64, scratch_operands = 0 : i64, tpu.core_type = #tpu.core_type<tc>, window_params = [{transform_indices = @transform_0, window_bounds = array<i64: 1, 8, 128>}, {pipeline_mode = #tpu.pipeline_mode<synchronous>, transform_indices = @transform_1, window_bounds = array<i64: 1, 128>}, {transform_indices = @transform_2, window_bounds = array<i64: 2, 128, 384>}, {transform_indices = @transform_3, window_bounds = array<i64: 2, 1, 384>}, {transform_indices = @transform_4, window_bounds = array<i64: 2, 128, 128>}, {transform_indices = @transform_5, window_bounds = array<i64: 2, 1, 128>}, {transform_indices = @transform_6, window_bounds = array<i64: 2, 128, 512>}, {transform_indices = @transform_7, window_bounds = array<i64: 2, 1, 512>}, {transform_indices = @transform_8, window_bounds = array<i64: 2, 512, 128>}, {transform_indices = @transform_9, window_bounds = array<i64: 2, 1, 128>}, {transform_indices = @transform_10, window_bounds = array<i64: 2, 1, 128>}, {transform_indices = @transform_11, window_bounds = array<i64: 2, 1, 128>}, {transform_indices = @transform_12, window_bounds = array<i64: 2, 1, 128>}, {transform_indices = @transform_13, window_bounds = array<i64: 2, 1, 128>}, {transform_indices = @transform_14, window_bounds = array<i64: 8, 128>}]} {
    %c0_i32 = arith.constant 0 : i32
    %0 = arith.cmpi eq, %arg1, %c0_i32 : i32
    %c1_i32 = arith.constant 1 : i32
    %1 = arith.muli %arg0, %c1_i32 : i32
    %c1_i32_0 = arith.constant 1 : i32
    %2 = arith.cmpi slt, %1, %c1_i32_0 : i32
    %3 = arith.andi %0, %2 : i1
    %4 = arith.extui %3 : i1 to i32
    %c0_i32_1 = arith.constant 0 : i32
    %5 = arith.cmpi ne, %4, %c0_i32_1 : i32
    scf.if %5 {
      %c0_116 = arith.constant 0 : index
      %c0_117 = arith.constant 0 : index
      %c0_118 = arith.constant 0 : index
      %246 = vector.load %arg2[%c0_116, %c0_117, %c0_118] : memref<1x8x128xf32, #tpu.memory_space<vmem>>, vector<1x8x128xf32>
      %247 = vector.shape_cast %246 : vector<1x8x128xf32> to vector<8x128xf32>
      %c0_119 = arith.constant 0 : index
      %c0_120 = arith.constant 0 : index
      %248 = vector.load %arg16[%c0_119, %c0_120] : memref<8x128xf32, #tpu.memory_space<vmem>>, vector<8x128xf32>
      tpu.vector_store %arg16[%c0_119, %c0_120], %247 {strides = array<i32>} : memref<8x128xf32, #tpu.memory_space<vmem>>, vector<8x128xf32>,
    } else {
    }
    %true = arith.constant true
    %6 = arith.xori %2, %true : i1
    %7 = arith.andi %0, %6 : i1
    %8 = arith.extui %7 : i1 to i32
    %c0_i32_2 = arith.constant 0 : i32
    %9 = arith.cmpi ne, %8, %c0_i32_2 : i32
    scf.if %9 {
      %c0_116 = arith.constant 0 : index
      %c0_117 = arith.constant 0 : index
      %246 = vector.load %arg3[%c0_116, %c0_117] : memref<1x128xf32, #tpu.memory_space<vmem>>, vector<1x128xf32>
      %247 = vector.shape_cast %246 : vector<1x128xf32> to vector<1x128xf32>
      %248 = vector.broadcast %247 : vector<1x128xf32> to vector<8x128xf32>
      %c0_118 = arith.constant 0 : index
      %c0_119 = arith.constant 0 : index
      %249 = vector.load %arg16[%c0_118, %c0_119] : memref<8x128xf32, #tpu.memory_space<vmem>>, vector<8x128xf32>
      tpu.vector_store %arg16[%c0_118, %c0_119], %248 {strides = array<i32>} : memref<8x128xf32, #tpu.memory_space<vmem>>, vector<8x128xf32>,
    } else {
    }
    %c0 = arith.constant 0 : index
    %c0_3 = arith.constant 0 : index
    %10 = vector.load %arg16[%c0, %c0_3] : memref<8x128xf32, #tpu.memory_space<vmem>>, vector<8x128xf32>
    %11 = arith.truncf %10 : vector<8x128xf32> to vector<8x128xbf16>
    %c0_4 = arith.constant 0 : index
    %c0_5 = arith.constant 0 : index
    %c0_6 = arith.constant 0 : index
    %12 = vector.load %arg4[%c0_4, %c0_5, %c0_6] : memref<2x128x384xbf16, #tpu.memory_space<vmem>>, vector<1x128x384xbf16>
    %13 = vector.shape_cast %12 : vector<1x128x384xbf16> to vector<128x384xbf16>
    %cst = arith.constant dense<0.000000e+00> : vector<8x384xf32>
    %14 = tpu.matmul %11, %13, %cst {dimension_numbers = #tpu.dot_dimension_numbers<[1], [0], [0], [1], [0, 0, 1, 1], [], []>} : vector<8x128xbf16>, vector<128x384xbf16>, vector<8x384xf32> -> vector<8x384xf32>
    %c0_7 = arith.constant 0 : index
    %c0_8 = arith.constant 0 : index
    %c0_9 = arith.constant 0 : index
    %15 = vector.load %arg5[%c0_7, %c0_8, %c0_9] : memref<2x1x384xf32, #tpu.memory_space<vmem>>, vector<1x1x384xf32>
    %16 = vector.shape_cast %15 : vector<1x1x384xf32> to vector<1x384xf32>
    %17 = vector.broadcast %16 : vector<1x384xf32> to vector<8x384xf32>
    %18 = arith.addf %14, %17 : vector<8x384xf32>
    %19 = vector.extract_strided_slice %18 {offsets = [0, 0], sizes = [8, 128], strides = [1, 1]} : vector<8x384xf32> to vector<8x128xf32>
    %20 = vector.shape_cast %19 : vector<8x128xf32> to vector<1x8x4x32xf32>
    %21 = tpu.transpose %20, [0, 2, 1, 3] : vector<1x8x4x32xf32> -> vector<1x4x8x32xf32>
    %22 = vector.shape_cast %21 : vector<1x4x8x32xf32> to vector<4x8x32xf32>
    %cst_10 = arith.constant 0.176776692 : f32
    %23 = vector.broadcast %cst_10 : f32 to vector<4x8x32xf32>
    %24 = arith.mulf %22, %23 : vector<4x8x32xf32>
    %25 = vector.extract_strided_slice %18 {offsets = [0, 128], sizes = [8, 128], strides = [1, 1]} : vector<8x384xf32> to vector<8x128xf32>
    %26 = vector.shape_cast %25 : vector<8x128xf32> to vector<1x8x4x32xf32>
    %27 = tpu.transpose %26, [0, 2, 1, 3] : vector<1x8x4x32xf32> -> vector<1x4x8x32xf32>
    %28 = vector.shape_cast %27 : vector<1x4x8x32xf32> to vector<4x8x32xf32>
    %29 = vector.extract_strided_slice %18 {offsets = [0, 256], sizes = [8, 128], strides = [1, 1]} : vector<8x384xf32> to vector<8x128xf32>
    %30 = vector.shape_cast %29 : vector<8x128xf32> to vector<1x8x4x32xf32>
    %31 = tpu.transpose %30, [0, 2, 1, 3] : vector<1x8x4x32xf32> -> vector<1x4x8x32xf32>
    %32 = vector.shape_cast %31 : vector<1x4x8x32xf32> to vector<4x8x32xf32>
    %33 = arith.truncf %24 : vector<4x8x32xf32> to vector<4x8x32xbf16>
    %34 = arith.truncf %28 : vector<4x8x32xf32> to vector<4x8x32xbf16>
    "tpu.trace_start"() <{level = 10 : i32, message = "zqd,zkd->zqk"}> : () -> ()
    %cst_11 = arith.constant dense<0.000000e+00> : vector<4x8x8xf32>
    %35 = tpu.matmul %33, %34, %cst_11 {dimension_numbers = #tpu.dot_dimension_numbers<[2], [2], [1], [1], [0, 0, 0, 1, 1, 1], [0], [0]>} : vector<4x8x32xbf16>, vector<4x8x32xbf16>, vector<4x8x8xf32> -> vector<4x8x8xf32>
    "tpu.trace_stop"() : () -> ()
    %cst_12 = arith.constant dense<0xFF800000> : vector<4x8xf32>
    %36 = vector.multi_reduction <maximumf>, %35, %cst_12 [2] : vector<4x8x8xf32> to vector<4x8xf32>
    %37 = vector.shape_cast %36 : vector<4x8xf32> to vector<4x8x1xf32>
    %38 = vector.broadcast %37 : vector<4x8x1xf32> to vector<4x8x8xf32>
    %39 = arith.subf %35, %38 : vector<4x8x8xf32>
    %40 = math.exp %39 : vector<4x8x8xf32>
    %cst_13 = arith.constant dense<0.000000e+00> : vector<4x8xf32>
    %41 = vector.multi_reduction <add>, %40, %cst_13 [2] : vector<4x8x8xf32> to vector<4x8xf32>
    %42 = vector.shape_cast %41 : vector<4x8xf32> to vector<4x8x1xf32>
    %43 = tpu.reciprocal %42 {approx = true} : vector<4x8x1xf32> -> vector<4x8x1xf32>
    %44 = vector.broadcast %43 : vector<4x8x1xf32> to vector<4x8x8xf32>
    %45 = arith.mulf %40, %44 : vector<4x8x8xf32>
    %46 = arith.truncf %45 : vector<4x8x8xf32> to vector<4x8x8xbf16>
    %47 = arith.truncf %32 : vector<4x8x32xf32> to vector<4x8x32xbf16>
    "tpu.trace_start"() <{level = 10 : i32, message = "zqk,zkd->zqd"}> : () -> ()
    %cst_14 = arith.constant dense<0.000000e+00> : vector<4x8x32xf32>
    %48 = tpu.matmul %46, %47, %cst_14 {dimension_numbers = #tpu.dot_dimension_numbers<[2], [1], [1], [2], [0, 0, 0, 1, 1, 2], [0], [0]>} : vector<4x8x8xbf16>, vector<4x8x32xbf16>, vector<4x8x32xf32> -> vector<4x8x32xf32>
    "tpu.trace_stop"() : () -> ()
    %49 = vector.shape_cast %48 : vector<4x8x32xf32> to vector<1x4x8x32xf32>
    %50 = tpu.transpose %49, [0, 2, 1, 3] : vector<1x4x8x32xf32> -> vector<1x8x4x32xf32>
    %51 = vector.shape_cast %50 : vector<1x8x4x32xf32> to vector<8x128xf32>
    %52 = arith.truncf %51 : vector<8x128xf32> to vector<8x128xbf16>
    %c0_15 = arith.constant 0 : index
    %c0_16 = arith.constant 0 : index
    %c0_17 = arith.constant 0 : index
    %53 = vector.load %arg6[%c0_15, %c0_16, %c0_17] : memref<2x128x128xbf16, #tpu.memory_space<vmem>>, vector<1x128x128xbf16>
    %54 = vector.shape_cast %53 : vector<1x128x128xbf16> to vector<128x128xbf16>
    %cst_18 = arith.constant dense<0.000000e+00> : vector<8x128xf32>
    %55 = tpu.matmul %52, %54, %cst_18 {dimension_numbers = #tpu.dot_dimension_numbers<[1], [0], [0], [1], [0, 0, 1, 1], [], []>} : vector<8x128xbf16>, vector<128x128xbf16>, vector<8x128xf32> -> vector<8x128xf32>
    %c0_19 = arith.constant 0 : index
    %c0_20 = arith.constant 0 : index
    %c0_21 = arith.constant 0 : index
    %56 = vector.load %arg7[%c0_19, %c0_20, %c0_21] : memref<2x1x128xf32, #tpu.memory_space<vmem>>, vector<1x1x128xf32>
    %57 = vector.shape_cast %56 : vector<1x1x128xf32> to vector<1x128xf32>
    %58 = vector.broadcast %57 : vector<1x128xf32> to vector<8x128xf32>
    %59 = arith.addf %55, %58 : vector<8x128xf32>
    %60 = arith.addf %10, %59 : vector<8x128xf32>
    %c0_22 = arith.constant 0 : index
    %c0_23 = arith.constant 0 : index
    %c0_24 = arith.constant 0 : index
    %61 = vector.load %arg12[%c0_22, %c0_23, %c0_24] : memref<2x1x128xf32, #tpu.memory_space<vmem>>, vector<1x1x128xf32>
    %62 = vector.shape_cast %61 : vector<1x1x128xf32> to vector<1x128xf32>
    %c0_25 = arith.constant 0 : index
    %c0_26 = arith.constant 0 : index
    %c0_27 = arith.constant 0 : index
    %63 = vector.load %arg13[%c0_25, %c0_26, %c0_27] : memref<2x1x128xf32, #tpu.memory_space<vmem>>, vector<1x1x128xf32>
    %64 = vector.shape_cast %63 : vector<1x1x128xf32> to vector<1x128xf32>
    %cst_28 = arith.constant dense<0.000000e+00> : vector<8xf32>
    %65 = vector.multi_reduction <add>, %60, %cst_28 [1] : vector<8x128xf32> to vector<8xf32>
    %66 = vector.shape_cast %65 : vector<8xf32> to vector<8x1xf32>
    %cst_29 = arith.constant 1.280000e+02 : f32
    %67 = vector.broadcast %cst_29 : f32 to vector<8x1xf32>
    %68 = arith.divf %66, %67 : vector<8x1xf32>
    %69 = vector.broadcast %68 : vector<8x1xf32> to vector<8x128xf32>
    %70 = arith.subf %60, %69 : vector<8x128xf32>
    %71 = arith.mulf %70, %70 : vector<8x128xf32>
    %cst_30 = arith.constant dense<0.000000e+00> : vector<8xf32>
    %72 = vector.multi_reduction <add>, %71, %cst_30 [1] : vector<8x128xf32> to vector<8xf32>
    %73 = vector.shape_cast %72 : vector<8xf32> to vector<8x1xf32>
    %cst_31 = arith.constant 1.280000e+02 : f32
    %74 = vector.broadcast %cst_31 : f32 to vector<8x1xf32>
    %75 = arith.divf %73, %74 : vector<8x1xf32>
    %cst_32 = arith.constant 9.99999974E-6 : f32
    %76 = vector.broadcast %cst_32 : f32 to vector<8x1xf32>
    %77 = arith.addf %75, %76 : vector<8x1xf32>
    %78 = math.rsqrt %77 : vector<8x1xf32>
    %79 = vector.broadcast %78 : vector<8x1xf32> to vector<8x128xf32>
    %80 = arith.mulf %70, %79 : vector<8x128xf32>
    %81 = vector.broadcast %62 : vector<1x128xf32> to vector<8x128xf32>
    %82 = arith.mulf %80, %81 : vector<8x128xf32>
    %83 = vector.broadcast %64 : vector<1x128xf32> to vector<8x128xf32>
    %84 = arith.addf %82, %83 : vector<8x128xf32>
    %85 = arith.truncf %84 : vector<8x128xf32> to vector<8x128xbf16>
    %c0_33 = arith.constant 0 : index
    %c0_34 = arith.constant 0 : index
    %c0_35 = arith.constant 0 : index
    %86 = vector.load %arg8[%c0_33, %c0_34, %c0_35] : memref<2x128x512xbf16, #tpu.memory_space<vmem>>, vector<1x128x512xbf16>
    %87 = vector.shape_cast %86 : vector<1x128x512xbf16> to vector<128x512xbf16>
    %cst_36 = arith.constant dense<0.000000e+00> : vector<8x512xf32>
    %88 = tpu.matmul %85, %87, %cst_36 {dimension_numbers = #tpu.dot_dimension_numbers<[1], [0], [0], [1], [0, 0, 1, 1], [], []>} : vector<8x128xbf16>, vector<128x512xbf16>, vector<8x512xf32> -> vector<8x512xf32>
    %c0_37 = arith.constant 0 : index
    %c0_38 = arith.constant 0 : index
    %c0_39 = arith.constant 0 : index
    %89 = vector.load %arg9[%c0_37, %c0_38, %c0_39] : memref<2x1x512xf32, #tpu.memory_space<vmem>>, vector<1x1x512xf32>
    %90 = vector.shape_cast %89 : vector<1x1x512xf32> to vector<1x512xf32>
    %91 = vector.broadcast %90 : vector<1x512xf32> to vector<8x512xf32>
    %92 = arith.addf %88, %91 : vector<8x512xf32>
    %cst_40 = arith.constant 0.000000e+00 : f32
    %93 = vector.broadcast %cst_40 : f32 to vector<8x512xf32>
    %94 = arith.maximumf %92, %93 : vector<8x512xf32>
    %95 = arith.truncf %94 : vector<8x512xf32> to vector<8x512xbf16>
    %c0_41 = arith.constant 0 : index
    %c0_42 = arith.constant 0 : index
    %c0_43 = arith.constant 0 : index
    %96 = vector.load %arg10[%c0_41, %c0_42, %c0_43] : memref<2x512x128xbf16, #tpu.memory_space<vmem>>, vector<1x512x128xbf16>
    %97 = vector.shape_cast %96 : vector<1x512x128xbf16> to vector<512x128xbf16>
    %cst_44 = arith.constant dense<0.000000e+00> : vector<8x128xf32>
    %98 = tpu.matmul %95, %97, %cst_44 {dimension_numbers = #tpu.dot_dimension_numbers<[1], [0], [0], [1], [0, 0, 1, 1], [], []>} : vector<8x512xbf16>, vector<512x128xbf16>, vector<8x128xf32> -> vector<8x128xf32>
    %c0_45 = arith.constant 0 : index
    %c0_46 = arith.constant 0 : index
    %c0_47 = arith.constant 0 : index
    %99 = vector.load %arg11[%c0_45, %c0_46, %c0_47] : memref<2x1x128xf32, #tpu.memory_space<vmem>>, vector<1x1x128xf32>
    %100 = vector.shape_cast %99 : vector<1x1x128xf32> to vector<1x128xf32>
    %101 = vector.broadcast %100 : vector<1x128xf32> to vector<8x128xf32>
    %102 = arith.addf %98, %101 : vector<8x128xf32>
    %103 = arith.addf %84, %102 : vector<8x128xf32>
    %c0_48 = arith.constant 0 : index
    %c0_49 = arith.constant 0 : index
    %c0_50 = arith.constant 0 : index
    %104 = vector.load %arg14[%c0_48, %c0_49, %c0_50] : memref<2x1x128xf32, #tpu.memory_space<vmem>>, vector<1x1x128xf32>
    %105 = vector.shape_cast %104 : vector<1x1x128xf32> to vector<1x128xf32>
    %c0_51 = arith.constant 0 : index
    %c0_52 = arith.constant 0 : index
    %c0_53 = arith.constant 0 : index
    %106 = vector.load %arg15[%c0_51, %c0_52, %c0_53] : memref<2x1x128xf32, #tpu.memory_space<vmem>>, vector<1x1x128xf32>
    %107 = vector.shape_cast %106 : vector<1x1x128xf32> to vector<1x128xf32>
    %cst_54 = arith.constant dense<0.000000e+00> : vector<8xf32>
    %108 = vector.multi_reduction <add>, %103, %cst_54 [1] : vector<8x128xf32> to vector<8xf32>
    %109 = vector.shape_cast %108 : vector<8xf32> to vector<8x1xf32>
    %cst_55 = arith.constant 1.280000e+02 : f32
    %110 = vector.broadcast %cst_55 : f32 to vector<8x1xf32>
    %111 = arith.divf %109, %110 : vector<8x1xf32>
    %112 = vector.broadcast %111 : vector<8x1xf32> to vector<8x128xf32>
    %113 = arith.subf %103, %112 : vector<8x128xf32>
    %114 = arith.mulf %113, %113 : vector<8x128xf32>
    %cst_56 = arith.constant dense<0.000000e+00> : vector<8xf32>
    %115 = vector.multi_reduction <add>, %114, %cst_56 [1] : vector<8x128xf32> to vector<8xf32>
    %116 = vector.shape_cast %115 : vector<8xf32> to vector<8x1xf32>
    %cst_57 = arith.constant 1.280000e+02 : f32
    %117 = vector.broadcast %cst_57 : f32 to vector<8x1xf32>
    %118 = arith.divf %116, %117 : vector<8x1xf32>
    %cst_58 = arith.constant 9.99999974E-6 : f32
    %119 = vector.broadcast %cst_58 : f32 to vector<8x1xf32>
    %120 = arith.addf %118, %119 : vector<8x1xf32>
    %121 = math.rsqrt %120 : vector<8x1xf32>
    %122 = vector.broadcast %121 : vector<8x1xf32> to vector<8x128xf32>
    %123 = arith.mulf %113, %122 : vector<8x128xf32>
    %124 = vector.broadcast %105 : vector<1x128xf32> to vector<8x128xf32>
    %125 = arith.mulf %123, %124 : vector<8x128xf32>
    %126 = vector.broadcast %107 : vector<1x128xf32> to vector<8x128xf32>
    %127 = arith.addf %125, %126 : vector<8x128xf32>
    %128 = arith.truncf %127 : vector<8x128xf32> to vector<8x128xbf16>
    %c1 = arith.constant 1 : index
    %c0_59 = arith.constant 0 : index
    %c0_60 = arith.constant 0 : index
    %129 = vector.load %arg4[%c1, %c0_59, %c0_60] : memref<2x128x384xbf16, #tpu.memory_space<vmem>>, vector<1x128x384xbf16>
    %130 = vector.shape_cast %129 : vector<1x128x384xbf16> to vector<128x384xbf16>
    %cst_61 = arith.constant dense<0.000000e+00> : vector<8x384xf32>
    %131 = tpu.matmul %128, %130, %cst_61 {dimension_numbers = #tpu.dot_dimension_numbers<[1], [0], [0], [1], [0, 0, 1, 1], [], []>} : vector<8x128xbf16>, vector<128x384xbf16>, vector<8x384xf32> -> vector<8x384xf32>
    %c1_62 = arith.constant 1 : index
    %c0_63 = arith.constant 0 : index
    %c0_64 = arith.constant 0 : index
    %132 = vector.load %arg5[%c1_62, %c0_63, %c0_64] : memref<2x1x384xf32, #tpu.memory_space<vmem>>, vector<1x1x384xf32>
    %133 = vector.shape_cast %132 : vector<1x1x384xf32> to vector<1x384xf32>
    %134 = vector.broadcast %133 : vector<1x384xf32> to vector<8x384xf32>
    %135 = arith.addf %131, %134 : vector<8x384xf32>
    %136 = vector.extract_strided_slice %135 {offsets = [0, 0], sizes = [8, 128], strides = [1, 1]} : vector<8x384xf32> to vector<8x128xf32>
    %137 = vector.shape_cast %136 : vector<8x128xf32> to vector<1x8x4x32xf32>
    %138 = tpu.transpose %137, [0, 2, 1, 3] : vector<1x8x4x32xf32> -> vector<1x4x8x32xf32>
    %139 = vector.shape_cast %138 : vector<1x4x8x32xf32> to vector<4x8x32xf32>
    %cst_65 = arith.constant 0.176776692 : f32
    %140 = vector.broadcast %cst_65 : f32 to vector<4x8x32xf32>
    %141 = arith.mulf %139, %140 : vector<4x8x32xf32>
    %142 = vector.extract_strided_slice %135 {offsets = [0, 128], sizes = [8, 128], strides = [1, 1]} : vector<8x384xf32> to vector<8x128xf32>
    %143 = vector.shape_cast %142 : vector<8x128xf32> to vector<1x8x4x32xf32>
    %144 = tpu.transpose %143, [0, 2, 1, 3] : vector<1x8x4x32xf32> -> vector<1x4x8x32xf32>
    %145 = vector.shape_cast %144 : vector<1x4x8x32xf32> to vector<4x8x32xf32>
    %146 = vector.extract_strided_slice %135 {offsets = [0, 256], sizes = [8, 128], strides = [1, 1]} : vector<8x384xf32> to vector<8x128xf32>
    %147 = vector.shape_cast %146 : vector<8x128xf32> to vector<1x8x4x32xf32>
    %148 = tpu.transpose %147, [0, 2, 1, 3] : vector<1x8x4x32xf32> -> vector<1x4x8x32xf32>
    %149 = vector.shape_cast %148 : vector<1x4x8x32xf32> to vector<4x8x32xf32>
    %150 = arith.truncf %141 : vector<4x8x32xf32> to vector<4x8x32xbf16>
    %151 = arith.truncf %145 : vector<4x8x32xf32> to vector<4x8x32xbf16>
    "tpu.trace_start"() <{level = 10 : i32, message = "zqd,zkd->zqk"}> : () -> ()
    %cst_66 = arith.constant dense<0.000000e+00> : vector<4x8x8xf32>
    %152 = tpu.matmul %150, %151, %cst_66 {dimension_numbers = #tpu.dot_dimension_numbers<[2], [2], [1], [1], [0, 0, 0, 1, 1, 1], [0], [0]>} : vector<4x8x32xbf16>, vector<4x8x32xbf16>, vector<4x8x8xf32> -> vector<4x8x8xf32>
    "tpu.trace_stop"() : () -> ()
    %cst_67 = arith.constant dense<0xFF800000> : vector<4x8xf32>
    %153 = vector.multi_reduction <maximumf>, %152, %cst_67 [2] : vector<4x8x8xf32> to vector<4x8xf32>
    %154 = vector.shape_cast %153 : vector<4x8xf32> to vector<4x8x1xf32>
    %155 = vector.broadcast %154 : vector<4x8x1xf32> to vector<4x8x8xf32>
    %156 = arith.subf %152, %155 : vector<4x8x8xf32>
    %157 = math.exp %156 : vector<4x8x8xf32>
    %cst_68 = arith.constant dense<0.000000e+00> : vector<4x8xf32>
    %158 = vector.multi_reduction <add>, %157, %cst_68 [2] : vector<4x8x8xf32> to vector<4x8xf32>
    %159 = vector.shape_cast %158 : vector<4x8xf32> to vector<4x8x1xf32>
    %160 = tpu.reciprocal %159 {approx = true} : vector<4x8x1xf32> -> vector<4x8x1xf32>
    %161 = vector.broadcast %160 : vector<4x8x1xf32> to vector<4x8x8xf32>
    %162 = arith.mulf %157, %161 : vector<4x8x8xf32>
    %163 = arith.truncf %162 : vector<4x8x8xf32> to vector<4x8x8xbf16>
    %164 = arith.truncf %149 : vector<4x8x32xf32> to vector<4x8x32xbf16>
    "tpu.trace_start"() <{level = 10 : i32, message = "zqk,zkd->zqd"}> : () -> ()
    %cst_69 = arith.constant dense<0.000000e+00> : vector<4x8x32xf32>
    %165 = tpu.matmul %163, %164, %cst_69 {dimension_numbers = #tpu.dot_dimension_numbers<[2], [1], [1], [2], [0, 0, 0, 1, 1, 2], [0], [0]>} : vector<4x8x8xbf16>, vector<4x8x32xbf16>, vector<4x8x32xf32> -> vector<4x8x32xf32>
    "tpu.trace_stop"() : () -> ()
    %166 = vector.shape_cast %165 : vector<4x8x32xf32> to vector<1x4x8x32xf32>
    %167 = tpu.transpose %166, [0, 2, 1, 3] : vector<1x4x8x32xf32> -> vector<1x8x4x32xf32>
    %168 = vector.shape_cast %167 : vector<1x8x4x32xf32> to vector<8x128xf32>
    %169 = arith.truncf %168 : vector<8x128xf32> to vector<8x128xbf16>
    %c1_70 = arith.constant 1 : index
    %c0_71 = arith.constant 0 : index
    %c0_72 = arith.constant 0 : index
    %170 = vector.load %arg6[%c1_70, %c0_71, %c0_72] : memref<2x128x128xbf16, #tpu.memory_space<vmem>>, vector<1x128x128xbf16>
    %171 = vector.shape_cast %170 : vector<1x128x128xbf16> to vector<128x128xbf16>
    %cst_73 = arith.constant dense<0.000000e+00> : vector<8x128xf32>
    %172 = tpu.matmul %169, %171, %cst_73 {dimension_numbers = #tpu.dot_dimension_numbers<[1], [0], [0], [1], [0, 0, 1, 1], [], []>} : vector<8x128xbf16>, vector<128x128xbf16>, vector<8x128xf32> -> vector<8x128xf32>
    %c1_74 = arith.constant 1 : index
    %c0_75 = arith.constant 0 : index
    %c0_76 = arith.constant 0 : index
    %173 = vector.load %arg7[%c1_74, %c0_75, %c0_76] : memref<2x1x128xf32, #tpu.memory_space<vmem>>, vector<1x1x128xf32>
    %174 = vector.shape_cast %173 : vector<1x1x128xf32> to vector<1x128xf32>
    %175 = vector.broadcast %174 : vector<1x128xf32> to vector<8x128xf32>
    %176 = arith.addf %172, %175 : vector<8x128xf32>
    %177 = arith.addf %127, %176 : vector<8x128xf32>
    %c1_77 = arith.constant 1 : index
    %c0_78 = arith.constant 0 : index
    %c0_79 = arith.constant 0 : index
    %178 = vector.load %arg12[%c1_77, %c0_78, %c0_79] : memref<2x1x128xf32, #tpu.memory_space<vmem>>, vector<1x1x128xf32>
    %179 = vector.shape_cast %178 : vector<1x1x128xf32> to vector<1x128xf32>
    %c1_80 = arith.constant 1 : index
    %c0_81 = arith.constant 0 : index
    %c0_82 = arith.constant 0 : index
    %180 = vector.load %arg13[%c1_80, %c0_81, %c0_82] : memref<2x1x128xf32, #tpu.memory_space<vmem>>, vector<1x1x128xf32>
    %181 = vector.shape_cast %180 : vector<1x1x128xf32> to vector<1x128xf32>
    %cst_83 = arith.constant dense<0.000000e+00> : vector<8xf32>
    %182 = vector.multi_reduction <add>, %177, %cst_83 [1] : vector<8x128xf32> to vector<8xf32>
    %183 = vector.shape_cast %182 : vector<8xf32> to vector<8x1xf32>
    %cst_84 = arith.constant 1.280000e+02 : f32
    %184 = vector.broadcast %cst_84 : f32 to vector<8x1xf32>
    %185 = arith.divf %183, %184 : vector<8x1xf32>
    %186 = vector.broadcast %185 : vector<8x1xf32> to vector<8x128xf32>
    %187 = arith.subf %177, %186 : vector<8x128xf32>
    %188 = arith.mulf %187, %187 : vector<8x128xf32>
    %cst_85 = arith.constant dense<0.000000e+00> : vector<8xf32>
    %189 = vector.multi_reduction <add>, %188, %cst_85 [1] : vector<8x128xf32> to vector<8xf32>
    %190 = vector.shape_cast %189 : vector<8xf32> to vector<8x1xf32>
    %cst_86 = arith.constant 1.280000e+02 : f32
    %191 = vector.broadcast %cst_86 : f32 to vector<8x1xf32>
    %192 = arith.divf %190, %191 : vector<8x1xf32>
    %cst_87 = arith.constant 9.99999974E-6 : f32
    %193 = vector.broadcast %cst_87 : f32 to vector<8x1xf32>
    %194 = arith.addf %192, %193 : vector<8x1xf32>
    %195 = math.rsqrt %194 : vector<8x1xf32>
    %196 = vector.broadcast %195 : vector<8x1xf32> to vector<8x128xf32>
    %197 = arith.mulf %187, %196 : vector<8x128xf32>
    %198 = vector.broadcast %179 : vector<1x128xf32> to vector<8x128xf32>
    %199 = arith.mulf %197, %198 : vector<8x128xf32>
    %200 = vector.broadcast %181 : vector<1x128xf32> to vector<8x128xf32>
    %201 = arith.addf %199, %200 : vector<8x128xf32>
    %202 = arith.truncf %201 : vector<8x128xf32> to vector<8x128xbf16>
    %c1_88 = arith.constant 1 : index
    %c0_89 = arith.constant 0 : index
    %c0_90 = arith.constant 0 : index
    %203 = vector.load %arg8[%c1_88, %c0_89, %c0_90] : memref<2x128x512xbf16, #tpu.memory_space<vmem>>, vector<1x128x512xbf16>
    %204 = vector.shape_cast %203 : vector<1x128x512xbf16> to vector<128x512xbf16>
    %cst_91 = arith.constant dense<0.000000e+00> : vector<8x512xf32>
    %205 = tpu.matmul %202, %204, %cst_91 {dimension_numbers = #tpu.dot_dimension_numbers<[1], [0], [0], [1], [0, 0, 1, 1], [], []>} : vector<8x128xbf16>, vector<128x512xbf16>, vector<8x512xf32> -> vector<8x512xf32>
    %c1_92 = arith.constant 1 : index
    %c0_93 = arith.constant 0 : index
    %c0_94 = arith.constant 0 : index
    %206 = vector.load %arg9[%c1_92, %c0_93, %c0_94] : memref<2x1x512xf32, #tpu.memory_space<vmem>>, vector<1x1x512xf32>
    %207 = vector.shape_cast %206 : vector<1x1x512xf32> to vector<1x512xf32>
    %208 = vector.broadcast %207 : vector<1x512xf32> to vector<8x512xf32>
    %209 = arith.addf %205, %208 : vector<8x512xf32>
    %cst_95 = arith.constant 0.000000e+00 : f32
    %210 = vector.broadcast %cst_95 : f32 to vector<8x512xf32>
    %211 = arith.maximumf %209, %210 : vector<8x512xf32>
    %212 = arith.truncf %211 : vector<8x512xf32> to vector<8x512xbf16>
    %c1_96 = arith.constant 1 : index
    %c0_97 = arith.constant 0 : index
    %c0_98 = arith.constant 0 : index
    %213 = vector.load %arg10[%c1_96, %c0_97, %c0_98] : memref<2x512x128xbf16, #tpu.memory_space<vmem>>, vector<1x512x128xbf16>
    %214 = vector.shape_cast %213 : vector<1x512x128xbf16> to vector<512x128xbf16>
    %cst_99 = arith.constant dense<0.000000e+00> : vector<8x128xf32>
    %215 = tpu.matmul %212, %214, %cst_99 {dimension_numbers = #tpu.dot_dimension_numbers<[1], [0], [0], [1], [0, 0, 1, 1], [], []>} : vector<8x512xbf16>, vector<512x128xbf16>, vector<8x128xf32> -> vector<8x128xf32>
    %c1_100 = arith.constant 1 : index
    %c0_101 = arith.constant 0 : index
    %c0_102 = arith.constant 0 : index
    %216 = vector.load %arg11[%c1_100, %c0_101, %c0_102] : memref<2x1x128xf32, #tpu.memory_space<vmem>>, vector<1x1x128xf32>
    %217 = vector.shape_cast %216 : vector<1x1x128xf32> to vector<1x128xf32>
    %218 = vector.broadcast %217 : vector<1x128xf32> to vector<8x128xf32>
    %219 = arith.addf %215, %218 : vector<8x128xf32>
    %220 = arith.addf %201, %219 : vector<8x128xf32>
    %c1_103 = arith.constant 1 : index
    %c0_104 = arith.constant 0 : index
    %c0_105 = arith.constant 0 : index
    %221 = vector.load %arg14[%c1_103, %c0_104, %c0_105] : memref<2x1x128xf32, #tpu.memory_space<vmem>>, vector<1x1x128xf32>
    %222 = vector.shape_cast %221 : vector<1x1x128xf32> to vector<1x128xf32>
    %c1_106 = arith.constant 1 : index
    %c0_107 = arith.constant 0 : index
    %c0_108 = arith.constant 0 : index
    %223 = vector.load %arg15[%c1_106, %c0_107, %c0_108] : memref<2x1x128xf32, #tpu.memory_space<vmem>>, vector<1x1x128xf32>
    %224 = vector.shape_cast %223 : vector<1x1x128xf32> to vector<1x128xf32>
    %cst_109 = arith.constant dense<0.000000e+00> : vector<8xf32>
    %225 = vector.multi_reduction <add>, %220, %cst_109 [1] : vector<8x128xf32> to vector<8xf32>
    %226 = vector.shape_cast %225 : vector<8xf32> to vector<8x1xf32>
    %cst_110 = arith.constant 1.280000e+02 : f32
    %227 = vector.broadcast %cst_110 : f32 to vector<8x1xf32>
    %228 = arith.divf %226, %227 : vector<8x1xf32>
    %229 = vector.broadcast %228 : vector<8x1xf32> to vector<8x128xf32>
    %230 = arith.subf %220, %229 : vector<8x128xf32>
    %231 = arith.mulf %230, %230 : vector<8x128xf32>
    %cst_111 = arith.constant dense<0.000000e+00> : vector<8xf32>
    %232 = vector.multi_reduction <add>, %231, %cst_111 [1] : vector<8x128xf32> to vector<8xf32>
    %233 = vector.shape_cast %232 : vector<8xf32> to vector<8x1xf32>
    %cst_112 = arith.constant 1.280000e+02 : f32
    %234 = vector.broadcast %cst_112 : f32 to vector<8x1xf32>
    %235 = arith.divf %233, %234 : vector<8x1xf32>
    %cst_113 = arith.constant 9.99999974E-6 : f32
    %236 = vector.broadcast %cst_113 : f32 to vector<8x1xf32>
    %237 = arith.addf %235, %236 : vector<8x1xf32>
    %238 = math.rsqrt %237 : vector<8x1xf32>
    %239 = vector.broadcast %238 : vector<8x1xf32> to vector<8x128xf32>
    %240 = arith.mulf %230, %239 : vector<8x128xf32>
    %241 = vector.broadcast %222 : vector<1x128xf32> to vector<8x128xf32>
    %242 = arith.mulf %240, %241 : vector<8x128xf32>
    %243 = vector.broadcast %224 : vector<1x128xf32> to vector<8x128xf32>
    %244 = arith.addf %242, %243 : vector<8x128xf32>
    %c0_114 = arith.constant 0 : index
    %c0_115 = arith.constant 0 : index
    %245 = vector.load %arg16[%c0_114, %c0_115] : memref<8x128xf32, #tpu.memory_space<vmem>>, vector<8x128xf32>
    tpu.vector_store %arg16[%c0_114, %c0_115], %244 {strides = array<i32>} : memref<8x128xf32, #tpu.memory_space<vmem>>, vector<8x128xf32>,
    return
  }
  func.func @transform_0(%arg0: i32, %arg1: i32) -> (i32, i32, i32) {
    %c0_i32 = arith.constant 0 : i32
    %0 = arith.minsi %arg0, %c0_i32 : i32
    %c0_i32_0 = arith.constant 0 : i32
    %c0_i32_1 = arith.constant 0 : i32
    %c0_i32_2 = arith.constant 0 : i32
    return %0, %c0_i32_0, %c0_i32_1 : i32, i32, i32
  }
  func.func @transform_1(%arg0: i32, %arg1: i32) -> (i32, i32) {
    %c0_i32 = arith.constant 0 : i32
    %c0_i32_0 = arith.constant 0 : i32
    %c0_i32_1 = arith.constant 0 : i32
    return %c0_i32, %c0_i32_0 : i32, i32
  }
  func.func @transform_2(%arg0: i32, %arg1: i32) -> (i32, i32, i32) {
    %c0_i32 = arith.constant 0 : i32
    %c0_i32_0 = arith.constant 0 : i32
    %c0_i32_1 = arith.constant 0 : i32
    return %arg1, %c0_i32, %c0_i32_0 : i32, i32, i32
  }
  func.func @transform_3(%arg0: i32, %arg1: i32) -> (i32, i32, i32) {
    %c0_i32 = arith.constant 0 : i32
    %c0_i32_0 = arith.constant 0 : i32
    %c0_i32_1 = arith.constant 0 : i32
    return %arg1, %c0_i32, %c0_i32_0 : i32, i32, i32
  }
  func.func @transform_4(%arg0: i32, %arg1: i32) -> (i32, i32, i32) {
    %c0_i32 = arith.constant 0 : i32
    %c0_i32_0 = arith.constant 0 : i32
    %c0_i32_1 = arith.constant 0 : i32
    return %arg1, %c0_i32, %c0_i32_0 : i32, i32, i32
  }
  func.func @transform_5(%arg0: i32, %arg1: i32) -> (i32, i32, i32) {
    %c0_i32 = arith.constant 0 : i32
    %c0_i32_0 = arith.constant 0 : i32
    %c0_i32_1 = arith.constant 0 : i32
    return %arg1, %c0_i32, %c0_i32_0 : i32, i32, i32
  }
  func.func @transform_6(%arg0: i32, %arg1: i32) -> (i32, i32, i32) {
    %c0_i32 = arith.constant 0 : i32
    %c0_i32_0 = arith.constant 0 : i32
    %c0_i32_1 = arith.constant 0 : i32
    return %arg1, %c0_i32, %c0_i32_0 : i32, i32, i32
  }
  func.func @transform_7(%arg0: i32, %arg1: i32) -> (i32, i32, i32) {
    %c0_i32 = arith.constant 0 : i32
    %c0_i32_0 = arith.constant 0 : i32
    %c0_i32_1 = arith.constant 0 : i32
    return %arg1, %c0_i32, %c0_i32_0 : i32, i32, i32
  }
  func.func @transform_8(%arg0: i32, %arg1: i32) -> (i32, i32, i32) {
    %c0_i32 = arith.constant 0 : i32
    %c0_i32_0 = arith.constant 0 : i32
    %c0_i32_1 = arith.constant 0 : i32
    return %arg1, %c0_i32, %c0_i32_0 : i32, i32, i32
  }
  func.func @transform_9(%arg0: i32, %arg1: i32) -> (i32, i32, i32) {
    %c0_i32 = arith.constant 0 : i32
    %c0_i32_0 = arith.constant 0 : i32
    %c0_i32_1 = arith.constant 0 : i32
    return %arg1, %c0_i32, %c0_i32_0 : i32, i32, i32
  }
  func.func @transform_10(%arg0: i32, %arg1: i32) -> (i32, i32, i32) {
    %c0_i32 = arith.constant 0 : i32
    %c0_i32_0 = arith.constant 0 : i32
    %c0_i32_1 = arith.constant 0 : i32
    return %arg1, %c0_i32, %c0_i32_0 : i32, i32, i32
  }
  func.func @transform_11(%arg0: i32, %arg1: i32) -> (i32, i32, i32) {
    %c0_i32 = arith.constant 0 : i32
    %c0_i32_0 = arith.constant 0 : i32
    %c0_i32_1 = arith.constant 0 : i32
    return %arg1, %c0_i32, %c0_i32_0 : i32, i32, i32
  }
  func.func @transform_12(%arg0: i32, %arg1: i32) -> (i32, i32, i32) {
    %c0_i32 = arith.constant 0 : i32
    %c0_i32_0 = arith.constant 0 : i32
    %c0_i32_1 = arith.constant 0 : i32
    return %arg1, %c0_i32, %c0_i32_0 : i32, i32, i32
  }
  func.func @transform_13(%arg0: i32, %arg1: i32) -> (i32, i32, i32) {
    %c0_i32 = arith.constant 0 : i32
    %c0_i32_0 = arith.constant 0 : i32
    %c0_i32_1 = arith.constant 0 : i32
    return %arg1, %c0_i32, %c0_i32_0 : i32, i32, i32
  }
  func.func @transform_14(%arg0: i32, %arg1: i32) -> (i32, i32) {
    %c0_i32 = arith.constant 0 : i32
    %c0_i32_0 = arith.constant 0 : i32
    return %arg0, %c0_i32 : i32, i32
  }
}

</mosaic_0001>

<bundles_post_ra>
// kernel: vjepa_forward.6
= control target key start
LH: loop header
LB: loop body
LE: loop exit
PB: predicated region body
PF: predicated region fallthrough
CT: control target
= control target key end

     0   :  { %9 = vsyncpa [#allocation3], 0  ;;  %s248_s0 = inlined_call_operand.vmem [shape: f32[8,12], index: 0, kind: input, shape index: {}]   ;;  %s249_s1 = inlined_call_operand.vmem [shape: bf16[12,128], index: 1, kind: input, shape index: {}]   ;;  %s250_s2 = inlined_call_operand.hbm [shape: f32[1,128], index: 2, kind: input, shape index: {}]   ;;  %s251_s3 = inlined_call_operand.hbm [shape: f32[1,128], index: 3, kind: input, shape index: {}]   ;;  %s252_s4 = inlined_call_operand.vmem [shape: f32[8,128], index: 4, kind: output, shape index: {}]  }
   0x1   :  { %10 = vsyncpa [#allocation5], 0  ;;  %s186_s15 = smov [#allocation2]   ;;  %s187_s17 = smov [#allocation4]  }
   0x2   :  { %s21_s16 = sshll.u32 %s186_s15, 4  ;;  %s31_s18 = sshll.u32 %s187_s17, 4  ;;  %s22_s16 = int_to_ptr.vmem [resolvable:$true] %s21_s16  ;;  %s32_s18 = int_to_ptr.vmem [resolvable:$true] %s31_s18 }
   0x3   :  { %s138_s21 = scalar_lea.hbm %s250_s2, 16 }
   0x4   :  { %p139_p0 = scmp.ne.s32.totalorder %s250_s2, %s138_s21  ;;  %p142_p1 = scmp.lt.u32.totalorder %s138_s21, %s250_s2 }
   0x6   :  { %p144_p2 = pnand %p142_p1, %p139_p0 }
   0x8   :  { %147 = shalt.err (!%p144_p2)
}
   0x9   :  { %s148_s26 = scalar_lea.vmem %s22_s16, 16  ;;  %s152_s27 = scalar_lea.vmem %s22_s16, 32 }
   0xa   :  { %p149_p3 = scmp.ne.s32.totalorder %s22_s16, %s148_s26  ;;  %p153_p4 = scmp.lt.s32.totalorder %s22_s16, %s22_s16 }
   0xb   :  { %p154_p5 = scmp.lt.s32.totalorder %s152_s27, %s148_s26 }
   0xd   :  { %p155_p6 = por %p154_p5, %p153_p4 }
   0xf   :  { %p156_p7 = pnand %p155_p6, %p149_p3 }
  0x11   :  { %159 = shalt.err (!%p156_p7)
}
  0x12   :  { %24 = dma.hbm_to_vmem [thread:$0]  %s250_s2, 16, %s22_s16, [#allocation3]  }
  0x13   :  { %s160_s6 = scalar_lea.hbm %s251_s3, 16 }
  0x14   :  { %p161_p8 = scmp.ne.s32.totalorder %s251_s3, %s160_s6  ;;  %p164_p9 = scmp.lt.u32.totalorder %s160_s6, %s251_s3 }
  0x16   :  { %p166_p10 = pnand %p164_p9, %p161_p8 }
  0x18   :  { %169 = shalt.err (!%p166_p10)
}
  0x19   :  { %s170_s11 = scalar_lea.vmem %s32_s18, 16  ;;  %s174_s12 = scalar_lea.vmem %s32_s18, 32 }
  0x1a   :  { %p171_p11 = scmp.ne.s32.totalorder %s32_s18, %s170_s11  ;;  %p175_p12 = scmp.lt.s32.totalorder %s32_s18, %s32_s18 }
  0x1b   :  { %p176_p13 = scmp.lt.s32.totalorder %s174_s12, %s170_s11 }
  0x1d   :  { %p177_p0 = por %p176_p13, %p175_p12 }
  0x1f   :  { %p178_p1 = pnand %p177_p0, %p171_p11 }
  0x21   :  { %181 = shalt.err (!%p178_p1)
}
  0x22   :  { %34 = dma.hbm_to_vmem [thread:$0]  %s251_s3, 16, %s32_s18, [#allocation5]  }
  0x23   :  { %182 = dma.done.wait [#allocation3], 16  }
  0x24   :  { %183 = vsyncadd [#allocation3], 4294967280 }
  0x25   :  { %184 = dma.done.wait [#allocation5], 16  }
  0x26   :  { %185 = vsyncadd [#allocation5], 4294967280  ;;  %v188_v0 = vmov 0.0   ;;  %vm189_vm0 = vmmov 0   ;;  %vm62_vm1 = vcmask 1045504   ;;  %v42_v2 = vld [vmem:[%s248_s0] sm:$0xff] }
  0x27   :  { %127 = vmatprep.subr.bf16.mxu0 %v188_v0  ;;  %129 = vmatprep.mubr.msk.bf16.mxu0 %vm189_vm0, %v188_v0  ;;  %v137_v1 = vld [vmem:[%s249_s1] sm:$0x3f]   ;;  %v43_v4 = vpack.c.bf16 %v42_v2, %v42_v2  ;;  %vm58_vm2 = vcmask 97280  }
  0x28   :  { %v64_v3 = vsel %vm62_vm1, %v137_v1, 0  ;;  %v121_v5 = vld [vmem:[#allocation2] ss:$0 sm:$0xff]  ;;  %v124_v7 = vld [vmem:[#allocation4] ss:$0 sm:$0xff] }
  0x29   :  { %128 = vmatpush3.bf16.msra.mxu0 %v64_v3 }
  0x2c   :  { %130 = vmatmul.mubr.msk.bf16.vlgmr.msra.gmra.mrb[0].mxu0 %vm58_vm2, %v43_v4 }
  0xff   :  { %v100_v6 = vpop.f32.mrb[0].mxu0 }
 0x100   :  { %v101_v8 = vadd.f32 %v121_v5, %v100_v6  ;;  %v131_v9 = vpop.f32.mrb[1].mxu0 }
 0x101   :  { %v103_v10 = vpop.f32.mrb[2].mxu0 }
 0x102   :  { %v113_v11 = vadd.f32 %v124_v7, %v101_v8  ;;  %v132_v12 = vpop.f32.mrb[3].mxu0 }
 0x104   :  { %114 = vst [vmem:[%s252_s4] sm:$0xff] %v113_v11 }
 0x105   :  { %119 = vsyncpa [#allocation3], 1 }
 0x106   :  { %120 = vsyncpa [#allocation5], 1 }

// kernel: vjepa_forward.8
= control target key start
LH: loop header
LB: loop body
LE: loop exit
PB: predicated region body
PF: predicated region fallthrough
CT: control target
= control target key end

     0   :  { %9 = vsyncpa [#allocation3], 0  ;;  %s148_s15 = smov [#allocation2]   ;;  %s200_s0 = inlined_call_operand.vmem [shape: f32[8,12], index: 0, kind: input, shape index: {}]   ;;  %s201_s1 = inlined_call_operand.vmem [shape: bf16[12,128], index: 1, kind: input, shape index: {}]   ;;  %s202_s2 = inlined_call_operand.vmem [shape: f32[1,128], index: 2, kind: input, shape index: {}]   ;;  %s203_s3 = inlined_call_operand.hbm [shape: f32[1,128], index: 3, kind: input, shape index: {}]   ;;  %s204_s4 = inlined_call_operand.vmem [shape: f32[8,128], index: 4, kind: output, shape index: {}]  }
   0x1   :  { %s22_s16 = sshll.u32 %s148_s15, 4  ;;  %s124_s19 = scalar_lea.hbm %s203_s3, 16  ;;  %s23_s16 = int_to_ptr.vmem [resolvable:$true] %s22_s16 }
   0x2   :  { %p125_p0 = scmp.ne.s32.totalorder %s203_s3, %s124_s19  ;;  %p128_p1 = scmp.lt.u32.totalorder %s124_s19, %s203_s3 }
   0x4   :  { %p130_p2 = pnand %p128_p1, %p125_p0 }
   0x6   :  { %133 = shalt.err (!%p130_p2)
}
   0x7   :  { %s134_s24 = scalar_lea.vmem %s23_s16, 16  ;;  %s138_s25 = scalar_lea.vmem %s23_s16, 32 }
   0x8   :  { %p135_p3 = scmp.ne.s32.totalorder %s23_s16, %s134_s24  ;;  %p139_p4 = scmp.lt.s32.totalorder %s23_s16, %s23_s16 }
   0x9   :  { %p140_p5 = scmp.lt.s32.totalorder %s138_s25, %s134_s24 }
   0xb   :  { %p141_p6 = por %p140_p5, %p139_p4 }
   0xd   :  { %p142_p7 = pnand %p141_p6, %p135_p3 }
   0xf   :  { %145 = shalt.err (!%p142_p7)
}
  0x10   :  { %25 = dma.hbm_to_vmem [thread:$0]  %s203_s3, 16, %s23_s16, [#allocation3]  }
  0x11   :  { %146 = dma.done.wait [#allocation3], 16  }
  0x12   :  { %147 = vsyncadd [#allocation3], 4294967280  ;;  %v149_v0 = vmov 0.0   ;;  %vm150_vm0 = vmmov 0   ;;  %vm50_vm1 = vcmask 1045504   ;;  %v30_v2 = vld [vmem:[%s200_s0] sm:$0xff] }
  0x13   :  { %114 = vmatprep.subr.bf16.mxu0 %v149_v0  ;;  %116 = vmatprep.mubr.msk.bf16.mxu0 %vm150_vm0, %v149_v0  ;;  %v123_v1 = vld [vmem:[%s201_s1] sm:$0x3f]   ;;  %v31_v4 = vpack.c.bf16 %v30_v2, %v30_v2  ;;  %vm46_vm2 = vcmask 97280  }
  0x14   :  { %v52_v3 = vsel %vm50_vm1, %v123_v1, 0  ;;  %v108_v5 = vld [vmem:[%s202_s2] ss:$0 sm:$0xff] }
  0x15   :  { %115 = vmatpush3.bf16.msra.mxu0 %v52_v3  ;;  %v111_v7 = vld [vmem:[#allocation2] ss:$0 sm:$0xff] }
  0x18   :  { %117 = vmatmul.mubr.msk.bf16.vlgmr.msra.gmra.mrb[0].mxu0 %vm46_vm2, %v31_v4 }
  0xeb   :  { %v88_v6 = vpop.f32.mrb[0].mxu0 }
  0xec   :  { %v89_v8 = vadd.f32 %v108_v5, %v88_v6  ;;  %v118_v9 = vpop.f32.mrb[1].mxu0 }
  0xed   :  { %v91_v10 = vpop.f32.mrb[2].mxu0 }
  0xee   :  { %v101_v11 = vadd.f32 %v111_v7, %v89_v8  ;;  %v119_v12 = vpop.f32.mrb[3].mxu0 }
  0xf0   :  { %102 = vst [vmem:[%s204_s4] sm:$0xff] %v101_v11 }
  0xf1   :  { %107 = vsyncpa [#allocation3], 1 }

// kernel: vjepa_forward.11
= control target key start
LH: loop header
LB: loop body
LE: loop exit
PB: predicated region body
PF: predicated region fallthrough
CT: control target
= control target key end

     0   :  { %s104_s0 = inlined_call_operand.vmem [shape: f32[8,128], index: 0, kind: input, shape index: {}]   ;;  %s105_s1 = inlined_call_operand.vmem [shape: f32[8,128], index: 1, kind: input, shape index: {}]   ;;  %s106_s2 = inlined_call_operand.hbm [shape: f32[1,1], index: 2, kind: output, shape index: {}]  }
   0x1   :  { %v18_v0 = vld [vmem:[%s104_s0] sm:$0xff] }
   0x2   :  { %v19_v1 = vld [vmem:[%s105_s1] sm:$0xff] }
   0x3   :  { %7 = vsyncpa [#allocation4], 0  ;;  %v20_v2 = vsub.f32 %v18_v0, %v19_v1  ;;  %s58_s16 = scalar_lea.hbm %s106_s2, 16 }
   0x4   :  { %p59_p0 = scmp.ne.s32.totalorder %s106_s2, %s58_s16  ;;  %p62_p1 = scmp.lt.u32.totalorder %s58_s16, %s106_s2 }
   0x5   :  { %v22_v3 = vmul.f32 %v20_v2, %v20_v2 }
   0x6   :  { %p64_p2 = pnand %p62_p1, %p59_p0 }
   0x7   :  { %23 = vadd.xlane.f32.xlu0 %v22_v3 }
  0x94   :  { %v24_v4 = vpop.xlane.xlu0 %23 }
  0x95   :  { %v25_v5 = vrot.slane %v24_v4, 4 }
  0x97   :  { %v26_v6 = vadd.f32 %v25_v5, %v24_v4 }
  0x99   :  { %v27_v7 = vrot.slane %v26_v6, 2 }
  0x9b   :  { %v28_v8 = vadd.f32 %v27_v7, %v26_v6 }
  0x9d   :  { %v29_v9 = vrot.slane %v28_v8, 1 }
  0x9f   :  { %v30_v10 = vadd.f32 %v29_v9, %v28_v8 }
  0xa1   :  { %55 = vpush %v30_v10 }
  0xd2   :  { %s56_s13 = spop %55 }
  0xd3   :  { %s39_s14 = smul.f32 0.0009765625, %s56_s13 }
  0xd5   :  { %41 = sst [smem:[#allocation3]] %s39_s14 }
  0xd6   :  { %67 = shalt.err (!%p64_p2)
}
  0xd7   :  { %s70_s20 = smov [#allocation3]  }
  0xd8   :  { %49 = dma.smem_to_hbm %s70_s20, 16, %s106_s2, [#allocation4]  }
  0xd9   :  { %68 = dma.done.wait [#allocation4], 16  }
  0xda   :  { %69 = vsyncadd [#allocation4], 4294967280 }
  0xdb   :  { %53 = sfence }
  0xdc   :  { %54 = vsyncpa [#allocation4], 1 }

// kernel: vjepa_forward.9
= control target key start
LH: loop header
LB: loop body
LE: loop exit
PB: predicated region body
PF: predicated region fallthrough
CT: control target
= control target key end

     0   :  { %18 = vsyncpa [#allocation3], 0  ;;  %s2945_s0 = inlined_call_operand.vmem [shape: f32[8,128], index: 0, kind: input, shape index: {}]   ;;  %s2946_s1 = inlined_call_operand.vmem [shape: bf16[2,128,128], index: 1, kind: input, shape index: {}]   ;;  %s2947_s2 = inlined_call_operand.vmem [shape: f32[2,1,128], index: 2, kind: input, shape index: {}]   ;;  %s2948_s3 = inlined_call_operand.hbm [shape: bf16[2,128,128], index: 3, kind: input, shape index: {}]   ;;  %s2949_s4 = inlined_call_operand.vmem [shape: f32[2,1,128], index: 4, kind: input, shape index: {}]   ;;  %s2950_s5 = inlined_call_operand.hbm [shape: bf16[2,128,512], index: 5, kind: input, shape index: {}]   ;;  %s2951_s6 = inlined_call_operand.vmem [shape: f32[2,1,512], index: 6, kind: input, shape index: {}]   ;;  %s2952_s7 = inlined_call_operand.hbm [shape: bf16[2,512,128], index: 7, kind: input, shape index: {}]   ;;  %s2953_s8 = inlined_call_operand.vmem [shape: f32[2,1,128], index: 8, kind: input, shape index: {}]   ;;  %s2954_s9 = inlined_call_operand.vmem [shape: f32[2,1,128], index: 9, kind: input, shape index: {}]   ;;  %s2955_s10 = inlined_call_operand.vmem [shape: f32[2,1,128], index: 10, kind: input, shape index: {}]   ;;  %s2956_s11 = inlined_call_operand.vmem [shape: f32[2,1,128], index: 11, kind: input, shape index: {}]   ;;  %s2957_s12 = inlined_call_operand.vmem [shape: f32[2,1,128], index: 12, kind: input, shape index: {}]   ;;  %s2958_s13 = inlined_call_operand.vmem [shape: f32[8,128], index: 13, kind: output, shape index: {}]  }
   0x1   :  { %19 = vsyncpa [#allocation5], 0  ;;  %s2651_s25 = smov [#allocation4]   ;;  %s2581_s29 = scalar_lea.hbm %s2950_s5, 8192 }
   0x2   :  { %s45_s26 = sshll.u32 %s2651_s25, 4  ;;  %p2582_p0 = scmp.ne.s32.totalorder %s2950_s5, %s2581_s29  ;;  %s46_s26 = int_to_ptr.vmem [resolvable:$true] %s45_s26 }
   0x3   :  { %p2585_p1 = scmp.lt.u32.totalorder %s2581_s29, %s2950_s5 }
   0x5   :  { %p2587_p2 = pnand %p2585_p1, %p2582_p0 }
   0x7   :  { %2590 = shalt.err (!%p2587_p2)
}
   0x8   :  { %s2591_s17 = scalar_lea.vmem %s46_s26, 8192  ;;  %p2596_p4 = scmp.lt.s32.totalorder %s46_s26, %s46_s26 }
   0x9   :  { %p2592_p3 = scmp.ne.s32.totalorder %s46_s26, %s2591_s17  ;;  %p2597_p5 = scmp.lt.s32.totalorder %s2591_s17, %s2591_s17 }
   0xb   :  { %p2598_p6 = por %p2597_p5, %p2596_p4 }
   0xd   :  { %p2599_p7 = pnand %p2598_p6, %p2592_p3 }
   0xf   :  { %2602 = shalt.err (!%p2599_p7)
}
  0x10   :  { %s2652_s18 = smov 256   ;;  %s2653_s19 = smov 16  }
  0x11   :  { %51 = dma.hbm_to_vmem [thread:$0]  %s2950_s5, 8192, %s46_s26, [#allocation5], %s2652_s18, %s2652_s18, %s2653_s19  }
  0x12   :  { %s2654_s22 = smov [#allocation2]   ;;  %s2603_s27 = scalar_lea.hbm %s2948_s3, 2048 }
  0x13   :  { %s31_s23 = sshll.u32 %s2654_s22, 4  ;;  %p2604_p8 = scmp.ne.s32.totalorder %s2948_s3, %s2603_s27  ;;  %s32_s23 = int_to_ptr.vmem [resolvable:$true] %s31_s23 }
  0x14   :  { %p2607_p9 = scmp.lt.u32.totalorder %s2603_s27, %s2948_s3 }
  0x16   :  { %p2609_p10 = pnand %p2607_p9, %p2604_p8 }
  0x18   :  { %2612 = shalt.err (!%p2609_p10)
}
  0x19   :  { %s2613_s15 = scalar_lea.vmem %s32_s23, 2048  ;;  %p2618_p12 = scmp.lt.s32.totalorder %s32_s23, %s32_s23 }
  0x1a   :  { %p2614_p11 = scmp.ne.s32.totalorder %s32_s23, %s2613_s15  ;;  %p2619_p13 = scmp.lt.s32.totalorder %s2613_s15, %s2613_s15 }
  0x1c   :  { %p2620_p0 = por %p2619_p13, %p2618_p12 }
  0x1e   :  { %p2621_p1 = pnand %p2620_p0, %p2614_p11 }
  0x20   :  { %2624 = shalt.err (!%p2621_p1)
}
  0x21   :  { %s2655_s5 = smov 64   ;;  %s2656_s26 = smov 4  }
  0x22   :  { %37 = dma.hbm_to_vmem [thread:$0]  %s2948_s3, 2048, %s32_s23, [#allocation3], %s2655_s5, %s2655_s5, %s2656_s26  }
  0x23   :  { %s2657_s18 = smov [#allocation6]   ;;  %s2625_s22 = scalar_lea.hbm %s2952_s7, 8192 }
  0x24   :  { %s59_s19 = sshll.u32 %s2657_s18, 4  ;;  %p2626_p2 = scmp.ne.s32.totalorder %s2952_s7, %s2625_s22  ;;  %s60_s19 = int_to_ptr.vmem [resolvable:$true] %s59_s19 }
  0x25   :  { %p2629_p3 = scmp.lt.u32.totalorder %s2625_s22, %s2952_s7 }
  0x27   :  { %p2631_p4 = pnand %p2629_p3, %p2626_p2 }
  0x29   :  { %2634 = shalt.err (!%p2631_p4)
}
  0x2a   :  { %s2635_s29 = scalar_lea.vmem %s60_s19, 8192  ;;  %p2640_p6 = scmp.lt.s32.totalorder %s60_s19, %s60_s19 }
  0x2b   :  { %p2636_p5 = scmp.ne.s32.totalorder %s60_s19, %s2635_s29  ;;  %p2641_p7 = scmp.lt.s32.totalorder %s2635_s29, %s2635_s29 }
  0x2d   :  { %p2642_p8 = por %p2641_p7, %p2640_p6 }
  0x2f   :  { %p2643_p9 = pnand %p2642_p8, %p2636_p5 }
  0x31   :  { %2646 = shalt.err (!%p2643_p9)
}
  0x32   :  { %65 = dma.hbm_to_vmem [thread:$0]  %s2952_s7, 8192, %s60_s19, [#allocation5], %s2655_s5, %s2655_s5, %s2656_s26  }
  0x33   :  { %2647 = dma.done.wait [#allocation3], 2048  }
  0x34   :  { %2648 = vsyncadd [#allocation3], 4294965248 }
  0x35   :  { %2649 = dma.done.wait [#allocation5], 16384  }
  0x36   :  { %2650 = vsyncadd [#allocation5], 4294950912  ;;  %v2658_v0 = vmov 0.0   ;;  %vm2659_vm0 = vmmov 0   ;;  %v2381_v1 = vld [vmem:[%s2946_s1] sm:$0xff]   ;;  %v2382_v2 = vld [vmem:[%s2946_s1 + $0x8] sm:$0xff]  }
  0x37   :  { %2291 = vmatprep.subr.bf16.mxu0 %v2658_v0  ;;  %2307 = vmatprep.mubr.msk.bf16.mxu0 %vm2659_vm0, %v2658_v0  ;;  %v2383_v3 = vld [vmem:[%s2946_s1 + $0x10] sm:$0xff]   ;;  %v2389_v4 = vld [vmem:[#allocation2] sm:$0xff]   ;;  %v2384_v5 = vld [vmem:[%s2946_s1 + $0x18] sm:$0xff]  }
  0x38   :  { %2311 = vmatprep.subr.bf16.mxu1 %v2658_v0  ;;  %2327 = vmatprep.mubr.msk.bf16.mxu1 %vm2659_vm0, %v2658_v0  ;;  %v2390_v6 = vld [vmem:[#allocation2 + $0x8] sm:$0xff]   ;;  %v2385_v7 = vld [vmem:[%s2946_s1 + $0x20] sm:$0xff]   ;;  %v2391_v8 = vld [vmem:[#allocation2 + $0x10] sm:$0xff]  }
  0x39   :  { %2292 = vmatpush3.bf16.msra.mxu0 %v2381_v1  ;;  %2312 = vmatpush3.bf16.msra.mxu1 %v2389_v4  ;;  %v2386_v9 = vld [vmem:[%s2946_s1 + $0x28] sm:$0xff]   ;;  %v2392_v10 = vld [vmem:[#allocation2 + $0x18] sm:$0xff]   ;;  %v2387_v11 = vld [vmem:[%s2946_s1 + $0x30] sm:$0xff]  }
  0x3a   :  { %2293 = vmatprep.subr.bf16.mxu0 %v2658_v0  ;;  %2313 = vmatprep.subr.bf16.mxu1 %v2658_v0  ;;  %v2393_v12 = vld [vmem:[#allocation2 + $0x20] sm:$0xff]   ;;  %v2388_v13 = vld [vmem:[%s2946_s1 + $0x38] sm:$0xff]   ;;  %v2394_v15 = vld [vmem:[#allocation2 + $0x28] sm:$0xff]  }
  0x3b   :  { %v90_v14 = vld [vmem:[%s2945_s0] sm:$0xff]  ;;  %v2395_v17 = vld [vmem:[#allocation2 + $0x30] sm:$0xff]   ;;  %v2396_v18 = vld [vmem:[#allocation2 + $0x38] sm:$0xff]  }
  0x3c   :  { %v93_v16 = vpack.c.bf16 %v90_v14, %v90_v14  ;;  %v1969_v19 = vld [vmem:[%s2947_s2] ss:$0 sm:$0xff]  ;;  %v2399_v34 = vld [vmem:[#allocation4 + $0x4] ss:$16 sps:$4 sm:$0xff]   ;;  %v2400_v35 = vld [vmem:[#allocation4 + $0x8] ss:$16 sps:$4 sm:$0xff]  }
  0x3d   :  { %2294 = vmatpush3.bf16.msra.mxu0 %v2382_v2  ;;  %2314 = vmatpush3.bf16.msra.mxu1 %v2390_v6  ;;  %v1978_v26 = vld [vmem:[%s2949_s4] ss:$0 sm:$0xff]  ;;  %v2402_v36 = vld [vmem:[#allocation4 + $0xc] ss:$16 sps:$4 sm:$0xff]   ;;  %v2405_v37 = vld [vmem:[#allocation4 + $0x24] ss:$16 sps:$4 sm:$0xff]  }
  0x3e   :  { %2295 = vmatprep.subr.bf16.mxu0 %v2658_v0  ;;  %2315 = vmatprep.subr.bf16.mxu1 %v2658_v0  ;;  %v2397_v33 = vld [vmem:[#allocation4] ss:$16 sps:$4 sm:$0xff]   ;;  %v2408_v38 = vld [vmem:[#allocation4 + $0x2c] ss:$16 sps:$4 sm:$0xff]   ;;  %v2406_v40 = vld [vmem:[#allocation4 + $0x28] ss:$16 sps:$4 sm:$0xff]  }
  0x3f   :  { %v2403_v39 = vld [vmem:[#allocation4 + $0x20] ss:$16 sps:$4 sm:$0xff]   ;;  %v2411_v41 = vld [vmem:[#allocation4 + $0x44] ss:$16 sps:$4 sm:$0xff]   ;;  %v2414_v42 = vld [vmem:[#allocation4 + $0x4c] ss:$16 sps:$4 sm:$0xff]  }
  0x40   :  { %v2409_v43 = vld [vmem:[#allocation4 + $0x40] ss:$16 sps:$4 sm:$0xff]   ;;  %v2412_v44 = vld [vmem:[#allocation4 + $0x48] ss:$16 sps:$4 sm:$0xff]   ;;  %v2417_v49 = vld [vmem:[#allocation4 + $0x64] ss:$16 sps:$4 sm:$0xff]  }
  0x41   :  { %2296 = vmatpush3.bf16.msra.mxu0 %v2383_v3  ;;  %2316 = vmatpush3.bf16.msra.mxu1 %v2391_v8  ;;  %v2420_v50 = vld [vmem:[#allocation4 + $0x6c] ss:$16 sps:$4 sm:$0xff]   ;;  %v2415_v51 = vld [vmem:[#allocation4 + $0x60] ss:$16 sps:$4 sm:$0xff]   ;;  %v2418_v52 = vld [vmem:[#allocation4 + $0x68] ss:$16 sps:$4 sm:$0xff]  }
  0x42   :  { %2297 = vmatprep.subr.bf16.mxu0 %v2658_v0  ;;  %2317 = vmatprep.subr.bf16.mxu1 %v2658_v0  ;;  %v2423_v53 = vld [vmem:[#allocation4 + $0x84] ss:$16 sps:$4 sm:$0xff]   ;;  %v2426_v54 = vld [vmem:[#allocation4 + $0x8c] ss:$16 sps:$4 sm:$0xff]   ;;  %v2421_v55 = vld [vmem:[#allocation4 + $0x80] ss:$16 sps:$4 sm:$0xff]  }
  0x43   :  { %v2424_v56 = vld [vmem:[#allocation4 + $0x88] ss:$16 sps:$4 sm:$0xff]   ;;  %v2429_v57 = vld [vmem:[#allocation4 + $0xa4] ss:$16 sps:$4 sm:$0xff]   ;;  %v2432_v58 = vld [vmem:[#allocation4 + $0xac] ss:$16 sps:$4 sm:$0xff]  }
  0x44   :  { %v2427_v59 = vld [vmem:[#allocation4 + $0xa0] ss:$16 sps:$4 sm:$0xff]   ;;  %v2430_v60 = vld [vmem:[#allocation4 + $0xa8] ss:$16 sps:$4 sm:$0xff]   ;;  %v2435_v61 = vld [vmem:[#allocation4 + $0xc4] ss:$16 sps:$4 sm:$0xff]  }
  0x45   :  { %2298 = vmatpush3.bf16.msra.mxu0 %v2384_v5  ;;  %2318 = vmatpush3.bf16.msra.mxu1 %v2392_v10  ;;  %v2438_v62 = vld [vmem:[#allocation4 + $0xcc] ss:$16 sps:$4 sm:$0xff]   ;;  %v2433_v63 = vld [vmem:[#allocation4 + $0xc0] ss:$16 sps:$4 sm:$0xff]   ;;  %v2436_v1 = vld [vmem:[#allocation4 + $0xc8] ss:$16 sps:$4 sm:$0xff]  }
  0x46   :  { %2299 = vmatprep.subr.bf16.mxu0 %v2658_v0  ;;  %2319 = vmatprep.subr.bf16.mxu1 %v2658_v0  ;;  %v2439_v2 = vld [vmem:[#allocation4 + $0xe0] ss:$16 sps:$4 sm:$0xff]   ;;  %v2441_v3 = vld [vmem:[#allocation4 + $0xe4] ss:$16 sps:$4 sm:$0xff]   ;;  %v2442_v4 = vld [vmem:[#allocation4 + $0xe8] ss:$16 sps:$4 sm:$0xff]  }
  0x47   :  { %v2444_v5 = vld [vmem:[#allocation4 + $0xec] ss:$16 sps:$4 sm:$0xff]   ;;  %v2660_v6 = vmov 0   ;;  %v2446_v8 = vld [vmem:[#allocation6 + $0xc0] sm:$0xff]  }
  0x49   :  { %2300 = vmatpush3.bf16.msra.mxu0 %v2385_v7  ;;  %2320 = vmatpush3.bf16.msra.mxu1 %v2393_v12  ;;  %v2445_v7 = vld [vmem:[#allocation6 + $0x40] sm:$0xff]  }
  0x4a   :  { %2301 = vmatprep.subr.bf16.mxu0 %v2658_v0  ;;  %2321 = vmatprep.subr.bf16.mxu1 %v2658_v0 }
  0x4d   :  { %2302 = vmatpush3.bf16.msra.mxu0 %v2386_v9  ;;  %2322 = vmatpush3.bf16.msra.mxu1 %v2394_v15  ;;  %v1988_v15 = vld [vmem:[%s2955_s10] ss:$0 sm:$0xff] }
  0x4e   :  { %2303 = vmatprep.subr.bf16.mxu0 %v2658_v0  ;;  %2323 = vmatprep.subr.bf16.mxu1 %v2658_v0 }
  0x51   :  { %2304 = vmatpush3.bf16.msra.mxu0 %v2387_v11  ;;  %2324 = vmatpush3.bf16.msra.mxu1 %v2395_v17 }
  0x52   :  { %2305 = vmatprep.subr.bf16.mxu0 %v2658_v0  ;;  %2325 = vmatprep.subr.bf16.mxu1 %v2658_v0 }
  0x55   :  { %2306 = vmatpush3.bf16.msra.mxu0 %v2388_v13  ;;  %2326 = vmatpush3.bf16.msra.mxu1 %v2396_v18  ;;  %v1987_v13 = vld [vmem:[%s2954_s9] ss:$0 sm:$0xff] }
  0x56   :  { %561 = vmatprep.subr.bf16.mxu0 %v2399_v34  ;;  %602 = vmatprep.subr.bf16.mxu1 %v2402_v36  ;;  %v2447_v18 = vld [vmem:[#allocation6] sm:$0xff]  }
  0x57   :  { %v2462_v34 = vld [vmem:[#allocation6 + $0xe0] sm:$0xff]  }
  0x58   :  { %2308 = vmatmul.mubr.bf16.vlgmr.msra.gmra.mrb[0].mxu0 %v93_v16  ;;  %v2464_v36 = vld [vmem:[#allocation6 + $0xa0] sm:$0xff]  }
  0x59   :  { %562 = vmatpush1.bf16.msra.mxu0 %v2397_v33  ;;  %593 = vmatprep.mubr.bf16.mxu0 %v2660_v6  ;;  %v2461_v33 = vld [vmem:[#allocation6 + $0x60] sm:$0xff]  }
  0x5a   :  { %563 = vmatprep.subr.bf16.mxu0 %v2405_v37  ;;  %v2465_v37 = vld [vmem:[#allocation6 + $0x68] sm:$0xff]  }
  0x5d   :  { %564 = vmatpush1.bf16.msra.mxu0 %v2403_v39  ;;  %v2467_v39 = vld [vmem:[#allocation6 + $0x28] sm:$0xff]  }
  0x5e   :  { %565 = vmatprep.subr.bf16.mxu0 %v2411_v41  ;;  %v2469_v41 = vld [vmem:[#allocation6 + $0x70] sm:$0xff]  }
  0x61   :  { %566 = vmatpush1.bf16.msra.mxu0 %v2409_v43  ;;  %v2471_v43 = vld [vmem:[#allocation6 + $0x30] sm:$0xff]  }
  0x62   :  { %567 = vmatprep.subr.bf16.mxu0 %v2417_v49  ;;  %v381_v49 = vlaneseq }
  0x65   :  { %568 = vmatpush1.bf16.msra.mxu0 %v2415_v51 }
  0x66   :  { %569 = vmatprep.subr.bf16.mxu0 %v2423_v53  ;;  %v379_v53 = vld [vmem:[%s2951_s6] sm:$0xf] }
  0x69   :  { %570 = vmatpush1.bf16.msra.mxu0 %v2421_v55 }
  0x6a   :  { %571 = vmatprep.subr.bf16.mxu0 %v2429_v57 }
  0x6d   :  { %572 = vmatpush1.bf16.msra.mxu0 %v2427_v59 }
  0x6e   :  { %573 = vmatprep.subr.bf16.mxu0 %v2435_v61 }
  0x71   :  { %574 = vmatpush1.bf16.msra.mxu0 %v2433_v63 }
  0x72   :  { %575 = vmatprep.subr.bf16.mxu0 %v2441_v3 }
  0x75   :  { %576 = vmatpush1.bf16.msra.mxu0 %v2439_v2 }
  0x76   :  { %2185 = vmatprep.subr.bf16.mxu0 %v2445_v7 }
 0x12b   :  { %v199_v20 = vpop.f32.mrb[0].mxu0 }
 0x12c   :  { %v200_v21 = vadd.f32 %v1969_v19, %v199_v20  ;;  %v2309_v22 = vpop.f32.mrb[1].mxu0  ;;  %v2448_v19 = vld [vmem:[#allocation6 + $0x80] sm:$0xff]  }
 0x12d   :  { %v202_v23 = vpop.f32.mrb[2].mxu0  ;;  %v2450_v22 = vld [vmem:[#allocation6 + $0xc8] sm:$0xff]  }
 0x12e   :  { %v205_v24 = vpack.c.bf16 %v200_v21, %v200_v21  ;;  %v2310_v25 = vpop.f32.mrb[3].mxu0  ;;  %v2449_v21 = vld [vmem:[#allocation6 + $0x48] sm:$0xff]  }
 0x12f   :  { %v2451_v23 = vld [vmem:[#allocation6 + $0x8] sm:$0xff]   ;;  %v2453_v25 = vld [vmem:[#allocation6 + $0x50] sm:$0xff]  }
 0x130   :  { %2328 = vmatmul.mubr.bf16.vlgmr.msra.gmra.mrb[0].mxu1 %v205_v24  ;;  %v2452_v24 = vld [vmem:[#allocation6 + $0x88] sm:$0xff]  }
 0x131   :  { %603 = vmatpush1.bf16.msra.mxu1 %v2400_v35  ;;  %634 = vmatprep.mubr.bf16.mxu1 %v2660_v6  ;;  %v2463_v35 = vld [vmem:[#allocation6 + $0x20] sm:$0xff]  }
 0x132   :  { %604 = vmatprep.subr.bf16.mxu1 %v2408_v38  ;;  %v2466_v38 = vld [vmem:[#allocation6 + $0xe8] sm:$0xff]  }
 0x135   :  { %605 = vmatpush1.bf16.msra.mxu1 %v2406_v40  ;;  %v2468_v40 = vld [vmem:[#allocation6 + $0xa8] sm:$0xff]  }
 0x136   :  { %606 = vmatprep.subr.bf16.mxu1 %v2414_v42  ;;  %v2470_v42 = vld [vmem:[#allocation6 + $0xf0] sm:$0xff]  }
 0x139   :  { %607 = vmatpush1.bf16.msra.mxu1 %v2412_v44  ;;  %v2472_v44 = vld [vmem:[#allocation6 + $0xb0] sm:$0xff]  }
 0x13a   :  { %608 = vmatprep.subr.bf16.mxu1 %v2420_v50  ;;  %v2834_v50 = vshrl.u32 %v381_v49, 7  ;;  %v2490_v49 = vld [vmem:[#allocation2 + $0x68] sm:$0xff]  }
 0x13c   :  { %v383_v51 = vsub.s32 0, %v2834_v50  ;;  %v395_v55 = vsub.s32 3, %v2834_v50 }
 0x13d   :  { %609 = vmatpush1.bf16.msra.mxu1 %v2418_v52  ;;  %v391_v52 = vsub.s32 2, %v2834_v50 }
 0x13e   :  { %610 = vmatprep.subr.bf16.mxu1 %v2426_v54  ;;  %v387_v54 = vsub.s32 1, %v2834_v50  ;;  %v396_v59 = vrot.slane %v379_v53, %v395_v55 }
 0x13f   :  { %v392_v57 = vrot.slane %v379_v53, %v391_v52 }
 0x141   :  { %611 = vmatpush1.bf16.msra.mxu1 %v2424_v56  ;;  %v384_v56 = vrot.slane %v379_v53, %v383_v51 }
 0x142   :  { %612 = vmatprep.subr.bf16.mxu1 %v2432_v58  ;;  %v388_v58 = vrot.slane %v379_v53, %v387_v54  ;;  %v2491_v53 = vld [vmem:[#allocation2 + $0x70] sm:$0xff]  }
 0x145   :  { %613 = vmatpush1.bf16.msra.mxu1 %v2430_v60 }
 0x146   :  { %614 = vmatprep.subr.bf16.mxu1 %v2438_v62 }
 0x149   :  { %615 = vmatpush1.bf16.msra.mxu1 %v2436_v1 }
 0x14a   :  { %616 = vmatprep.subr.bf16.mxu1 %v2444_v5 }
 0x14d   :  { %617 = vmatpush1.bf16.msra.mxu1 %v2442_v4 }
 0x14e   :  { %2207 = vmatprep.subr.bf16.mxu1 %v2446_v8 }
 0x203   :  { %v311_v27 = vpop.f32.mrb[0].mxu1 }
 0x204   :  { %v312_v28 = vadd.f32 %v1978_v26, %v311_v27  ;;  %v2329_v29 = vpop.f32.mrb[1].mxu1  ;;  %v2454_v26 = vld [vmem:[#allocation6 + $0xd0] sm:$0xff]  }
 0x205   :  { %v314_v30 = vpop.f32.mrb[2].mxu1  ;;  %v2455_v27 = vld [vmem:[#allocation6 + $0x10] sm:$0xff]   ;;  %v2457_v29 = vld [vmem:[#allocation6 + $0x58] sm:$0xff]  }
 0x206   :  { %v2330_v31 = vpop.f32.mrb[3].mxu1  ;;  %v317_v32 = vadd.f32 %v312_v28, %v90_v14  ;;  %v2456_v28 = vld [vmem:[#allocation6 + $0x90] sm:$0xff]   ;;  %v2458_v30 = vld [vmem:[#allocation6 + $0xd8] sm:$0xff]  }
 0x207   :  { %v2459_v31 = vld [vmem:[#allocation6 + $0x18] sm:$0xff]  }
 0x208   :  { %320 = vadd.xlane.f32.xlu0 %v317_v32 }
 0x295   :  { %v321_v45 = vpop.xlane.xlu0 %320 }
 0x296   :  { %v323_v46 = vmul.f32 0.0078125, %v321_v45  ;;  %v2473_v45 = vld [vmem:[#allocation6 + $0x78] sm:$0xff]  }
 0x298   :  { %v324_v47 = vsub.f32 %v317_v32, %v323_v46  ;;  %v2460_v32 = vld [vmem:[#allocation6 + $0x98] sm:$0xff]  }
 0x299   :  { %v2474_v46 = vld [vmem:[#allocation6 + $0xf8] sm:$0xff]  }
 0x29a   :  { %v325_v48 = vmul.f32 %v324_v47, %v324_v47 }
 0x29c   :  { %326 = vadd.xlane.f32.xlu0 %v325_v48  ;;  %v2476_v48 = vld [vmem:[#allocation6 + $0xb8] sm:$0xff]  }
 0x329   :  { %v327_v9 = vpop.xlane.xlu0 %326 }
 0x32a   :  { %v328_v10 = vmul.f32 0.0078125, %v327_v9 }
 0x32c   :  { %v329_v11 = vadd.f32 1e-05, %v328_v10 }
 0x32e   :  { %2573 = vrsqrt.f32 %v329_v11 }
 0x338   :  { %v2574_v12 = vpop.eup %2573 }
 0x339   :  { %v331_v14 = vmul.f32 %v2574_v12, %v324_v47  ;;  %v2475_v47 = vld [vmem:[#allocation6 + $0x38] sm:$0xff]  }
 0x33b   :  { %v338_v16 = vmul.f32 %v1987_v13, %v331_v14 }
 0x33d   :  { %v2828_v17 = vadd.f32 %v1988_v15, %v338_v16 }
 0x33f   :  { %v346_v20 = vpack.c.bf16 %v2828_v17, %v2828_v17 }
 0x341   :  { %594 = vmatmul.mubr.bf16.vlgmr.msra.gmra.mrb[4].mxu0 %v346_v20  ;;  %635 = vmatmul.mubr.bf16.vlgmr.msra.gmra.mrb[4].mxu1 %v346_v20 }
 0x342   :  { %2186 = vmatpush3.bf16.msra.mxu0 %v2447_v18  ;;  %2208 = vmatpush3.bf16.msra.mxu1 %v2448_v19 }
 0x343   :  { %2187 = vmatprep.subr.bf16.mxu0 %v2449_v21  ;;  %2209 = vmatprep.subr.bf16.mxu1 %v2450_v22  ;;  %v2021_v21 = vld [vmem:[%s2953_s8] ss:$0 sm:$0xff] }
 0x346   :  { %2188 = vmatpush3.bf16.msra.mxu0 %v2451_v23  ;;  %2210 = vmatpush3.bf16.msra.mxu1 %v2452_v24 }
 0x347   :  { %2189 = vmatprep.subr.bf16.mxu0 %v2453_v25  ;;  %2211 = vmatprep.subr.bf16.mxu1 %v2454_v26 }
 0x34a   :  { %2190 = vmatpush3.bf16.msra.mxu0 %v2455_v27  ;;  %2212 = vmatpush3.bf16.msra.mxu1 %v2456_v28 }
 0x34b   :  { %2191 = vmatprep.subr.bf16.mxu0 %v2457_v29  ;;  %2213 = vmatprep.subr.bf16.mxu1 %v2458_v30 }
 0x34e   :  { %2192 = vmatpush3.bf16.msra.mxu0 %v2459_v31  ;;  %2214 = vmatpush3.bf16.msra.mxu1 %v2460_v32 }
 0x34f   :  { %2193 = vmatprep.subr.bf16.mxu0 %v2461_v33  ;;  %2215 = vmatprep.subr.bf16.mxu1 %v2462_v34  ;;  %v2477_v33 = vld [vmem:[%s2946_s1 + $0x40] sm:$0xff]   ;;  %v2478_v34 = vld [vmem:[%s2946_s1 + $0x48] sm:$0xff]  }
 0x352   :  { %2194 = vmatpush3.bf16.msra.mxu0 %v2463_v35  ;;  %2216 = vmatpush3.bf16.msra.mxu1 %v2464_v36 }
 0x353   :  { %2195 = vmatprep.subr.bf16.mxu0 %v2465_v37  ;;  %2217 = vmatprep.subr.bf16.mxu1 %v2466_v38 }
 0x356   :  { %2196 = vmatpush3.bf16.msra.mxu0 %v2467_v39  ;;  %2218 = vmatpush3.bf16.msra.mxu1 %v2468_v40  ;;  %v2480_v39 = vld [vmem:[%s2946_s1 + $0x58] sm:$0xff]   ;;  %v2481_v40 = vld [vmem:[%s2946_s1 + $0x60] sm:$0xff]  }
 0x357   :  { %2197 = vmatprep.subr.bf16.mxu0 %v2469_v41  ;;  %2219 = vmatprep.subr.bf16.mxu1 %v2470_v42  ;;  %v2482_v41 = vld [vmem:[%s2946_s1 + $0x68] sm:$0xff]   ;;  %v2483_v42 = vld [vmem:[%s2946_s1 + $0x70] sm:$0xff]  }
 0x35a   :  { %2198 = vmatpush3.bf16.msra.mxu0 %v2471_v43  ;;  %2220 = vmatpush3.bf16.msra.mxu1 %v2472_v44  ;;  %v2484_v43 = vld [vmem:[%s2946_s1 + $0x78] sm:$0xff]   ;;  %v2485_v44 = vld [vmem:[#allocation2 + $0x40] sm:$0xff]  }
 0x35b   :  { %2199 = vmatprep.subr.bf16.mxu0 %v2473_v45  ;;  %2221 = vmatprep.subr.bf16.mxu1 %v2474_v46  ;;  %v2486_v45 = vld [vmem:[#allocation2 + $0x48] sm:$0xff]   ;;  %v2487_v46 = vld [vmem:[#allocation2 + $0x50] sm:$0xff]  }
 0x35e   :  { %2200 = vmatpush3.bf16.msra.mxu0 %v2475_v47  ;;  %2222 = vmatpush3.bf16.msra.mxu1 %v2476_v48  ;;  %v2488_v47 = vld [vmem:[#allocation2 + $0x58] sm:$0xff]   ;;  %v2489_v48 = vld [vmem:[#allocation2 + $0x60] sm:$0xff]  }
 0x35f   :  { %2331 = vmatprep.subr.bf16.mxu0 %v2658_v0  ;;  %2351 = vmatprep.subr.bf16.mxu1 %v2658_v0 }
 0x414   :  { %v595_v60 = vpop.f32.mrb[4].mxu0  ;;  %v636_v61 = vpop.f32.mrb[4].mxu1 }
 0x415   :  { %v596_v62 = vadd.f32 %v595_v60, %v384_v56  ;;  %v637_v63 = vadd.f32 %v636_v61, %v392_v57  ;;  %v597_v1 = vpop.f32.mrb[5].mxu0  ;;  %v638_v2 = vpop.f32.mrb[5].mxu1  ;;  %v2054_v60 = vld [vmem:[%s2956_s11] ss:$0 sm:$0xff] }
 0x416   :  { %v598_v3 = vadd.f32 %v597_v1, %v388_v58  ;;  %v639_v4 = vadd.f32 %v638_v2, %v396_v59  ;;  %v599_v5 = vpop.f32.mrb[6].mxu0  ;;  %v640_v7 = vpop.f32.mrb[6].mxu1 }
 0x417   :  { %v643_v8 = vmax.f32 %v596_v62, 0.0  ;;  %v645_v9 = vmax.f32 %v637_v63, 0.0  ;;  %v600_v10 = vpop.f32.mrb[7].mxu0  ;;  %v641_v11 = vpop.f32.mrb[7].mxu1  ;;  %v2055_v62 = vld [vmem:[%s2957_s12] ss:$0 sm:$0xff] }
 0x418   :  { %v644_v12 = vmax.f32 %v598_v3, 0.0  ;;  %v646_v13 = vmax.f32 %v639_v4, 0.0  ;;  %v2073_v3 = vld [vmem:[%s2947_s2 + $0x1] ss:$0 sm:$0xff] }
 0x419   :  { %v647_v16 = vpack.c.bf16 %v643_v8, %v643_v8  ;;  %v649_v18 = vpack.c.bf16 %v645_v9, %v645_v9  ;;  %v2083_v11 = vld [vmem:[%s2949_s4 + $0x1] ss:$0 sm:$0xff] }
 0x41a   :  { %v648_v14 = vpack.c.bf16 %v644_v12, %v644_v12  ;;  %v650_v15 = vpack.c.bf16 %v646_v13, %v646_v13 }
 0x41c   :  { %946 = vmatprep.mubr.bf16.mxu0 %v648_v14  ;;  %986 = vmatprep.mubr.bf16.mxu1 %v650_v15 }
 0x41d   :  { %947 = vmatmul.mubr.bf16.vlgmr.msra.gmra.mrb[8].mxu0 %v647_v16  ;;  %987 = vmatmul.mubr.bf16.vlgmr.msra.gmra.mrb[8].mxu1 %v649_v18 }
 0x41e   :  { %2347 = vmatprep.mubr.msk.bf16.mxu0 %vm2659_vm0, %v2658_v0  ;;  %2367 = vmatprep.mubr.msk.bf16.mxu1 %vm2659_vm0, %v2658_v0 }
 0x41f   :  { %2332 = vmatpush3.bf16.msra.mxu0 %v2477_v33  ;;  %2352 = vmatpush3.bf16.msra.mxu1 %v2485_v44  ;;  %v2526_v44 = vld [vmem:[#allocation4 + $0x1a8] ss:$16 sps:$4 sm:$0xff]  }
 0x420   :  { %2333 = vmatprep.subr.bf16.mxu0 %v2658_v0  ;;  %2353 = vmatprep.subr.bf16.mxu1 %v2658_v0 }
 0x423   :  { %2334 = vmatpush3.bf16.msra.mxu0 %v2478_v34  ;;  %2354 = vmatpush3.bf16.msra.mxu1 %v2486_v45  ;;  %v2513_v34 = vld [vmem:[#allocation4 + $0x164] ss:$16 sps:$4 sm:$0xff]  }
 0x424   :  { %2335 = vmatprep.subr.bf16.mxu0 %v2658_v0  ;;  %2355 = vmatprep.subr.bf16.mxu1 %v2658_v0  ;;  %v2531_v45 = vld [vmem:[#allocation4 + $0x1c4] ss:$16 sps:$4 sm:$0xff]  }
 0x427   :  { %2356 = vmatpush3.bf16.msra.mxu1 %v2487_v46  ;;  %v2534_v46 = vld [vmem:[#allocation4 + $0x1cc] ss:$16 sps:$4 sm:$0xff]  }
 0x428   :  { %2357 = vmatprep.subr.bf16.mxu1 %v2658_v0 }
 0x42b   :  { %2358 = vmatpush3.bf16.msra.mxu1 %v2488_v47  ;;  %v2529_v47 = vld [vmem:[#allocation4 + $0x1c0] ss:$16 sps:$4 sm:$0xff]  }
 0x42c   :  { %2359 = vmatprep.subr.bf16.mxu1 %v2658_v0 }
 0x42f   :  { %2360 = vmatpush3.bf16.msra.mxu1 %v2489_v48  ;;  %v2532_v48 = vld [vmem:[#allocation4 + $0x1c8] ss:$16 sps:$4 sm:$0xff]  }
 0x430   :  { %2361 = vmatprep.subr.bf16.mxu1 %v2658_v0 }
 0x433   :  { %2362 = vmatpush3.bf16.msra.mxu1 %v2490_v49  ;;  %v2537_v49 = vld [vmem:[#allocation4 + $0x1e4] ss:$16 sps:$4 sm:$0xff]  }
 0x434   :  { %2363 = vmatprep.subr.bf16.mxu1 %v2658_v0 }
 0x437   :  { %2364 = vmatpush3.bf16.msra.mxu1 %v2491_v53  ;;  %v2535_v53 = vld [vmem:[#allocation4 + $0x1e0] ss:$16 sps:$4 sm:$0xff]  }
 0x438   :  { %2365 = vmatprep.subr.bf16.mxu1 %v2658_v0 }
 0x4f0   :  { %v2201_v19 = vpop.f32.mrb[8].mxu0  ;;  %v2223_v20 = vpop.f32.mrb[8].mxu1 }
 0x4f1   :  { %v2202_v22 = vpop.f32.mrb[9].mxu0  ;;  %v2224_v23 = vpop.f32.mrb[9].mxu1 }
 0x4f2   :  { %v2203_v24 = vadd.f32 %v2202_v22, %v2201_v19  ;;  %v2225_v25 = vadd.f32 %v2224_v23, %v2223_v20  ;;  %v2204_v26 = vpop.f32.mrb[10].mxu0  ;;  %v2226_v27 = vpop.f32.mrb[10].mxu1  ;;  %v2493_v19 = vld [vmem:[#allocation4 + $0x100] ss:$16 sps:$4 sm:$0xff]   ;;  %v2495_v20 = vld [vmem:[#allocation4 + $0x104] ss:$16 sps:$4 sm:$0xff]  }
 0x4f3   :  { %v2205_v28 = vpop.f32.mrb[11].mxu0  ;;  %v2227_v29 = vpop.f32.mrb[11].mxu1  ;;  %v2498_v22 = vld [vmem:[#allocation4 + $0x10c] ss:$16 sps:$4 sm:$0xff]   ;;  %v2501_v23 = vld [vmem:[#allocation4 + $0x124] ss:$16 sps:$4 sm:$0xff]  }
 0x4f4   :  { %v949_v30 = vadd.f32 %v2203_v24, %v2021_v21  ;;  %v2496_v21 = vld [vmem:[#allocation4 + $0x108] ss:$16 sps:$4 sm:$0xff]   ;;  %v2504_v24 = vld [vmem:[#allocation4 + $0x12c] ss:$16 sps:$4 sm:$0xff]   ;;  %v2507_v26 = vld [vmem:[#allocation4 + $0x144] ss:$16 sps:$4 sm:$0xff]  }
 0x4f5   :  { %v2510_v27 = vld [vmem:[#allocation4 + $0x14c] ss:$16 sps:$4 sm:$0xff]   ;;  %v2505_v28 = vld [vmem:[#allocation4 + $0x140] ss:$16 sps:$4 sm:$0xff]   ;;  %v2508_v29 = vld [vmem:[#allocation4 + $0x148] ss:$16 sps:$4 sm:$0xff]  }
 0x4f6   :  { %v989_v31 = vadd.f32 %v2225_v25, %v949_v30  ;;  %v2502_v25 = vld [vmem:[#allocation4 + $0x128] ss:$16 sps:$4 sm:$0xff]  }
 0x4f8   :  { %v994_v32 = vadd.f32 %v989_v31, %v2828_v17  ;;  %v2479_v17 = vld [vmem:[%s2946_s1 + $0x50] sm:$0xff]  }
 0x4f9   :  { %2336 = vmatpush3.bf16.msra.mxu0 %v2479_v17  ;;  %v2522_v17 = vld [vmem:[#allocation4 + $0x18c] ss:$16 sps:$4 sm:$0xff]  }
 0x4fa   :  { %997 = vadd.xlane.f32.xlu1 %v994_v32  ;;  %2337 = vmatprep.subr.bf16.mxu0 %v2658_v0 }
 0x4fd   :  { %2338 = vmatpush3.bf16.msra.mxu0 %v2480_v39  ;;  %v2517_v39 = vld [vmem:[#allocation4 + $0x180] ss:$16 sps:$4 sm:$0xff]  }
 0x4fe   :  { %2339 = vmatprep.subr.bf16.mxu0 %v2658_v0 }
 0x501   :  { %2340 = vmatpush3.bf16.msra.mxu0 %v2481_v40  ;;  %v2520_v40 = vld [vmem:[#allocation4 + $0x188] ss:$16 sps:$4 sm:$0xff]  }
 0x502   :  { %2341 = vmatprep.subr.bf16.mxu0 %v2658_v0 }
 0x505   :  { %2342 = vmatpush3.bf16.msra.mxu0 %v2482_v41  ;;  %v2525_v41 = vld [vmem:[#allocation4 + $0x1a4] ss:$16 sps:$4 sm:$0xff]  }
 0x506   :  { %2343 = vmatprep.subr.bf16.mxu0 %v2658_v0 }
 0x509   :  { %2344 = vmatpush3.bf16.msra.mxu0 %v2483_v42  ;;  %v2528_v42 = vld [vmem:[#allocation4 + $0x1ac] ss:$16 sps:$4 sm:$0xff]  }
 0x50a   :  { %2345 = vmatprep.subr.bf16.mxu0 %v2658_v0  ;;  %v2492_v0 = vld [vmem:[#allocation2 + $0x78] sm:$0xff]  }
 0x50b   :  { %2366 = vmatpush3.bf16.msra.mxu1 %v2492_v0  ;;  %v2095_v0 = vld [vmem:[%s2955_s10 + $0x1] ss:$0 sm:$0xff] }
 0x50c   :  { %1538 = vmatprep.subr.bf16.mxu1 %v2498_v22  ;;  %v2557_v22 = vld [vmem:[#allocation6 + $0x160] sm:$0xff]  }
 0x50d   :  { %2346 = vmatpush3.bf16.msra.mxu0 %v2484_v43  ;;  %v2523_v43 = vld [vmem:[#allocation4 + $0x1a0] ss:$16 sps:$4 sm:$0xff]  }
 0x50e   :  { %1497 = vmatprep.subr.bf16.mxu0 %v2495_v20  ;;  %v2555_v20 = vld [vmem:[#allocation6 + $0x118] sm:$0xff]  }
 0x587   :  { %v998_v35 = vpop.xlane.xlu1 %997 }
 0x588   :  { %v999_v36 = vmul.f32 0.0078125, %v998_v35  ;;  %v2516_v35 = vld [vmem:[#allocation4 + $0x16c] ss:$16 sps:$4 sm:$0xff]  }
 0x58a   :  { %v1000_v37 = vsub.f32 %v994_v32, %v999_v36  ;;  %v2511_v36 = vld [vmem:[#allocation4 + $0x160] ss:$16 sps:$4 sm:$0xff]  }
 0x58c   :  { %v1001_v38 = vmul.f32 %v1000_v37, %v1000_v37 }
 0x58e   :  { %1002 = vadd.xlane.f32.xlu1 %v1001_v38  ;;  %v2519_v38 = vld [vmem:[#allocation4 + $0x184] ss:$16 sps:$4 sm:$0xff]  }
 0x61b   :  { %v1003_v56 = vpop.xlane.xlu1 %1002 }
 0x61c   :  { %v1004_v57 = vmul.f32 0.0078125, %v1003_v56  ;;  %v2538_v56 = vld [vmem:[#allocation4 + $0x1e8] ss:$16 sps:$4 sm:$0xff]  }
 0x61e   :  { %v1005_v58 = vadd.f32 1e-05, %v1004_v57  ;;  %v2540_v57 = vld [vmem:[#allocation4 + $0x1ec] ss:$16 sps:$4 sm:$0xff]  }
 0x620   :  { %2575 = vrsqrt.f32 %v1005_v58  ;;  %v2541_v58 = vld [vmem:[#allocation6 + $0x140] sm:$0xff]  }
 0x62a   :  { %v2576_v59 = vpop.eup %2575 }
 0x62b   :  { %v1007_v61 = vmul.f32 %v2576_v59, %v1000_v37  ;;  %v2514_v37 = vld [vmem:[#allocation4 + $0x168] ss:$16 sps:$4 sm:$0xff]   ;;  %v2542_v59 = vld [vmem:[#allocation6 + $0x1c0] sm:$0xff]  }
 0x62d   :  { %v1014_v63 = vmul.f32 %v2054_v60, %v1007_v61 }
 0x62f   :  { %v1021_v1 = vadd.f32 %v2055_v62, %v1014_v63 }
 0x631   :  { %v1022_v2 = vpack.c.bf16 %v1021_v1, %v1021_v1 }
 0x633   :  { %2348 = vmatmul.mubr.bf16.vlgmr.msra.gmra.mrb[12].mxu0 %v1022_v2 }
 0x634   :  { %1529 = vmatprep.mubr.bf16.mxu0 %v2660_v6  ;;  %1498 = vmatpush1.bf16.msra.mxu0 %v2493_v19  ;;  %v2554_v19 = vld [vmem:[#allocation6 + $0x1d8] sm:$0xff]  }
 0x635   :  { %1499 = vmatprep.subr.bf16.mxu0 %v2501_v23  ;;  %v2558_v23 = vld [vmem:[#allocation6 + $0x1e0] sm:$0xff]  }
 0x706   :  { %v1130_v4 = vpop.f32.mrb[12].mxu0 }
 0x707   :  { %v1131_v5 = vadd.f32 %v2073_v3, %v1130_v4  ;;  %v2349_v7 = vpop.f32.mrb[13].mxu0 }
 0x708   :  { %v1133_v8 = vpop.f32.mrb[14].mxu0  ;;  %v2544_v7 = vld [vmem:[#allocation6 + $0x180] sm:$0xff]  }
 0x709   :  { %v1136_v9 = vpack.c.bf16 %v1131_v5, %v1131_v5  ;;  %v2350_v10 = vpop.f32.mrb[15].mxu0  ;;  %v2543_v5 = vld [vmem:[#allocation6 + $0x100] sm:$0xff]  }
 0x70a   :  { %v2546_v10 = vld [vmem:[#allocation6 + $0x1c8] sm:$0xff]  }
 0x70b   :  { %2368 = vmatmul.mubr.bf16.vlgmr.msra.gmra.mrb[12].mxu1 %v1136_v9  ;;  %v2545_v9 = vld [vmem:[#allocation6 + $0x148] sm:$0xff]  }
 0x70c   :  { %1570 = vmatprep.mubr.bf16.mxu1 %v2660_v6  ;;  %v2499_v6 = vld [vmem:[#allocation4 + $0x120] ss:$16 sps:$4 sm:$0xff]   ;;  %1539 = vmatpush1.bf16.msra.mxu1 %v2496_v21  ;;  %v2556_v21 = vld [vmem:[#allocation6 + $0x198] sm:$0xff]  }
 0x70d   :  { %1540 = vmatprep.subr.bf16.mxu1 %v2504_v24  ;;  %1500 = vmatpush1.bf16.msra.mxu0 %v2499_v6  ;;  %v2559_v24 = vld [vmem:[#allocation6 + $0x120] sm:$0xff]  }
 0x70e   :  { %1501 = vmatprep.subr.bf16.mxu0 %v2507_v26  ;;  %v2560_v6 = vld [vmem:[#allocation6 + $0x1a0] sm:$0xff]   ;;  %v2562_v26 = vld [vmem:[#allocation6 + $0x1e8] sm:$0xff]  }
 0x710   :  { %1541 = vmatpush1.bf16.msra.mxu1 %v2502_v25  ;;  %v2561_v25 = vld [vmem:[#allocation6 + $0x168] sm:$0xff]  }
 0x711   :  { %1542 = vmatprep.subr.bf16.mxu1 %v2510_v27  ;;  %1502 = vmatpush1.bf16.msra.mxu0 %v2505_v28  ;;  %v2563_v27 = vld [vmem:[#allocation6 + $0x128] sm:$0xff]  }
 0x712   :  { %1503 = vmatprep.subr.bf16.mxu0 %v2513_v34  ;;  %v2564_v28 = vld [vmem:[#allocation6 + $0x1a8] sm:$0xff]   ;;  %v2570_v34 = vld [vmem:[#allocation6 + $0x1f8] sm:$0xff]  }
 0x714   :  { %1543 = vmatpush1.bf16.msra.mxu1 %v2508_v29  ;;  %v2565_v29 = vld [vmem:[#allocation6 + $0x170] sm:$0xff]  }
 0x715   :  { %1544 = vmatprep.subr.bf16.mxu1 %v2516_v35  ;;  %1504 = vmatpush1.bf16.msra.mxu0 %v2511_v36  ;;  %v2571_v35 = vld [vmem:[#allocation6 + $0x138] sm:$0xff]  }
 0x716   :  { %1505 = vmatprep.subr.bf16.mxu0 %v2519_v38  ;;  %v2572_v36 = vld [vmem:[#allocation6 + $0x1b8] sm:$0xff]  }
 0x718   :  { %1545 = vmatpush1.bf16.msra.mxu1 %v2514_v37  ;;  %v2096_v37 = vld [vmem:[%s2951_s6 + $0x4] sm:$0xf] }
 0x719   :  { %1546 = vmatprep.subr.bf16.mxu1 %v2522_v17  ;;  %1506 = vmatpush1.bf16.msra.mxu0 %v2517_v39  ;;  %v1320_v38 = vrot.slane %v2096_v37, %v383_v51  ;;  %v1328_v17 = vrot.slane %v2096_v37, %v391_v52  ;;  %v1324_v39 = vrot.slane %v2096_v37, %v387_v54 }
 0x71a   :  { %1507 = vmatprep.subr.bf16.mxu0 %v2525_v41 }
 0x71c   :  { %1547 = vmatpush1.bf16.msra.mxu1 %v2520_v40  ;;  %v1332_v40 = vrot.slane %v2096_v37, %v395_v55 }
 0x71d   :  { %1548 = vmatprep.subr.bf16.mxu1 %v2528_v42  ;;  %1508 = vmatpush1.bf16.msra.mxu0 %v2523_v43 }
 0x71e   :  { %1509 = vmatprep.subr.bf16.mxu0 %v2531_v45 }
 0x720   :  { %1549 = vmatpush1.bf16.msra.mxu1 %v2526_v44 }
 0x721   :  { %1550 = vmatprep.subr.bf16.mxu1 %v2534_v46  ;;  %1510 = vmatpush1.bf16.msra.mxu0 %v2529_v47 }
 0x722   :  { %1511 = vmatprep.subr.bf16.mxu0 %v2537_v49 }
 0x724   :  { %1551 = vmatpush1.bf16.msra.mxu1 %v2532_v48 }
 0x725   :  { %1552 = vmatprep.subr.bf16.mxu1 %v2540_v57  ;;  %1512 = vmatpush1.bf16.msra.mxu0 %v2535_v53 }
 0x726   :  { %2247 = vmatprep.subr.bf16.mxu0 %v2541_v58 }
 0x728   :  { %1553 = vmatpush1.bf16.msra.mxu1 %v2538_v56 }
 0x729   :  { %2269 = vmatprep.subr.bf16.mxu1 %v2542_v59 }
 0x7de   :  { %v1244_v12 = vpop.f32.mrb[12].mxu1 }
 0x7df   :  { %v1245_v13 = vadd.f32 %v2083_v11, %v1244_v12  ;;  %v2369_v14 = vpop.f32.mrb[13].mxu1  ;;  %v2547_v11 = vld [vmem:[#allocation6 + $0x108] sm:$0xff]  }
 0x7e0   :  { %v1247_v15 = vpop.f32.mrb[14].mxu1  ;;  %v2548_v12 = vld [vmem:[#allocation6 + $0x188] sm:$0xff]   ;;  %v2550_v14 = vld [vmem:[#allocation6 + $0x1d0] sm:$0xff]  }
 0x7e1   :  { %v2370_v16 = vpop.f32.mrb[15].mxu1  ;;  %v1250_v18 = vadd.f32 %v1245_v13, %v1021_v1  ;;  %v2094_v1 = vld [vmem:[%s2954_s9 + $0x1] ss:$0 sm:$0xff]  ;;  %v2549_v13 = vld [vmem:[#allocation6 + $0x150] sm:$0xff]  }
 0x7e2   :  { %v2551_v15 = vld [vmem:[#allocation6 + $0x110] sm:$0xff]  }
 0x7e3   :  { %1255 = vadd.xlane.f32.xlu0 %v1250_v18  ;;  %v2552_v16 = vld [vmem:[#allocation6 + $0x190] sm:$0xff]  }
 0x870   :  { %v1256_v30 = vpop.xlane.xlu0 %1255 }
 0x871   :  { %v1257_v31 = vmul.f32 0.0078125, %v1256_v30  ;;  %v2566_v30 = vld [vmem:[#allocation6 + $0x1f0] sm:$0xff]  }
 0x873   :  { %v1258_v32 = vsub.f32 %v1250_v18, %v1257_v31  ;;  %v2553_v18 = vld [vmem:[#allocation6 + $0x158] sm:$0xff]   ;;  %v2567_v31 = vld [vmem:[#allocation6 + $0x130] sm:$0xff]  }
 0x875   :  { %v1259_v33 = vmul.f32 %v1258_v32, %v1258_v32 }
 0x877   :  { %1260 = vadd.xlane.f32.xlu1 %v1259_v33  ;;  %v2569_v33 = vld [vmem:[#allocation6 + $0x178] sm:$0xff]  }
 0x904   :  { %v1261_v60 = vpop.xlane.xlu1 %1260 }
 0x905   :  { %v1262_v61 = vmul.f32 0.0078125, %v1261_v60 }
 0x907   :  { %v1263_v62 = vadd.f32 1e-05, %v1262_v61 }
 0x909   :  { %2577 = vrsqrt.f32 %v1263_v62 }
 0x913   :  { %v2578_v63 = vpop.eup %2577 }
 0x914   :  { %v1265_v2 = vmul.f32 %v2578_v63, %v1258_v32  ;;  %v2568_v32 = vld [vmem:[#allocation6 + $0x1b0] sm:$0xff]   ;;  %v2130_v63 = vld [vmem:[%s2953_s8 + $0x1] ss:$0 sm:$0xff] }
 0x916   :  { %v1272_v3 = vmul.f32 %v2094_v1, %v1265_v2 }
 0x918   :  { %v2917_v4 = vadd.f32 %v2095_v0, %v1272_v3 }
 0x91a   :  { %v1280_v8 = vpack.c.bf16 %v2917_v4, %v2917_v4 }
 0x91c   :  { %1530 = vmatmul.mubr.bf16.vlgmr.msra.gmra.mrb[16].mxu0 %v1280_v8  ;;  %1571 = vmatmul.mubr.bf16.vlgmr.msra.gmra.mrb[16].mxu1 %v1280_v8 }
 0x91d   :  { %2248 = vmatpush3.bf16.msra.mxu0 %v2543_v5  ;;  %2270 = vmatpush3.bf16.msra.mxu1 %v2544_v7 }
 0x91e   :  { %2249 = vmatprep.subr.bf16.mxu0 %v2545_v9  ;;  %2271 = vmatprep.subr.bf16.mxu1 %v2546_v10 }
 0x921   :  { %2250 = vmatpush3.bf16.msra.mxu0 %v2547_v11  ;;  %2272 = vmatpush3.bf16.msra.mxu1 %v2548_v12 }
 0x922   :  { %2251 = vmatprep.subr.bf16.mxu0 %v2549_v13  ;;  %2273 = vmatprep.subr.bf16.mxu1 %v2550_v14 }
 0x925   :  { %2252 = vmatpush3.bf16.msra.mxu0 %v2551_v15  ;;  %2274 = vmatpush3.bf16.msra.mxu1 %v2552_v16 }
 0x926   :  { %2253 = vmatprep.subr.bf16.mxu0 %v2553_v18  ;;  %2275 = vmatprep.subr.bf16.mxu1 %v2554_v19 }
 0x929   :  { %2254 = vmatpush3.bf16.msra.mxu0 %v2555_v20  ;;  %2276 = vmatpush3.bf16.msra.mxu1 %v2556_v21 }
 0x92a   :  { %2255 = vmatprep.subr.bf16.mxu0 %v2557_v22  ;;  %2277 = vmatprep.subr.bf16.mxu1 %v2558_v23  ;;  %v2165_v22 = vld [vmem:[%s2956_s11 + $0x1] ss:$0 sm:$0xff] }
 0x92d   :  { %2256 = vmatpush3.bf16.msra.mxu0 %v2559_v24  ;;  %2278 = vmatpush3.bf16.msra.mxu1 %v2560_v6 }
 0x92e   :  { %2257 = vmatprep.subr.bf16.mxu0 %v2561_v25  ;;  %2279 = vmatprep.subr.bf16.mxu1 %v2562_v26 }
 0x931   :  { %2258 = vmatpush3.bf16.msra.mxu0 %v2563_v27  ;;  %2280 = vmatpush3.bf16.msra.mxu1 %v2564_v28 }
 0x932   :  { %2259 = vmatprep.subr.bf16.mxu0 %v2565_v29  ;;  %2281 = vmatprep.subr.bf16.mxu1 %v2566_v30 }
 0x935   :  { %2260 = vmatpush3.bf16.msra.mxu0 %v2567_v31  ;;  %2282 = vmatpush3.bf16.msra.mxu1 %v2568_v32 }
 0x936   :  { %2261 = vmatprep.subr.bf16.mxu0 %v2569_v33  ;;  %2283 = vmatprep.subr.bf16.mxu1 %v2570_v34 }
 0x939   :  { %2262 = vmatpush3.bf16.msra.mxu0 %v2571_v35  ;;  %2284 = vmatpush3.bf16.msra.mxu1 %v2572_v36 }
 0x9ef   :  { %v1531_v41 = vpop.f32.mrb[16].mxu0  ;;  %v1572_v42 = vpop.f32.mrb[16].mxu1 }
 0x9f0   :  { %v1532_v43 = vadd.f32 %v1531_v41, %v1320_v38  ;;  %v1573_v44 = vadd.f32 %v1572_v42, %v1328_v17  ;;  %v1533_v45 = vpop.f32.mrb[17].mxu0  ;;  %v1574_v46 = vpop.f32.mrb[17].mxu1 }
 0x9f1   :  { %v1534_v47 = vadd.f32 %v1533_v45, %v1324_v39  ;;  %v1575_v48 = vadd.f32 %v1574_v46, %v1332_v40  ;;  %v1535_v49 = vpop.f32.mrb[18].mxu0  ;;  %v1576_v53 = vpop.f32.mrb[18].mxu1 }
 0x9f2   :  { %v1579_v51 = vmax.f32 %v1532_v43, 0.0  ;;  %v1581_v56 = vmax.f32 %v1573_v44, 0.0  ;;  %v1536_v57 = vpop.f32.mrb[19].mxu0  ;;  %v1577_v52 = vpop.f32.mrb[19].mxu1 }
 0x9f3   :  { %v1580_v58 = vmax.f32 %v1534_v47, 0.0  ;;  %v1582_v59 = vmax.f32 %v1575_v48, 0.0 }
 0x9f4   :  { %v1583_v50 = vpack.c.bf16 %v1579_v51, %v1579_v51  ;;  %v1585_v55 = vpack.c.bf16 %v1581_v56, %v1581_v56 }
 0x9f5   :  { %v1584_v54 = vpack.c.bf16 %v1580_v58, %v1580_v58  ;;  %v1586_v60 = vpack.c.bf16 %v1582_v59, %v1582_v59 }
 0x9f7   :  { %1884 = vmatprep.mubr.bf16.mxu0 %v1584_v54  ;;  %1924 = vmatprep.mubr.bf16.mxu1 %v1586_v60 }
 0x9f8   :  { %1885 = vmatmul.mubr.bf16.vlgmr.msra.gmra.mrb[20].mxu0 %v1583_v50  ;;  %1925 = vmatmul.mubr.bf16.vlgmr.msra.gmra.mrb[20].mxu1 %v1585_v55 }
 0xacb   :  { %v2263_v61 = vpop.f32.mrb[20].mxu0  ;;  %v2285_v62 = vpop.f32.mrb[20].mxu1 }
 0xacc   :  { %v2264_v1 = vpop.f32.mrb[21].mxu0  ;;  %v2286_v2 = vpop.f32.mrb[21].mxu1 }
 0xacd   :  { %v2265_v0 = vadd.f32 %v2264_v1, %v2263_v61  ;;  %v2287_v3 = vadd.f32 %v2286_v2, %v2285_v62  ;;  %v2266_v5 = vpop.f32.mrb[22].mxu0  ;;  %v2288_v7 = vpop.f32.mrb[22].mxu1 }
 0xace   :  { %v2267_v8 = vpop.f32.mrb[23].mxu0  ;;  %v2289_v9 = vpop.f32.mrb[23].mxu1 }
 0xacf   :  { %v1887_v10 = vadd.f32 %v2265_v0, %v2130_v63 }
 0xad1   :  { %v1927_v11 = vadd.f32 %v2287_v3, %v1887_v10 }
 0xad3   :  { %v1932_v12 = vadd.f32 %v1927_v11, %v2917_v4  ;;  %v2166_v4 = vld [vmem:[%s2957_s12 + $0x1] ss:$0 sm:$0xff] }
 0xad5   :  { %1937 = vadd.xlane.f32.xlu0 %v1932_v12 }
 0xb62   :  { %v1938_v13 = vpop.xlane.xlu0 %1937 }
 0xb63   :  { %v1939_v14 = vmul.f32 0.0078125, %v1938_v13 }
 0xb65   :  { %v1940_v15 = vsub.f32 %v1932_v12, %v1939_v14 }
 0xb67   :  { %v1941_v16 = vmul.f32 %v1940_v15, %v1940_v15 }
 0xb69   :  { %1942 = vadd.xlane.f32.xlu1 %v1941_v16 }
 0xbf6   :  { %v1943_v18 = vpop.xlane.xlu1 %1942 }
 0xbf7   :  { %v1944_v19 = vmul.f32 0.0078125, %v1943_v18 }
 0xbf9   :  { %v1945_v20 = vadd.f32 1e-05, %v1944_v19 }
 0xbfb   :  { %2579 = vrsqrt.f32 %v1945_v20 }
 0xc05   :  { %v2580_v21 = vpop.eup %2579 }
 0xc06   :  { %v1947_v23 = vmul.f32 %v2580_v21, %v1940_v15 }
 0xc08   :  { %v1954_v24 = vmul.f32 %v2165_v22, %v1947_v23 }
 0xc0a   :  { %v1961_v6 = vadd.f32 %v2166_v4, %v1954_v24 }
 0xc0c   :  { %1962 = vst [vmem:[%s2958_s13] sm:$0xff] %v1961_v6 }
 0xc0d   :  { %1967 = vsyncpa [#allocation3], 1 }
 0xc0e   :  { %1968 = vsyncpa [#allocation5], 1 }

// kernel: vjepa_forward.7
= control target key start
LH: loop header
LB: loop body
LE: loop exit
PB: predicated region body
PF: predicated region fallthrough
CT: control target
= control target key end

     0   :  { %18 = vsyncpa [#allocation3], 0  ;;  %s3536_s0 = inlined_call_operand.vmem [shape: f32[8,128], index: 0, kind: input, shape index: {}]   ;;  %s3537_s1 = inlined_call_operand.vmem [shape: bf16[2,128,128], index: 1, kind: input, shape index: {}]   ;;  %s3538_s2 = inlined_call_operand.vmem [shape: f32[2,1,128], index: 2, kind: input, shape index: {}]   ;;  %s3539_s3 = inlined_call_operand.vmem [shape: bf16[2,128,128], index: 3, kind: input, shape index: {}]   ;;  %s3540_s4 = inlined_call_operand.vmem [shape: f32[2,1,128], index: 4, kind: input, shape index: {}]   ;;  %s3541_s5 = inlined_call_operand.vmem [shape: bf16[2,128,512], index: 5, kind: input, shape index: {}]   ;;  %s3542_s6 = inlined_call_operand.vmem [shape: f32[2,1,512], index: 6, kind: input, shape index: {}]   ;;  %s3543_s7 = inlined_call_operand.vmem [shape: bf16[2,512,128], index: 7, kind: input, shape index: {}]   ;;  %s3544_s8 = inlined_call_operand.hbm [shape: f32[2,1,128], index: 8, kind: input, shape index: {}]   ;;  %s3545_s9 = inlined_call_operand.vmem [shape: f32[2,1,128], index: 9, kind: input, shape index: {}]   ;;  %s3546_s10 = inlined_call_operand.hbm [shape: f32[2,1,128], index: 10, kind: input, shape index: {}]   ;;  %s3547_s11 = inlined_call_operand.hbm [shape: f32[2,1,128], index: 11, kind: input, shape index: {}]   ;;  %s3548_s12 = inlined_call_operand.hbm [shape: f32[2,1,128], index: 12, kind: input, shape index: {}]   ;;  %s3549_s13 = inlined_call_operand.vmem [shape: f32[8,128], index: 13, kind: output, shape index: {}]  }
   0x1   :  { %19 = vsyncpa [#allocation5], 0 }
   0x2   :  { %20 = vsyncpa [#allocation8], 0  ;;  %s2797_s25 = smov [#allocation4]   ;;  %s2798_s27 = smov [#allocation2]  }
   0x3   :  { %s56_s26 = sshll.u32 %s2797_s25, 4  ;;  %s42_s28 = sshll.u32 %s2798_s27, 4  ;;  %s57_s26 = int_to_ptr.vmem [resolvable:$true] %s56_s26  ;;  %s2876_s28 = int_to_ptr.vmem [resolvable:$true] %s42_s28 }
   0x4   :  { %s2703_s14 = scalar_lea.hbm %s3546_s10, 32 }
   0x5   :  { %p2704_p0 = scmp.ne.s32.totalorder %s3546_s10, %s2703_s14  ;;  %p2707_p1 = scmp.lt.u32.totalorder %s2703_s14, %s3546_s10 }
   0x7   :  { %p2709_p2 = pnand %p2707_p1, %p2704_p0 }
   0x9   :  { %2712 = shalt.err (!%p2709_p2)
}
   0xa   :  { %s2713_s19 = scalar_lea.vmem %s57_s26, 32  ;;  %p2718_p4 = scmp.lt.s32.totalorder %s57_s26, %s57_s26 }
   0xb   :  { %p2714_p3 = scmp.ne.s32.totalorder %s57_s26, %s2713_s19  ;;  %p2719_p5 = scmp.lt.s32.totalorder %s2713_s19, %s2713_s19 }
   0xd   :  { %p2720_p6 = por %p2719_p5, %p2718_p4 }
   0xf   :  { %p2721_p7 = pnand %p2720_p6, %p2714_p3 }
  0x11   :  { %2724 = shalt.err (!%p2721_p7)
}
  0x12   :  { %s2799_s20 = smov 16   ;;  %s2800_s21 = smov 1  }
  0x13   :  { %62 = dma.hbm_to_vmem [thread:$0]  %s3546_s10, 32, %s57_s26, [#allocation5], %s2799_s20, %s2799_s20, %s2800_s21  }
  0x14   :  { %s2725_s27 = scalar_lea.hbm %s3544_s8, 32 }
  0x15   :  { %p2726_p8 = scmp.ne.s32.totalorder %s3544_s8, %s2725_s27  ;;  %p2729_p9 = scmp.lt.u32.totalorder %s2725_s27, %s3544_s8 }
  0x17   :  { %p2731_p10 = pnand %p2729_p9, %p2726_p8 }
  0x19   :  { %2734 = shalt.err (!%p2731_p10)
}
  0x1a   :  { %s2735_s16 = scalar_lea.vmem %s2876_s28, 32  ;;  %p2740_p12 = scmp.lt.s32.totalorder %s2876_s28, %s2876_s28 }
  0x1b   :  { %p2736_p11 = scmp.ne.s32.totalorder %s2876_s28, %s2735_s16  ;;  %p2741_p13 = scmp.lt.s32.totalorder %s2735_s16, %s2735_s16 }
  0x1d   :  { %p2742_p0 = por %p2741_p13, %p2740_p12 }
  0x1f   :  { %p2743_p1 = pnand %p2742_p0, %p2736_p11 }
  0x21   :  { %2746 = shalt.err (!%p2743_p1)
}
  0x22   :  { %48 = dma.hbm_to_vmem [thread:$0]  %s3544_s8, 32, %s2876_s28, [#allocation3], %s2799_s20, %s2799_s20, %s2800_s21  }
  0x23   :  { %s2801_s17 = smov [#allocation6]   ;;  %s2802_s19 = smov [#allocation7]  }
  0x24   :  { %s68_s18 = sshll.u32 %s2801_s17, 4  ;;  %s80_s22 = sshll.u32 %s2802_s19, 4  ;;  %s69_s18 = int_to_ptr.vmem [resolvable:$true] %s68_s18  ;;  %s2913_s22 = int_to_ptr.vmem [resolvable:$true] %s80_s22 }
  0x25   :  { %s2747_s25 = scalar_lea.hbm %s3547_s11, 32 }
  0x26   :  { %p2748_p2 = scmp.ne.s32.totalorder %s3547_s11, %s2747_s25  ;;  %p2751_p3 = scmp.lt.u32.totalorder %s2747_s25, %s3547_s11 }
  0x28   :  { %p2753_p4 = pnand %p2751_p3, %p2748_p2 }
  0x2a   :  { %2756 = shalt.err (!%p2753_p4)
}
  0x2b   :  { %s2757_s8 = scalar_lea.vmem %s69_s18, 32  ;;  %p2762_p6 = scmp.lt.s32.totalorder %s69_s18, %s69_s18 }
  0x2c   :  { %p2758_p5 = scmp.ne.s32.totalorder %s69_s18, %s2757_s8  ;;  %p2763_p7 = scmp.lt.s32.totalorder %s2757_s8, %s2757_s8 }
  0x2e   :  { %p2764_p8 = por %p2763_p7, %p2762_p6 }
  0x30   :  { %p2765_p9 = pnand %p2764_p8, %p2758_p5 }
  0x32   :  { %2768 = shalt.err (!%p2765_p9)
}
  0x33   :  { %74 = dma.hbm_to_vmem [thread:$0]  %s3547_s11, 32, %s69_s18, [#allocation5], %s2799_s20, %s2799_s20, %s2800_s21  }
  0x34   :  { %s2769_s26 = scalar_lea.hbm %s3548_s12, 32 }
  0x35   :  { %p2770_p10 = scmp.ne.s32.totalorder %s3548_s12, %s2769_s26  ;;  %p2773_p11 = scmp.lt.u32.totalorder %s2769_s26, %s3548_s12 }
  0x37   :  { %p2775_p12 = pnand %p2773_p11, %p2770_p10 }
  0x39   :  { %2778 = shalt.err (!%p2775_p12)
}
  0x3a   :  { %s2779_s25 = scalar_lea.vmem %s2913_s22, 32  ;;  %p2784_p0 = scmp.lt.s32.totalorder %s2913_s22, %s2913_s22 }
  0x3b   :  { %p2780_p13 = scmp.ne.s32.totalorder %s2913_s22, %s2779_s25  ;;  %p2785_p1 = scmp.lt.s32.totalorder %s2779_s25, %s2779_s25 }
  0x3d   :  { %p2786_p2 = por %p2785_p1, %p2784_p0 }
  0x3f   :  { %p2787_p3 = pnand %p2786_p2, %p2780_p13 }
  0x41   :  { %2790 = shalt.err (!%p2787_p3)
}
  0x42   :  { %86 = dma.hbm_to_vmem [thread:$0]  %s3548_s12, 32, %s2913_s22, [#allocation8], %s2799_s20, %s2799_s20, %s2800_s21  }
  0x43   :  { %2791 = dma.done.wait [#allocation3], 32  }
  0x44   :  { %2792 = vsyncadd [#allocation3], 4294967264 }
  0x45   :  { %2793 = dma.done.wait [#allocation5], 64  }
  0x46   :  { %2794 = vsyncadd [#allocation5], 4294967232 }
  0x47   :  { %2795 = dma.done.wait [#allocation8], 32  }
  0x48   :  { %2796 = vsyncadd [#allocation8], 4294967264  ;;  %v2803_v0 = vmov 0.0   ;;  %vm2804_vm0 = vmmov 0   ;;  %v2503_v1 = vld [vmem:[%s3537_s1] sm:$0xff]   ;;  %v2504_v2 = vld [vmem:[%s3537_s1 + $0x8] sm:$0xff]  }
  0x49   :  { %2414 = vmatprep.subr.bf16.mxu0 %v2803_v0  ;;  %2430 = vmatprep.mubr.msk.bf16.mxu0 %vm2804_vm0, %v2803_v0  ;;  %v2505_v3 = vld [vmem:[%s3537_s1 + $0x10] sm:$0xff]   ;;  %v2511_v4 = vld [vmem:[%s3539_s3] sm:$0xff]   ;;  %v2506_v5 = vld [vmem:[%s3537_s1 + $0x18] sm:$0xff]  }
  0x4a   :  { %2434 = vmatprep.subr.bf16.mxu1 %v2803_v0  ;;  %2450 = vmatprep.mubr.msk.bf16.mxu1 %vm2804_vm0, %v2803_v0  ;;  %v2512_v6 = vld [vmem:[%s3539_s3 + $0x8] sm:$0xff]   ;;  %v2507_v7 = vld [vmem:[%s3537_s1 + $0x20] sm:$0xff]   ;;  %v2513_v8 = vld [vmem:[%s3539_s3 + $0x10] sm:$0xff]  }
  0x4b   :  { %2415 = vmatpush3.bf16.msra.mxu0 %v2503_v1  ;;  %2435 = vmatpush3.bf16.msra.mxu1 %v2511_v4  ;;  %v2508_v9 = vld [vmem:[%s3537_s1 + $0x28] sm:$0xff]   ;;  %v2514_v10 = vld [vmem:[%s3539_s3 + $0x18] sm:$0xff]   ;;  %v2509_v11 = vld [vmem:[%s3537_s1 + $0x30] sm:$0xff]  }
  0x4c   :  { %2416 = vmatprep.subr.bf16.mxu0 %v2803_v0  ;;  %2436 = vmatprep.subr.bf16.mxu1 %v2803_v0  ;;  %v2515_v12 = vld [vmem:[%s3539_s3 + $0x20] sm:$0xff]   ;;  %v2510_v13 = vld [vmem:[%s3537_s1 + $0x38] sm:$0xff]   ;;  %v2516_v15 = vld [vmem:[%s3539_s3 + $0x28] sm:$0xff]  }
  0x4d   :  { %v104_v14 = vld [vmem:[%s3536_s0] sm:$0xff]  ;;  %v2517_v17 = vld [vmem:[%s3539_s3 + $0x30] sm:$0xff]   ;;  %v2518_v18 = vld [vmem:[%s3539_s3 + $0x38] sm:$0xff]  }
  0x4e   :  { %v107_v16 = vpack.c.bf16 %v104_v14, %v104_v14  ;;  %v1984_v19 = vld [vmem:[%s3538_s2] ss:$0 sm:$0xff]  ;;  %v2521_v34 = vld [vmem:[%s3541_s5 + $0x4] ss:$16 sps:$4 sm:$0xff]   ;;  %v2522_v35 = vld [vmem:[%s3541_s5 + $0x8] ss:$16 sps:$4 sm:$0xff]  }
  0x4f   :  { %2417 = vmatpush3.bf16.msra.mxu0 %v2504_v2  ;;  %2437 = vmatpush3.bf16.msra.mxu1 %v2512_v6  ;;  %v1993_v26 = vld [vmem:[%s3540_s4] ss:$0 sm:$0xff]  ;;  %v2524_v36 = vld [vmem:[%s3541_s5 + $0xc] ss:$16 sps:$4 sm:$0xff]   ;;  %v2527_v37 = vld [vmem:[%s3541_s5 + $0x24] ss:$16 sps:$4 sm:$0xff]  }
  0x50   :  { %2418 = vmatprep.subr.bf16.mxu0 %v2803_v0  ;;  %2438 = vmatprep.subr.bf16.mxu1 %v2803_v0  ;;  %v2519_v33 = vld [vmem:[%s3541_s5] ss:$16 sps:$4 sm:$0xff]   ;;  %v2530_v38 = vld [vmem:[%s3541_s5 + $0x2c] ss:$16 sps:$4 sm:$0xff]   ;;  %v2528_v40 = vld [vmem:[%s3541_s5 + $0x28] ss:$16 sps:$4 sm:$0xff]  }
  0x51   :  { %v2525_v39 = vld [vmem:[%s3541_s5 + $0x20] ss:$16 sps:$4 sm:$0xff]   ;;  %v2533_v41 = vld [vmem:[%s3541_s5 + $0x44] ss:$16 sps:$4 sm:$0xff]   ;;  %v2536_v42 = vld [vmem:[%s3541_s5 + $0x4c] ss:$16 sps:$4 sm:$0xff]  }
  0x52   :  { %v2531_v43 = vld [vmem:[%s3541_s5 + $0x40] ss:$16 sps:$4 sm:$0xff]   ;;  %v2534_v44 = vld [vmem:[%s3541_s5 + $0x48] ss:$16 sps:$4 sm:$0xff]   ;;  %v2539_v49 = vld [vmem:[%s3541_s5 + $0x64] ss:$16 sps:$4 sm:$0xff]  }
  0x53   :  { %2419 = vmatpush3.bf16.msra.mxu0 %v2505_v3  ;;  %2439 = vmatpush3.bf16.msra.mxu1 %v2513_v8  ;;  %v2542_v50 = vld [vmem:[%s3541_s5 + $0x6c] ss:$16 sps:$4 sm:$0xff]   ;;  %v2537_v51 = vld [vmem:[%s3541_s5 + $0x60] ss:$16 sps:$4 sm:$0xff]   ;;  %v2540_v52 = vld [vmem:[%s3541_s5 + $0x68] ss:$16 sps:$4 sm:$0xff]  }
  0x54   :  { %2420 = vmatprep.subr.bf16.mxu0 %v2803_v0  ;;  %2440 = vmatprep.subr.bf16.mxu1 %v2803_v0  ;;  %v2545_v53 = vld [vmem:[%s3541_s5 + $0x84] ss:$16 sps:$4 sm:$0xff]   ;;  %v2548_v54 = vld [vmem:[%s3541_s5 + $0x8c] ss:$16 sps:$4 sm:$0xff]   ;;  %v2543_v55 = vld [vmem:[%s3541_s5 + $0x80] ss:$16 sps:$4 sm:$0xff]  }
  0x55   :  { %v2546_v56 = vld [vmem:[%s3541_s5 + $0x88] ss:$16 sps:$4 sm:$0xff]   ;;  %v2551_v57 = vld [vmem:[%s3541_s5 + $0xa4] ss:$16 sps:$4 sm:$0xff]   ;;  %v2554_v58 = vld [vmem:[%s3541_s5 + $0xac] ss:$16 sps:$4 sm:$0xff]  }
  0x56   :  { %v2549_v59 = vld [vmem:[%s3541_s5 + $0xa0] ss:$16 sps:$4 sm:$0xff]   ;;  %v2552_v60 = vld [vmem:[%s3541_s5 + $0xa8] ss:$16 sps:$4 sm:$0xff]   ;;  %v2557_v61 = vld [vmem:[%s3541_s5 + $0xc4] ss:$16 sps:$4 sm:$0xff]  }
  0x57   :  { %2421 = vmatpush3.bf16.msra.mxu0 %v2506_v5  ;;  %2441 = vmatpush3.bf16.msra.mxu1 %v2514_v10  ;;  %v2560_v62 = vld [vmem:[%s3541_s5 + $0xcc] ss:$16 sps:$4 sm:$0xff]   ;;  %v2555_v63 = vld [vmem:[%s3541_s5 + $0xc0] ss:$16 sps:$4 sm:$0xff]   ;;  %v2558_v1 = vld [vmem:[%s3541_s5 + $0xc8] ss:$16 sps:$4 sm:$0xff]  }
  0x58   :  { %2422 = vmatprep.subr.bf16.mxu0 %v2803_v0  ;;  %2442 = vmatprep.subr.bf16.mxu1 %v2803_v0  ;;  %v2561_v2 = vld [vmem:[%s3541_s5 + $0xe0] ss:$16 sps:$4 sm:$0xff]   ;;  %v2563_v3 = vld [vmem:[%s3541_s5 + $0xe4] ss:$16 sps:$4 sm:$0xff]   ;;  %v2564_v4 = vld [vmem:[%s3541_s5 + $0xe8] ss:$16 sps:$4 sm:$0xff]  }
  0x59   :  { %v2566_v5 = vld [vmem:[%s3541_s5 + $0xec] ss:$16 sps:$4 sm:$0xff]   ;;  %v2805_v6 = vmov 0   ;;  %v2568_v8 = vld [vmem:[%s3543_s7 + $0xc0] sm:$0xff]  }
  0x5b   :  { %2423 = vmatpush3.bf16.msra.mxu0 %v2507_v7  ;;  %2443 = vmatpush3.bf16.msra.mxu1 %v2515_v12  ;;  %v2567_v7 = vld [vmem:[%s3543_s7 + $0x40] sm:$0xff]  }
  0x5c   :  { %2424 = vmatprep.subr.bf16.mxu0 %v2803_v0  ;;  %2444 = vmatprep.subr.bf16.mxu1 %v2803_v0 }
  0x5f   :  { %2425 = vmatpush3.bf16.msra.mxu0 %v2508_v9  ;;  %2445 = vmatpush3.bf16.msra.mxu1 %v2516_v15  ;;  %v2003_v15 = vld [vmem:[#allocation4] ss:$0 sm:$0xff] }
  0x60   :  { %2426 = vmatprep.subr.bf16.mxu0 %v2803_v0  ;;  %2446 = vmatprep.subr.bf16.mxu1 %v2803_v0 }
  0x63   :  { %2427 = vmatpush3.bf16.msra.mxu0 %v2509_v11  ;;  %2447 = vmatpush3.bf16.msra.mxu1 %v2517_v17 }
  0x64   :  { %2428 = vmatprep.subr.bf16.mxu0 %v2803_v0  ;;  %2448 = vmatprep.subr.bf16.mxu1 %v2803_v0 }
  0x67   :  { %2429 = vmatpush3.bf16.msra.mxu0 %v2510_v13  ;;  %2449 = vmatpush3.bf16.msra.mxu1 %v2518_v18  ;;  %v2002_v13 = vld [vmem:[%s3545_s9] ss:$0 sm:$0xff] }
  0x68   :  { %575 = vmatprep.subr.bf16.mxu0 %v2521_v34  ;;  %616 = vmatprep.subr.bf16.mxu1 %v2524_v36  ;;  %v2569_v18 = vld [vmem:[%s3543_s7] sm:$0xff]  }
  0x69   :  { %v2584_v34 = vld [vmem:[%s3543_s7 + $0xe0] sm:$0xff]  }
  0x6a   :  { %2431 = vmatmul.mubr.bf16.vlgmr.msra.gmra.mrb[0].mxu0 %v107_v16  ;;  %v2586_v36 = vld [vmem:[%s3543_s7 + $0xa0] sm:$0xff]  }
  0x6b   :  { %576 = vmatpush1.bf16.msra.mxu0 %v2519_v33  ;;  %607 = vmatprep.mubr.bf16.mxu0 %v2805_v6  ;;  %v2583_v33 = vld [vmem:[%s3543_s7 + $0x60] sm:$0xff]  }
  0x6c   :  { %577 = vmatprep.subr.bf16.mxu0 %v2527_v37  ;;  %v2587_v37 = vld [vmem:[%s3543_s7 + $0x68] sm:$0xff]  }
  0x6f   :  { %578 = vmatpush1.bf16.msra.mxu0 %v2525_v39  ;;  %v2589_v39 = vld [vmem:[%s3543_s7 + $0x28] sm:$0xff]  }
  0x70   :  { %579 = vmatprep.subr.bf16.mxu0 %v2533_v41  ;;  %v2591_v41 = vld [vmem:[%s3543_s7 + $0x70] sm:$0xff]  }
  0x73   :  { %580 = vmatpush1.bf16.msra.mxu0 %v2531_v43  ;;  %v2593_v43 = vld [vmem:[%s3543_s7 + $0x30] sm:$0xff]  }
  0x74   :  { %581 = vmatprep.subr.bf16.mxu0 %v2539_v49  ;;  %v395_v49 = vlaneseq }
  0x77   :  { %582 = vmatpush1.bf16.msra.mxu0 %v2537_v51 }
  0x78   :  { %583 = vmatprep.subr.bf16.mxu0 %v2545_v53  ;;  %v393_v53 = vld [vmem:[%s3542_s6] sm:$0xf] }
  0x7b   :  { %584 = vmatpush1.bf16.msra.mxu0 %v2543_v55 }
  0x7c   :  { %585 = vmatprep.subr.bf16.mxu0 %v2551_v57 }
  0x7f   :  { %586 = vmatpush1.bf16.msra.mxu0 %v2549_v59 }
  0x80   :  { %587 = vmatprep.subr.bf16.mxu0 %v2557_v61 }
  0x83   :  { %588 = vmatpush1.bf16.msra.mxu0 %v2555_v63 }
  0x84   :  { %589 = vmatprep.subr.bf16.mxu0 %v2563_v3 }
  0x87   :  { %590 = vmatpush1.bf16.msra.mxu0 %v2561_v2 }
  0x88   :  { %2308 = vmatprep.subr.bf16.mxu0 %v2567_v7 }
 0x13d   :  { %v213_v20 = vpop.f32.mrb[0].mxu0 }
 0x13e   :  { %v214_v21 = vadd.f32 %v1984_v19, %v213_v20  ;;  %v2432_v22 = vpop.f32.mrb[1].mxu0  ;;  %v2570_v19 = vld [vmem:[%s3543_s7 + $0x80] sm:$0xff]  }
 0x13f   :  { %v216_v23 = vpop.f32.mrb[2].mxu0  ;;  %v2572_v22 = vld [vmem:[%s3543_s7 + $0xc8] sm:$0xff]  }
 0x140   :  { %v219_v24 = vpack.c.bf16 %v214_v21, %v214_v21  ;;  %v2433_v25 = vpop.f32.mrb[3].mxu0  ;;  %v2571_v21 = vld [vmem:[%s3543_s7 + $0x48] sm:$0xff]  }
 0x141   :  { %v2573_v23 = vld [vmem:[%s3543_s7 + $0x8] sm:$0xff]   ;;  %v2575_v25 = vld [vmem:[%s3543_s7 + $0x50] sm:$0xff]  }
 0x142   :  { %2451 = vmatmul.mubr.bf16.vlgmr.msra.gmra.mrb[0].mxu1 %v219_v24  ;;  %v2574_v24 = vld [vmem:[%s3543_s7 + $0x88] sm:$0xff]  }
 0x143   :  { %617 = vmatpush1.bf16.msra.mxu1 %v2522_v35  ;;  %648 = vmatprep.mubr.bf16.mxu1 %v2805_v6  ;;  %v2585_v35 = vld [vmem:[%s3543_s7 + $0x20] sm:$0xff]  }
 0x144   :  { %618 = vmatprep.subr.bf16.mxu1 %v2530_v38  ;;  %v2588_v38 = vld [vmem:[%s3543_s7 + $0xe8] sm:$0xff]  }
 0x147   :  { %619 = vmatpush1.bf16.msra.mxu1 %v2528_v40  ;;  %v2590_v40 = vld [vmem:[%s3543_s7 + $0xa8] sm:$0xff]  }
 0x148   :  { %620 = vmatprep.subr.bf16.mxu1 %v2536_v42  ;;  %v2592_v42 = vld [vmem:[%s3543_s7 + $0xf0] sm:$0xff]  }
 0x14b   :  { %621 = vmatpush1.bf16.msra.mxu1 %v2534_v44  ;;  %v2594_v44 = vld [vmem:[%s3543_s7 + $0xb0] sm:$0xff]  }
 0x14c   :  { %622 = vmatprep.subr.bf16.mxu1 %v2542_v50  ;;  %v3230_v50 = vshrl.u32 %v395_v49, 7  ;;  %v2612_v49 = vld [vmem:[%s3539_s3 + $0x68] sm:$0xff]  }
 0x14e   :  { %v397_v51 = vsub.s32 0, %v3230_v50  ;;  %v409_v55 = vsub.s32 3, %v3230_v50 }
 0x14f   :  { %623 = vmatpush1.bf16.msra.mxu1 %v2540_v52  ;;  %v405_v52 = vsub.s32 2, %v3230_v50 }
 0x150   :  { %624 = vmatprep.subr.bf16.mxu1 %v2548_v54  ;;  %v401_v54 = vsub.s32 1, %v3230_v50  ;;  %v410_v59 = vrot.slane %v393_v53, %v409_v55 }
 0x151   :  { %v406_v57 = vrot.slane %v393_v53, %v405_v52 }
 0x153   :  { %625 = vmatpush1.bf16.msra.mxu1 %v2546_v56  ;;  %v398_v56 = vrot.slane %v393_v53, %v397_v51 }
 0x154   :  { %626 = vmatprep.subr.bf16.mxu1 %v2554_v58  ;;  %v402_v58 = vrot.slane %v393_v53, %v401_v54  ;;  %v2613_v53 = vld [vmem:[%s3539_s3 + $0x70] sm:$0xff]  }
 0x157   :  { %627 = vmatpush1.bf16.msra.mxu1 %v2552_v60 }
 0x158   :  { %628 = vmatprep.subr.bf16.mxu1 %v2560_v62 }
 0x15b   :  { %629 = vmatpush1.bf16.msra.mxu1 %v2558_v1 }
 0x15c   :  { %630 = vmatprep.subr.bf16.mxu1 %v2566_v5 }
 0x15f   :  { %631 = vmatpush1.bf16.msra.mxu1 %v2564_v4 }
 0x160   :  { %2330 = vmatprep.subr.bf16.mxu1 %v2568_v8 }
 0x215   :  { %v325_v27 = vpop.f32.mrb[0].mxu1 }
 0x216   :  { %v326_v28 = vadd.f32 %v1993_v26, %v325_v27  ;;  %v2452_v29 = vpop.f32.mrb[1].mxu1  ;;  %v2576_v26 = vld [vmem:[%s3543_s7 + $0xd0] sm:$0xff]  }
 0x217   :  { %v328_v30 = vpop.f32.mrb[2].mxu1  ;;  %v2577_v27 = vld [vmem:[%s3543_s7 + $0x10] sm:$0xff]   ;;  %v2579_v29 = vld [vmem:[%s3543_s7 + $0x58] sm:$0xff]  }
 0x218   :  { %v2453_v31 = vpop.f32.mrb[3].mxu1  ;;  %v331_v32 = vadd.f32 %v326_v28, %v104_v14  ;;  %v2578_v28 = vld [vmem:[%s3543_s7 + $0x90] sm:$0xff]   ;;  %v2580_v30 = vld [vmem:[%s3543_s7 + $0xd8] sm:$0xff]  }
 0x219   :  { %v2581_v31 = vld [vmem:[%s3543_s7 + $0x18] sm:$0xff]  }
 0x21a   :  { %334 = vadd.xlane.f32.xlu0 %v331_v32 }
 0x2a7   :  { %v335_v45 = vpop.xlane.xlu0 %334 }
 0x2a8   :  { %v337_v46 = vmul.f32 0.0078125, %v335_v45  ;;  %v2595_v45 = vld [vmem:[%s3543_s7 + $0x78] sm:$0xff]  }
 0x2aa   :  { %v338_v47 = vsub.f32 %v331_v32, %v337_v46  ;;  %v2582_v32 = vld [vmem:[%s3543_s7 + $0x98] sm:$0xff]  }
 0x2ab   :  { %v2596_v46 = vld [vmem:[%s3543_s7 + $0xf8] sm:$0xff]  }
 0x2ac   :  { %v339_v48 = vmul.f32 %v338_v47, %v338_v47 }
 0x2ae   :  { %340 = vadd.xlane.f32.xlu0 %v339_v48  ;;  %v2598_v48 = vld [vmem:[%s3543_s7 + $0xb8] sm:$0xff]  }
 0x33b   :  { %v341_v9 = vpop.xlane.xlu0 %340 }
 0x33c   :  { %v342_v10 = vmul.f32 0.0078125, %v341_v9 }
 0x33e   :  { %v343_v11 = vadd.f32 1e-05, %v342_v10 }
 0x340   :  { %2695 = vrsqrt.f32 %v343_v11 }
 0x34a   :  { %v2696_v12 = vpop.eup %2695 }
 0x34b   :  { %v345_v14 = vmul.f32 %v2696_v12, %v338_v47  ;;  %v2597_v47 = vld [vmem:[%s3543_s7 + $0x38] sm:$0xff]  }
 0x34d   :  { %v352_v16 = vmul.f32 %v2002_v13, %v345_v14 }
 0x34f   :  { %v3134_v17 = vadd.f32 %v2003_v15, %v352_v16 }
 0x351   :  { %v360_v20 = vpack.c.bf16 %v3134_v17, %v3134_v17 }
 0x353   :  { %608 = vmatmul.mubr.bf16.vlgmr.msra.gmra.mrb[4].mxu0 %v360_v20  ;;  %649 = vmatmul.mubr.bf16.vlgmr.msra.gmra.mrb[4].mxu1 %v360_v20 }
 0x354   :  { %2309 = vmatpush3.bf16.msra.mxu0 %v2569_v18  ;;  %2331 = vmatpush3.bf16.msra.mxu1 %v2570_v19 }
 0x355   :  { %2310 = vmatprep.subr.bf16.mxu0 %v2571_v21  ;;  %2332 = vmatprep.subr.bf16.mxu1 %v2572_v22  ;;  %v2036_v21 = vld [vmem:[#allocation2] ss:$0 sm:$0xff] }
 0x358   :  { %2311 = vmatpush3.bf16.msra.mxu0 %v2573_v23  ;;  %2333 = vmatpush3.bf16.msra.mxu1 %v2574_v24 }
 0x359   :  { %2312 = vmatprep.subr.bf16.mxu0 %v2575_v25  ;;  %2334 = vmatprep.subr.bf16.mxu1 %v2576_v26 }
 0x35c   :  { %2313 = vmatpush3.bf16.msra.mxu0 %v2577_v27  ;;  %2335 = vmatpush3.bf16.msra.mxu1 %v2578_v28 }
 0x35d   :  { %2314 = vmatprep.subr.bf16.mxu0 %v2579_v29  ;;  %2336 = vmatprep.subr.bf16.mxu1 %v2580_v30 }
 0x360   :  { %2315 = vmatpush3.bf16.msra.mxu0 %v2581_v31  ;;  %2337 = vmatpush3.bf16.msra.mxu1 %v2582_v32 }
 0x361   :  { %2316 = vmatprep.subr.bf16.mxu0 %v2583_v33  ;;  %2338 = vmatprep.subr.bf16.mxu1 %v2584_v34  ;;  %v2599_v33 = vld [vmem:[%s3537_s1 + $0x40] sm:$0xff]   ;;  %v2600_v34 = vld [vmem:[%s3537_s1 + $0x48] sm:$0xff]  }
 0x364   :  { %2317 = vmatpush3.bf16.msra.mxu0 %v2585_v35  ;;  %2339 = vmatpush3.bf16.msra.mxu1 %v2586_v36 }
 0x365   :  { %2318 = vmatprep.subr.bf16.mxu0 %v2587_v37  ;;  %2340 = vmatprep.subr.bf16.mxu1 %v2588_v38 }
 0x368   :  { %2319 = vmatpush3.bf16.msra.mxu0 %v2589_v39  ;;  %2341 = vmatpush3.bf16.msra.mxu1 %v2590_v40  ;;  %v2602_v39 = vld [vmem:[%s3537_s1 + $0x58] sm:$0xff]   ;;  %v2603_v40 = vld [vmem:[%s3537_s1 + $0x60] sm:$0xff]  }
 0x369   :  { %2320 = vmatprep.subr.bf16.mxu0 %v2591_v41  ;;  %2342 = vmatprep.subr.bf16.mxu1 %v2592_v42  ;;  %v2604_v41 = vld [vmem:[%s3537_s1 + $0x68] sm:$0xff]   ;;  %v2605_v42 = vld [vmem:[%s3537_s1 + $0x70] sm:$0xff]  }
 0x36c   :  { %2321 = vmatpush3.bf16.msra.mxu0 %v2593_v43  ;;  %2343 = vmatpush3.bf16.msra.mxu1 %v2594_v44  ;;  %v2606_v43 = vld [vmem:[%s3537_s1 + $0x78] sm:$0xff]   ;;  %v2607_v44 = vld [vmem:[%s3539_s3 + $0x40] sm:$0xff]  }
 0x36d   :  { %2322 = vmatprep.subr.bf16.mxu0 %v2595_v45  ;;  %2344 = vmatprep.subr.bf16.mxu1 %v2596_v46  ;;  %v2608_v45 = vld [vmem:[%s3539_s3 + $0x48] sm:$0xff]   ;;  %v2609_v46 = vld [vmem:[%s3539_s3 + $0x50] sm:$0xff]  }
 0x370   :  { %2323 = vmatpush3.bf16.msra.mxu0 %v2597_v47  ;;  %2345 = vmatpush3.bf16.msra.mxu1 %v2598_v48  ;;  %v2610_v47 = vld [vmem:[%s3539_s3 + $0x58] sm:$0xff]   ;;  %v2611_v48 = vld [vmem:[%s3539_s3 + $0x60] sm:$0xff]  }
 0x371   :  { %2454 = vmatprep.subr.bf16.mxu0 %v2803_v0  ;;  %2474 = vmatprep.subr.bf16.mxu1 %v2803_v0 }
 0x426   :  { %v609_v60 = vpop.f32.mrb[4].mxu0  ;;  %v650_v61 = vpop.f32.mrb[4].mxu1 }
 0x427   :  { %v610_v62 = vadd.f32 %v609_v60, %v398_v56  ;;  %v651_v63 = vadd.f32 %v650_v61, %v406_v57  ;;  %v611_v1 = vpop.f32.mrb[5].mxu0  ;;  %v652_v2 = vpop.f32.mrb[5].mxu1  ;;  %v2069_v60 = vld [vmem:[#allocation6] ss:$0 sm:$0xff] }
 0x428   :  { %v612_v3 = vadd.f32 %v611_v1, %v402_v58  ;;  %v653_v4 = vadd.f32 %v652_v2, %v410_v59  ;;  %v613_v5 = vpop.f32.mrb[6].mxu0  ;;  %v654_v7 = vpop.f32.mrb[6].mxu1 }
 0x429   :  { %v657_v8 = vmax.f32 %v610_v62, 0.0  ;;  %v659_v9 = vmax.f32 %v651_v63, 0.0  ;;  %v614_v10 = vpop.f32.mrb[7].mxu0  ;;  %v655_v11 = vpop.f32.mrb[7].mxu1  ;;  %v2070_v62 = vld [vmem:[#allocation7] ss:$0 sm:$0xff] }
 0x42a   :  { %v658_v12 = vmax.f32 %v612_v3, 0.0  ;;  %v660_v13 = vmax.f32 %v653_v4, 0.0  ;;  %v2614_v3 = vld [vmem:[%s3539_s3 + $0x78] sm:$0xff]   ;;  %v2114_v11 = vld [vmem:[%s3540_s4 + $0x1] ss:$0 sm:$0xff] }
 0x42b   :  { %v661_v16 = vpack.c.bf16 %v657_v8, %v657_v8  ;;  %v663_v18 = vpack.c.bf16 %v659_v9, %v659_v9 }
 0x42c   :  { %v662_v14 = vpack.c.bf16 %v658_v12, %v658_v12  ;;  %v664_v15 = vpack.c.bf16 %v660_v13, %v660_v13 }
 0x42e   :  { %960 = vmatprep.mubr.bf16.mxu0 %v662_v14  ;;  %1000 = vmatprep.mubr.bf16.mxu1 %v664_v15 }
 0x42f   :  { %961 = vmatmul.mubr.bf16.vlgmr.msra.gmra.mrb[8].mxu0 %v661_v16  ;;  %1001 = vmatmul.mubr.bf16.vlgmr.msra.gmra.mrb[8].mxu1 %v663_v18 }
 0x430   :  { %2470 = vmatprep.mubr.msk.bf16.mxu0 %vm2804_vm0, %v2803_v0  ;;  %2490 = vmatprep.mubr.msk.bf16.mxu1 %vm2804_vm0, %v2803_v0 }
 0x431   :  { %2455 = vmatpush3.bf16.msra.mxu0 %v2599_v33  ;;  %2475 = vmatpush3.bf16.msra.mxu1 %v2607_v44  ;;  %v2648_v44 = vld [vmem:[%s3541_s5 + $0x1a8] ss:$16 sps:$4 sm:$0xff]  }
 0x432   :  { %2456 = vmatprep.subr.bf16.mxu0 %v2803_v0  ;;  %2476 = vmatprep.subr.bf16.mxu1 %v2803_v0 }
 0x435   :  { %2457 = vmatpush3.bf16.msra.mxu0 %v2600_v34  ;;  %2477 = vmatpush3.bf16.msra.mxu1 %v2608_v45  ;;  %v2635_v34 = vld [vmem:[%s3541_s5 + $0x164] ss:$16 sps:$4 sm:$0xff]  }
 0x436   :  { %2458 = vmatprep.subr.bf16.mxu0 %v2803_v0  ;;  %2478 = vmatprep.subr.bf16.mxu1 %v2803_v0  ;;  %v2653_v45 = vld [vmem:[%s3541_s5 + $0x1c4] ss:$16 sps:$4 sm:$0xff]  }
 0x439   :  { %2479 = vmatpush3.bf16.msra.mxu1 %v2609_v46  ;;  %v2656_v46 = vld [vmem:[%s3541_s5 + $0x1cc] ss:$16 sps:$4 sm:$0xff]  }
 0x43a   :  { %2480 = vmatprep.subr.bf16.mxu1 %v2803_v0 }
 0x43d   :  { %2481 = vmatpush3.bf16.msra.mxu1 %v2610_v47  ;;  %v2651_v47 = vld [vmem:[%s3541_s5 + $0x1c0] ss:$16 sps:$4 sm:$0xff]  }
 0x43e   :  { %2482 = vmatprep.subr.bf16.mxu1 %v2803_v0 }
 0x441   :  { %2483 = vmatpush3.bf16.msra.mxu1 %v2611_v48  ;;  %v2654_v48 = vld [vmem:[%s3541_s5 + $0x1c8] ss:$16 sps:$4 sm:$0xff]  }
 0x442   :  { %2484 = vmatprep.subr.bf16.mxu1 %v2803_v0 }
 0x445   :  { %2485 = vmatpush3.bf16.msra.mxu1 %v2612_v49  ;;  %v2659_v49 = vld [vmem:[%s3541_s5 + $0x1e4] ss:$16 sps:$4 sm:$0xff]  }
 0x446   :  { %2486 = vmatprep.subr.bf16.mxu1 %v2803_v0 }
 0x449   :  { %2487 = vmatpush3.bf16.msra.mxu1 %v2613_v53  ;;  %v2657_v53 = vld [vmem:[%s3541_s5 + $0x1e0] ss:$16 sps:$4 sm:$0xff]  }
 0x44a   :  { %2488 = vmatprep.subr.bf16.mxu1 %v2803_v0 }
 0x44d   :  { %2489 = vmatpush3.bf16.msra.mxu1 %v2614_v3  ;;  %v2125_v3 = vld [vmem:[#allocation4 + $0x1] ss:$0 sm:$0xff] }
 0x502   :  { %v2324_v19 = vpop.f32.mrb[8].mxu0  ;;  %v2346_v20 = vpop.f32.mrb[8].mxu1 }
 0x503   :  { %v2325_v22 = vpop.f32.mrb[9].mxu0  ;;  %v2347_v23 = vpop.f32.mrb[9].mxu1 }
 0x504   :  { %v2326_v24 = vadd.f32 %v2325_v22, %v2324_v19  ;;  %v2348_v25 = vadd.f32 %v2347_v23, %v2346_v20  ;;  %v2327_v26 = vpop.f32.mrb[10].mxu0  ;;  %v2349_v27 = vpop.f32.mrb[10].mxu1  ;;  %v2615_v19 = vld [vmem:[%s3541_s5 + $0x100] ss:$16 sps:$4 sm:$0xff]   ;;  %v2617_v20 = vld [vmem:[%s3541_s5 + $0x104] ss:$16 sps:$4 sm:$0xff]  }
 0x505   :  { %v2328_v28 = vpop.f32.mrb[11].mxu0  ;;  %v2350_v29 = vpop.f32.mrb[11].mxu1  ;;  %v2623_v22 = vld [vmem:[%s3541_s5 + $0x124] ss:$16 sps:$4 sm:$0xff]   ;;  %v2626_v23 = vld [vmem:[%s3541_s5 + $0x12c] ss:$16 sps:$4 sm:$0xff]  }
 0x506   :  { %v963_v30 = vadd.f32 %v2326_v24, %v2036_v21  ;;  %v2620_v21 = vld [vmem:[%s3541_s5 + $0x10c] ss:$16 sps:$4 sm:$0xff]   ;;  %v2621_v24 = vld [vmem:[%s3541_s5 + $0x120] ss:$16 sps:$4 sm:$0xff]   ;;  %v2629_v26 = vld [vmem:[%s3541_s5 + $0x144] ss:$16 sps:$4 sm:$0xff]  }
 0x507   :  { %1552 = vmatprep.subr.bf16.mxu1 %v2620_v21  ;;  %v2632_v27 = vld [vmem:[%s3541_s5 + $0x14c] ss:$16 sps:$4 sm:$0xff]   ;;  %v2627_v28 = vld [vmem:[%s3541_s5 + $0x140] ss:$16 sps:$4 sm:$0xff]   ;;  %v2630_v29 = vld [vmem:[%s3541_s5 + $0x148] ss:$16 sps:$4 sm:$0xff]  }
 0x508   :  { %v1003_v31 = vadd.f32 %v2348_v25, %v963_v30  ;;  %v2624_v25 = vld [vmem:[%s3541_s5 + $0x128] ss:$16 sps:$4 sm:$0xff]   ;;  %v2679_v21 = vld [vmem:[%s3543_s7 + $0x160] sm:$0xff]  }
 0x50a   :  { %v1008_v32 = vadd.f32 %v1003_v31, %v3134_v17  ;;  %v2601_v17 = vld [vmem:[%s3537_s1 + $0x50] sm:$0xff]  }
 0x50b   :  { %2459 = vmatpush3.bf16.msra.mxu0 %v2601_v17  ;;  %v2644_v17 = vld [vmem:[%s3541_s5 + $0x18c] ss:$16 sps:$4 sm:$0xff]  }
 0x50c   :  { %1011 = vadd.xlane.f32.xlu1 %v1008_v32  ;;  %2460 = vmatprep.subr.bf16.mxu0 %v2803_v0 }
 0x50f   :  { %2461 = vmatpush3.bf16.msra.mxu0 %v2602_v39  ;;  %v2639_v39 = vld [vmem:[%s3541_s5 + $0x180] ss:$16 sps:$4 sm:$0xff]  }
 0x510   :  { %2462 = vmatprep.subr.bf16.mxu0 %v2803_v0 }
 0x513   :  { %2463 = vmatpush3.bf16.msra.mxu0 %v2603_v40  ;;  %v2642_v40 = vld [vmem:[%s3541_s5 + $0x188] ss:$16 sps:$4 sm:$0xff]  }
 0x514   :  { %2464 = vmatprep.subr.bf16.mxu0 %v2803_v0 }
 0x517   :  { %2465 = vmatpush3.bf16.msra.mxu0 %v2604_v41  ;;  %v2647_v41 = vld [vmem:[%s3541_s5 + $0x1a4] ss:$16 sps:$4 sm:$0xff]  }
 0x518   :  { %2466 = vmatprep.subr.bf16.mxu0 %v2803_v0 }
 0x51b   :  { %2467 = vmatpush3.bf16.msra.mxu0 %v2605_v42  ;;  %v2650_v42 = vld [vmem:[%s3541_s5 + $0x1ac] ss:$16 sps:$4 sm:$0xff]  }
 0x51c   :  { %2468 = vmatprep.subr.bf16.mxu0 %v2803_v0  ;;  %v2088_v0 = vld [vmem:[%s3538_s2 + $0x1] ss:$0 sm:$0xff] }
 0x51f   :  { %2469 = vmatpush3.bf16.msra.mxu0 %v2606_v43  ;;  %v2645_v43 = vld [vmem:[%s3541_s5 + $0x1a0] ss:$16 sps:$4 sm:$0xff]  }
 0x520   :  { %1511 = vmatprep.subr.bf16.mxu0 %v2617_v20  ;;  %v2677_v20 = vld [vmem:[%s3543_s7 + $0x118] sm:$0xff]  }
 0x599   :  { %v1012_v35 = vpop.xlane.xlu1 %1011 }
 0x59a   :  { %v1013_v36 = vmul.f32 0.0078125, %v1012_v35  ;;  %v2638_v35 = vld [vmem:[%s3541_s5 + $0x16c] ss:$16 sps:$4 sm:$0xff]  }
 0x59c   :  { %v1014_v37 = vsub.f32 %v1008_v32, %v1013_v36  ;;  %v2633_v36 = vld [vmem:[%s3541_s5 + $0x160] ss:$16 sps:$4 sm:$0xff]  }
 0x59e   :  { %v1015_v38 = vmul.f32 %v1014_v37, %v1014_v37 }
 0x5a0   :  { %1016 = vadd.xlane.f32.xlu1 %v1015_v38  ;;  %v2641_v38 = vld [vmem:[%s3541_s5 + $0x184] ss:$16 sps:$4 sm:$0xff]  }
 0x62d   :  { %v1017_v56 = vpop.xlane.xlu1 %1016 }
 0x62e   :  { %v1018_v57 = vmul.f32 0.0078125, %v1017_v56  ;;  %v2660_v56 = vld [vmem:[%s3541_s5 + $0x1e8] ss:$16 sps:$4 sm:$0xff]  }
 0x630   :  { %v1019_v58 = vadd.f32 1e-05, %v1018_v57  ;;  %v2662_v57 = vld [vmem:[%s3541_s5 + $0x1ec] ss:$16 sps:$4 sm:$0xff]  }
 0x632   :  { %2697 = vrsqrt.f32 %v1019_v58  ;;  %v2663_v58 = vld [vmem:[%s3543_s7 + $0x140] sm:$0xff]  }
 0x63c   :  { %v2698_v59 = vpop.eup %2697 }
 0x63d   :  { %v1021_v61 = vmul.f32 %v2698_v59, %v1014_v37  ;;  %v2636_v37 = vld [vmem:[%s3541_s5 + $0x168] ss:$16 sps:$4 sm:$0xff]   ;;  %v2664_v59 = vld [vmem:[%s3543_s7 + $0x1c0] sm:$0xff]  }
 0x63f   :  { %v1028_v63 = vmul.f32 %v2069_v60, %v1021_v61 }
 0x641   :  { %v1035_v1 = vadd.f32 %v2070_v62, %v1028_v63 }
 0x643   :  { %v1036_v2 = vpack.c.bf16 %v1035_v1, %v1035_v1 }
 0x645   :  { %2471 = vmatmul.mubr.bf16.vlgmr.msra.gmra.mrb[12].mxu0 %v1036_v2 }
 0x646   :  { %1543 = vmatprep.mubr.bf16.mxu0 %v2805_v6  ;;  %1512 = vmatpush1.bf16.msra.mxu0 %v2615_v19  ;;  %v2676_v19 = vld [vmem:[%s3543_s7 + $0x1d8] sm:$0xff]  }
 0x647   :  { %1513 = vmatprep.subr.bf16.mxu0 %v2623_v22  ;;  %v2680_v22 = vld [vmem:[%s3543_s7 + $0x1e0] sm:$0xff]  }
 0x64a   :  { %1514 = vmatpush1.bf16.msra.mxu0 %v2621_v24  ;;  %v2682_v24 = vld [vmem:[%s3543_s7 + $0x1a0] sm:$0xff]  }
 0x64b   :  { %1515 = vmatprep.subr.bf16.mxu0 %v2629_v26  ;;  %v2684_v26 = vld [vmem:[%s3543_s7 + $0x1e8] sm:$0xff]  }
 0x64e   :  { %1516 = vmatpush1.bf16.msra.mxu0 %v2627_v28  ;;  %v2686_v28 = vld [vmem:[%s3543_s7 + $0x1a8] sm:$0xff]  }
 0x64f   :  { %1517 = vmatprep.subr.bf16.mxu0 %v2635_v34  ;;  %v2692_v34 = vld [vmem:[%s3543_s7 + $0x1f8] sm:$0xff]  }
 0x652   :  { %1518 = vmatpush1.bf16.msra.mxu0 %v2633_v36  ;;  %v2694_v36 = vld [vmem:[%s3543_s7 + $0x1b8] sm:$0xff]  }
 0x653   :  { %1519 = vmatprep.subr.bf16.mxu0 %v2641_v38 }
 0x656   :  { %1520 = vmatpush1.bf16.msra.mxu0 %v2639_v39 }
 0x657   :  { %1521 = vmatprep.subr.bf16.mxu0 %v2647_v41 }
 0x65a   :  { %1522 = vmatpush1.bf16.msra.mxu0 %v2645_v43 }
 0x65b   :  { %1523 = vmatprep.subr.bf16.mxu0 %v2653_v45 }
 0x65e   :  { %1524 = vmatpush1.bf16.msra.mxu0 %v2651_v47 }
 0x65f   :  { %1525 = vmatprep.subr.bf16.mxu0 %v2659_v49 }
 0x662   :  { %1526 = vmatpush1.bf16.msra.mxu0 %v2657_v53 }
 0x663   :  { %2370 = vmatprep.subr.bf16.mxu0 %v2663_v58 }
 0x718   :  { %v1144_v4 = vpop.f32.mrb[12].mxu0 }
 0x719   :  { %v1145_v5 = vadd.f32 %v2088_v0, %v1144_v4  ;;  %v2472_v7 = vpop.f32.mrb[13].mxu0 }
 0x71a   :  { %v1147_v8 = vpop.f32.mrb[14].mxu0  ;;  %v2666_v7 = vld [vmem:[%s3543_s7 + $0x180] sm:$0xff]  }
 0x71b   :  { %v1150_v9 = vpack.c.bf16 %v1145_v5, %v1145_v5  ;;  %v2473_v10 = vpop.f32.mrb[15].mxu0  ;;  %v2665_v5 = vld [vmem:[%s3543_s7 + $0x100] sm:$0xff]  }
 0x71c   :  { %v2668_v10 = vld [vmem:[%s3543_s7 + $0x1c8] sm:$0xff]  }
 0x71d   :  { %2491 = vmatmul.mubr.bf16.vlgmr.msra.gmra.mrb[12].mxu1 %v1150_v9  ;;  %v2667_v9 = vld [vmem:[%s3543_s7 + $0x148] sm:$0xff]  }
 0x71e   :  { %1584 = vmatprep.mubr.bf16.mxu1 %v2805_v6  ;;  %v2618_v6 = vld [vmem:[%s3541_s5 + $0x108] ss:$16 sps:$4 sm:$0xff]  }
 0x71f   :  { %1553 = vmatpush1.bf16.msra.mxu1 %v2618_v6  ;;  %v2678_v6 = vld [vmem:[%s3543_s7 + $0x198] sm:$0xff]  }
 0x720   :  { %1554 = vmatprep.subr.bf16.mxu1 %v2626_v23  ;;  %v2681_v23 = vld [vmem:[%s3543_s7 + $0x120] sm:$0xff]  }
 0x723   :  { %1555 = vmatpush1.bf16.msra.mxu1 %v2624_v25  ;;  %v2683_v25 = vld [vmem:[%s3543_s7 + $0x168] sm:$0xff]  }
 0x724   :  { %1556 = vmatprep.subr.bf16.mxu1 %v2632_v27  ;;  %v2685_v27 = vld [vmem:[%s3543_s7 + $0x128] sm:$0xff]  }
 0x727   :  { %1557 = vmatpush1.bf16.msra.mxu1 %v2630_v29  ;;  %v2687_v29 = vld [vmem:[%s3543_s7 + $0x170] sm:$0xff]  }
 0x728   :  { %1558 = vmatprep.subr.bf16.mxu1 %v2638_v35  ;;  %v2693_v35 = vld [vmem:[%s3543_s7 + $0x138] sm:$0xff]  }
 0x72b   :  { %1559 = vmatpush1.bf16.msra.mxu1 %v2636_v37  ;;  %v2158_v37 = vld [vmem:[%s3542_s6 + $0x4] sm:$0xf] }
 0x72c   :  { %1560 = vmatprep.subr.bf16.mxu1 %v2644_v17  ;;  %v1334_v38 = vrot.slane %v2158_v37, %v397_v51  ;;  %v1342_v17 = vrot.slane %v2158_v37, %v405_v52  ;;  %v1338_v39 = vrot.slane %v2158_v37, %v401_v54 }
 0x72f   :  { %1561 = vmatpush1.bf16.msra.mxu1 %v2642_v40  ;;  %v1346_v40 = vrot.slane %v2158_v37, %v409_v55 }
 0x730   :  { %1562 = vmatprep.subr.bf16.mxu1 %v2650_v42 }
 0x733   :  { %1563 = vmatpush1.bf16.msra.mxu1 %v2648_v44 }
 0x734   :  { %1564 = vmatprep.subr.bf16.mxu1 %v2656_v46 }
 0x737   :  { %1565 = vmatpush1.bf16.msra.mxu1 %v2654_v48 }
 0x738   :  { %1566 = vmatprep.subr.bf16.mxu1 %v2662_v57 }
 0x73b   :  { %1567 = vmatpush1.bf16.msra.mxu1 %v2660_v56 }
 0x73c   :  { %2392 = vmatprep.subr.bf16.mxu1 %v2664_v59 }
 0x7f0   :  { %v1258_v12 = vpop.f32.mrb[12].mxu1 }
 0x7f1   :  { %v1259_v13 = vadd.f32 %v2114_v11, %v1258_v12  ;;  %v2492_v14 = vpop.f32.mrb[13].mxu1  ;;  %v2669_v11 = vld [vmem:[%s3543_s7 + $0x108] sm:$0xff]  }
 0x7f2   :  { %v1261_v15 = vpop.f32.mrb[14].mxu1  ;;  %v2670_v12 = vld [vmem:[%s3543_s7 + $0x188] sm:$0xff]   ;;  %v2672_v14 = vld [vmem:[%s3543_s7 + $0x1d0] sm:$0xff]  }
 0x7f3   :  { %v2493_v16 = vpop.f32.mrb[15].mxu1  ;;  %v1264_v18 = vadd.f32 %v1259_v13, %v1035_v1  ;;  %v2124_v1 = vld [vmem:[%s3545_s9 + $0x1] ss:$0 sm:$0xff]  ;;  %v2671_v13 = vld [vmem:[%s3543_s7 + $0x150] sm:$0xff]  }
 0x7f4   :  { %v2673_v15 = vld [vmem:[%s3543_s7 + $0x110] sm:$0xff]  }
 0x7f5   :  { %1269 = vadd.xlane.f32.xlu0 %v1264_v18  ;;  %v2674_v16 = vld [vmem:[%s3543_s7 + $0x190] sm:$0xff]  }
 0x882   :  { %v1270_v30 = vpop.xlane.xlu0 %1269 }
 0x883   :  { %v1271_v31 = vmul.f32 0.0078125, %v1270_v30  ;;  %v2688_v30 = vld [vmem:[%s3543_s7 + $0x1f0] sm:$0xff]  }
 0x885   :  { %v1272_v32 = vsub.f32 %v1264_v18, %v1271_v31  ;;  %v2675_v18 = vld [vmem:[%s3543_s7 + $0x158] sm:$0xff]   ;;  %v2689_v31 = vld [vmem:[%s3543_s7 + $0x130] sm:$0xff]  }
 0x887   :  { %v1273_v33 = vmul.f32 %v1272_v32, %v1272_v32 }
 0x889   :  { %1274 = vadd.xlane.f32.xlu1 %v1273_v33  ;;  %v2691_v33 = vld [vmem:[%s3543_s7 + $0x178] sm:$0xff]  }
 0x916   :  { %v1275_v60 = vpop.xlane.xlu1 %1274 }
 0x917   :  { %v1276_v61 = vmul.f32 0.0078125, %v1275_v60 }
 0x919   :  { %v1277_v62 = vadd.f32 1e-05, %v1276_v61 }
 0x91b   :  { %2699 = vrsqrt.f32 %v1277_v62 }
 0x925   :  { %v2700_v63 = vpop.eup %2699 }
 0x926   :  { %v1279_v2 = vmul.f32 %v2700_v63, %v1272_v32  ;;  %v2690_v32 = vld [vmem:[%s3543_s7 + $0x1b0] sm:$0xff]   ;;  %v2255_v63 = vld [vmem:[#allocation2 + $0x1] ss:$0 sm:$0xff] }
 0x928   :  { %v1286_v0 = vmul.f32 %v2124_v1, %v1279_v2 }
 0x92a   :  { %v3427_v4 = vadd.f32 %v2125_v3, %v1286_v0 }
 0x92c   :  { %v1294_v8 = vpack.c.bf16 %v3427_v4, %v3427_v4 }
 0x92e   :  { %1544 = vmatmul.mubr.bf16.vlgmr.msra.gmra.mrb[16].mxu0 %v1294_v8  ;;  %1585 = vmatmul.mubr.bf16.vlgmr.msra.gmra.mrb[16].mxu1 %v1294_v8 }
 0x92f   :  { %2371 = vmatpush3.bf16.msra.mxu0 %v2665_v5  ;;  %2393 = vmatpush3.bf16.msra.mxu1 %v2666_v7 }
 0x930   :  { %2372 = vmatprep.subr.bf16.mxu0 %v2667_v9  ;;  %2394 = vmatprep.subr.bf16.mxu1 %v2668_v10 }
 0x933   :  { %2373 = vmatpush3.bf16.msra.mxu0 %v2669_v11  ;;  %2395 = vmatpush3.bf16.msra.mxu1 %v2670_v12 }
 0x934   :  { %2374 = vmatprep.subr.bf16.mxu0 %v2671_v13  ;;  %2396 = vmatprep.subr.bf16.mxu1 %v2672_v14 }
 0x937   :  { %2375 = vmatpush3.bf16.msra.mxu0 %v2673_v15  ;;  %2397 = vmatpush3.bf16.msra.mxu1 %v2674_v16 }
 0x938   :  { %2376 = vmatprep.subr.bf16.mxu0 %v2675_v18  ;;  %2398 = vmatprep.subr.bf16.mxu1 %v2676_v19 }
 0x93b   :  { %2377 = vmatpush3.bf16.msra.mxu0 %v2677_v20  ;;  %2399 = vmatpush3.bf16.msra.mxu1 %v2678_v6 }
 0x93c   :  { %2378 = vmatprep.subr.bf16.mxu0 %v2679_v21  ;;  %2400 = vmatprep.subr.bf16.mxu1 %v2680_v22  ;;  %v2288_v21 = vld [vmem:[#allocation6 + $0x1] ss:$0 sm:$0xff] }
 0x93f   :  { %2379 = vmatpush3.bf16.msra.mxu0 %v2681_v23  ;;  %2401 = vmatpush3.bf16.msra.mxu1 %v2682_v24  ;;  %v2289_v23 = vld [vmem:[#allocation7 + $0x1] ss:$0 sm:$0xff] }
 0x940   :  { %2380 = vmatprep.subr.bf16.mxu0 %v2683_v25  ;;  %2402 = vmatprep.subr.bf16.mxu1 %v2684_v26 }
 0x943   :  { %2381 = vmatpush3.bf16.msra.mxu0 %v2685_v27  ;;  %2403 = vmatpush3.bf16.msra.mxu1 %v2686_v28 }
 0x944   :  { %2382 = vmatprep.subr.bf16.mxu0 %v2687_v29  ;;  %2404 = vmatprep.subr.bf16.mxu1 %v2688_v30 }
 0x947   :  { %2383 = vmatpush3.bf16.msra.mxu0 %v2689_v31  ;;  %2405 = vmatpush3.bf16.msra.mxu1 %v2690_v32 }
 0x948   :  { %2384 = vmatprep.subr.bf16.mxu0 %v2691_v33  ;;  %2406 = vmatprep.subr.bf16.mxu1 %v2692_v34 }
 0x94b   :  { %2385 = vmatpush3.bf16.msra.mxu0 %v2693_v35  ;;  %2407 = vmatpush3.bf16.msra.mxu1 %v2694_v36 }
 0xa01   :  { %v1545_v41 = vpop.f32.mrb[16].mxu0  ;;  %v1586_v42 = vpop.f32.mrb[16].mxu1 }
 0xa02   :  { %v1546_v43 = vadd.f32 %v1545_v41, %v1334_v38  ;;  %v1587_v44 = vadd.f32 %v1586_v42, %v1342_v17  ;;  %v1547_v45 = vpop.f32.mrb[17].mxu0  ;;  %v1588_v46 = vpop.f32.mrb[17].mxu1 }
 0xa03   :  { %v1548_v47 = vadd.f32 %v1547_v45, %v1338_v39  ;;  %v1589_v48 = vadd.f32 %v1588_v46, %v1346_v40  ;;  %v1549_v49 = vpop.f32.mrb[18].mxu0  ;;  %v1590_v53 = vpop.f32.mrb[18].mxu1 }
 0xa04   :  { %v1593_v51 = vmax.f32 %v1546_v43, 0.0  ;;  %v1595_v56 = vmax.f32 %v1587_v44, 0.0  ;;  %v1550_v57 = vpop.f32.mrb[19].mxu0  ;;  %v1591_v52 = vpop.f32.mrb[19].mxu1 }
 0xa05   :  { %v1594_v58 = vmax.f32 %v1548_v47, 0.0  ;;  %v1596_v59 = vmax.f32 %v1589_v48, 0.0 }
 0xa06   :  { %v1597_v50 = vpack.c.bf16 %v1593_v51, %v1593_v51  ;;  %v1599_v55 = vpack.c.bf16 %v1595_v56, %v1595_v56 }
 0xa07   :  { %v1598_v54 = vpack.c.bf16 %v1594_v58, %v1594_v58  ;;  %v1600_v60 = vpack.c.bf16 %v1596_v59, %v1596_v59 }
 0xa09   :  { %1898 = vmatprep.mubr.bf16.mxu0 %v1598_v54  ;;  %1938 = vmatprep.mubr.bf16.mxu1 %v1600_v60 }
 0xa0a   :  { %1899 = vmatmul.mubr.bf16.vlgmr.msra.gmra.mrb[20].mxu0 %v1597_v50  ;;  %1939 = vmatmul.mubr.bf16.vlgmr.msra.gmra.mrb[20].mxu1 %v1599_v55 }
 0xadd   :  { %v2386_v61 = vpop.f32.mrb[20].mxu0  ;;  %v2408_v62 = vpop.f32.mrb[20].mxu1 }
 0xade   :  { %v2387_v1 = vpop.f32.mrb[21].mxu0  ;;  %v2409_v2 = vpop.f32.mrb[21].mxu1 }
 0xadf   :  { %v2388_v3 = vadd.f32 %v2387_v1, %v2386_v61  ;;  %v2410_v0 = vadd.f32 %v2409_v2, %v2408_v62  ;;  %v2389_v5 = vpop.f32.mrb[22].mxu0  ;;  %v2411_v7 = vpop.f32.mrb[22].mxu1 }
 0xae0   :  { %v2390_v8 = vpop.f32.mrb[23].mxu0  ;;  %v2412_v9 = vpop.f32.mrb[23].mxu1 }
 0xae1   :  { %v1901_v10 = vadd.f32 %v2388_v3, %v2255_v63 }
 0xae3   :  { %v1941_v11 = vadd.f32 %v2410_v0, %v1901_v10 }
 0xae5   :  { %v1946_v12 = vadd.f32 %v1941_v11, %v3427_v4 }
 0xae7   :  { %1951 = vadd.xlane.f32.xlu0 %v1946_v12 }
 0xb74   :  { %v1952_v13 = vpop.xlane.xlu0 %1951 }
 0xb75   :  { %v1953_v14 = vmul.f32 0.0078125, %v1952_v13 }
 0xb77   :  { %v1954_v15 = vsub.f32 %v1946_v12, %v1953_v14 }
 0xb79   :  { %v1955_v16 = vmul.f32 %v1954_v15, %v1954_v15 }
 0xb7b   :  { %1956 = vadd.xlane.f32.xlu1 %v1955_v16 }
 0xc08   :  { %v1957_v18 = vpop.xlane.xlu1 %1956 }
 0xc09   :  { %v1958_v19 = vmul.f32 0.0078125, %v1957_v18 }
 0xc0b   :  { %v1959_v20 = vadd.f32 1e-05, %v1958_v19 }
 0xc0d   :  { %2701 = vrsqrt.f32 %v1959_v20 }
 0xc17   :  { %v2702_v6 = vpop.eup %2701 }
 0xc18   :  { %v1961_v22 = vmul.f32 %v2702_v6, %v1954_v15 }
 0xc1a   :  { %v1968_v24 = vmul.f32 %v2288_v21, %v1961_v22 }
 0xc1c   :  { %v1975_v25 = vadd.f32 %v2289_v23, %v1968_v24 }
 0xc1e   :  { %1976 = vst [vmem:[%s3549_s13] sm:$0xff] %v1975_v25 }
 0xc1f   :  { %1981 = vsyncpa [#allocation3], 1 }
 0xc20   :  { %1982 = vsyncpa [#allocation5], 1 }
 0xc21   :  { %1983 = vsyncpa [#allocation8], 1 }

// kernel: vjepa_forward.10
= control target key start
LH: loop header
LB: loop body
LE: loop exit
PB: predicated region body
PF: predicated region fallthrough
CT: control target
= control target key end

     0   :  { %s7826_s0 = inlined_call_operand.vmem [shape: f32[1,8,128], index: 0, kind: input, shape index: {}]   ;;  %s7827_s1 = inlined_call_operand.hbm [shape: f32[1,128], index: 1, kind: input, shape index: {}]   ;;  %s7828_s2 = inlined_call_operand.vmem [shape: bf16[2,128,384], index: 2, kind: input, shape index: {}]   ;;  %s7829_s3 = inlined_call_operand.vmem [shape: f32[2,1,384], index: 3, kind: input, shape index: {}]   ;;  %s7830_s4 = inlined_call_operand.hbm [shape: bf16[2,128,128], index: 4, kind: input, shape index: {}]   ;;  %s7831_s5 = inlined_call_operand.vmem [shape: f32[2,1,128], index: 5, kind: input, shape index: {}]   ;;  %s7832_s6 = inlined_call_operand.vmem [shape: bf16[2,128,512], index: 6, kind: input, shape index: {}]   ;;  %s7833_s7 = inlined_call_operand.vmem [shape: f32[2,1,512], index: 7, kind: input, shape index: {}]   ;;  %s7834_s8 = inlined_call_operand.vmem [shape: bf16[2,512,128], index: 8, kind: input, shape index: {}]   ;;  %s7835_s9 = inlined_call_operand.vmem [shape: f32[2,1,128], index: 9, kind: input, shape index: {}]   ;;  %s7836_s10 = inlined_call_operand.hbm [shape: f32[2,1,128], index: 10, kind: input, shape index: {}]   ;;  %s7837_s11 = inlined_call_operand.hbm [shape: f32[2,1,128], index: 11, kind: input, shape index: {}]   ;;  %s7838_s12 = inlined_call_operand.hbm [shape: f32[2,1,128], index: 12, kind: input, shape index: {}]   ;;  %s7839_s13 = inlined_call_operand.hbm [shape: f32[2,1,128], index: 13, kind: input, shape index: {}]   ;;  %s7840_s14 = inlined_call_operand.vmem [shape: f32[16,128], index: 14, kind: output, shape index: {}]  }
   0x1   :  { %7849 = sst [smem:[#allocation17_spill]] %s7827_s1 }
   0x2   :  { %7850 = sst [smem:[#allocation18_spill]] %s7830_s4 }
   0x3   :  { %7851 = sst [smem:[#allocation19_spill]] %s7832_s6 }
   0x4   :  { %7852 = sst [smem:[#allocation20_spill]] %s7833_s7 }
   0x5   :  { %7853 = sst [smem:[#allocation21_spill]] %s7834_s8 }
   0x6   :  { %7854 = sst [smem:[#allocation22_spill]] %s7835_s9 }
   0x7   :  { %19 = vsyncpa [#allocation3], 0 }
   0x8   :  { %20 = vsyncpa [#allocation5], 0 }
   0x9   :  { %21 = vsyncpa [#allocation8], 0 }
   0xa   :  { %22 = vsyncpa [#allocation11], 0  ;;  %s6658_s29 = smov 0   ;;  %s6660_s30 = smov 0  }
   0xb   :  { %s6662_s15 = smov 0  }
   0xc LB: > { %7855 = sst [smem:[#allocation16_spill]] %s6563_s15  ;;  %s6565_s16 = smov [#allocation4]   ;;  %s6563_s15 = sphi %s6662_s15, %s28_s15   ;;  %s6559_s30 = sphi %s6660_s30, %s7870_s30   ;;  %s6555_s29 = sphi %s6658_s29, %s7869_s29  }
   0xd   : > { %s480_s17 = sshll.u32 %s6565_s16, 4  ;;  %s5243_s18 = sadd.s32 4294967295, %s6563_s15   ;;  %s6680_s17 = int_to_ptr.vmem [resolvable:$true] %s480_s17 }
   0xe   : > { %p5245_p0 = scmp.ge.s32.totalorder %s6563_s15, 1  ;;  %p434_p1 = scmp.lt.s32.totalorder %s6563_s15, 3 }
   0xf   : > { %p6676_p2 = scmp.eq.s32.totalorder %s5243_s18, 0  ;;  %s6566_s22 = smov [#allocation7]  }
  0x10   : > { %p6682_p3 = pnand %p5245_p0, %p434_p1  ;;  %s557_s23 = sshll.u32 %s6566_s22, 4  ;;  %s6694_s23 = int_to_ptr.vmem [resolvable:$true] %s557_s23 }
  0x11   : > { %s7856_s19 = scalar_select %p6676_p2, 1, 0 }
  0x12   : > { %s7857_s20 = scalar_select %p6682_p3, 1, 0 }
  0x13   : > { %p6003_p4 = pneg %p6682_p3  ;;  %s7859_s4 = sld [smem:[#allocation18_spill]] }
  0x15   : > { %p6690_p5 = pnand %p6676_p2, %p6003_p4 }
  0x17   : > { %p6704_p7 = pneg %p6690_p5 }
  0x19   : > { %s6357_s26 = scalar_lea.hbm %s7859_s4, 2048 }
  0x1a   : > { %p6358_p6 = scmp.ne.s32.totalorder %s7859_s4, %s6357_s26  ;;  %p6364_p10 = scmp.lt.u32.totalorder %s6357_s26, %s7859_s4 }
  0x1c   : > { %p6360_p8 = pnand %p6704_p7, %p6358_p6 }
  0x1e   : > { %p6361_p9 = pneg %p6360_p8 }
  0x20   : > { %p6366_p11 = pnand %p6364_p10, %p6361_p9 }
  0x22   : > { %6369 = shalt.err (!%p6366_p11)
}
  0x23   : > { %s6370_s24 = scalar_lea.vmem %s6680_s17, 2048  ;;  %p6378_p1 = scmp.lt.s32.totalorder %s6680_s17, %s6680_s17 }
  0x24   : > { %p6371_p12 = scmp.ne.s32.totalorder %s6680_s17, %s6370_s24  ;;  %p6379_p4 = scmp.lt.s32.totalorder %s6370_s24, %s6370_s24 }
  0x26   : > { %p6373_p13 = pnand %p6371_p12, %p6704_p7  ;;  %p6380_p6 = por %p6379_p4, %p6378_p1 }
  0x28   : > { %p6374_p0 = pneg %p6373_p13 }
  0x2a   : > { %p6381_p8 = pnand %p6380_p6, %p6374_p0 }
  0x2c   : > { %6384 = shalt.err (!%p6381_p8)
}
  0x2d   : > { %s6567_s25 = smov 64   ;;  %s6568_s26 = smov 4  }
  0x2e   : > { %6009 = dma.hbm_to_vmem [thread:$0]  (!%p6690_p5), %s7859_s4, 2048, %s6680_s17, [#allocation5], %s6567_s25, %s6567_s25, %s6568_s26  }
  0x2f   : > { %s6385_s15 = scalar_lea.hbm %s7837_s11, 32 }
  0x30   : > { %p6386_p9 = scmp.ne.s32.totalorder %s7837_s11, %s6385_s15  ;;  %p6392_p12 = scmp.lt.u32.totalorder %s6385_s15, %s7837_s11 }
  0x32   : > { %p6388_p10 = pnand %p6386_p9, %p6704_p7 }
  0x34   : > { %p6389_p11 = pneg %p6388_p10 }
  0x36   : > { %p6394_p13 = pnand %p6392_p12, %p6389_p11 }
  0x38   : > { %6397 = shalt.err (!%p6394_p13)
}
  0x39   : > { %s6398_s17 = scalar_lea.vmem %s6694_s23, 32  ;;  %p6406_p6 = scmp.lt.s32.totalorder %s6694_s23, %s6694_s23 }
  0x3a   : > { %p6399_p0 = scmp.ne.s32.totalorder %s6694_s23, %s6398_s17  ;;  %p6407_p8 = scmp.lt.s32.totalorder %s6398_s17, %s6398_s17 }
  0x3c   : > { %p6401_p1 = pnand %p6399_p0, %p6704_p7  ;;  %p6408_p9 = por %p6407_p8, %p6406_p6 }
  0x3e   : > { %p6402_p4 = pneg %p6401_p1 }
  0x40   : > { %p6409_p10 = pnand %p6408_p9, %p6402_p4 }
  0x42   : > { %6412 = shalt.err (!%p6409_p10)
}
  0x43   : > { %s6569_s7 = smov 16   ;;  %s6570_s8 = smov 1  }
  0x44   : > { %6015 = dma.hbm_to_vmem [thread:$0]  (!%p6690_p5), %s7837_s11, 32, %s6694_s23, [#allocation8], %s6569_s7, %s6569_s7, %s6570_s8  }
  0x45   : > { %s40_s25 = sadd.s32 1, %s6559_s30  ;;  %s6571_s26 = smov [#allocation2]  }
  0x46   : > { %p42_p11 = scmp.ge.s32.totalorder %s40_s25, 2  ;;  %s447_s27 = sshll.u32 %s6571_s26, 4  ;;  %s448_s27 = int_to_ptr.vmem [resolvable:$true] %s447_s27 }
  0x47   : > { %s6572_s28 = smov [#allocation6]   ;;  %s7861_s1 = sld [smem:[#allocation17_spill]] }
  0x48   : > { %s7872_s25 = smov (%p42_p11, %s40_s25), 0  ;;  %s541_s18 = sshll.u32 %s6572_s28, 4  ;;  %s542_s18 = int_to_ptr.vmem [resolvable:$true] %s541_s18 }
  0x4d   : > { %s6413_s17 = scalar_lea.hbm %s7861_s1, 16 }
  0x4e   : > { %p6414_p12 = scmp.ne.s32.totalorder %s7861_s1, %s6413_s17  ;;  %p6420_p1 = scmp.lt.u32.totalorder %s6413_s17, %s7861_s1 }
  0x50   : > { %p6416_p13 = pnand %p6414_p12, %p6704_p7 }
  0x52   : > { %p6417_p0 = pneg %p6416_p13 }
  0x54   : > { %p6422_p4 = pnand %p6420_p1, %p6417_p0 }
  0x56   : > { %6425 = shalt.err (!%p6422_p4)
}
  0x57   : > { %s6426_s15 = scalar_lea.vmem %s448_s27, 16  ;;  %s6433_s26 = scalar_lea.vmem %s448_s27, 32 }
  0x58   : > { %p6427_p6 = scmp.ne.s32.totalorder %s448_s27, %s6426_s15  ;;  %p6434_p10 = scmp.lt.s32.totalorder %s448_s27, %s448_s27 }
  0x59   : > { %p6435_p11 = scmp.lt.s32.totalorder %s6433_s26, %s6426_s15 }
  0x5a   : > { %p6429_p8 = pnand %p6427_p6, %p6704_p7 }
  0x5b   : > { %p6436_p2 = por %p6435_p11, %p6434_p10 }
  0x5c   : > { %p6430_p9 = pneg %p6429_p8 }
  0x5e   : > { %p6437_p3 = pnand %p6436_p2, %p6430_p9 }
  0x60   : > { %6440 = shalt.err (!%p6437_p3)
}
  0x61   : > { %6006 = dma.hbm_to_vmem [thread:$0]  (!%p6690_p5), %s7861_s1, 16, %s448_s27, [#allocation3]  }
  0x62   : > { %s6441_s24 = scalar_lea.hbm %s7836_s10, 32 }
  0x63   : > { %p6442_p12 = scmp.ne.s32.totalorder %s7836_s10, %s6441_s24  ;;  %p6448_p3 = scmp.lt.u32.totalorder %s6441_s24, %s7836_s10 }
  0x65   : > { %p6444_p13 = pnand %p6442_p12, %p6704_p7 }
  0x67   : > { %p6445_p2 = pneg %p6444_p13 }
  0x69   : > { %p6450_p0 = pnand %p6448_p3, %p6445_p2 }
  0x6b   : > { %6453 = shalt.err (!%p6450_p0)
}
  0x6c   : > { %s6454_s26 = scalar_lea.vmem %s542_s18, 32  ;;  %p6462_p8 = scmp.lt.s32.totalorder %s542_s18, %s542_s18 }
  0x6d   : > { %p6455_p1 = scmp.ne.s32.totalorder %s542_s18, %s6454_s26  ;;  %p6463_p9 = scmp.lt.s32.totalorder %s6454_s26, %s6454_s26 }
  0x6f   : > { %p6457_p4 = pnand %p6455_p1, %p6704_p7  ;;  %p6464_p10 = por %p6463_p9, %p6462_p8 }
  0x71   : > { %p6458_p6 = pneg %p6457_p4 }
  0x73   : > { %p6465_p11 = pnand %p6464_p10, %p6458_p6 }
  0x75   : > { %6468 = shalt.err (!%p6465_p11)
}
  0x76   : > { %6012 = dma.hbm_to_vmem [thread:$0]  (!%p6690_p5), %s7836_s10, 32, %s542_s18, [#allocation5], %s6569_s7, %s6569_s7, %s6570_s8  }
  0x77   : > { %s6573_s6 = smov [#allocation9]   ;;  %s6574_s22 = smov [#allocation10]  }
  0x78   : > { %s573_s28 = sshll.u32 %s6573_s6, 4  ;;  %s589_s24 = sshll.u32 %s6574_s22, 4  ;;  %s574_s28 = int_to_ptr.vmem [resolvable:$true] %s573_s28  ;;  %s590_s24 = int_to_ptr.vmem [resolvable:$true] %s589_s24 }
  0x79   : > { %s6469_s9 = scalar_lea.hbm %s7838_s12, 32 }
  0x7a   : > { %p6470_p12 = scmp.ne.s32.totalorder %s7838_s12, %s6469_s9  ;;  %p6476_p3 = scmp.lt.u32.totalorder %s6469_s9, %s7838_s12 }
  0x7c   : > { %p6472_p13 = pnand %p6470_p12, %p6704_p7 }
  0x7e   : > { %p6473_p2 = pneg %p6472_p13 }
  0x80   : > { %p6478_p0 = pnand %p6476_p3, %p6473_p2 }
  0x82   : > { %6481 = shalt.err (!%p6478_p0)
}
  0x83   : > { %s6482_s18 = scalar_lea.vmem %s574_s28, 32  ;;  %p6490_p8 = scmp.lt.s32.totalorder %s574_s28, %s574_s28 }
  0x84   : > { %p6483_p1 = scmp.ne.s32.totalorder %s574_s28, %s6482_s18  ;;  %p6491_p9 = scmp.lt.s32.totalorder %s6482_s18, %s6482_s18 }
  0x86   : > { %p6485_p4 = pnand %p6483_p1, %p6704_p7  ;;  %p6492_p10 = por %p6491_p9, %p6490_p8 }
  0x88   : > { %p6486_p6 = pneg %p6485_p4 }
  0x8a   : > { %p6493_p11 = pnand %p6492_p10, %p6486_p6 }
  0x8c   : > { %6496 = shalt.err (!%p6493_p11)
}
  0x8d   : > { %6018 = dma.hbm_to_vmem [thread:$0]  (!%p6690_p5), %s7838_s12, 32, %s574_s28, [#allocation8], %s6569_s7, %s6569_s7, %s6570_s8  }
  0x8e   : > { %s6497_s17 = scalar_lea.hbm %s7839_s13, 32 }
  0x8f   : > { %p6498_p12 = scmp.ne.s32.totalorder %s7839_s13, %s6497_s17  ;;  %p6504_p3 = scmp.lt.u32.totalorder %s6497_s17, %s7839_s13 }
  0x91   : > { %p6500_p13 = pnand %p6498_p12, %p6704_p7 }
  0x93   : > { %p6501_p2 = pneg %p6500_p13 }
  0x95   : > { %p6506_p0 = pnand %p6504_p3, %p6501_p2 }
  0x97   : > { %6509 = shalt.err (!%p6506_p0)
}
  0x98   : > { %s6510_s27 = scalar_lea.vmem %s590_s24, 32  ;;  %p6518_p8 = scmp.lt.s32.totalorder %s590_s24, %s590_s24 }
  0x99   : > { %p6511_p1 = scmp.ne.s32.totalorder %s590_s24, %s6510_s27  ;;  %p6519_p9 = scmp.lt.s32.totalorder %s6510_s27, %s6510_s27 }
  0x9b   : > { %p6513_p4 = pnand %p6511_p1, %p6704_p7  ;;  %p6520_p10 = por %p6519_p9, %p6518_p8 }
  0x9d   : > { %p6514_p6 = pneg %p6513_p4 }
  0x9f   : > { %p6521_p11 = pnand %p6520_p10, %p6514_p6 }
  0xa1   : > { %6524 = shalt.err (!%p6521_p11)
}
  0xa2   : > { %6021 = dma.hbm_to_vmem [thread:$0]  (!%p6690_p5), %s7839_s13, 32, %s590_s24, [#allocation11], %s6569_s7, %s6569_s7, %s6570_s8  }
  0xa3   : > { %p7862_p12 = scmp.ne.s32.totalorder %s7857_s20, 0 }
  0xa4   : > { %p7863_p7 = scmp.ne.s32.totalorder (!%p7862_p12), %s7856_s19, 0 }
  0xa5   : > { %616 = sbr.rel (%p7862_p12) target bundleno = 5406 (0x151e), region = 76 }
  0xac   : > { %6538 = dma.done.wait (%p7863_p7), [#allocation3], 16  }
  0xad   : > { %6540 = vsyncadd (%p7863_p7), [#allocation3], 4294967280 }
  0xae   : > { %6542 = dma.done.wait (%p7863_p7), [#allocation5], 2080  }
  0xaf   : > { %6544 = vsyncadd (%p7863_p7), [#allocation5], 4294965216 }
  0xb0   : > { %6546 = dma.done.wait (%p7863_p7), [#allocation8], 64  }
  0xb1   : > { %6548 = vsyncadd (%p7863_p7), [#allocation8], 4294967232 }
  0xb2   : > { %6550 = dma.done.wait (%p7863_p7), [#allocation11], 32  }
  0xb3   : > { %6552 = vsyncadd (%p7863_p7), [#allocation11], 4294967264  ;;  %p718_p5 = scmp.lt.s32.totalorder %s6555_s29, 0  ;;  %p774_p13 = scmp.lt.s32.totalorder %s6555_s29, 1 }
  0xb5   : > { %s719_s20 = scalar_select %p718_p5, %s6555_s29, 0 }
  0xb6   : > { %s775_s21 = scalar_select %p774_p13, %s6555_s29, 1 }
  0xb7   : > { %s7874_s20 = smov (!%p718_p5, %s719_s20), 0  ;;  %784 = sbr.rel (!%p774_p13) target bundleno = 190 (0xbe), region = 104 }
  0xb8   : > { %s5271_s16 = sshll.u32 %s775_s21, 3  ;;  %s5270_s7 = sshll.u32 %s7874_s20, 3 }
  0xb9   : > { %s6860_s1 = scalar_lea.vmem %s7840_s14, %s5271_s16  ;;  %s723_s19 = scalar_lea.vmem %s7826_s0, %s5270_s7 }
  0xba   : > { %v785_v0 = vld [vmem:[%s723_s19] sm:$0xff] (%p774_p13) }
  0xbb   : > { %786 = vst [vmem:[%s6860_s1] sm:$0xff] (%p774_p13), %v785_v0 }
  0xbe PF: > { %p787_p2 = scmp.ge.s32.totalorder %s6555_s29, 1 }
  0xbf   : > { %v5274_v1 = vld [vmem:[#allocation2] ss:$0 sm:$0xff] (%p787_p2) }
  0xc0   : > { %791 = sbr.rel (!%p787_p2) target bundleno = 199 (0xc7), region = 108  ;;  %799 = vst [vmem:[%s6860_s1] sm:$0xff] (%p787_p2), %v5274_v1 }
  0xc7 PF: > { %v6076_v2 = vld [vmem:[%s7828_s2 + $0x4] ss:$12 sps:$4 sm:$0xff]   ;;  %v6078_v3 = vld [vmem:[%s7828_s2] ss:$12 sps:$4 sm:$0xff]   ;;  %v6575_v4 = vmov 0   ;;  %v6576_v22 = vmov 0.0   ;;  %v836_v25 = vlaneseq }
  0xc8   : > { %1011 = vmatprep.mubr.bf16.mxu0 %v6575_v4  ;;  %979 = vmatprep.subr.bf16.mxu0 %v6076_v2  ;;  %v6079_v5 = vld [vmem:[%s7828_s2 + $0x1c] ss:$12 sps:$4 sm:$0xff]   ;;  %v6081_v6 = vld [vmem:[%s7828_s2 + $0x18] ss:$12 sps:$4 sm:$0xff]   ;;  %v6082_v7 = vld [vmem:[%s7828_s2 + $0x34] ss:$12 sps:$4 sm:$0xff]  }
  0xc9   : > { %980 = vmatpush1.bf16.msra.mxu0 %v6078_v3  ;;  %v6084_v8 = vld [vmem:[%s7828_s2 + $0x30] ss:$12 sps:$4 sm:$0xff]   ;;  %v6085_v9 = vld [vmem:[%s7828_s2 + $0x4c] ss:$12 sps:$4 sm:$0xff]   ;;  %v6087_v10 = vld [vmem:[%s7828_s2 + $0x48] ss:$12 sps:$4 sm:$0xff]   ;;  %5803 = vmatprep.subr.bf16.mxu1 %v6576_v22 }
  0xca   : > { %981 = vmatprep.subr.bf16.mxu0 %v6079_v5  ;;  %v6088_v11 = vld [vmem:[%s7828_s2 + $0x64] ss:$12 sps:$4 sm:$0xff]   ;;  %v6090_v12 = vld [vmem:[%s7828_s2 + $0x60] ss:$12 sps:$4 sm:$0xff]   ;;  %v6091_v13 = vld [vmem:[%s7828_s2 + $0x7c] ss:$12 sps:$4 sm:$0xff]  }
  0xcb   : > { %v6093_v14 = vld [vmem:[%s7828_s2 + $0x78] ss:$12 sps:$4 sm:$0xff]   ;;  %v6094_v15 = vld [vmem:[%s7828_s2 + $0x94] ss:$12 sps:$4 sm:$0xff]   ;;  %v6096_v16 = vld [vmem:[%s7828_s2 + $0x90] ss:$12 sps:$4 sm:$0xff]  }
  0xcc   : > { %v6097_v17 = vld [vmem:[%s7828_s2 + $0xac] ss:$12 sps:$4 sm:$0xff]   ;;  %v6099_v18 = vld [vmem:[%s7828_s2 + $0xa8] ss:$12 sps:$4 sm:$0xff]   ;;  %v800_v19 = vld [vmem:[%s6860_s1] sm:$0xff]  ;;  %v6935_v27 = vshrl.u32 %v836_v25, 7 }
  0xcd   : > { %982 = vmatpush1.bf16.msra.mxu0 %v6081_v6  ;;  %v801_v20 = vpack.c.bf16 %v800_v19, %v800_v19  ;;  %v6100_v21 = vld [vmem:[%s7828_s2 + $0x8] ss:$12 sps:$4 sm:$0xff]   ;;  %v6101_v23 = vld [vmem:[%s7828_s2 + $0x20] ss:$12 sps:$4 sm:$0xff]   ;;  %v6102_v24 = vld [vmem:[%s7828_s2 + $0x38] ss:$12 sps:$4 sm:$0xff]  }
  0xce   : > { %983 = vmatprep.subr.bf16.mxu0 %v6082_v7  ;;  %5804 = vmatpush3.bf16.msra.mxu1 %v6100_v21  ;;  %v6103_v26 = vld [vmem:[%s7828_s2 + $0x50] ss:$12 sps:$4 sm:$0xff]   ;;  %v6104_v28 = vld [vmem:[%s7828_s2 + $0x68] ss:$12 sps:$4 sm:$0xff]   ;;  %v6942_v29 = vsub.s32 1, %v6935_v27  ;;  %v6951_v31 = vsub.s32 0, %v6935_v27 }
  0xcf   : > { %5805 = vmatprep.subr.bf16.mxu1 %v6576_v22  ;;  %v6947_v30 = vld [vmem:[%s7829_s3] sm:$0x7]  ;;  %v6106_v39 = vld [vmem:[%s7828_s2 + $0x98] ss:$12 sps:$4 sm:$0xff]   ;;  %s6577_s20 = smov 32   ;;  %s6578_s21 = smov 96  }
  0xd0   : > { %v843_v32 = vrot.slane %v6947_v30, %v6942_v29  ;;  %v6105_v33 = vld [vmem:[%s7828_s2 + $0x80] ss:$12 sps:$4 sm:$0xff]   ;;  %v839_v36 = vrot.slane %v6947_v30, %v6951_v31  ;;  %v6107_v42 = vld [vmem:[%s7828_s2 + $0xb0] ss:$12 sps:$4 sm:$0xff]   ;;  %s6579_s8 = smov 64   ;;  %vm6580_vm0 = vmmov 0  }
  0xd1   : > { %984 = vmatpush1.bf16.msra.mxu0 %v6084_v8  ;;  %5819 = vmatprep.mubr.msk.bf16.mxu1 %vm6580_vm0, %v6576_v22  ;;  %v6581_v43 = vmov 1983009808   ;;  %v6582_v45 = vmov 1934713408   ;;  %vm1510_vm1 = vcmask 261120   ;;  %vm1695_vm2 = vcmask 64512  }
  0xd2   : > { %985 = vmatprep.subr.bf16.mxu0 %v6085_v9  ;;  %5806 = vmatpush3.bf16.msra.mxu1 %v6101_v23  ;;  %v1073_v44 = vunpack.c.l.s4 %v6581_v43  ;;  %v1105_v46 = vunpack.c.l.s4 %v6582_v45  ;;  %vm1751_vm3 = vcmask 1043456   ;;  %vm2082_vm4 = vcmask 523264   ;;  %s7864_s22 = sld [smem:[#allocation19_spill]]  ;;  %s7865_s26 = sld [smem:[#allocation21_spill]] }
  0xd3   : > { %5807 = vmatprep.subr.bf16.mxu1 %v6576_v22  ;;  %vm2084_vm5 = vcmask 785408   ;;  %s7866_s6 = sld [smem:[#allocation20_spill]]  ;;  %s7867_s23 = sld [smem:[#allocation22_spill]] }
  0xd4   : > { %v1074_v47 = vunpack.c.0.s8 %v1073_v44  ;;  %v1106_v50 = vunpack.c.0.s8 %v1105_v46 }
  0xd5   : > { %986 = vmatpush1.bf16.msra.mxu0 %v6087_v10 }
  0xd6   : > { %987 = vmatprep.subr.bf16.mxu0 %v6088_v11  ;;  %5808 = vmatpush3.bf16.msra.mxu1 %v6102_v24  ;;  %v6982_v51 = vsub.s32 %v1074_v47, %v6935_v27  ;;  %v6985_v58 = vsub.s32 %v1106_v50, %v6935_v27 }
  0xd7   : > { %5809 = vmatprep.subr.bf16.mxu1 %v6576_v22 }
  0xd9   : > { %988 = vmatpush1.bf16.msra.mxu0 %v6090_v12 }
  0xda   : > { %989 = vmatprep.subr.bf16.mxu0 %v6091_v13  ;;  %5810 = vmatpush3.bf16.msra.mxu1 %v6103_v26 }
  0xdb   : > { %5811 = vmatprep.subr.bf16.mxu1 %v6576_v22 }
  0xdd   : > { %990 = vmatpush1.bf16.msra.mxu0 %v6093_v14 }
  0xde   : > { %991 = vmatprep.subr.bf16.mxu0 %v6094_v15  ;;  %5812 = vmatpush3.bf16.msra.mxu1 %v6104_v28 }
  0xdf   : > { %5813 = vmatprep.subr.bf16.mxu1 %v6576_v22 }
  0xe1   : > { %992 = vmatpush1.bf16.msra.mxu0 %v6096_v16 }
  0xe2   : > { %993 = vmatprep.subr.bf16.mxu0 %v6097_v17  ;;  %5814 = vmatpush3.bf16.msra.mxu1 %v6105_v33 }
  0xe3   : > { %5815 = vmatprep.subr.bf16.mxu1 %v6576_v22 }
  0xe5   : > { %994 = vmatpush1.bf16.msra.mxu0 %v6099_v18 }
  0xe6   : > { %5847 = vmatprep.subr.bf16.mxu0 %v6576_v22  ;;  %5816 = vmatpush3.bf16.msra.mxu1 %v6106_v39 }
  0xe7   : > { %5817 = vmatprep.subr.bf16.mxu1 %v6576_v22 }
  0xe8   : > { %1012 = vmatmul.mubr.bf16.vlgmr.msra.gmra.mrb[0].mxu0 %v801_v20 }
  0xe9   : > { %5849 = vmatprep.mubr.msk.bf16.mxu0 %vm6580_vm0, %v6576_v22 }
  0xea   : > { %5818 = vmatpush3.bf16.msra.mxu1 %v6107_v42 }
  0xeb   : > { %5823 = vmatprep.subr.bf16.mxu1 %v6576_v22 }
  0xed   : > { %5820 = vmatmul.mubr.bf16.vlgmr.msra.gmra.mrb[0].mxu1 %v801_v20 }
  0xee   : > { %5825 = vmatprep.mubr.msk.bf16.mxu1 %vm6580_vm0, %v6576_v22 }
 0x1bb   : > { %v1013_v34 = vpop.f32.mrb[0].mxu0 }
 0x1bc   : > { %v1015_v35 = vpop.f32.mrb[1].mxu0  ;;  %v1014_v41 = vadd.f32 %v1013_v34, %v839_v36 }
 0x1bd   : > { %v1016_v37 = vadd.f32 %v1015_v35, %v843_v32  ;;  %v1017_v38 = vpop.f32.mrb[2].mxu0 }
 0x1be   : > { %v1018_v40 = vpop.f32.mrb[3].mxu0 }
 0x1bf   : > { %1217 = vrot.lane.b32.xlu1 %v1016_v37, %s6577_s20  ;;  %1211 = vrot.lane.b32.xlu0 %v1016_v37, %s6578_s21 }
 0x1c3   : > { %1214 = vrot.lane.b32.xlu0 %v1016_v37, %s6579_s8  ;;  %1061 = vrot.lane.b32.xlu1 %v1014_v41, %s6578_s21 }
 0x1c7   : > { %1064 = vrot.lane.b32.xlu0 %v1014_v41, %s6579_s8  ;;  %1067 = vrot.lane.b32.xlu1 %v1014_v41, %s6577_s20 }
 0x231   : > { %v1218_v48 = vpop.permute.xlu1 %1217  ;;  %v1212_v49 = vpop.permute.xlu0 %1211 }
 0x232   : > { %v1236_v52 = vcombine.low %v1212_v49, %v1218_v48  ;;  %v1237_v53 = vcombine.high %v1212_v49, %v1218_v48 }
 0x234   : > { %v1244_v59 = vrot.slane %v1236_v52, %v6982_v51  ;;  %v1251_v60 = vrot.slane %v1237_v53, %v6982_v51 }
 0x235   : > { %v1215_v54 = vpop.permute.xlu0 %1214  ;;  %v1062_v55 = vpop.permute.xlu1 %1061 }
 0x236   : > { %v1220_v56 = vcombine.low %v1016_v37, %v1215_v54  ;;  %v1221_v57 = vcombine.high %v1016_v37, %v1215_v54 }
 0x238   : > { %v1228_v61 = vrot.slane %v1220_v56, %v6982_v51  ;;  %v1235_v62 = vrot.slane %v1221_v57, %v6982_v51 }
 0x239   : > { %v1065_v63 = vpop.permute.xlu0 %1064  ;;  %v1068_v0 = vpop.permute.xlu1 %1067 }
 0x23a   : > { %v1252_v1 = vcombine.low %v1228_v61, %v1244_v59  ;;  %v1253_v2 = vcombine.high %v1228_v61, %v1244_v59  ;;  %v1268_v3 = vcombine.low %v1235_v62, %v1251_v60  ;;  %v1269_v5 = vcombine.high %v1235_v62, %v1251_v60 }
 0x23b   : > { %v1070_v6 = vcombine.low %v1014_v41, %v1065_v63  ;;  %v1071_v7 = vcombine.high %v1014_v41, %v1065_v63  ;;  %v1086_v8 = vcombine.low %v1062_v55, %v1068_v0  ;;  %v1087_v9 = vcombine.high %v1062_v55, %v1068_v0 }
 0x23c   : > { %v1260_v10 = vrot.slane %v1252_v1, %v6985_v58  ;;  %v1267_v11 = vrot.slane %v1253_v2, %v6985_v58  ;;  %v1276_v12 = vrot.slane %v1268_v3, %v6985_v58  ;;  %v1283_v13 = vrot.slane %v1269_v5, %v6985_v58 }
 0x23d   : > { %v1078_v14 = vrot.slane %v1070_v6, %v6982_v51  ;;  %v1085_v15 = vrot.slane %v1071_v7, %v6982_v51  ;;  %v1094_v16 = vrot.slane %v1086_v8, %v6982_v51  ;;  %v1101_v17 = vrot.slane %v1087_v9, %v6982_v51 }
 0x23e   : > { %v1288_v18 = vcombine.low %v1260_v10, %v1267_v11  ;;  %v5301_v19 = vcombine.high %v1260_v10, %v1267_v11  ;;  %v1304_v20 = vcombine.low %v1276_v12, %v1283_v13  ;;  %v5302_v21 = vcombine.high %v1276_v12, %v1283_v13 }
 0x23f   : > { %v1102_v23 = vcombine.low %v1078_v14, %v1094_v16  ;;  %v1103_v24 = vcombine.high %v1078_v14, %v1094_v16  ;;  %v1118_v25 = vcombine.low %v1085_v15, %v1101_v17  ;;  %v1119_v26 = vcombine.high %v1085_v15, %v1101_v17 }
 0x240   : > { %v1295_v28 = vrot.slane %v1288_v18, %v6982_v51  ;;  %v1303_v32 = vrot.slane %v5301_v19, %v6982_v51  ;;  %v1311_v33 = vrot.slane %v1304_v20, %v6982_v51  ;;  %v1319_v34 = vrot.slane %v5302_v21, %v6982_v51 }
 0x241   : > { %v1110_v35 = vrot.slane %v1102_v23, %v6985_v58  ;;  %v1117_v36 = vrot.slane %v1103_v24, %v6985_v58  ;;  %v1126_v37 = vrot.slane %v1118_v25, %v6985_v58  ;;  %v1133_v38 = vrot.slane %v1119_v26, %v6985_v58 }
 0x242   : > { %v1320_v39 = vcombine.low %v1295_v28, %v1303_v32  ;;  %v1336_v40 = vcombine.low %v1311_v33, %v1319_v34  ;;  %v1321_v61 = vcombine.high %v1295_v28, %v1303_v32  ;;  %v1337_v62 = vcombine.high %v1311_v33, %v1319_v34  ;;  %v1054_v28 = vpop.f32.mrb[0].mxu1 }
 0x243   : > { %v1138_v41 = vcombine.low %v1110_v35, %v1117_v36  ;;  %v5299_v42 = vcombine.high %v1110_v35, %v1117_v36  ;;  %v1154_v43 = vcombine.low %v1126_v37, %v1133_v38  ;;  %v5300_v44 = vcombine.high %v1126_v37, %v1133_v38  ;;  %v5821_v32 = vpop.f32.mrb[1].mxu1 }
 0x244   : > { %v1328_v45 = vrot.slane %v1320_v39, %v6985_v58  ;;  %v1344_v46 = vrot.slane %v1336_v40, %v6985_v58  ;;  %v1335_v2 = vrot.slane %v1321_v61, %v6985_v58  ;;  %v1351_v3 = vrot.slane %v1337_v62, %v6985_v58  ;;  %v1057_v33 = vpop.f32.mrb[2].mxu1 }
 0x245   : > { %v1145_v47 = vrot.slane %v1138_v41, %v6982_v51  ;;  %v1153_v48 = vrot.slane %v5299_v42, %v6982_v51  ;;  %v1161_v49 = vrot.slane %v1154_v43, %v6982_v51  ;;  %v1169_v50 = vrot.slane %v5300_v44, %v6982_v51  ;;  %v5822_v34 = vpop.f32.mrb[3].mxu1 }
 0x246   : > { %v1352_v52 = vcombine.low %v1328_v45, %v1344_v46  ;;  %v1353_v60 = vcombine.high %v1328_v45, %v1344_v46  ;;  %v1354_v10 = vcombine.low %v1335_v2, %v1351_v3  ;;  %v1355_v18 = vcombine.high %v1335_v2, %v1351_v3 }
 0x247   : > { %v1170_v53 = vcombine.low %v1145_v47, %v1153_v48  ;;  %v1186_v54 = vcombine.low %v1161_v49, %v1169_v50  ;;  %v1171_v5 = vcombine.high %v1145_v47, %v1153_v48  ;;  %v1187_v6 = vcombine.high %v1161_v49, %v1169_v50 }
 0x248   : > { %v1506_v55 = vpack.c.bf16 %v1352_v52, %v1352_v52  ;;  %v1507_v1 = vpack.c.bf16 %v1353_v60, %v1353_v60  ;;  %v1508_v14 = vpack.c.bf16 %v1354_v10, %v1354_v10  ;;  %v1509_v20 = vpack.c.bf16 %v1355_v18, %v1355_v18 }
 0x249   : > { %v1178_v56 = vrot.slane %v1170_v53, %v6985_v58  ;;  %v1194_v57 = vrot.slane %v1186_v54, %v6985_v58  ;;  %v1185_v12 = vrot.slane %v1171_v5, %v6985_v58  ;;  %v1201_v13 = vrot.slane %v1187_v6, %v6985_v58 }
 0x24a   : > { %v1515_v59 = vsel %vm1510_vm1, %v1506_v55, 0  ;;  %v1561_v9 = vsel %vm1510_vm1, %v1507_v1, 0  ;;  %v1607_v17 = vsel %vm1510_vm1, %v1508_v14, 0  ;;  %v1653_v24 = vsel %vm1510_vm1, %v1509_v20, 0 }
 0x24b   : > { %5824 = vmatpush3.bf16.xpose.msra.mxu1 %v1515_v59  ;;  %v1202_v63 = vcombine.low %v1178_v56, %v1194_v57  ;;  %v1203_v8 = vcombine.high %v1178_v56, %v1194_v57  ;;  %v1204_v16 = vcombine.low %v1185_v12, %v1201_v13  ;;  %v1205_v23 = vcombine.high %v1185_v12, %v1201_v13 }
 0x24c   : > { %5829 = vmatprep.subr.bf16.mxu1 %v6576_v22  ;;  %v7042_v46 = vsub.s32 2, %v6935_v27 }
 0x24d   : > { %v1206_v0 = vmul.f32 0.17677669, %v1202_v63  ;;  %v1207_v11 = vmul.f32 0.17677669, %v1203_v8  ;;  %v1208_v19 = vmul.f32 0.17677669, %v1204_v16 }
 0x24e   : > { %v1209_v25 = vmul.f32 0.17677669, %v1205_v23  ;;  %v847_v52 = vrot.slane %v6947_v30, %v7042_v46 }
 0x24f   : > { %v1502_v7 = vpack.c.bf16 %v1206_v0, %v1206_v0  ;;  %v1503_v15 = vpack.c.bf16 %v1207_v11, %v1207_v11  ;;  %v1504_v21 = vpack.c.bf16 %v1208_v19, %v1208_v19 }
 0x250   : > { %v1505_v26 = vpack.c.bf16 %v1209_v25, %v1209_v25  ;;  %v1055_v54 = vadd.f32 %v1054_v28, %v847_v52 }
 0x252   : > { %5826 = vmatmul.mubr.msk.bf16.vlgmr.msra.gmra.mrb[4].mxu1 %vm1510_vm1, %v1502_v7 }
 0x253   : > { %5830 = vmatpush3.bf16.xpose.msra.mxu1 %v1561_v9  ;;  %5831 = vmatprep.mubr.msk.bf16.mxu1 %vm6580_vm0, %v6576_v22 }
 0x254   : > { %5835 = vmatprep.subr.bf16.mxu1 %v6576_v22 }
 0x25a   : > { %5832 = vmatmul.mubr.msk.bf16.vlgmr.msra.gmra.mrb[8].mxu1 %vm1510_vm1, %v1503_v15 }
 0x25b   : > { %5836 = vmatpush3.bf16.xpose.msra.mxu1 %v1607_v17  ;;  %5837 = vmatprep.mubr.msk.bf16.mxu1 %vm6580_vm0, %v6576_v22 }
 0x25c   : > { %5841 = vmatprep.subr.bf16.mxu1 %v6576_v22 }
 0x262   : > { %5838 = vmatmul.mubr.msk.bf16.vlgmr.msra.gmra.mrb[12].mxu1 %vm1510_vm1, %v1504_v21 }
 0x263   : > { %5842 = vmatpush3.bf16.xpose.msra.mxu1 %v1653_v24  ;;  %5843 = vmatprep.mubr.msk.bf16.mxu1 %vm6580_vm0, %v6576_v22 }
 0x264   : > { %5853 = vmatprep.subr.bf16.mxu1 %v6576_v22 }
 0x26a   : > { %5844 = vmatmul.mubr.msk.bf16.vlgmr.msra.gmra.mrb[16].mxu1 %vm1510_vm1, %v1505_v26 }
 0x26b   : > { %5855 = vmatprep.mubr.msk.bf16.mxu1 %vm6580_vm0, %v6576_v22 }
 0x325   : > { %v1551_v35 = vpop.f32.mrb[4].mxu1 }
 0x326   : > { %v5827_v36 = vpop.f32.mrb[5].mxu1  ;;  %v1696_v37 = vsel %vm1695_vm2, %v1551_v35, -inf }
 0x327   : > { %1697 = vmax.xlane.f32.xlu0 %v1696_v37  ;;  %v1554_v38 = vpop.f32.mrb[6].mxu1 }
 0x328   : > { %v5828_v39 = vpop.f32.mrb[7].mxu1 }
 0x32d   : > { %v1597_v40 = vpop.f32.mrb[8].mxu1 }
 0x32e   : > { %v5833_v41 = vpop.f32.mrb[9].mxu1  ;;  %v1699_v42 = vsel %vm1695_vm2, %v1597_v40, -inf }
 0x32f   : > { %1700 = vmax.xlane.f32.xlu1 %v1699_v42  ;;  %v1600_v43 = vpop.f32.mrb[10].mxu1 }
 0x330   : > { %v5834_v44 = vpop.f32.mrb[11].mxu1 }
 0x335   : > { %v1643_v45 = vpop.f32.mrb[12].mxu1 }
 0x336   : > { %v5839_v47 = vpop.f32.mrb[13].mxu1  ;;  %v1702_v48 = vsel %vm1695_vm2, %v1643_v45, -inf }
 0x337   : > { %1703 = vmax.xlane.f32.xlu0 %v1702_v48  ;;  %v1646_v49 = vpop.f32.mrb[14].mxu1 }
 0x338   : > { %v5840_v50 = vpop.f32.mrb[15].mxu1 }
 0x33d   : > { %v1689_v53 = vpop.f32.mrb[16].mxu1 }
 0x33e   : > { %v5845_v55 = vpop.f32.mrb[17].mxu1  ;;  %v1705_v56 = vsel %vm1695_vm2, %v1689_v53, -inf }
 0x33f   : > { %1706 = vmax.xlane.f32.xlu0 %v1705_v56  ;;  %v1692_v57 = vpop.f32.mrb[18].mxu1 }
 0x340   : > { %1357 = vrot.lane.b32.xlu1 %v1055_v54, %s6578_s21  ;;  %v5846_v59 = vpop.f32.mrb[19].mxu1 }
 0x3b4   : > { %v1698_v60 = vpop.xlane.xlu0 %1697 }
 0x3b5   : > { %v1708_v61 = vsub.f32 %v1551_v35, %v1698_v60 }
 0x3b7   : > { %v1712_v62 = vmul.f32 1.442695, %v1708_v61 }
 0x3b9   : > { %6316 = vpow2.f32 %v1712_v62 }
 0x3bc   : > { %v1701_v63 = vpop.xlane.xlu1 %1700 }
 0x3bd   : > { %v1709_v0 = vsub.f32 %v1597_v40, %v1701_v63 }
 0x3bf   : > { %v1714_v1 = vmul.f32 1.442695, %v1709_v0 }
 0x3c0   : > { %v1358_v16 = vpop.permute.xlu1 %1357 }
 0x3c1   : > { %6318 = vpow2.f32 %v1714_v1 }
 0x3c3   : > { %v7049_v2 = vpop.eup %6316 }
 0x3c4   : > { %v1720_v30 = vsel %vm1695_vm2, %v7049_v2, 0.0  ;;  %v1704_v6 = vpop.xlane.xlu0 %1703 }
 0x3c5   : > { %1721 = vadd.xlane.f32.xlu1 %v1720_v30  ;;  %v1710_v7 = vsub.f32 %v1643_v45, %v1704_v6 }
 0x3c7   : > { %v1716_v8 = vmul.f32 1.442695, %v1710_v7 }
 0x3c9   : > { %6320 = vpow2.f32 %v1716_v8 }
 0x3cb   : > { %v7053_v3 = vpop.eup %6318 }
 0x3cc   : > { %v1723_v5 = vsel %vm1695_vm2, %v7053_v3, 0.0  ;;  %v1707_v9 = vpop.xlane.xlu0 %1706 }
 0x3cd   : > { %1724 = vadd.xlane.f32.xlu0 %v1723_v5  ;;  %v1711_v10 = vsub.f32 %v1689_v53, %v1707_v9 }
 0x3cf   : > { %v1718_v11 = vmul.f32 1.442695, %v1711_v10 }
 0x3d1   : > { %6322 = vpow2.f32 %v1718_v11 }
 0x3d3   : > { %v7059_v12 = vpop.eup %6320 }
 0x3d4   : > { %v1726_v13 = vsel %vm1695_vm2, %v7059_v12, 0.0 }
 0x3d6   : > { %1363 = vrot.lane.b32.xlu1 %v1055_v54, %s6577_s20 }
 0x3db   : > { %v7063_v14 = vpop.eup %6322 }
 0x3dc   : > { %v1729_v15 = vsel %vm1695_vm2, %v7063_v14, 0.0 }
 0x3e3   : > { %1360 = vrot.lane.b32.xlu0 %v1055_v54, %s6579_s8 }
 0x3fa   : > { %1727 = vadd.xlane.f32.xlu1 %v1726_v13 }
 0x402   : > { %1730 = vadd.xlane.f32.xlu0 %v1729_v15 }
 0x452   : > { %v1722_v17 = vpop.xlane.xlu1 %1721 }
 0x453   : > { %6324 = vrcp.f32 %v1722_v17 }
 0x456   : > { %v1364_v18 = vpop.permute.xlu1 %1363 }
 0x457   : > { %v1382_v20 = vcombine.low %v1358_v16, %v1364_v18  ;;  %v1383_v21 = vcombine.high %v1358_v16, %v1364_v18 }
 0x459   : > { %v1390_v26 = vrot.slane %v1382_v20, %v6982_v51  ;;  %v1397_v28 = vrot.slane %v1383_v21, %v6982_v51 }
 0x45a   : > { %v1725_v19 = vpop.xlane.xlu0 %1724 }
 0x45b   : > { %6326 = vrcp.f32 %v1725_v19 }
 0x45d   : > { %v6325_v56 = vpop.eup %6324 }
 0x45e   : > { %v1361_v23 = vpop.permute.xlu0 %1360  ;;  %v1736_v5 = vmul.f32 %v6325_v56, %v7049_v2 }
 0x45f   : > { %v1366_v24 = vcombine.low %v1055_v54, %v1361_v23  ;;  %v1367_v25 = vcombine.high %v1055_v54, %v1361_v23 }
 0x460   : > { %v1740_v15 = vpack.c.bf16 %v1736_v5, %v1736_v5 }
 0x461   : > { %v1374_v32 = vrot.slane %v1366_v24, %v6982_v51  ;;  %v1381_v33 = vrot.slane %v1367_v25, %v6982_v51 }
 0x463   : > { %v1398_v34 = vcombine.low %v1374_v32, %v1390_v26  ;;  %v1399_v35 = vcombine.high %v1374_v32, %v1390_v26  ;;  %v1414_v36 = vcombine.low %v1381_v33, %v1397_v28  ;;  %v1415_v37 = vcombine.high %v1381_v33, %v1397_v28  ;;  %v6108_v26 = vld [vmem:[#allocation4] sm:$0xff]   ;;  %v6109_v28 = vld [vmem:[#allocation4 + $0x8] sm:$0xff]   ;;  %v6111_v32 = vld [vmem:[#allocation4 + $0x18] sm:$0xff]  }
 0x464   : > { %v6113_v33 = vld [vmem:[#allocation4 + $0x28] sm:$0xff]  }
 0x465   : > { %v1406_v38 = vrot.slane %v1398_v34, %v6985_v58  ;;  %v1413_v39 = vrot.slane %v1399_v35, %v6985_v58  ;;  %v1422_v40 = vrot.slane %v1414_v36, %v6985_v58  ;;  %v1429_v41 = vrot.slane %v1415_v37, %v6985_v58  ;;  %v6327_v62 = vpop.eup %6326 }
 0x466   : > { %v1737_v6 = vmul.f32 %v6327_v62, %v7053_v3 }
 0x467   : > { %v1434_v42 = vcombine.low %v1406_v38, %v1413_v39  ;;  %v5303_v43 = vcombine.high %v1406_v38, %v1413_v39  ;;  %v1450_v44 = vcombine.low %v1422_v40, %v1429_v41  ;;  %v5304_v45 = vcombine.high %v1422_v40, %v1429_v41 }
 0x468   : > { %v1741_v16 = vpack.c.bf16 %v1737_v6, %v1737_v6 }
 0x469   : > { %v1441_v47 = vrot.slane %v1434_v42, %v6982_v51  ;;  %v1449_v48 = vrot.slane %v5303_v43, %v6982_v51  ;;  %v1457_v49 = vrot.slane %v1450_v44, %v6982_v51  ;;  %v1465_v50 = vrot.slane %v5304_v45, %v6982_v51 }
 0x46b   : > { %v1466_v52 = vcombine.low %v1441_v47, %v1449_v48  ;;  %v1482_v53 = vcombine.low %v1457_v49, %v1465_v50  ;;  %v1467_v54 = vcombine.high %v1441_v47, %v1449_v48  ;;  %v1483_v55 = vcombine.high %v1457_v49, %v1465_v50 }
 0x46d   : > { %v1474_v57 = vrot.slane %v1466_v52, %v6985_v58  ;;  %v1490_v59 = vrot.slane %v1482_v53, %v6985_v58  ;;  %v1481_v60 = vrot.slane %v1467_v54, %v6985_v58  ;;  %v1497_v61 = vrot.slane %v1483_v55, %v6985_v58 }
 0x46f   : > { %v1498_v63 = vcombine.low %v1474_v57, %v1490_v59  ;;  %v1499_v0 = vcombine.high %v1474_v57, %v1490_v59  ;;  %v1500_v1 = vcombine.low %v1481_v60, %v1497_v61  ;;  %v1501_v30 = vcombine.high %v1481_v60, %v1497_v61 }
 0x471   : > { %v1744_v7 = vpack.c.bf16 %v1498_v63, %v1498_v63  ;;  %v1745_v8 = vpack.c.bf16 %v1499_v0, %v1499_v0  ;;  %v1746_v11 = vpack.c.bf16 %v1500_v1, %v1500_v1  ;;  %v1747_v13 = vpack.c.bf16 %v1501_v30, %v1501_v30  ;;  %v6114_v1 = vld [vmem:[#allocation4 + $0x30] sm:$0xff]  }
 0x473   : > { %v1753_v9 = vsel %vm1751_vm3, %v1744_v7, 0  ;;  %v1799_v10 = vsel %vm1751_vm3, %v1745_v8, 0  ;;  %v1845_v2 = vsel %vm1751_vm3, %v1746_v11, 0  ;;  %v1891_v3 = vsel %vm1751_vm3, %v1747_v13, 0  ;;  %v6115_v13 = vld [vmem:[#allocation4 + $0x38] sm:$0xff]  }
 0x474   : > { %5848 = vmatpush3.bf16.msra.mxu0 %v1753_v9  ;;  %5854 = vmatpush3.bf16.msra.mxu1 %v1799_v10 }
 0x475   : > { %5859 = vmatprep.subr.bf16.mxu0 %v6576_v22  ;;  %5865 = vmatprep.subr.bf16.mxu1 %v6576_v22 }
 0x477   : > { %5850 = vmatmul.mubr.msk.bf16.vlgmr.msra.gmra.mrb[4].mxu0 %vm1695_vm2, %v1740_v15  ;;  %5856 = vmatmul.mubr.msk.bf16.vlgmr.msra.gmra.mrb[20].mxu1 %vm1695_vm2, %v1741_v16 }
 0x478   : > { %5860 = vmatpush3.bf16.msra.mxu0 %v1845_v2  ;;  %5866 = vmatpush3.bf16.msra.mxu1 %v1891_v3 }
 0x479   : > { %5861 = vmatprep.mubr.msk.bf16.mxu0 %vm6580_vm0, %v6576_v22  ;;  %5867 = vmatprep.mubr.msk.bf16.mxu1 %vm6580_vm0, %v6576_v22 }
 0x47a   : > { %5871 = vmatprep.subr.bf16.mxu0 %v6576_v22 }
 0x487   : > { %v1728_v17 = vpop.xlane.xlu1 %1727 }
 0x488   : > { %6328 = vrcp.f32 %v1728_v17 }
 0x48f   : > { %v1731_v18 = vpop.xlane.xlu0 %1730 }
 0x490   : > { %6330 = vrcp.f32 %v1731_v18 }
 0x492   : > { %v6329_v19 = vpop.eup %6328 }
 0x493   : > { %v1738_v20 = vmul.f32 %v6329_v19, %v7059_v12  ;;  %v6110_v12 = vld [vmem:[#allocation4 + $0x10] sm:$0xff]  }
 0x495   : > { %v1742_v21 = vpack.c.bf16 %v1738_v20, %v1738_v20 }
 0x497   : > { %5862 = vmatmul.mubr.msk.bf16.vlgmr.msra.gmra.mrb[8].mxu0 %vm1695_vm2, %v1742_v21 }
 0x498   : > { %5887 = vmatprep.mubr.msk.bf16.mxu0 %vm6580_vm0, %v6576_v22  ;;  %5872 = vmatpush3.bf16.msra.mxu0 %v6108_v26 }
 0x499   : > { %5873 = vmatprep.subr.bf16.mxu0 %v6576_v22 }
 0x49a   : > { %v6331_v23 = vpop.eup %6330 }
 0x49b   : > { %v1739_v24 = vmul.f32 %v6331_v23, %v7063_v14  ;;  %v6112_v14 = vld [vmem:[#allocation4 + $0x20] sm:$0xff]  }
 0x49c   : > { %5874 = vmatpush3.bf16.msra.mxu0 %v6109_v28 }
 0x49d   : > { %v1743_v25 = vpack.c.bf16 %v1739_v24, %v1739_v24  ;;  %5875 = vmatprep.subr.bf16.mxu0 %v6576_v22 }
 0x49f   : > { %5868 = vmatmul.mubr.msk.bf16.vlgmr.msra.gmra.mrb[24].mxu1 %vm1695_vm2, %v1743_v25 }
 0x4a0   : > { %2474 = vmatprep.mubr.bf16.mxu1 %v6575_v4  ;;  %5876 = vmatpush3.bf16.msra.mxu0 %v6110_v12 }
 0x4a1   : > { %5877 = vmatprep.subr.bf16.mxu0 %v6576_v22 }
 0x4a4   : > { %5878 = vmatpush3.bf16.msra.mxu0 %v6111_v32 }
 0x4a5   : > { %5879 = vmatprep.subr.bf16.mxu0 %v6576_v22 }
 0x4a8   : > { %5880 = vmatpush3.bf16.msra.mxu0 %v6112_v14 }
 0x4a9   : > { %5881 = vmatprep.subr.bf16.mxu0 %v6576_v22 }
 0x4ac   : > { %5882 = vmatpush3.bf16.msra.mxu0 %v6113_v33 }
 0x4ad   : > { %5883 = vmatprep.subr.bf16.mxu0 %v6576_v22 }
 0x4b0   : > { %5884 = vmatpush3.bf16.msra.mxu0 %v6114_v1 }
 0x4b1   : > { %5885 = vmatprep.subr.bf16.mxu0 %v6576_v22 }
 0x4b4   : > { %5886 = vmatpush3.bf16.msra.mxu0 %v6115_v13  ;;  %v6148_v13 = vld [vmem:[%s7864_s22 + $0xa4] ss:$16 sps:$4 sm:$0xff]  }
 0x54a   : > { %v1789_v34 = vpop.f32.mrb[4].mxu0  ;;  %v1835_v35 = vpop.f32.mrb[20].mxu1 }
 0x54b   : > { %v5851_v36 = vpop.f32.mrb[5].mxu0  ;;  %v5857_v37 = vpop.f32.mrb[21].mxu1 }
 0x54c   : > { %v1792_v38 = vpop.f32.mrb[6].mxu0  ;;  %v1838_v39 = vpop.f32.mrb[22].mxu1 }
 0x54d   : > { %v5852_v40 = vpop.f32.mrb[7].mxu0  ;;  %v5858_v41 = vpop.f32.mrb[23].mxu1  ;;  %v5315_v39 = vld [vmem:[%s7831_s5] ss:$0 sm:$0xff] }
 0x56a   : > { %v1881_v42 = vpop.f32.mrb[8].mxu0 }
 0x56b   : > { %v1933_v43 = vcombine.low %v1789_v34, %v1881_v42  ;;  %v1934_v44 = vcombine.high %v1789_v34, %v1881_v42  ;;  %v5863_v45 = vpop.f32.mrb[9].mxu0 }
 0x56c   : > { %v1884_v47 = vpop.f32.mrb[10].mxu0  ;;  %v6356_v45 = vld [vmem:[%s6860_s1] sm:$0xff] }
 0x56d   : > { %v5864_v48 = vpop.f32.mrb[11].mxu0  ;;  %v1941_v55 = vrot.slane %v1933_v43, %v6982_v51  ;;  %v1948_v56 = vrot.slane %v1934_v44, %v6982_v51 }
 0x56e   : > { %v6116_v48 = vld [vmem:[%s7864_s22] ss:$16 sps:$4 sm:$0xff]  }
 0x572   : > { %v1927_v49 = vpop.f32.mrb[24].mxu1 }
 0x573   : > { %v1949_v50 = vcombine.low %v1835_v35, %v1927_v49  ;;  %v1950_v52 = vcombine.high %v1835_v35, %v1927_v49  ;;  %v5869_v53 = vpop.f32.mrb[25].mxu1  ;;  %v6118_v49 = vld [vmem:[%s7864_s22 + $0x4] ss:$16 sps:$4 sm:$0xff]  }
 0x574   : > { %v1930_v54 = vpop.f32.mrb[26].mxu1  ;;  %v6124_v53 = vld [vmem:[%s7864_s22 + $0x24] ss:$16 sps:$4 sm:$0xff]   ;;  %2442 = vmatprep.subr.bf16.mxu1 %v6118_v49 }
 0x575   : > { %v1957_v57 = vrot.slane %v1949_v50, %v6982_v51  ;;  %v1964_v59 = vrot.slane %v1950_v52, %v6982_v51  ;;  %v5870_v60 = vpop.f32.mrb[27].mxu1  ;;  %v6119_v50 = vld [vmem:[%s7864_s22 + $0x8] ss:$16 sps:$4 sm:$0xff]   ;;  %v6121_v52 = vld [vmem:[%s7864_s22 + $0xc] ss:$16 sps:$4 sm:$0xff]   ;;  %2443 = vmatpush1.bf16.msra.mxu1 %v6116_v48  ;;  %v6174_v48 = vld [vmem:[%s7865_s26 + $0x10] sm:$0xff]  }
 0x576   : > { %v6127_v54 = vld [vmem:[%s7864_s22 + $0x2c] ss:$16 sps:$4 sm:$0xff]   ;;  %2483 = vmatprep.subr.bf16.mxu0 %v6121_v52  ;;  %2444 = vmatprep.subr.bf16.mxu1 %v6124_v53  ;;  %v6128_v60 = vld [vmem:[%s7864_s22 + $0x40] ss:$16 sps:$4 sm:$0xff]  }
 0x577   : > { %v1965_v61 = vcombine.low %v1941_v55, %v1957_v57  ;;  %v1966_v62 = vcombine.high %v1941_v55, %v1957_v57  ;;  %v1981_v63 = vcombine.low %v1948_v56, %v1964_v59  ;;  %v1982_v0 = vcombine.high %v1948_v56, %v1964_v59  ;;  %v6122_v55 = vld [vmem:[%s7864_s22 + $0x20] ss:$16 sps:$4 sm:$0xff]   ;;  %v6125_v56 = vld [vmem:[%s7864_s22 + $0x28] ss:$16 sps:$4 sm:$0xff]   ;;  %v6130_v57 = vld [vmem:[%s7864_s22 + $0x44] ss:$16 sps:$4 sm:$0xff]  }
 0x578   : > { %v6133_v59 = vld [vmem:[%s7864_s22 + $0x4c] ss:$16 sps:$4 sm:$0xff]   ;;  %v6175_v49 = vld [vmem:[%s7865_s26 + $0x90] sm:$0xff]  }
 0x579   : > { %v1973_v30 = vrot.slane %v1965_v61, %v6985_v58  ;;  %v1980_v5 = vrot.slane %v1966_v62, %v6985_v58  ;;  %v1989_v6 = vrot.slane %v1981_v63, %v6985_v58  ;;  %v1996_v7 = vrot.slane %v1982_v0, %v6985_v58  ;;  %2445 = vmatpush1.bf16.msra.mxu1 %v6122_v55  ;;  %v6131_v61 = vld [vmem:[%s7864_s22 + $0x48] ss:$16 sps:$4 sm:$0xff]   ;;  %v6180_v55 = vld [vmem:[%s7865_s26 + $0x60] sm:$0xff]  }
 0x57a   : > { %2446 = vmatprep.subr.bf16.mxu1 %v6130_v57  ;;  %v6177_v52 = vld [vmem:[%s7865_s26 + $0xd8] sm:$0xff]   ;;  %v6182_v57 = vld [vmem:[%s7865_s26 + $0x20] sm:$0xff]  }
 0x57b   : > { %v2001_v8 = vcombine.low %v1973_v30, %v1980_v5  ;;  %v5313_v9 = vcombine.high %v1973_v30, %v1980_v5  ;;  %v2017_v10 = vcombine.low %v1989_v6, %v1996_v7  ;;  %v5314_v11 = vcombine.high %v1989_v6, %v1996_v7  ;;  %v6136_v30 = vld [vmem:[%s7864_s22 + $0x64] ss:$16 sps:$4 sm:$0xff]   ;;  %v6139_v5 = vld [vmem:[%s7864_s22 + $0x6c] ss:$16 sps:$4 sm:$0xff]   ;;  %v6134_v6 = vld [vmem:[%s7864_s22 + $0x60] ss:$16 sps:$4 sm:$0xff]  }
 0x57c   : > { %v6137_v7 = vld [vmem:[%s7864_s22 + $0x68] ss:$16 sps:$4 sm:$0xff]  }
 0x57d   : > { %v2008_v15 = vrot.slane %v2001_v8, %v6982_v51  ;;  %v2016_v16 = vrot.slane %v5313_v9, %v6982_v51  ;;  %v2024_v2 = vrot.slane %v2017_v10, %v6982_v51  ;;  %v2032_v3 = vrot.slane %v5314_v11, %v6982_v51  ;;  %2447 = vmatpush1.bf16.msra.mxu1 %v6128_v60  ;;  %v6142_v8 = vld [vmem:[%s7864_s22 + $0x84] ss:$16 sps:$4 sm:$0xff]   ;;  %v6145_v9 = vld [vmem:[%s7864_s22 + $0x8c] ss:$16 sps:$4 sm:$0xff]   ;;  %v6140_v10 = vld [vmem:[%s7864_s22 + $0x80] ss:$16 sps:$4 sm:$0xff]  }
 0x57e   : > { %2448 = vmatprep.subr.bf16.mxu1 %v6136_v30  ;;  %v6143_v11 = vld [vmem:[%s7864_s22 + $0x88] ss:$16 sps:$4 sm:$0xff]   ;;  %v6190_v30 = vld [vmem:[%s7865_s26 + $0x30] sm:$0xff]  }
 0x57f   : > { %v2034_v17 = vcombine.high %v2008_v15, %v2016_v16  ;;  %v2050_v18 = vcombine.high %v2024_v2, %v2032_v3  ;;  %v2033_v19 = vcombine.low %v2008_v15, %v2016_v16  ;;  %v2049_v20 = vcombine.low %v2024_v2, %v2032_v3  ;;  %v6151_v15 = vld [vmem:[%s7864_s22 + $0xac] ss:$16 sps:$4 sm:$0xff]   ;;  %v6146_v16 = vld [vmem:[%s7864_s22 + $0xa0] ss:$16 sps:$4 sm:$0xff]   ;;  %v6149_v2 = vld [vmem:[%s7864_s22 + $0xa8] ss:$16 sps:$4 sm:$0xff]  }
 0x580   : > { %v6152_v3 = vld [vmem:[%s7864_s22 + $0xc0] ss:$16 sps:$4 sm:$0xff]   ;;  %v6178_v53 = vld [vmem:[%s7865_s26 + $0x18] sm:$0xff]   ;;  %v6184_v60 = vld [vmem:[%s7865_s26 + $0x68] sm:$0xff]  }
 0x581   : > { %v2048_v21 = vrot.slane %v2034_v17, %v6985_v58  ;;  %v2064_v23 = vrot.slane %v2050_v18, %v6985_v58  ;;  %v2041_v24 = vrot.slane %v2033_v19, %v6985_v58  ;;  %v2057_v25 = vrot.slane %v2049_v20, %v6985_v58  ;;  %2449 = vmatpush1.bf16.msra.mxu1 %v6134_v6  ;;  %v6154_v17 = vld [vmem:[%s7864_s22 + $0xc4] ss:$16 sps:$4 sm:$0xff]   ;;  %v6155_v18 = vld [vmem:[%s7864_s22 + $0xc8] ss:$16 sps:$4 sm:$0xff]   ;;  %v6157_v19 = vld [vmem:[%s7864_s22 + $0xcc] ss:$16 sps:$4 sm:$0xff]  }
 0x582   : > { %2450 = vmatprep.subr.bf16.mxu1 %v6142_v8  ;;  %v6160_v20 = vld [vmem:[%s7864_s22 + $0xe4] ss:$16 sps:$4 sm:$0xff]   ;;  %v6192_v6 = vld [vmem:[%s7865_s26 + $0x78] sm:$0xff]  }
 0x583   : > { %v2067_v26 = vcombine.low %v2048_v21, %v2064_v23  ;;  %v2066_v28 = vcombine.high %v2041_v24, %v2057_v25  ;;  %v2068_v12 = vcombine.high %v2048_v21, %v2064_v23  ;;  %v2065_v32 = vcombine.low %v2041_v24, %v2057_v25  ;;  %v6163_v21 = vld [vmem:[%s7864_s22 + $0xec] ss:$16 sps:$4 sm:$0xff]   ;;  %v6158_v23 = vld [vmem:[%s7864_s22 + $0xe0] ss:$16 sps:$4 sm:$0xff]   ;;  %v6161_v24 = vld [vmem:[%s7864_s22 + $0xe8] ss:$16 sps:$4 sm:$0xff]  }
 0x584   : > { %v6164_v25 = vld [vmem:[%s7865_s26 + $0x40] sm:$0xff]   ;;  %v6194_v8 = vld [vmem:[%s7865_s26 + $0x38] sm:$0xff]  }
 0x585   : > { %2074 = vrot.lane.b32.xlu1 %v2067_v26, %s6579_s8  ;;  %2070 = vrot.lane.b32.xlu0 %v2066_v28, %s6577_s20  ;;  %v6165_v26 = vld [vmem:[%s7865_s26 + $0xc0] sm:$0xff]  }
 0x586   : > { %2451 = vmatpush1.bf16.msra.mxu1 %v6140_v10  ;;  %v2260_v10 = vld [vmem:[%s7866_s6] sm:$0xf] }
 0x587   : > { %2452 = vmatprep.subr.bf16.mxu1 %v6148_v13  ;;  %v2265_v13 = vrot.slane %v2260_v10, %v6951_v31 }
 0x589   : > { %2078 = vrot.lane.b32.xlu1 %v2068_v12, %s6578_s21 }
 0x58a   : > { %2453 = vmatpush1.bf16.msra.mxu1 %v6146_v16  ;;  %v2269_v16 = vrot.slane %v2260_v10, %v6942_v29 }
 0x58b   : > { %2454 = vmatprep.subr.bf16.mxu1 %v6154_v17 }
 0x58e   : > { %2455 = vmatpush1.bf16.msra.mxu1 %v6152_v3 }
 0x58f   : > { %2456 = vmatprep.subr.bf16.mxu1 %v6160_v20 }
 0x592   : > { %2457 = vmatpush1.bf16.msra.mxu1 %v6158_v23 }
 0x593   : > { %5681 = vmatprep.subr.bf16.mxu1 %v6164_v25 }
 0x5f7   : > { %v2075_v14 = vpop.permute.xlu1 %2074  ;;  %v2071_v33 = vpop.permute.xlu0 %2070 }
 0x5f8   : > { %v2081_v34 = vsel %vm1510_vm1, %v2065_v32, %v2071_v33  ;;  %v5324_v33 = vld [vmem:[#allocation6] ss:$0 sm:$0xff] }
 0x5f9   : > { %v2083_v36 = vsel %vm2082_vm4, %v2081_v34, %v2075_v14 }
 0x5fb   : > { %v2079_v35 = vpop.permute.xlu1 %2078 }
 0x5fc   : > { %v2085_v37 = vsel %vm2084_vm5, %v2083_v36, %v2079_v35  ;;  %v5325_v35 = vld [vmem:[#allocation7] ss:$0 sm:$0xff] }
 0x5fd   : > { %v2086_v38 = vpack.c.bf16 %v2085_v37, %v2085_v37 }
 0x5ff   : > { %5888 = vmatmul.mubr.bf16.vlgmr.msra.gmra.mrb[12].mxu0 %v2086_v38  ;;  %v6166_v38 = vld [vmem:[%s7865_s26] sm:$0xff]  }
 0x600   : > { %2515 = vmatprep.mubr.bf16.mxu0 %v6575_v4  ;;  %2484 = vmatpush1.bf16.msra.mxu0 %v6119_v50  ;;  %v6176_v50 = vld [vmem:[%s7865_s26 + $0x58] sm:$0xff]  }
 0x601   : > { %2485 = vmatprep.subr.bf16.mxu0 %v6127_v54  ;;  %v6179_v54 = vld [vmem:[%s7865_s26 + $0x98] sm:$0xff]  }
 0x604   : > { %2486 = vmatpush1.bf16.msra.mxu0 %v6125_v56  ;;  %v6181_v56 = vld [vmem:[%s7865_s26 + $0xe0] sm:$0xff]  }
 0x605   : > { %2487 = vmatprep.subr.bf16.mxu0 %v6133_v59  ;;  %v6183_v59 = vld [vmem:[%s7865_s26 + $0xa0] sm:$0xff]  }
 0x608   : > { %2488 = vmatpush1.bf16.msra.mxu0 %v6131_v61  ;;  %v6185_v61 = vld [vmem:[%s7865_s26 + $0xe8] sm:$0xff]  }
 0x609   : > { %2489 = vmatprep.subr.bf16.mxu0 %v6139_v5  ;;  %v6191_v5 = vld [vmem:[%s7865_s26 + $0xb0] sm:$0xff]  }
 0x60c   : > { %2490 = vmatpush1.bf16.msra.mxu0 %v6137_v7  ;;  %v6193_v7 = vld [vmem:[%s7865_s26 + $0xf8] sm:$0xff]  }
 0x60d   : > { %2491 = vmatprep.subr.bf16.mxu0 %v6145_v9  ;;  %v6195_v9 = vld [vmem:[%s7865_s26 + $0xb8] sm:$0xff]  }
 0x610   : > { %2492 = vmatpush1.bf16.msra.mxu0 %v6143_v11  ;;  %v2276_v11 = vsub.s32 3, %v6935_v27 }
 0x611   : > { %2493 = vmatprep.subr.bf16.mxu0 %v6151_v15  ;;  %v2273_v15 = vrot.slane %v2260_v10, %v7042_v46 }
 0x614   : > { %2494 = vmatpush1.bf16.msra.mxu0 %v6149_v2  ;;  %v2277_v2 = vrot.slane %v2260_v10, %v2276_v11  ;;  %v6214_v10 = vld [vmem:[%s7828_s2 + $0x124] ss:$12 sps:$4 sm:$0xff]  }
 0x615   : > { %2495 = vmatprep.subr.bf16.mxu0 %v6157_v19 }
 0x618   : > { %2496 = vmatpush1.bf16.msra.mxu0 %v6155_v18 }
 0x619   : > { %2497 = vmatprep.subr.bf16.mxu0 %v6163_v21 }
 0x61c   : > { %2498 = vmatpush1.bf16.msra.mxu0 %v6161_v24 }
 0x61d   : > { %5703 = vmatprep.subr.bf16.mxu0 %v6165_v26 }
 0x6d2   : > { %v2192_v40 = vpop.f32.mrb[12].mxu0 }
 0x6d3   : > { %v2193_v41 = vadd.f32 %v5315_v39, %v2192_v40  ;;  %v5889_v42 = vpop.f32.mrb[13].mxu0  ;;  %v6167_v39 = vld [vmem:[%s7865_s26 + $0x80] sm:$0xff]  }
 0x6d4   : > { %v2195_v43 = vpop.f32.mrb[14].mxu0  ;;  %v6169_v42 = vld [vmem:[%s7865_s26 + $0xc8] sm:$0xff]  }
 0x6d5   : > { %v5890_v44 = vpop.f32.mrb[15].mxu0  ;;  %v2198_v47 = vadd.f32 %v6356_v45, %v2193_v41  ;;  %v6168_v41 = vld [vmem:[%s7865_s26 + $0x48] sm:$0xff]   ;;  %v6172_v45 = vld [vmem:[%s7865_s26 + $0x50] sm:$0xff]  }
 0x6d6   : > { %v6170_v43 = vld [vmem:[%s7865_s26 + $0x8] sm:$0xff]  }
 0x6d7   : > { %2201 = vadd.xlane.f32.xlu0 %v2198_v47  ;;  %v6171_v44 = vld [vmem:[%s7865_s26 + $0x88] sm:$0xff]  }
 0x764   : > { %v2202_v62 = vpop.xlane.xlu0 %2201 }
 0x765   : > { %v2204_v63 = vmul.f32 0.0078125, %v2202_v62  ;;  %v6186_v62 = vld [vmem:[%s7865_s26 + $0x28] sm:$0xff]  }
 0x767   : > { %v2205_v0 = vsub.f32 %v2198_v47, %v2204_v63  ;;  %v6173_v47 = vld [vmem:[%s7865_s26 + $0xd0] sm:$0xff]   ;;  %v6187_v63 = vld [vmem:[%s7865_s26 + $0xa8] sm:$0xff]  }
 0x769   : > { %v2206_v1 = vmul.f32 %v2205_v0, %v2205_v0 }
 0x76b   : > { %2207 = vadd.xlane.f32.xlu1 %v2206_v1  ;;  %v6189_v1 = vld [vmem:[%s7865_s26 + $0xf0] sm:$0xff]  }
 0x7f8   : > { %v2208_v28 = vpop.xlane.xlu1 %2207 }
 0x7f9   : > { %v2209_v12 = vmul.f32 0.0078125, %v2208_v28 }
 0x7fb   : > { %v2210_v32 = vadd.f32 1e-05, %v2209_v12 }
 0x7fd   : > { %6332 = vrsqrt.f32 %v2210_v32 }
 0x807   : > { %v6333_v14 = vpop.eup %6332 }
 0x808   : > { %v2212_v34 = vmul.f32 %v6333_v14, %v2205_v0  ;;  %v6188_v0 = vld [vmem:[%s7865_s26 + $0x70] sm:$0xff]  }
 0x80a   : > { %v2219_v36 = vmul.f32 %v5324_v33, %v2212_v34 }
 0x80c   : > { %v7241_v37 = vadd.f32 %v5325_v35, %v2219_v36 }
 0x80e   : > { %v2227_v40 = vpack.c.bf16 %v7241_v37, %v7241_v37 }
 0x810   : > { %2475 = vmatmul.mubr.bf16.vlgmr.msra.gmra.mrb[28].mxu1 %v2227_v40  ;;  %2516 = vmatmul.mubr.bf16.vlgmr.msra.gmra.mrb[16].mxu0 %v2227_v40 }
 0x811   : > { %5682 = vmatpush3.bf16.msra.mxu1 %v6166_v38  ;;  %5704 = vmatpush3.bf16.msra.mxu0 %v6167_v39 }
 0x812   : > { %5683 = vmatprep.subr.bf16.mxu1 %v6168_v41  ;;  %5705 = vmatprep.subr.bf16.mxu0 %v6169_v42  ;;  %v5358_v42 = vld [vmem:[%s7867_s23] ss:$0 sm:$0xff] }
 0x815   : > { %5684 = vmatpush3.bf16.msra.mxu1 %v6170_v43  ;;  %5706 = vmatpush3.bf16.msra.mxu0 %v6171_v44 }
 0x816   : > { %5685 = vmatprep.subr.bf16.mxu1 %v6172_v45  ;;  %5707 = vmatprep.subr.bf16.mxu0 %v6173_v47 }
 0x819   : > { %5686 = vmatpush3.bf16.msra.mxu1 %v6174_v48  ;;  %5708 = vmatpush3.bf16.msra.mxu0 %v6175_v49 }
 0x81a   : > { %5687 = vmatprep.subr.bf16.mxu1 %v6176_v50  ;;  %5709 = vmatprep.subr.bf16.mxu0 %v6177_v52 }
 0x81d   : > { %5688 = vmatpush3.bf16.msra.mxu1 %v6178_v53  ;;  %5710 = vmatpush3.bf16.msra.mxu0 %v6179_v54 }
 0x81e   : > { %5689 = vmatprep.subr.bf16.mxu1 %v6180_v55  ;;  %5711 = vmatprep.subr.bf16.mxu0 %v6181_v56  ;;  %v6196_v56 = vld [vmem:[%s7828_s2 + $0xc0] ss:$12 sps:$4 sm:$0xff]  }
 0x821   : > { %5690 = vmatpush3.bf16.msra.mxu1 %v6182_v57  ;;  %5712 = vmatpush3.bf16.msra.mxu0 %v6183_v59  ;;  %v6198_v57 = vld [vmem:[%s7828_s2 + $0xc4] ss:$12 sps:$4 sm:$0xff]   ;;  %v6199_v59 = vld [vmem:[%s7828_s2 + $0xc8] ss:$12 sps:$4 sm:$0xff]  }
 0x822   : > { %5691 = vmatprep.subr.bf16.mxu1 %v6184_v60  ;;  %5713 = vmatprep.subr.bf16.mxu0 %v6185_v61  ;;  %v6202_v60 = vld [vmem:[%s7828_s2 + $0xdc] ss:$12 sps:$4 sm:$0xff]   ;;  %v6200_v61 = vld [vmem:[%s7828_s2 + $0xd8] ss:$12 sps:$4 sm:$0xff]  }
 0x825   : > { %5692 = vmatpush3.bf16.msra.mxu1 %v6186_v62  ;;  %5714 = vmatpush3.bf16.msra.mxu0 %v6187_v63  ;;  %v6206_v62 = vld [vmem:[%s7828_s2 + $0xf4] ss:$12 sps:$4 sm:$0xff]   ;;  %v6204_v63 = vld [vmem:[%s7828_s2 + $0xf0] ss:$12 sps:$4 sm:$0xff]  }
 0x826   : > { %5693 = vmatprep.subr.bf16.mxu1 %v6188_v0  ;;  %5715 = vmatprep.subr.bf16.mxu0 %v6189_v1 }
 0x829   : > { %5694 = vmatpush3.bf16.msra.mxu1 %v6190_v30  ;;  %5716 = vmatpush3.bf16.msra.mxu0 %v6191_v5 }
 0x82a   : > { %5695 = vmatprep.subr.bf16.mxu1 %v6192_v6  ;;  %5717 = vmatprep.subr.bf16.mxu0 %v6193_v7  ;;  %v6207_v6 = vld [vmem:[%s7828_s2 + $0xf8] ss:$12 sps:$4 sm:$0xff]  }
 0x82b   : > { %v6210_v7 = vld [vmem:[%s7828_s2 + $0x10c] ss:$12 sps:$4 sm:$0xff]  }
 0x82d   : > { %5696 = vmatpush3.bf16.msra.mxu1 %v6194_v8  ;;  %5718 = vmatpush3.bf16.msra.mxu0 %v6195_v9  ;;  %v6208_v8 = vld [vmem:[%s7828_s2 + $0x108] ss:$12 sps:$4 sm:$0xff]   ;;  %v6211_v9 = vld [vmem:[%s7828_s2 + $0x110] ss:$12 sps:$4 sm:$0xff]  }
 0x82e   : > { %5891 = vmatprep.subr.bf16.mxu0 %v6576_v22  ;;  %3083 = vmatprep.subr.bf16.mxu1 %v6198_v57 }
 0x8e3   : > { %v2476_v3 = vpop.f32.mrb[28].mxu1  ;;  %v2517_v17 = vpop.f32.mrb[16].mxu0 }
 0x8e4   : > { %v2477_v18 = vadd.f32 %v2476_v3, %v2265_v13  ;;  %v2518_v19 = vadd.f32 %v2517_v17, %v2273_v15  ;;  %v2478_v20 = vpop.f32.mrb[29].mxu1  ;;  %v2519_v21 = vpop.f32.mrb[17].mxu0  ;;  %v6212_v13 = vld [vmem:[%s7828_s2 + $0x120] ss:$12 sps:$4 sm:$0xff]   ;;  %v6215_v15 = vld [vmem:[%s7828_s2 + $0x128] ss:$12 sps:$4 sm:$0xff]  }
 0x8e5   : > { %v2479_v23 = vadd.f32 %v2478_v20, %v2269_v16  ;;  %v2520_v24 = vadd.f32 %v2519_v21, %v2277_v2  ;;  %v2480_v25 = vpop.f32.mrb[30].mxu1  ;;  %v2521_v26 = vpop.f32.mrb[18].mxu0  ;;  %v6218_v16 = vld [vmem:[%s7828_s2 + $0x13c] ss:$12 sps:$4 sm:$0xff]   ;;  %v6216_v2 = vld [vmem:[%s7828_s2 + $0x138] ss:$12 sps:$4 sm:$0xff]  }
 0x8e6   : > { %v2524_v28 = vmax.f32 %v2477_v18, 0.0  ;;  %v2526_v12 = vmax.f32 %v2518_v19, 0.0  ;;  %v2481_v32 = vpop.f32.mrb[31].mxu1  ;;  %v2522_v14 = vpop.f32.mrb[19].mxu0  ;;  %v6219_v3 = vld [vmem:[%s7828_s2 + $0x140] ss:$12 sps:$4 sm:$0xff]  }
 0x8e7   : > { %v2525_v33 = vmax.f32 %v2479_v23, 0.0  ;;  %v2527_v34 = vmax.f32 %v2520_v24, 0.0  ;;  %v6220_v17 = vld [vmem:[%s7828_s2 + $0x150] ss:$12 sps:$4 sm:$0xff]   ;;  %v6222_v18 = vld [vmem:[%s7828_s2 + $0x154] ss:$12 sps:$4 sm:$0xff]  }
 0x8e8   : > { %v2528_v38 = vpack.c.bf16 %v2524_v28, %v2524_v28  ;;  %v2530_v39 = vpack.c.bf16 %v2526_v12, %v2526_v12  ;;  %v6223_v19 = vld [vmem:[%s7828_s2 + $0x158] ss:$12 sps:$4 sm:$0xff]   ;;  %v6224_v21 = vld [vmem:[%s7828_s2 + $0x168] ss:$12 sps:$4 sm:$0xff]   ;;  %v6227_v23 = vld [vmem:[%s7828_s2 + $0x170] ss:$12 sps:$4 sm:$0xff]  }
 0x8e9   : > { %v2529_v35 = vpack.c.bf16 %v2525_v33, %v2525_v33  ;;  %v2531_v36 = vpack.c.bf16 %v2527_v34, %v2527_v34  ;;  %v6226_v20 = vld [vmem:[%s7828_s2 + $0x16c] ss:$12 sps:$4 sm:$0xff]   ;;  %v5391_v12 = vld [vmem:[#allocation9] ss:$0 sm:$0xff]  ;;  %v5392_v14 = vld [vmem:[#allocation10] ss:$0 sm:$0xff] }
 0x8eb   : > { %2827 = vmatprep.mubr.bf16.mxu1 %v2529_v35  ;;  %2867 = vmatprep.mubr.bf16.mxu0 %v2531_v36  ;;  %v7444_v36 = vld [vmem:[%s7829_s3 + $0x3] sm:$0x7] }
 0x8ec   : > { %2828 = vmatmul.mubr.bf16.vlgmr.msra.gmra.mrb[32].mxu1 %v2528_v38  ;;  %2868 = vmatmul.mubr.bf16.vlgmr.msra.gmra.mrb[20].mxu0 %v2530_v39  ;;  %v2947_v38 = vrot.slane %v7444_v36, %v6942_v29 }
 0x8ed   : > { %3115 = vmatprep.mubr.bf16.mxu1 %v6575_v4  ;;  %5907 = vmatprep.mubr.msk.bf16.mxu0 %vm6580_vm0, %v6576_v22 }
 0x8ee   : > { %5892 = vmatpush3.bf16.msra.mxu0 %v6199_v59  ;;  %3084 = vmatpush1.bf16.msra.mxu1 %v6196_v56 }
 0x8ef   : > { %5893 = vmatprep.subr.bf16.mxu0 %v6576_v22  ;;  %3085 = vmatprep.subr.bf16.mxu1 %v6202_v60 }
 0x8f2   : > { %3086 = vmatpush1.bf16.msra.mxu1 %v6200_v61 }
 0x8f3   : > { %3087 = vmatprep.subr.bf16.mxu1 %v6206_v62 }
 0x8f6   : > { %3088 = vmatpush1.bf16.msra.mxu1 %v6204_v63 }
 0x8f7   : > { %3089 = vmatprep.subr.bf16.mxu1 %v6210_v7 }
 0x8fa   : > { %3090 = vmatpush1.bf16.msra.mxu1 %v6208_v8 }
 0x8fb   : > { %3091 = vmatprep.subr.bf16.mxu1 %v6214_v10 }
 0x8fe   : > { %3092 = vmatpush1.bf16.msra.mxu1 %v6212_v13 }
 0x8ff   : > { %3093 = vmatprep.subr.bf16.mxu1 %v6218_v16 }
 0x902   : > { %3094 = vmatpush1.bf16.msra.mxu1 %v6216_v2 }
 0x903   : > { %3095 = vmatprep.subr.bf16.mxu1 %v6222_v18 }
 0x906   : > { %3096 = vmatpush1.bf16.msra.mxu1 %v6220_v17 }
 0x907   : > { %3097 = vmatprep.subr.bf16.mxu1 %v6226_v20 }
 0x90a   : > { %3098 = vmatpush1.bf16.msra.mxu1 %v6224_v21 }
 0x90b   : > { %5911 = vmatprep.subr.bf16.mxu1 %v6576_v22 }
 0x9bf   : > { %v5697_v40 = vpop.f32.mrb[32].mxu1  ;;  %v5719_v41 = vpop.f32.mrb[20].mxu0 }
 0x9c0   : > { %v5698_v43 = vpop.f32.mrb[33].mxu1  ;;  %v5720_v44 = vpop.f32.mrb[21].mxu0 }
 0x9c1   : > { %v5699_v45 = vadd.f32 %v5698_v43, %v5697_v40  ;;  %v5721_v47 = vadd.f32 %v5720_v44, %v5719_v41  ;;  %v5700_v48 = vpop.f32.mrb[34].mxu1  ;;  %v5722_v49 = vpop.f32.mrb[22].mxu0  ;;  %v2943_v43 = vrot.slane %v7444_v36, %v6951_v31 }
 0x9c2   : > { %v5701_v50 = vpop.f32.mrb[35].mxu1  ;;  %v5723_v52 = vpop.f32.mrb[23].mxu0 }
 0x9c3   : > { %v2830_v53 = vadd.f32 %v5699_v45, %v5358_v42 }
 0x9c5   : > { %v2870_v54 = vadd.f32 %v5721_v47, %v2830_v53 }
 0x9c7   : > { %v2875_v55 = vadd.f32 %v2870_v54, %v7241_v37  ;;  %v6203_v37 = vld [vmem:[%s7828_s2 + $0xe0] ss:$12 sps:$4 sm:$0xff]  }
 0x9c8   : > { %5894 = vmatpush3.bf16.msra.mxu0 %v6203_v37 }
 0x9c9   : > { %2878 = vadd.xlane.f32.xlu0 %v2875_v55  ;;  %5895 = vmatprep.subr.bf16.mxu0 %v6576_v22 }
 0x9cc   : > { %5896 = vmatpush3.bf16.msra.mxu0 %v6207_v6 }
 0x9cd   : > { %5897 = vmatprep.subr.bf16.mxu0 %v6576_v22 }
 0x9d0   : > { %5898 = vmatpush3.bf16.msra.mxu0 %v6211_v9 }
 0x9d1   : > { %5899 = vmatprep.subr.bf16.mxu0 %v6576_v22 }
 0x9d4   : > { %5900 = vmatpush3.bf16.msra.mxu0 %v6215_v15 }
 0x9d5   : > { %5901 = vmatprep.subr.bf16.mxu0 %v6576_v22 }
 0x9d8   : > { %5902 = vmatpush3.bf16.msra.mxu0 %v6219_v3 }
 0x9d9   : > { %5903 = vmatprep.subr.bf16.mxu0 %v6576_v22 }
 0x9dc   : > { %5904 = vmatpush3.bf16.msra.mxu0 %v6223_v19 }
 0x9dd   : > { %5905 = vmatprep.subr.bf16.mxu0 %v6576_v22 }
 0x9e0   : > { %5906 = vmatpush3.bf16.msra.mxu0 %v6227_v23 }
 0x9e1   : > { %5935 = vmatprep.subr.bf16.mxu0 %v6576_v22 }
 0xa56   : > { %v2879_v0 = vpop.xlane.xlu0 %2878 }
 0xa57   : > { %v2880_v1 = vmul.f32 0.0078125, %v2879_v0 }
 0xa59   : > { %v2881_v30 = vsub.f32 %v2875_v55, %v2880_v1 }
 0xa5b   : > { %v2882_v5 = vmul.f32 %v2881_v30, %v2881_v30 }
 0xa5d   : > { %2883 = vadd.xlane.f32.xlu0 %v2882_v5 }
 0xaea   : > { %v2884_v24 = vpop.xlane.xlu0 %2883 }
 0xaeb   : > { %v2885_v25 = vmul.f32 0.0078125, %v2884_v24 }
 0xaed   : > { %v2886_v26 = vadd.f32 1e-05, %v2885_v25 }
 0xaef   : > { %6334 = vrsqrt.f32 %v2886_v26 }
 0xaf9   : > { %v6335_v28 = vpop.eup %6334 }
 0xafa   : > { %v2888_v32 = vmul.f32 %v6335_v28, %v2881_v30 }
 0xafc   : > { %v2895_v33 = vmul.f32 %v5391_v12, %v2888_v32 }
 0xafe   : > { %v7433_v34 = vadd.f32 %v5392_v14, %v2895_v33 }
 0xb00   : > { %v2903_v35 = vpack.c.bf16 %v7433_v34, %v7433_v34 }
 0xb02   : > { %3116 = vmatmul.mubr.bf16.vlgmr.msra.gmra.mrb[36].mxu1 %v2903_v35  ;;  %5908 = vmatmul.mubr.bf16.vlgmr.msra.gmra.mrb[24].mxu0 %v2903_v35 }
 0xb03   : > { %5913 = vmatprep.mubr.msk.bf16.mxu1 %vm6580_vm0, %v6576_v22  ;;  %5937 = vmatprep.mubr.msk.bf16.mxu0 %vm6580_vm0, %v6576_v22 }
 0xbd5   : > { %v3117_v39 = vpop.f32.mrb[36].mxu1  ;;  %v7448_v40 = vpop.f32.mrb[24].mxu0 }
 0xbd6   : > { %v3119_v41 = vpop.f32.mrb[37].mxu1  ;;  %v5909_v42 = vpop.f32.mrb[25].mxu0  ;;  %v3118_v50 = vadd.f32 %v3117_v39, %v2943_v43 }
 0xbd7   : > { %v3120_v44 = vadd.f32 %v3119_v41, %v2947_v38  ;;  %v3121_v45 = vpop.f32.mrb[38].mxu1  ;;  %v3161_v47 = vpop.f32.mrb[26].mxu0 }
 0xbd8   : > { %v3122_v48 = vpop.f32.mrb[39].mxu1  ;;  %v5910_v49 = vpop.f32.mrb[27].mxu0 }
 0xbd9   : > { %3318 = vrot.lane.b32.xlu0 %v3120_v44, %s6579_s8  ;;  %3315 = vrot.lane.b32.xlu1 %v3120_v44, %s6578_s21 }
 0xbdd   : > { %3321 = vrot.lane.b32.xlu1 %v3120_v44, %s6577_s20  ;;  %3168 = vrot.lane.b32.xlu0 %v3118_v50, %s6579_s8 }
 0xbe1   : > { %3165 = vrot.lane.b32.xlu1 %v3118_v50, %s6578_s21 }
 0xbe5   : > { %3171 = vrot.lane.b32.xlu1 %v3118_v50, %s6577_s20 }
 0xc4b   : > { %v3319_v52 = vpop.permute.xlu0 %3318  ;;  %v3316_v53 = vpop.permute.xlu1 %3315 }
 0xc4c   : > { %v3324_v54 = vcombine.low %v3120_v44, %v3319_v52  ;;  %v3325_v55 = vcombine.high %v3120_v44, %v3319_v52 }
 0xc4e   : > { %v3332_v60 = vrot.slane %v3324_v54, %v6982_v51  ;;  %v3339_v37 = vrot.slane %v3325_v55, %v6982_v51 }
 0xc4f   : > { %v3322_v56 = vpop.permute.xlu1 %3321  ;;  %v3169_v6 = vpop.permute.xlu0 %3168 }
 0xc50   : > { %v3340_v57 = vcombine.low %v3316_v53, %v3322_v56  ;;  %v3341_v59 = vcombine.high %v3316_v53, %v3322_v56  ;;  %v3174_v13 = vcombine.low %v3118_v50, %v3169_v6  ;;  %v3175_v15 = vcombine.high %v3118_v50, %v3169_v6 }
 0xc52   : > { %v3348_v61 = vrot.slane %v3340_v57, %v6982_v51  ;;  %v3355_v62 = vrot.slane %v3341_v59, %v6982_v51  ;;  %v3182_v26 = vrot.slane %v3174_v13, %v6982_v51  ;;  %v3189_v28 = vrot.slane %v3175_v15, %v6982_v51 }
 0xc53   : > { %v3166_v63 = vpop.permute.xlu1 %3165 }
 0xc54   : > { %v3356_v0 = vcombine.low %v3332_v60, %v3348_v61  ;;  %v3357_v1 = vcombine.high %v3332_v60, %v3348_v61  ;;  %v3372_v30 = vcombine.low %v3339_v37, %v3355_v62  ;;  %v3373_v5 = vcombine.high %v3339_v37, %v3355_v62 }
 0xc56   : > { %v3364_v7 = vrot.slane %v3356_v0, %v6985_v58  ;;  %v3371_v8 = vrot.slane %v3357_v1, %v6985_v58  ;;  %v3380_v9 = vrot.slane %v3372_v30, %v6985_v58  ;;  %v3387_v10 = vrot.slane %v3373_v5, %v6985_v58 }
 0xc57   : > { %v3172_v16 = vpop.permute.xlu1 %3171 }
 0xc58   : > { %v3392_v2 = vcombine.low %v3364_v7, %v3371_v8  ;;  %v5452_v3 = vcombine.high %v3364_v7, %v3371_v8  ;;  %v3408_v17 = vcombine.low %v3380_v9, %v3387_v10  ;;  %v5453_v18 = vcombine.high %v3380_v9, %v3387_v10 }
 0xc59   : > { %v3190_v19 = vcombine.low %v3166_v63, %v3172_v16  ;;  %v3191_v20 = vcombine.high %v3166_v63, %v3172_v16 }
 0xc5a   : > { %v3399_v21 = vrot.slane %v3392_v2, %v6982_v51  ;;  %v3407_v23 = vrot.slane %v5452_v3, %v6982_v51  ;;  %v3415_v24 = vrot.slane %v3408_v17, %v6982_v51  ;;  %v3423_v25 = vrot.slane %v5453_v18, %v6982_v51 }
 0xc5b   : > { %v3198_v12 = vrot.slane %v3190_v19, %v6982_v51  ;;  %v3205_v32 = vrot.slane %v3191_v20, %v6982_v51 }
 0xc5c   : > { %v3424_v14 = vcombine.low %v3399_v21, %v3407_v23  ;;  %v3440_v33 = vcombine.low %v3415_v24, %v3423_v25  ;;  %v3425_v63 = vcombine.high %v3399_v21, %v3407_v23  ;;  %v3441_v5 = vcombine.high %v3415_v24, %v3423_v25 }
 0xc5d   : > { %v3206_v35 = vcombine.low %v3182_v26, %v3198_v12  ;;  %v3207_v38 = vcombine.high %v3182_v26, %v3198_v12  ;;  %v3222_v39 = vcombine.low %v3189_v28, %v3205_v32  ;;  %v3223_v41 = vcombine.high %v3189_v28, %v3205_v32 }
 0xc5e   : > { %v3432_v42 = vrot.slane %v3424_v14, %v6985_v58  ;;  %v3448_v43 = vrot.slane %v3440_v33, %v6985_v58  ;;  %v3439_v9 = vrot.slane %v3425_v63, %v6985_v58  ;;  %v3455_v10 = vrot.slane %v3441_v5, %v6985_v58 }
 0xc5f   : > { %v3214_v44 = vrot.slane %v3206_v35, %v6985_v58  ;;  %v3221_v45 = vrot.slane %v3207_v38, %v6985_v58  ;;  %v3230_v47 = vrot.slane %v3222_v39, %v6985_v58  ;;  %v3237_v48 = vrot.slane %v3223_v41, %v6985_v58 }
 0xc60   : > { %v3456_v49 = vcombine.low %v3432_v42, %v3448_v43  ;;  %v3457_v30 = vcombine.high %v3432_v42, %v3448_v43  ;;  %v3458_v17 = vcombine.low %v3439_v9, %v3455_v10  ;;  %v3459_v26 = vcombine.high %v3439_v9, %v3455_v10 }
 0xc61   : > { %v3242_v50 = vcombine.low %v3214_v44, %v3221_v45  ;;  %v5450_v52 = vcombine.high %v3214_v44, %v3221_v45  ;;  %v3258_v53 = vcombine.low %v3230_v47, %v3237_v48  ;;  %v5451_v54 = vcombine.high %v3230_v47, %v3237_v48 }
 0xc62   : > { %v3610_v55 = vpack.c.bf16 %v3456_v49, %v3456_v49  ;;  %v3611_v8 = vpack.c.bf16 %v3457_v30, %v3457_v30  ;;  %v3612_v21 = vpack.c.bf16 %v3458_v17, %v3458_v17  ;;  %v3613_v12 = vpack.c.bf16 %v3459_v26, %v3459_v26 }
 0xc63   : > { %v3249_v56 = vrot.slane %v3242_v50, %v6982_v51  ;;  %v3257_v57 = vrot.slane %v5450_v52, %v6982_v51  ;;  %v3265_v59 = vrot.slane %v3258_v53, %v6982_v51  ;;  %v3273_v60 = vrot.slane %v5451_v54, %v6982_v51 }
 0xc64   : > { %v3618_v37 = vsel %vm1510_vm1, %v3610_v55, 0  ;;  %v3664_v3 = vsel %vm1510_vm1, %v3611_v8, 0  ;;  %v3710_v25 = vsel %vm1510_vm1, %v3612_v21, 0  ;;  %v3756_v33 = vsel %vm1510_vm1, %v3613_v12, 0 }
 0xc65   : > { %v3274_v61 = vcombine.low %v3249_v56, %v3257_v57  ;;  %v3290_v62 = vcombine.low %v3265_v59, %v3273_v60  ;;  %5912 = vmatpush3.bf16.xpose.msra.mxu1 %v3618_v37  ;;  %v3275_v13 = vcombine.high %v3249_v56, %v3257_v57  ;;  %v3291_v15 = vcombine.high %v3265_v59, %v3273_v60 }
 0xc66   : > { %5917 = vmatprep.subr.bf16.mxu1 %v6576_v22  ;;  %v2951_v57 = vrot.slane %v7444_v36, %v7042_v46 }
 0xc67   : > { %v3282_v0 = vrot.slane %v3274_v61, %v6985_v58  ;;  %v3298_v1 = vrot.slane %v3290_v62, %v6985_v58  ;;  %v3289_v19 = vrot.slane %v3275_v13, %v6985_v58  ;;  %v3305_v20 = vrot.slane %v3291_v15, %v6985_v58 }
 0xc68   : > { %v3159_v60 = vadd.f32 %v7448_v40, %v2951_v57 }
 0xc69   : > { %v3306_v6 = vcombine.low %v3282_v0, %v3298_v1  ;;  %v3307_v2 = vcombine.high %v3282_v0, %v3298_v1  ;;  %v3308_v24 = vcombine.low %v3289_v19, %v3305_v20  ;;  %v3309_v14 = vcombine.high %v3289_v19, %v3305_v20 }
 0xc6b   : > { %v3310_v7 = vmul.f32 0.17677669, %v3306_v6  ;;  %v3311_v18 = vmul.f32 0.17677669, %v3307_v2  ;;  %v3312_v28 = vmul.f32 0.17677669, %v3308_v24 }
 0xc6c   : > { %v3313_v35 = vmul.f32 0.17677669, %v3309_v14 }
 0xc6d   : > { %v3606_v16 = vpack.c.bf16 %v3310_v7, %v3310_v7  ;;  %v3607_v23 = vpack.c.bf16 %v3311_v18, %v3311_v18  ;;  %v3608_v32 = vpack.c.bf16 %v3312_v28, %v3312_v28 }
 0xc6e   : > { %v3609_v38 = vpack.c.bf16 %v3313_v35, %v3313_v35 }
 0xc6f   : > { %5914 = vmatmul.mubr.msk.bf16.vlgmr.msra.gmra.mrb[40].mxu1 %vm1510_vm1, %v3606_v16 }
 0xc70   : > { %5918 = vmatpush3.bf16.xpose.msra.mxu1 %v3664_v3  ;;  %5919 = vmatprep.mubr.msk.bf16.mxu1 %vm6580_vm0, %v6576_v22 }
 0xc71   : > { %5923 = vmatprep.subr.bf16.mxu1 %v6576_v22 }
 0xc77   : > { %5920 = vmatmul.mubr.msk.bf16.vlgmr.msra.gmra.mrb[44].mxu1 %vm1510_vm1, %v3607_v23 }
 0xc78   : > { %5924 = vmatpush3.bf16.xpose.msra.mxu1 %v3710_v25  ;;  %5925 = vmatprep.mubr.msk.bf16.mxu1 %vm6580_vm0, %v6576_v22 }
 0xc79   : > { %5929 = vmatprep.subr.bf16.mxu1 %v6576_v22 }
 0xc7f   : > { %5926 = vmatmul.mubr.msk.bf16.vlgmr.msra.gmra.mrb[48].mxu1 %vm1510_vm1, %v3608_v32 }
 0xc80   : > { %5930 = vmatpush3.bf16.xpose.msra.mxu1 %v3756_v33  ;;  %5931 = vmatprep.mubr.msk.bf16.mxu1 %vm6580_vm0, %v6576_v22 }
 0xc81   : > { %5941 = vmatprep.subr.bf16.mxu1 %v6576_v22 }
 0xc87   : > { %5932 = vmatmul.mubr.msk.bf16.vlgmr.msra.gmra.mrb[52].mxu1 %vm1510_vm1, %v3609_v38 }
 0xc88   : > { %5943 = vmatprep.mubr.msk.bf16.mxu1 %vm6580_vm0, %v6576_v22 }
 0xd42   : > { %v3654_v39 = vpop.f32.mrb[40].mxu1 }
 0xd43   : > { %v5915_v41 = vpop.f32.mrb[41].mxu1  ;;  %v3798_v42 = vsel %vm1695_vm2, %v3654_v39, -inf }
 0xd44   : > { %3799 = vmax.xlane.f32.xlu0 %v3798_v42  ;;  %v3657_v43 = vpop.f32.mrb[42].mxu1 }
 0xd45   : > { %v5916_v44 = vpop.f32.mrb[43].mxu1 }
 0xd4a   : > { %v3700_v45 = vpop.f32.mrb[44].mxu1 }
 0xd4b   : > { %v5921_v47 = vpop.f32.mrb[45].mxu1  ;;  %v3801_v48 = vsel %vm1695_vm2, %v3700_v45, -inf }
 0xd4c   : > { %3802 = vmax.xlane.f32.xlu1 %v3801_v48  ;;  %v3703_v49 = vpop.f32.mrb[46].mxu1 }
 0xd4d   : > { %v5922_v50 = vpop.f32.mrb[47].mxu1 }
 0xd52   : > { %v3746_v52 = vpop.f32.mrb[48].mxu1 }
 0xd53   : > { %v5927_v53 = vpop.f32.mrb[49].mxu1  ;;  %v3804_v54 = vsel %vm1695_vm2, %v3746_v52, -inf }
 0xd54   : > { %3805 = vmax.xlane.f32.xlu0 %v3804_v54  ;;  %v3749_v55 = vpop.f32.mrb[50].mxu1 }
 0xd55   : > { %v5928_v56 = vpop.f32.mrb[51].mxu1 }
 0xd5a   : > { %v3792_v59 = vpop.f32.mrb[52].mxu1 }
 0xd5b   : > { %v5933_v37 = vpop.f32.mrb[53].mxu1  ;;  %v3807_v61 = vsel %vm1695_vm2, %v3792_v59, -inf }
 0xd5c   : > { %3808 = vmax.xlane.f32.xlu0 %v3807_v61  ;;  %v3795_v62 = vpop.f32.mrb[54].mxu1 }
 0xd5d   : > { %3461 = vrot.lane.b32.xlu1 %v3159_v60, %s6578_s21  ;;  %v5934_v63 = vpop.f32.mrb[55].mxu1 }
 0xdd1   : > { %v3800_v0 = vpop.xlane.xlu0 %3799 }
 0xdd2   : > { %v3810_v1 = vsub.f32 %v3654_v39, %v3800_v0 }
 0xdd4   : > { %v3814_v30 = vmul.f32 1.442695, %v3810_v1 }
 0xdd6   : > { %6336 = vpow2.f32 %v3814_v30 }
 0xdd9   : > { %v3803_v5 = vpop.xlane.xlu1 %3802 }
 0xdda   : > { %v3811_v6 = vsub.f32 %v3700_v45, %v3803_v5 }
 0xddc   : > { %v3816_v7 = vmul.f32 1.442695, %v3811_v6 }
 0xddd   : > { %v3462_v21 = vpop.permute.xlu1 %3461 }
 0xdde   : > { %6338 = vpow2.f32 %v3816_v7 }
 0xde0   : > { %v7518_v36 = vpop.eup %6336 }
 0xde1   : > { %v3822_v40 = vsel %vm1695_vm2, %v7518_v36, 0.0  ;;  %v3806_v10 = vpop.xlane.xlu0 %3805 }
 0xde2   : > { %3823 = vadd.xlane.f32.xlu1 %v3822_v40  ;;  %v3812_v13 = vsub.f32 %v3746_v52, %v3806_v10 }
 0xde4   : > { %v3818_v15 = vmul.f32 1.442695, %v3812_v13 }
 0xde6   : > { %6340 = vpow2.f32 %v3818_v15 }
 0xde8   : > { %v7522_v8 = vpop.eup %6338 }
 0xde9   : > { %v3825_v9 = vsel %vm1695_vm2, %v7522_v8, 0.0  ;;  %v3809_v16 = vpop.xlane.xlu0 %3808 }
 0xdea   : > { %3826 = vadd.xlane.f32.xlu0 %v3825_v9  ;;  %v3813_v2 = vsub.f32 %v3792_v59, %v3809_v16 }
 0xdec   : > { %v3820_v3 = vmul.f32 1.442695, %v3813_v2 }
 0xdee   : > { %6342 = vpow2.f32 %v3820_v3 }
 0xdf0   : > { %v7528_v17 = vpop.eup %6340 }
 0xdf1   : > { %v3828_v18 = vsel %vm1695_vm2, %v7528_v17, 0.0 }
 0xdf3   : > { %3467 = vrot.lane.b32.xlu1 %v3159_v60, %s6577_s20 }
 0xdf8   : > { %v7532_v19 = vpop.eup %6342 }
 0xdf9   : > { %v3831_v20 = vsel %vm1695_vm2, %v7532_v19, 0.0 }
 0xe00   : > { %3464 = vrot.lane.b32.xlu0 %v3159_v60, %s6579_s8 }
 0xe17   : > { %3829 = vadd.xlane.f32.xlu1 %v3828_v18 }
 0xe1f   : > { %3832 = vadd.xlane.f32.xlu0 %v3831_v20 }
 0xe6f   : > { %v3824_v23 = vpop.xlane.xlu1 %3823 }
 0xe70   : > { %6344 = vrcp.f32 %v3824_v23 }
 0xe73   : > { %v3468_v24 = vpop.permute.xlu1 %3467 }
 0xe74   : > { %v3486_v26 = vcombine.low %v3462_v21, %v3468_v24  ;;  %v3487_v28 = vcombine.high %v3462_v21, %v3468_v24 }
 0xe76   : > { %v3494_v33 = vrot.slane %v3486_v26, %v6982_v51  ;;  %v3501_v35 = vrot.slane %v3487_v28, %v6982_v51 }
 0xe77   : > { %v3827_v25 = vpop.xlane.xlu0 %3826 }
 0xe78   : > { %6346 = vrcp.f32 %v3827_v25 }
 0xe7a   : > { %v6345_v63 = vpop.eup %6344 }
 0xe7b   : > { %v3465_v12 = vpop.permute.xlu0 %3464  ;;  %v3838_v13 = vmul.f32 %v6345_v63, %v7518_v36 }
 0xe7c   : > { %v3470_v32 = vcombine.low %v3159_v60, %v3465_v12  ;;  %v3471_v14 = vcombine.high %v3159_v60, %v3465_v12 }
 0xe7d   : > { %v3842_v23 = vpack.c.bf16 %v3838_v13, %v3838_v13  ;;  %v6234_v13 = vld [vmem:[#allocation4 + $0x70] sm:$0xff]  }
 0xe7e   : > { %v3478_v38 = vrot.slane %v3470_v32, %v6982_v51  ;;  %v3485_v39 = vrot.slane %v3471_v14, %v6982_v51 }
 0xe80   : > { %v3502_v41 = vcombine.low %v3478_v38, %v3494_v33  ;;  %v3503_v42 = vcombine.high %v3478_v38, %v3494_v33  ;;  %v3518_v43 = vcombine.low %v3485_v39, %v3501_v35  ;;  %v3519_v44 = vcombine.high %v3485_v39, %v3501_v35  ;;  %v6228_v38 = vld [vmem:[#allocation4 + $0x40] sm:$0xff]   ;;  %v6229_v39 = vld [vmem:[#allocation4 + $0x48] sm:$0xff]  }
 0xe82   : > { %v3510_v45 = vrot.slane %v3502_v41, %v6985_v58  ;;  %v3517_v47 = vrot.slane %v3503_v42, %v6985_v58  ;;  %v3526_v48 = vrot.slane %v3518_v43, %v6985_v58  ;;  %v3533_v49 = vrot.slane %v3519_v44, %v6985_v58  ;;  %v6347_v6 = vpop.eup %6346  ;;  %v6231_v41 = vld [vmem:[#allocation4 + $0x58] sm:$0xff]   ;;  %v6233_v42 = vld [vmem:[#allocation4 + $0x68] sm:$0xff]  }
 0xe83   : > { %v3839_v15 = vmul.f32 %v6347_v6, %v7522_v8 }
 0xe84   : > { %v3538_v50 = vcombine.low %v3510_v45, %v3517_v47  ;;  %v5454_v52 = vcombine.high %v3510_v45, %v3517_v47  ;;  %v3554_v53 = vcombine.low %v3526_v48, %v3533_v49  ;;  %v5455_v54 = vcombine.high %v3526_v48, %v3533_v49 }
 0xe85   : > { %v3843_v24 = vpack.c.bf16 %v3839_v15, %v3839_v15 }
 0xe86   : > { %v3545_v55 = vrot.slane %v3538_v50, %v6982_v51  ;;  %v3553_v56 = vrot.slane %v5454_v52, %v6982_v51  ;;  %v3561_v57 = vrot.slane %v3554_v53, %v6982_v51  ;;  %v3569_v59 = vrot.slane %v5455_v54, %v6982_v51 }
 0xe88   : > { %v3570_v60 = vcombine.low %v3545_v55, %v3553_v56  ;;  %v3586_v37 = vcombine.low %v3561_v57, %v3569_v59  ;;  %v3571_v61 = vcombine.high %v3545_v55, %v3553_v56  ;;  %v3587_v62 = vcombine.high %v3561_v57, %v3569_v59 }
 0xe8a   : > { %v3578_v0 = vrot.slane %v3570_v60, %v6985_v58  ;;  %v3594_v1 = vrot.slane %v3586_v37, %v6985_v58  ;;  %v3585_v30 = vrot.slane %v3571_v61, %v6985_v58  ;;  %v3601_v5 = vrot.slane %v3587_v62, %v6985_v58 }
 0xe8c   : > { %v3602_v7 = vcombine.low %v3578_v0, %v3594_v1  ;;  %v3603_v40 = vcombine.high %v3578_v0, %v3594_v1  ;;  %v3604_v9 = vcombine.low %v3585_v30, %v3601_v5  ;;  %v3605_v10 = vcombine.high %v3585_v30, %v3601_v5 }
 0xe8e   : > { %v3846_v16 = vpack.c.bf16 %v3602_v7, %v3602_v7  ;;  %v3847_v2 = vpack.c.bf16 %v3603_v40, %v3603_v40  ;;  %v3848_v20 = vpack.c.bf16 %v3604_v9, %v3604_v9  ;;  %v3849_v21 = vpack.c.bf16 %v3605_v10, %v3605_v10 }
 0xe90   : > { %v3854_v3 = vsel %vm1751_vm3, %v3846_v16, 0  ;;  %v3900_v18 = vsel %vm1751_vm3, %v3847_v2, 0  ;;  %v3946_v36 = vsel %vm1751_vm3, %v3848_v20, 0  ;;  %v3992_v8 = vsel %vm1751_vm3, %v3849_v21, 0 }
 0xe91   : > { %5936 = vmatpush3.bf16.msra.mxu0 %v3854_v3  ;;  %5942 = vmatpush3.bf16.msra.mxu1 %v3900_v18 }
 0xe92   : > { %5947 = vmatprep.subr.bf16.mxu0 %v6576_v22  ;;  %5953 = vmatprep.subr.bf16.mxu1 %v6576_v22 }
 0xe94   : > { %5938 = vmatmul.mubr.msk.bf16.vlgmr.msra.gmra.mrb[28].mxu0 %vm1695_vm2, %v3842_v23  ;;  %5944 = vmatmul.mubr.msk.bf16.vlgmr.msra.gmra.mrb[56].mxu1 %vm1695_vm2, %v3843_v24  ;;  %v6235_v24 = vld [vmem:[#allocation4 + $0x78] sm:$0xff]  }
 0xe95   : > { %5948 = vmatpush3.bf16.msra.mxu0 %v3946_v36  ;;  %5954 = vmatpush3.bf16.msra.mxu1 %v3992_v8 }
 0xe96   : > { %5949 = vmatprep.mubr.msk.bf16.mxu0 %vm6580_vm0, %v6576_v22  ;;  %5955 = vmatprep.mubr.msk.bf16.mxu1 %vm6580_vm0, %v6576_v22 }
 0xe97   : > { %5959 = vmatprep.subr.bf16.mxu0 %v6576_v22 }
 0xea4   : > { %v3830_v25 = vpop.xlane.xlu1 %3829 }
 0xea5   : > { %6348 = vrcp.f32 %v3830_v25 }
 0xeac   : > { %v3833_v26 = vpop.xlane.xlu0 %3832 }
 0xead   : > { %6350 = vrcp.f32 %v3833_v26 }
 0xeaf   : > { %v6349_v28 = vpop.eup %6348 }
 0xeb0   : > { %v3840_v12 = vmul.f32 %v6349_v28, %v7528_v17  ;;  %v6230_v17 = vld [vmem:[#allocation4 + $0x50] sm:$0xff]  }
 0xeb2   : > { %v3844_v32 = vpack.c.bf16 %v3840_v12, %v3840_v12 }
 0xeb4   : > { %5950 = vmatmul.mubr.msk.bf16.vlgmr.msra.gmra.mrb[32].mxu0 %vm1695_vm2, %v3844_v32 }
 0xeb5   : > { %5975 = vmatprep.mubr.msk.bf16.mxu0 %vm6580_vm0, %v6576_v22  ;;  %5960 = vmatpush3.bf16.msra.mxu0 %v6228_v38 }
 0xeb6   : > { %5961 = vmatprep.subr.bf16.mxu0 %v6576_v22 }
 0xeb7   : > { %v6351_v14 = vpop.eup %6350 }
 0xeb8   : > { %v3841_v33 = vmul.f32 %v6351_v14, %v7532_v19  ;;  %v6232_v19 = vld [vmem:[#allocation4 + $0x60] sm:$0xff]  }
 0xeb9   : > { %5962 = vmatpush3.bf16.msra.mxu0 %v6229_v39 }
 0xeba   : > { %v3845_v35 = vpack.c.bf16 %v3841_v33, %v3841_v33  ;;  %5963 = vmatprep.subr.bf16.mxu0 %v6576_v22 }
 0xebc   : > { %5956 = vmatmul.mubr.msk.bf16.vlgmr.msra.gmra.mrb[60].mxu1 %vm1695_vm2, %v3845_v35 }
 0xebd   : > { %4578 = vmatprep.mubr.bf16.mxu1 %v6575_v4  ;;  %5964 = vmatpush3.bf16.msra.mxu0 %v6230_v17 }
 0xebe   : > { %5965 = vmatprep.subr.bf16.mxu0 %v6576_v22 }
 0xec1   : > { %5966 = vmatpush3.bf16.msra.mxu0 %v6231_v41 }
 0xec2   : > { %5967 = vmatprep.subr.bf16.mxu0 %v6576_v22 }
 0xec5   : > { %5968 = vmatpush3.bf16.msra.mxu0 %v6232_v19 }
 0xec6   : > { %5969 = vmatprep.subr.bf16.mxu0 %v6576_v22 }
 0xec9   : > { %5970 = vmatpush3.bf16.msra.mxu0 %v6233_v42 }
 0xeca   : > { %5971 = vmatprep.subr.bf16.mxu0 %v6576_v22 }
 0xecd   : > { %5972 = vmatpush3.bf16.msra.mxu0 %v6234_v13  ;;  %v6257_v13 = vld [vmem:[%s7864_s22 + $0x168] ss:$16 sps:$4 sm:$0xff]  }
 0xece   : > { %5973 = vmatprep.subr.bf16.mxu0 %v6576_v22 }
 0xed1   : > { %5974 = vmatpush3.bf16.msra.mxu0 %v6235_v24  ;;  %v6274_v24 = vld [vmem:[%s7864_s22 + $0x1c4] ss:$16 sps:$4 sm:$0xff]  }
 0xf67   : > { %v3890_v43 = vpop.f32.mrb[28].mxu0  ;;  %v3936_v44 = vpop.f32.mrb[56].mxu1 }
 0xf68   : > { %v5939_v45 = vpop.f32.mrb[29].mxu0  ;;  %v5945_v47 = vpop.f32.mrb[57].mxu1 }
 0xf69   : > { %v3893_v48 = vpop.f32.mrb[30].mxu0  ;;  %v3939_v49 = vpop.f32.mrb[58].mxu1 }
 0xf6a   : > { %v5940_v50 = vpop.f32.mrb[31].mxu0  ;;  %v5946_v52 = vpop.f32.mrb[59].mxu1  ;;  %v5467_v48 = vld [vmem:[%s7831_s5 + $0x1] ss:$0 sm:$0xff] }
 0xf87   : > { %v3982_v53 = vpop.f32.mrb[32].mxu0 }
 0xf88   : > { %v4034_v54 = vcombine.low %v3890_v43, %v3982_v53  ;;  %v4035_v55 = vcombine.high %v3890_v43, %v3982_v53  ;;  %v5951_v56 = vpop.f32.mrb[33].mxu0 }
 0xf89   : > { %v3985_v57 = vpop.f32.mrb[34].mxu0  ;;  %v6236_v56 = vld [vmem:[%s7864_s22 + $0x100] ss:$16 sps:$4 sm:$0xff]  }
 0xf8a   : > { %v5952_v59 = vpop.f32.mrb[35].mxu0  ;;  %v4042_v0 = vrot.slane %v4034_v54, %v6982_v51  ;;  %v4049_v1 = vrot.slane %v4035_v55, %v6982_v51  ;;  %v6239_v57 = vld [vmem:[%s7864_s22 + $0x108] ss:$16 sps:$4 sm:$0xff]  }
 0xf8b   : > { %v6241_v59 = vld [vmem:[%s7864_s22 + $0x10c] ss:$16 sps:$4 sm:$0xff]  }
 0xf8c   : > { %4587 = vmatprep.subr.bf16.mxu0 %v6241_v59  ;;  %v6300_v59 = vld [vmem:[%s7865_s26 + $0x160] sm:$0xff]  }
 0xf8f   : > { %v4028_v60 = vpop.f32.mrb[60].mxu1 }
 0xf90   : > { %v4050_v37 = vcombine.low %v3936_v44, %v4028_v60  ;;  %v4051_v61 = vcombine.high %v3936_v44, %v4028_v60  ;;  %v5957_v62 = vpop.f32.mrb[61].mxu1  ;;  %v6247_v60 = vld [vmem:[%s7864_s22 + $0x12c] ss:$16 sps:$4 sm:$0xff]  }
 0xf91   : > { %v4031_v63 = vpop.f32.mrb[62].mxu1  ;;  %v6250_v62 = vld [vmem:[%s7864_s22 + $0x144] ss:$16 sps:$4 sm:$0xff]  }
 0xf92   : > { %v4058_v30 = vrot.slane %v4050_v37, %v6982_v51  ;;  %v4065_v5 = vrot.slane %v4051_v61, %v6982_v51  ;;  %v5958_v6 = vpop.f32.mrb[63].mxu1  ;;  %v6242_v37 = vld [vmem:[%s7864_s22 + $0x120] ss:$16 sps:$4 sm:$0xff]   ;;  %v6245_v61 = vld [vmem:[%s7864_s22 + $0x128] ss:$16 sps:$4 sm:$0xff]  }
 0xf93   : > { %v6253_v63 = vld [vmem:[%s7864_s22 + $0x14c] ss:$16 sps:$4 sm:$0xff]  }
 0xf94   : > { %v4066_v7 = vcombine.low %v4042_v0, %v4058_v30  ;;  %v4067_v40 = vcombine.high %v4042_v0, %v4058_v30  ;;  %v4082_v9 = vcombine.low %v4049_v1, %v4065_v5  ;;  %v4083_v10 = vcombine.high %v4049_v1, %v4065_v5  ;;  %v6248_v0 = vld [vmem:[%s7864_s22 + $0x140] ss:$16 sps:$4 sm:$0xff]   ;;  %v6251_v1 = vld [vmem:[%s7864_s22 + $0x148] ss:$16 sps:$4 sm:$0xff]  }
 0xf96   : > { %v4074_v15 = vrot.slane %v4066_v7, %v6985_v58  ;;  %v4081_v16 = vrot.slane %v4067_v40, %v6985_v58  ;;  %v4090_v2 = vrot.slane %v4082_v9, %v6985_v58  ;;  %v4097_v3 = vrot.slane %v4083_v10, %v6985_v58  ;;  %v6256_v40 = vld [vmem:[%s7864_s22 + $0x164] ss:$16 sps:$4 sm:$0xff]   ;;  %v6259_v9 = vld [vmem:[%s7864_s22 + $0x16c] ss:$16 sps:$4 sm:$0xff]   ;;  %v6254_v10 = vld [vmem:[%s7864_s22 + $0x160] ss:$16 sps:$4 sm:$0xff]  }
 0xf98   : > { %v4102_v18 = vcombine.low %v4074_v15, %v4081_v16  ;;  %v5464_v20 = vcombine.high %v4074_v15, %v4081_v16  ;;  %v4118_v21 = vcombine.low %v4090_v2, %v4097_v3  ;;  %v5465_v23 = vcombine.high %v4090_v2, %v4097_v3  ;;  %v6262_v15 = vld [vmem:[%s7864_s22 + $0x184] ss:$16 sps:$4 sm:$0xff]   ;;  %v6265_v16 = vld [vmem:[%s7864_s22 + $0x18c] ss:$16 sps:$4 sm:$0xff]   ;;  %v6260_v2 = vld [vmem:[%s7864_s22 + $0x180] ss:$16 sps:$4 sm:$0xff]  }
 0xf99   : > { %v6263_v3 = vld [vmem:[%s7864_s22 + $0x188] ss:$16 sps:$4 sm:$0xff]  }
 0xf9a   : > { %v4109_v36 = vrot.slane %v4102_v18, %v6982_v51  ;;  %v4117_v8 = vrot.slane %v5464_v20, %v6982_v51  ;;  %v4125_v25 = vrot.slane %v4118_v21, %v6982_v51  ;;  %v4133_v26 = vrot.slane %v5465_v23, %v6982_v51  ;;  %v6268_v18 = vld [vmem:[%s7864_s22 + $0x1a4] ss:$16 sps:$4 sm:$0xff]   ;;  %v6271_v20 = vld [vmem:[%s7864_s22 + $0x1ac] ss:$16 sps:$4 sm:$0xff]   ;;  %v6266_v21 = vld [vmem:[%s7864_s22 + $0x1a0] ss:$16 sps:$4 sm:$0xff]  }
 0xf9b   : > { %v6269_v23 = vld [vmem:[%s7864_s22 + $0x1a8] ss:$16 sps:$4 sm:$0xff]  }
 0xf9c   : > { %v4135_v28 = vcombine.high %v4109_v36, %v4117_v8  ;;  %v4151_v12 = vcombine.high %v4125_v25, %v4133_v26  ;;  %v4134_v32 = vcombine.low %v4109_v36, %v4117_v8  ;;  %v4150_v14 = vcombine.low %v4125_v25, %v4133_v26  ;;  %v6277_v36 = vld [vmem:[%s7864_s22 + $0x1cc] ss:$16 sps:$4 sm:$0xff]   ;;  %v6272_v8 = vld [vmem:[%s7864_s22 + $0x1c0] ss:$16 sps:$4 sm:$0xff]   ;;  %v6275_v25 = vld [vmem:[%s7864_s22 + $0x1c8] ss:$16 sps:$4 sm:$0xff]  }
 0xf9d   : > { %v6280_v26 = vld [vmem:[%s7864_s22 + $0x1e4] ss:$16 sps:$4 sm:$0xff]  }
 0xf9e   : > { %v4149_v22 = vrot.slane %v4135_v28, %v6985_v58  ;;  %v4165_v33 = vrot.slane %v4151_v12, %v6985_v58  ;;  %v4142_v35 = vrot.slane %v4134_v32, %v6985_v58  ;;  %v4158_v38 = vrot.slane %v4150_v14, %v6985_v58  ;;  %v6283_v28 = vld [vmem:[%s7864_s22 + $0x1ec] ss:$16 sps:$4 sm:$0xff]   ;;  %v6278_v12 = vld [vmem:[%s7864_s22 + $0x1e0] ss:$16 sps:$4 sm:$0xff]   ;;  %v6281_v32 = vld [vmem:[%s7864_s22 + $0x1e8] ss:$16 sps:$4 sm:$0xff]  }
 0xf9f   : > { %v6284_v14 = vld [vmem:[%s7865_s26 + $0x140] sm:$0xff]  }
 0xfa0   : > { %v4168_v39 = vcombine.low %v4149_v22, %v4165_v33  ;;  %v4167_v17 = vcombine.high %v4142_v35, %v4158_v38  ;;  %v4169_v41 = vcombine.high %v4149_v22, %v4165_v33  ;;  %v4166_v19 = vcombine.low %v4142_v35, %v4158_v38  ;;  %v6285_v22 = vld [vmem:[%s7865_s26 + $0x1c0] sm:$0xff]  }
 0xfa2   : > { %4175 = vrot.lane.b32.xlu1 %v4168_v39, %s6579_s8  ;;  %4171 = vrot.lane.b32.xlu0 %v4167_v17, %s6577_s20  ;;  %v5476_v17 = vld [vmem:[#allocation6 + $0x1] ss:$0 sm:$0xff] }
 0xfa6   : > { %4179 = vrot.lane.b32.xlu1 %v4169_v41, %s6578_s21 }
0x1014   : > { %v4176_v51 = vpop.permute.xlu1 %4175  ;;  %v4172_v42 = vpop.permute.xlu0 %4171 }
0x1015   : > { %v4182_v43 = vsel %vm1510_vm1, %v4166_v19, %v4172_v42  ;;  %v5477_v19 = vld [vmem:[#allocation7 + $0x1] ss:$0 sm:$0xff] }
0x1016   : > { %v4183_v45 = vsel %vm2082_vm4, %v4182_v43, %v4176_v51  ;;  %v6286_v43 = vld [vmem:[%s7865_s26 + $0x100] sm:$0xff]  }
0x1018   : > { %v4180_v44 = vpop.permute.xlu1 %4179 }
0x1019   : > { %v4184_v47 = vsel %vm2084_vm5, %v4183_v45, %v4180_v44  ;;  %v6287_v44 = vld [vmem:[%s7865_s26 + $0x180] sm:$0xff]  }
0x101a   : > { %v4185_v58 = vpack.c.bf16 %v4184_v47, %v4184_v47  ;;  %v6288_v47 = vld [vmem:[%s7865_s26 + $0x148] sm:$0xff]  }
0x101c   : > { %5976 = vmatmul.mubr.bf16.vlgmr.msra.gmra.mrb[36].mxu0 %v4185_v58  ;;  %v6289_v58 = vld [vmem:[%s7865_s26 + $0x1c8] sm:$0xff]  }
0x101d   : > { %4619 = vmatprep.mubr.bf16.mxu0 %v6575_v4  ;;  %v6238_v4 = vld [vmem:[%s7864_s22 + $0x104] ss:$16 sps:$4 sm:$0xff]   ;;  %4588 = vmatpush1.bf16.msra.mxu0 %v6239_v57  ;;  %v6299_v57 = vld [vmem:[%s7865_s26 + $0x198] sm:$0xff]  }
0x101e   : > { %4546 = vmatprep.subr.bf16.mxu1 %v6238_v4  ;;  %4589 = vmatprep.subr.bf16.mxu0 %v6247_v60  ;;  %v6298_v4 = vld [vmem:[%s7865_s26 + $0x118] sm:$0xff]   ;;  %v6302_v60 = vld [vmem:[%s7865_s26 + $0x120] sm:$0xff]  }
0x101f   : > { %4547 = vmatpush1.bf16.msra.mxu1 %v6236_v56  ;;  %v6297_v56 = vld [vmem:[%s7865_s26 + $0x1d8] sm:$0xff]  }
0x1021   : > { %4590 = vmatpush1.bf16.msra.mxu0 %v6245_v61  ;;  %v6304_v61 = vld [vmem:[%s7865_s26 + $0x168] sm:$0xff]  }
0x1022   : > { %4591 = vmatprep.subr.bf16.mxu0 %v6253_v63  ;;  %v6306_v63 = vld [vmem:[%s7865_s26 + $0x128] sm:$0xff]  }
0x1025   : > { %4592 = vmatpush1.bf16.msra.mxu0 %v6251_v1  ;;  %v6308_v1 = vld [vmem:[%s7865_s26 + $0x170] sm:$0xff]  }
0x1026   : > { %4593 = vmatprep.subr.bf16.mxu0 %v6259_v9  ;;  %v6314_v9 = vld [vmem:[%s7865_s26 + $0x138] sm:$0xff]  }
0x1029   : > { %4594 = vmatpush1.bf16.msra.mxu0 %v6257_v13  ;;  %v5510_v13 = vld [vmem:[%s7866_s6 + $0x4] sm:$0xf] }
0x102a   : > { %4595 = vmatprep.subr.bf16.mxu0 %v6265_v16  ;;  %v4377_v16 = vrot.slane %v5510_v13, %v7042_v46 }
0x102d   : > { %4596 = vmatpush1.bf16.msra.mxu0 %v6263_v3  ;;  %v4381_v3 = vrot.slane %v5510_v13, %v2276_v11 }
0x102e   : > { %4597 = vmatprep.subr.bf16.mxu0 %v6271_v20 }
0x1031   : > { %4598 = vmatpush1.bf16.msra.mxu0 %v6269_v23 }
0x1032   : > { %4599 = vmatprep.subr.bf16.mxu0 %v6277_v36 }
0x1035   : > { %4600 = vmatpush1.bf16.msra.mxu0 %v6275_v25 }
0x1036   : > { %4601 = vmatprep.subr.bf16.mxu0 %v6283_v28 }
0x1039   : > { %4602 = vmatpush1.bf16.msra.mxu0 %v6281_v32 }
0x103a   : > { %5781 = vmatprep.subr.bf16.mxu0 %v6285_v22 }
0x10ef   : > { %v4293_v49 = vpop.f32.mrb[36].mxu0 }
0x10f0   : > { %v4294_v50 = vadd.f32 %v5467_v48, %v4293_v49  ;;  %v5977_v52 = vpop.f32.mrb[37].mxu0  ;;  %v6290_v48 = vld [vmem:[%s7865_s26 + $0x108] sm:$0xff]  }
0x10f1   : > { %v4296_v53 = vpop.f32.mrb[38].mxu0  ;;  %v6291_v49 = vld [vmem:[%s7865_s26 + $0x188] sm:$0xff]   ;;  %v6293_v52 = vld [vmem:[%s7865_s26 + $0x1d0] sm:$0xff]  }
0x10f2   : > { %v5978_v54 = vpop.f32.mrb[39].mxu0  ;;  %v4299_v55 = vadd.f32 %v4294_v50, %v7433_v34  ;;  %v6244_v34 = vld [vmem:[%s7864_s22 + $0x124] ss:$16 sps:$4 sm:$0xff]  }
0x10f3   : > { %4548 = vmatprep.subr.bf16.mxu1 %v6244_v34  ;;  %v6292_v50 = vld [vmem:[%s7865_s26 + $0x150] sm:$0xff]   ;;  %v6301_v34 = vld [vmem:[%s7865_s26 + $0x1e0] sm:$0xff]  }
0x10f4   : > { %4304 = vadd.xlane.f32.xlu0 %v4299_v55  ;;  %4549 = vmatpush1.bf16.msra.mxu1 %v6242_v37  ;;  %v6294_v53 = vld [vmem:[%s7865_s26 + $0x110] sm:$0xff]   ;;  %v6303_v37 = vld [vmem:[%s7865_s26 + $0x1a0] sm:$0xff]  }
0x10f5   : > { %4550 = vmatprep.subr.bf16.mxu1 %v6250_v62  ;;  %v6295_v54 = vld [vmem:[%s7865_s26 + $0x190] sm:$0xff]   ;;  %v6305_v62 = vld [vmem:[%s7865_s26 + $0x1e8] sm:$0xff]  }
0x10f8   : > { %4551 = vmatpush1.bf16.msra.mxu1 %v6248_v0  ;;  %v6307_v0 = vld [vmem:[%s7865_s26 + $0x1a8] sm:$0xff]  }
0x10f9   : > { %4552 = vmatprep.subr.bf16.mxu1 %v6256_v40  ;;  %v6313_v40 = vld [vmem:[%s7865_s26 + $0x1f8] sm:$0xff]  }
0x10fc   : > { %4553 = vmatpush1.bf16.msra.mxu1 %v6254_v10  ;;  %v6315_v10 = vld [vmem:[%s7865_s26 + $0x1b8] sm:$0xff]  }
0x10fd   : > { %4554 = vmatprep.subr.bf16.mxu1 %v6262_v15  ;;  %v4369_v15 = vrot.slane %v5510_v13, %v6951_v31 }
0x1100   : > { %4555 = vmatpush1.bf16.msra.mxu1 %v6260_v2  ;;  %v4373_v2 = vrot.slane %v5510_v13, %v6942_v29 }
0x1101   : > { %4556 = vmatprep.subr.bf16.mxu1 %v6268_v18 }
0x1104   : > { %4557 = vmatpush1.bf16.msra.mxu1 %v6266_v21 }
0x1105   : > { %4558 = vmatprep.subr.bf16.mxu1 %v6274_v24 }
0x1108   : > { %4559 = vmatpush1.bf16.msra.mxu1 %v6272_v8 }
0x1109   : > { %4560 = vmatprep.subr.bf16.mxu1 %v6280_v26 }
0x110c   : > { %4561 = vmatpush1.bf16.msra.mxu1 %v6278_v12 }
0x110d   : > { %5759 = vmatprep.subr.bf16.mxu1 %v6284_v14 }
0x1181   : > { %v4305_v30 = vpop.xlane.xlu0 %4304 }
0x1182   : > { %v4306_v5 = vmul.f32 0.0078125, %v4305_v30  ;;  %v6309_v30 = vld [vmem:[%s7865_s26 + $0x1f0] sm:$0xff]  }
0x1184   : > { %v4307_v6 = vsub.f32 %v4299_v55, %v4306_v5  ;;  %v6296_v55 = vld [vmem:[%s7865_s26 + $0x158] sm:$0xff]   ;;  %v6310_v5 = vld [vmem:[%s7865_s26 + $0x130] sm:$0xff]  }
0x1186   : > { %v4308_v7 = vmul.f32 %v4307_v6, %v4307_v6 }
0x1188   : > { %4309 = vadd.xlane.f32.xlu1 %v4308_v7  ;;  %v6312_v7 = vld [vmem:[%s7865_s26 + $0x178] sm:$0xff]  }
0x1215   : > { %v4310_v33 = vpop.xlane.xlu1 %4309 }
0x1216   : > { %v4311_v35 = vmul.f32 0.0078125, %v4310_v33 }
0x1218   : > { %v4312_v38 = vadd.f32 1e-05, %v4311_v35 }
0x121a   : > { %6352 = vrsqrt.f32 %v4312_v38 }
0x1224   : > { %v6353_v39 = vpop.eup %6352 }
0x1225   : > { %v4314_v41 = vmul.f32 %v6353_v39, %v4307_v6  ;;  %v6311_v6 = vld [vmem:[%s7865_s26 + $0x1b0] sm:$0xff]   ;;  %v5608_v39 = vld [vmem:[%s7867_s23 + $0x1] ss:$0 sm:$0xff] }
0x1227   : > { %v4321_v51 = vmul.f32 %v5476_v17, %v4314_v41 }
0x1229   : > { %v7710_v42 = vadd.f32 %v5477_v19, %v4321_v51 }
0x122b   : > { %v4329_v45 = vpack.c.bf16 %v7710_v42, %v7710_v42 }
0x122d   : > { %4579 = vmatmul.mubr.bf16.vlgmr.msra.gmra.mrb[64].mxu1 %v4329_v45  ;;  %4620 = vmatmul.mubr.bf16.vlgmr.msra.gmra.mrb[40].mxu0 %v4329_v45 }
0x122e   : > { %5760 = vmatpush3.bf16.msra.mxu1 %v6286_v43  ;;  %5782 = vmatpush3.bf16.msra.mxu0 %v6287_v44 }
0x122f   : > { %5761 = vmatprep.subr.bf16.mxu1 %v6288_v47  ;;  %5783 = vmatprep.subr.bf16.mxu0 %v6289_v58 }
0x1232   : > { %5762 = vmatpush3.bf16.msra.mxu1 %v6290_v48  ;;  %5784 = vmatpush3.bf16.msra.mxu0 %v6291_v49 }
0x1233   : > { %5763 = vmatprep.subr.bf16.mxu1 %v6292_v50  ;;  %5785 = vmatprep.subr.bf16.mxu0 %v6293_v52 }
0x1236   : > { %5764 = vmatpush3.bf16.msra.mxu1 %v6294_v53  ;;  %5786 = vmatpush3.bf16.msra.mxu0 %v6295_v54 }
0x1237   : > { %5765 = vmatprep.subr.bf16.mxu1 %v6296_v55  ;;  %5787 = vmatprep.subr.bf16.mxu0 %v6297_v56 }
0x123a   : > { %5766 = vmatpush3.bf16.msra.mxu1 %v6298_v4  ;;  %5788 = vmatpush3.bf16.msra.mxu0 %v6299_v57 }
0x123b   : > { %5767 = vmatprep.subr.bf16.mxu1 %v6300_v59  ;;  %5789 = vmatprep.subr.bf16.mxu0 %v6301_v34  ;;  %v5641_v59 = vld [vmem:[#allocation9 + $0x1] ss:$0 sm:$0xff] }
0x123e   : > { %5768 = vmatpush3.bf16.msra.mxu1 %v6302_v60  ;;  %5790 = vmatpush3.bf16.msra.mxu0 %v6303_v37  ;;  %v5642_v60 = vld [vmem:[#allocation10 + $0x1] ss:$0 sm:$0xff] }
0x123f   : > { %5769 = vmatprep.subr.bf16.mxu1 %v6304_v61  ;;  %5791 = vmatprep.subr.bf16.mxu0 %v6305_v62 }
0x1242   : > { %5770 = vmatpush3.bf16.msra.mxu1 %v6306_v63  ;;  %5792 = vmatpush3.bf16.msra.mxu0 %v6307_v0 }
0x1243   : > { %5771 = vmatprep.subr.bf16.mxu1 %v6308_v1  ;;  %5793 = vmatprep.subr.bf16.mxu0 %v6309_v30 }
0x1246   : > { %5772 = vmatpush3.bf16.msra.mxu1 %v6310_v5  ;;  %5794 = vmatpush3.bf16.msra.mxu0 %v6311_v6 }
0x1247   : > { %5773 = vmatprep.subr.bf16.mxu1 %v6312_v7  ;;  %5795 = vmatprep.subr.bf16.mxu0 %v6313_v40 }
0x124a   : > { %5774 = vmatpush3.bf16.msra.mxu1 %v6314_v9  ;;  %5796 = vmatpush3.bf16.msra.mxu0 %v6315_v10 }
0x1300   : > { %v4580_v18 = vpop.f32.mrb[64].mxu1  ;;  %v4621_v20 = vpop.f32.mrb[40].mxu0 }
0x1301   : > { %v4581_v21 = vadd.f32 %v4580_v18, %v4369_v15  ;;  %v4622_v23 = vadd.f32 %v4621_v20, %v4377_v16  ;;  %v4582_v24 = vpop.f32.mrb[65].mxu1  ;;  %v4623_v36 = vpop.f32.mrb[41].mxu0 }
0x1302   : > { %v4583_v8 = vadd.f32 %v4582_v24, %v4373_v2  ;;  %v4624_v25 = vadd.f32 %v4623_v36, %v4381_v3  ;;  %v4584_v26 = vpop.f32.mrb[66].mxu1  ;;  %v4625_v28 = vpop.f32.mrb[42].mxu0 }
0x1303   : > { %v4628_v12 = vmax.f32 %v4581_v21, 0.0  ;;  %v4630_v32 = vmax.f32 %v4622_v23, 0.0  ;;  %v4585_v31 = vpop.f32.mrb[67].mxu1  ;;  %v4626_v14 = vpop.f32.mrb[43].mxu0 }
0x1304   : > { %v4629_v46 = vmax.f32 %v4583_v8, 0.0  ;;  %v4631_v22 = vmax.f32 %v4624_v25, 0.0 }
0x1305   : > { %v4632_v27 = vpack.c.bf16 %v4628_v12, %v4628_v12  ;;  %v4634_v11 = vpack.c.bf16 %v4630_v32, %v4630_v32 }
0x1306   : > { %v4633_v29 = vpack.c.bf16 %v4629_v46, %v4629_v46  ;;  %v4635_v33 = vpack.c.bf16 %v4631_v22, %v4631_v22 }
0x1308   : > { %4933 = vmatprep.mubr.bf16.mxu1 %v4633_v29  ;;  %4973 = vmatprep.mubr.bf16.mxu0 %v4635_v33 }
0x1309   : > { %4934 = vmatmul.mubr.bf16.vlgmr.msra.gmra.mrb[68].mxu1 %v4632_v27  ;;  %4974 = vmatmul.mubr.bf16.vlgmr.msra.gmra.mrb[44].mxu0 %v4634_v11 }
0x13dc   : > { %v5775_v35 = vpop.f32.mrb[68].mxu1  ;;  %v5797_v38 = vpop.f32.mrb[44].mxu0 }
0x13dd   : > { %v5776_v17 = vpop.f32.mrb[69].mxu1  ;;  %v5798_v41 = vpop.f32.mrb[45].mxu0 }
0x13de   : > { %v5777_v19 = vadd.f32 %v5776_v17, %v5775_v35  ;;  %v5799_v51 = vadd.f32 %v5798_v41, %v5797_v38  ;;  %v5778_v43 = vpop.f32.mrb[70].mxu1  ;;  %v5800_v44 = vpop.f32.mrb[46].mxu0 }
0x13df   : > { %v5779_v45 = vpop.f32.mrb[71].mxu1  ;;  %v5801_v47 = vpop.f32.mrb[47].mxu0 }
0x13e0   : > { %v4936_v58 = vadd.f32 %v5777_v19, %v5608_v39 }
0x13e2   : > { %v4976_v48 = vadd.f32 %v5799_v51, %v4936_v58 }
0x13e4   : > { %v4981_v49 = vadd.f32 %v4976_v48, %v7710_v42 }
0x13e6   : > { %4986 = vadd.xlane.f32.xlu0 %v4981_v49 }
0x1473   : > { %v4987_v50 = vpop.xlane.xlu0 %4986 }
0x1474   : > { %v4988_v52 = vmul.f32 0.0078125, %v4987_v50 }
0x1476   : > { %v4989_v53 = vsub.f32 %v4981_v49, %v4988_v52 }
0x1478   : > { %v4990_v54 = vmul.f32 %v4989_v53, %v4989_v53 }
0x147a   : > { %4991 = vadd.xlane.f32.xlu0 %v4990_v54 }
0x1507   : > { %v4992_v55 = vpop.xlane.xlu0 %4991 }
0x1508   : > { %v4993_v56 = vmul.f32 0.0078125, %v4992_v55 }
0x150a   : > { %v4994_v4 = vadd.f32 1e-05, %v4993_v56 }
0x150c   : > { %6354 = vrsqrt.f32 %v4994_v4 }
0x1516   : > { %v6355_v57 = vpop.eup %6354 }
0x1517   : > { %v4996_v34 = vmul.f32 %v6355_v57, %v4989_v53 }
0x1519   : > { %v5003_v37 = vmul.f32 %v5641_v59, %v4996_v34 }
0x151b   : > { %v5010_v61 = vadd.f32 %v5642_v60, %v5003_v37 }
0x151d   : > { %5011 = vst [vmem:[%s6860_s1] sm:$0xff] %v5010_v61 }
0x151e PF: > { %s7868_s15 = sld [smem:[#allocation16_spill]]  ;;  %s7869_s29 = smov %s6559_s30 }
0x151f   : > { %s7870_s30 = smov %s7872_s25 }
0x1524   : > { %s28_s15 = sadd.s32 1, %s7868_s15  }
0x1525   : > { %p25_p3 = scmp.ge.s32.totalorder %s28_s15, 4  }
0x1527   :  { %27 = sbr.rel (!%p25_p3) target bundleno = 12 (0xc), region = 177 }
0x152e   :  { %5031 = vsyncpa [#allocation3], 1 }
0x152f   :  { %5033 = vsyncpa [#allocation3 + $0x1], 1 }
0x1530   :  { %5034 = vsyncpa [#allocation5], 1 }
0x1531   :  { %5035 = vsyncpa [#allocation8], 1 }
0x1532   :  { %5036 = vsyncpa [#allocation11], 1 }

</bundles_post_ra>
